<compile_context>
chip_gen: v5e
topology: v5e:2x2
jax: 0.10.0
libtpu: 0.0.40
codegen_flags: <defaults>
</compile_context>

<pallas_src>
import math
import functools

import jax
import jax.numpy as jnp
import numpy as np
from jax.experimental import pallas as pl
from jax.experimental.pallas import tpu as pltpu

D = 8
W = 256
INPUT_CH = 3
INPUT_CH_VIEWS = 3
OUTPUT_CH = 4
OUT_PAD = 128          # lane-dense output width; sliced back to OUTPUT_CH in wrapper
SKIPS = (4,)


def nerf_kernel(pts_ref,
                w0_ref, b0_ref,
                w1_ref, b1_ref,
                w2_ref, b2_ref,
                w3_ref, b3_ref,
                w4_ref, b4_ref,
                w5h_ref, w5p_ref, b5_ref,
                w6_ref, b6_ref,
                w7_ref, b7_ref,
                wout_ref, bout_ref,
                out_ref):
    # bf16 activations into the MXU, f32 accumulation; bias add + ReLU in f32 on VPU.
    pts = pts_ref[...].astype(jnp.bfloat16)          # (TILE_N, 3)

    def linear_relu(h_bf16, w_ref, b_ref):
        y = jnp.dot(h_bf16, w_ref[...], preferred_element_type=jnp.float32) + b_ref[...]
        return jnp.maximum(y, 0.0).astype(jnp.bfloat16)

    # layers 0 .. 4
    h = linear_relu(pts, w0_ref, b0_ref)
    h = linear_relu(h, w1_ref, b1_ref)
    h = linear_relu(h, w2_ref, b2_ref)
    h = linear_relu(h, w3_ref, b3_ref)
    h = linear_relu(h, w4_ref, b4_ref)

    # skip connection at i=4: concat([pts, h]) @ W5 == pts @ W5[:3] + h @ W5[3:]
    y5 = (jnp.dot(pts, w5p_ref[...], preferred_element_type=jnp.float32)
          + jnp.dot(h, w5h_ref[...], preferred_element_type=jnp.float32)
          + b5_ref[...])
    h = jnp.maximum(y5, 0.0).astype(jnp.bfloat16)

    # layers 6, 7
    h = linear_relu(h, w6_ref, b6_ref)
    h = linear_relu(h, w7_ref, b7_ref)

    # output_linear (no activation) — lane-dense padded to OUT_PAD columns
    out = jnp.dot(h, wout_ref[...], preferred_element_type=jnp.float32) + bout_ref[...]
    out_ref[...] = out.astype(out_ref.dtype)


def make_params(key):
    """Deterministic init mimicking PyTorch's Linear default (uniform ±1/sqrt(fan_in)).
    Weights stored (in_features, out_features), f32 master copies."""
    dims = [(INPUT_CH, W)]
    for i in range(D - 1):           # i = 0..6 -> pts_linears[i+1]
        in_dim = W + INPUT_CH if i in SKIPS else W
        dims.append((in_dim, W))
    dims.append((W, OUTPUT_CH))      # output_linear

    params = []
    for (fan_in, fan_out) in dims:
        key, kw, kb = jax.random.split(key, 3)
        bound = 1.0 / math.sqrt(fan_in)
        w = jax.random.uniform(kw, (fan_in, fan_out), jnp.float32, -bound, bound)
        b = jax.random.uniform(kb, (1, fan_out), jnp.float32, -bound, bound)
        params.append((w, b))
    return params


def nerf_reference(x, params, matmul_dtype=jnp.float32):
    """Pure-JAX reference of the PyTorch forward (use_viewdirs=False).

    matmul_dtype=jnp.bfloat16 reproduces the kernel's precision (bf16 matmul
    inputs, f32 accumulation) for a matched-precision comparison."""
    pts = x[:, :INPUT_CH].astype(matmul_dtype)
    h = pts
    for i in range(D):
        w, b = params[i]
        y = jnp.dot(h, w.astype(matmul_dtype), preferred_element_type=jnp.float32) + b
        h = jnp.maximum(y, 0.0).astype(matmul_dtype)
        if i in SKIPS:
            h = jnp.concatenate([pts, h], axis=-1)
    wout, bout = params[D]
    return jnp.dot(h, wout.astype(matmul_dtype), preferred_element_type=jnp.float32) + bout


@functools.partial(jax.jit, static_argnames=("tile_n",))
def nerf_pallas(x, params, tile_n=512):
    n = x.shape[0]
    n_tiles = pl.cdiv(n, tile_n)
    n_pad = n_tiles * tile_n

    # Only the first INPUT_CH columns (pts) are used when use_viewdirs=False;
    # drop the view-direction columns in the wrapper (halves input DMA).
    pts = x[:, :INPUT_CH].astype(jnp.float32)
    if n_pad != n:
        pts = jnp.pad(pts, ((0, n_pad - n), (0, 0)))

    # Flatten params into kernel argument order (bf16 weights, f32 biases);
    # split the skip layer's weight so the kernel avoids an in-kernel concat.
    flat, specs = [], []

    def add_full(arr):
        flat.append(arr)
        # Constant index_map -> weights are only DMA'd once, then stay resident.
        specs.append(pl.BlockSpec(arr.shape, lambda i: (0, 0)))

    for i in range(D):
        w, b = params[i]
        w = w.astype(jnp.bfloat16)
        b = b.astype(jnp.float32)
        if i == SKIPS[0] + 1:
            add_full(w[INPUT_CH:, :])   # w5h: rows acting on h
            add_full(w[:INPUT_CH, :])   # w5p: rows acting on pts
            add_full(b)
        else:
            add_full(w)
            add_full(b)

    wout, bout = params[D]
    # Lane-dense output: pad (W, 4)/(1, 4) -> (W, 128)/(1, 128) with zeros.
    wout = jnp.pad(wout.astype(jnp.bfloat16), ((0, 0), (0, OUT_PAD - OUTPUT_CH)))
    bout = jnp.pad(bout.astype(jnp.float32), ((0, 0), (0, OUT_PAD - OUTPUT_CH)))
    add_full(wout)
    add_full(bout)

    x_spec = pl.BlockSpec((tile_n, INPUT_CH), lambda i: (i, 0))
    out_spec = pl.BlockSpec((tile_n, OUT_PAD), lambda i: (i, 0))

    # TODO(synk): on v7x the seven WxW hidden weights could be quantized to fp8
    # for another ~2x MXU throughput; kept bf16 here for portability (v5e/v6e
    # have no fp8 MXU path).
    out = pl.pallas_call(
        nerf_kernel,
        out_shape=jax.ShapeDtypeStruct((n_pad, OUT_PAD), jnp.float32),
        grid=(n_tiles,),
        in_specs=[x_spec] + specs,
        out_specs=out_spec,
        compiler_params=pltpu.CompilerParams(
            dimension_semantics=("parallel",)),
    )(pts, *flat)

    return out[:n, :OUTPUT_CH]


if __name__ == "__main__":
    key = jax.random.PRNGKey(0)
    key, kx, kp = jax.random.split(key, 3)

    # Small batch, non-multiple of tile_n to exercise the cdiv + padding path.
    N = 1000
    x = jax.random.normal(kx, (N, INPUT_CH + INPUT_CH_VIEWS), dtype=jnp.float32)

    params = make_params(kp)

    out = nerf_pallas(x, params, tile_n=256)
    out = jax.block_until_ready(out)

    # Matched-precision (bf16 matmuls, f32 accumulation) pure-JAX reference.
    ref = nerf_reference(x, params, matmul_dtype=jnp.bfloat16)
    np.testing.assert_allclose(np.asarray(out), np.asarray(ref), rtol=2e-2, atol=2e-2)

    # TODO(synk): use_viewdirs=True branch (feature/alpha/rgb heads) not exercised
    # by the default constructor; only the output_linear path is implemented.
    print("KERNEL_OK")
</pallas_src>

<mosaic_0001>
module attributes {stable_mosaic.version = 11 : i64} {
  func.func @nerf_kernel(%arg0: i32, %arg1: memref<256x3xf32, #tpu.memory_space<vmem>>, %arg2: memref<3x256xbf16, #tpu.memory_space<vmem>>, %arg3: memref<1x256xf32, #tpu.memory_space<vmem>>, %arg4: memref<256x256xbf16, #tpu.memory_space<vmem>>, %arg5: memref<1x256xf32, #tpu.memory_space<vmem>>, %arg6: memref<256x256xbf16, #tpu.memory_space<vmem>>, %arg7: memref<1x256xf32, #tpu.memory_space<vmem>>, %arg8: memref<256x256xbf16, #tpu.memory_space<vmem>>, %arg9: memref<1x256xf32, #tpu.memory_space<vmem>>, %arg10: memref<256x256xbf16, #tpu.memory_space<vmem>>, %arg11: memref<1x256xf32, #tpu.memory_space<vmem>>, %arg12: memref<256x256xbf16, #tpu.memory_space<vmem>>, %arg13: memref<3x256xbf16, #tpu.memory_space<vmem>>, %arg14: memref<1x256xf32, #tpu.memory_space<vmem>>, %arg15: memref<256x256xbf16, #tpu.memory_space<vmem>>, %arg16: memref<1x256xf32, #tpu.memory_space<vmem>>, %arg17: memref<256x256xbf16, #tpu.memory_space<vmem>>, %arg18: memref<1x256xf32, #tpu.memory_space<vmem>>, %arg19: memref<256x128xbf16, #tpu.memory_space<vmem>>, %arg20: memref<1x128xf32, #tpu.memory_space<vmem>>, %arg21: memref<256x128xf32, #tpu.memory_space<vmem>>) attributes {dimension_semantics = [#tpu.dimension_semantics<parallel>], iteration_bounds = array<i64: 4>, scalar_prefetch = 0 : i64, scratch_operands = 0 : i64, tpu.core_type = #tpu.core_type<tc>, window_params = [{transform_indices = @transform_0, window_bounds = array<i64: 256, 3>}, {pipeline_mode = #tpu.pipeline_mode<synchronous>, transform_indices = @transform_1, window_bounds = array<i64: 3, 256>}, {pipeline_mode = #tpu.pipeline_mode<synchronous>, transform_indices = @transform_2, window_bounds = array<i64: 1, 256>}, {pipeline_mode = #tpu.pipeline_mode<synchronous>, transform_indices = @transform_3, window_bounds = array<i64: 256, 256>}, {pipeline_mode = #tpu.pipeline_mode<synchronous>, transform_indices = @transform_4, window_bounds = array<i64: 1, 256>}, {pipeline_mode = #tpu.pipeline_mode<synchronous>, transform_indices = @transform_5, window_bounds = array<i64: 256, 256>}, {pipeline_mode = #tpu.pipeline_mode<synchronous>, transform_indices = @transform_6, window_bounds = array<i64: 1, 256>}, {pipeline_mode = #tpu.pipeline_mode<synchronous>, transform_indices = @transform_7, window_bounds = array<i64: 256, 256>}, {pipeline_mode = #tpu.pipeline_mode<synchronous>, transform_indices = @transform_8, window_bounds = array<i64: 1, 256>}, {pipeline_mode = #tpu.pipeline_mode<synchronous>, transform_indices = @transform_9, window_bounds = array<i64: 256, 256>}, {pipeline_mode = #tpu.pipeline_mode<synchronous>, transform_indices = @transform_10, window_bounds = array<i64: 1, 256>}, {pipeline_mode = #tpu.pipeline_mode<synchronous>, transform_indices = @transform_11, window_bounds = array<i64: 256, 256>}, {pipeline_mode = #tpu.pipeline_mode<synchronous>, transform_indices = @transform_12, window_bounds = array<i64: 3, 256>}, {pipeline_mode = #tpu.pipeline_mode<synchronous>, transform_indices = @transform_13, window_bounds = array<i64: 1, 256>}, {pipeline_mode = #tpu.pipeline_mode<synchronous>, transform_indices = @transform_14, window_bounds = array<i64: 256, 256>}, {pipeline_mode = #tpu.pipeline_mode<synchronous>, transform_indices = @transform_15, window_bounds = array<i64: 1, 256>}, {pipeline_mode = #tpu.pipeline_mode<synchronous>, transform_indices = @transform_16, window_bounds = array<i64: 256, 256>}, {pipeline_mode = #tpu.pipeline_mode<synchronous>, transform_indices = @transform_17, window_bounds = array<i64: 1, 256>}, {pipeline_mode = #tpu.pipeline_mode<synchronous>, transform_indices = @transform_18, window_bounds = array<i64: 256, 128>}, {pipeline_mode = #tpu.pipeline_mode<synchronous>, transform_indices = @transform_19, window_bounds = array<i64: 1, 128>}, {transform_indices = @transform_20, window_bounds = array<i64: 256, 128>}]} {
    %c0 = arith.constant 0 : index
    %c0_0 = arith.constant 0 : index
    %0 = vector.load %arg1[%c0, %c0_0] : memref<256x3xf32, #tpu.memory_space<vmem>>, vector<256x3xf32>
    %1 = arith.truncf %0 : vector<256x3xf32> to vector<256x3xbf16>
    %c0_1 = arith.constant 0 : index
    %c0_2 = arith.constant 0 : index
    %2 = vector.load %arg2[%c0_1, %c0_2] : memref<3x256xbf16, #tpu.memory_space<vmem>>, vector<3x256xbf16>
    %cst = arith.constant dense<0.000000e+00> : vector<256x256xf32>
    %3 = tpu.matmul %1, %2, %cst {dimension_numbers = #tpu.dot_dimension_numbers<[1], [0], [0], [1], [0, 0, 1, 1], [], []>} : vector<256x3xbf16>, vector<3x256xbf16>, vector<256x256xf32> -> vector<256x256xf32>
    %c0_3 = arith.constant 0 : index
    %c0_4 = arith.constant 0 : index
    %4 = vector.load %arg3[%c0_3, %c0_4] : memref<1x256xf32, #tpu.memory_space<vmem>>, vector<1x256xf32>
    %5 = vector.broadcast %4 : vector<1x256xf32> to vector<256x256xf32>
    %6 = arith.addf %3, %5 : vector<256x256xf32>
    %cst_5 = arith.constant 0.000000e+00 : f32
    %7 = vector.broadcast %cst_5 : f32 to vector<256x256xf32>
    %8 = arith.maximumf %6, %7 : vector<256x256xf32>
    %9 = arith.truncf %8 : vector<256x256xf32> to vector<256x256xbf16>
    %c0_6 = arith.constant 0 : index
    %c0_7 = arith.constant 0 : index
    %10 = vector.load %arg4[%c0_6, %c0_7] : memref<256x256xbf16, #tpu.memory_space<vmem>>, vector<256x256xbf16>
    %cst_8 = arith.constant dense<0.000000e+00> : vector<256x256xf32>
    %11 = tpu.matmul %9, %10, %cst_8 {dimension_numbers = #tpu.dot_dimension_numbers<[1], [0], [0], [1], [0, 0, 1, 1], [], []>} : vector<256x256xbf16>, vector<256x256xbf16>, vector<256x256xf32> -> vector<256x256xf32>
    %c0_9 = arith.constant 0 : index
    %c0_10 = arith.constant 0 : index
    %12 = vector.load %arg5[%c0_9, %c0_10] : memref<1x256xf32, #tpu.memory_space<vmem>>, vector<1x256xf32>
    %13 = vector.broadcast %12 : vector<1x256xf32> to vector<256x256xf32>
    %14 = arith.addf %11, %13 : vector<256x256xf32>
    %cst_11 = arith.constant 0.000000e+00 : f32
    %15 = vector.broadcast %cst_11 : f32 to vector<256x256xf32>
    %16 = arith.maximumf %14, %15 : vector<256x256xf32>
    %17 = arith.truncf %16 : vector<256x256xf32> to vector<256x256xbf16>
    %c0_12 = arith.constant 0 : index
    %c0_13 = arith.constant 0 : index
    %18 = vector.load %arg6[%c0_12, %c0_13] : memref<256x256xbf16, #tpu.memory_space<vmem>>, vector<256x256xbf16>
    %cst_14 = arith.constant dense<0.000000e+00> : vector<256x256xf32>
    %19 = tpu.matmul %17, %18, %cst_14 {dimension_numbers = #tpu.dot_dimension_numbers<[1], [0], [0], [1], [0, 0, 1, 1], [], []>} : vector<256x256xbf16>, vector<256x256xbf16>, vector<256x256xf32> -> vector<256x256xf32>
    %c0_15 = arith.constant 0 : index
    %c0_16 = arith.constant 0 : index
    %20 = vector.load %arg7[%c0_15, %c0_16] : memref<1x256xf32, #tpu.memory_space<vmem>>, vector<1x256xf32>
    %21 = vector.broadcast %20 : vector<1x256xf32> to vector<256x256xf32>
    %22 = arith.addf %19, %21 : vector<256x256xf32>
    %cst_17 = arith.constant 0.000000e+00 : f32
    %23 = vector.broadcast %cst_17 : f32 to vector<256x256xf32>
    %24 = arith.maximumf %22, %23 : vector<256x256xf32>
    %25 = arith.truncf %24 : vector<256x256xf32> to vector<256x256xbf16>
    %c0_18 = arith.constant 0 : index
    %c0_19 = arith.constant 0 : index
    %26 = vector.load %arg8[%c0_18, %c0_19] : memref<256x256xbf16, #tpu.memory_space<vmem>>, vector<256x256xbf16>
    %cst_20 = arith.constant dense<0.000000e+00> : vector<256x256xf32>
    %27 = tpu.matmul %25, %26, %cst_20 {dimension_numbers = #tpu.dot_dimension_numbers<[1], [0], [0], [1], [0, 0, 1, 1], [], []>} : vector<256x256xbf16>, vector<256x256xbf16>, vector<256x256xf32> -> vector<256x256xf32>
    %c0_21 = arith.constant 0 : index
    %c0_22 = arith.constant 0 : index
    %28 = vector.load %arg9[%c0_21, %c0_22] : memref<1x256xf32, #tpu.memory_space<vmem>>, vector<1x256xf32>
    %29 = vector.broadcast %28 : vector<1x256xf32> to vector<256x256xf32>
    %30 = arith.addf %27, %29 : vector<256x256xf32>
    %cst_23 = arith.constant 0.000000e+00 : f32
    %31 = vector.broadcast %cst_23 : f32 to vector<256x256xf32>
    %32 = arith.maximumf %30, %31 : vector<256x256xf32>
    %33 = arith.truncf %32 : vector<256x256xf32> to vector<256x256xbf16>
    %c0_24 = arith.constant 0 : index
    %c0_25 = arith.constant 0 : index
    %34 = vector.load %arg10[%c0_24, %c0_25] : memref<256x256xbf16, #tpu.memory_space<vmem>>, vector<256x256xbf16>
    %cst_26 = arith.constant dense<0.000000e+00> : vector<256x256xf32>
    %35 = tpu.matmul %33, %34, %cst_26 {dimension_numbers = #tpu.dot_dimension_numbers<[1], [0], [0], [1], [0, 0, 1, 1], [], []>} : vector<256x256xbf16>, vector<256x256xbf16>, vector<256x256xf32> -> vector<256x256xf32>
    %c0_27 = arith.constant 0 : index
    %c0_28 = arith.constant 0 : index
    %36 = vector.load %arg11[%c0_27, %c0_28] : memref<1x256xf32, #tpu.memory_space<vmem>>, vector<1x256xf32>
    %37 = vector.broadcast %36 : vector<1x256xf32> to vector<256x256xf32>
    %38 = arith.addf %35, %37 : vector<256x256xf32>
    %cst_29 = arith.constant 0.000000e+00 : f32
    %39 = vector.broadcast %cst_29 : f32 to vector<256x256xf32>
    %40 = arith.maximumf %38, %39 : vector<256x256xf32>
    %41 = arith.truncf %40 : vector<256x256xf32> to vector<256x256xbf16>
    %c0_30 = arith.constant 0 : index
    %c0_31 = arith.constant 0 : index
    %42 = vector.load %arg13[%c0_30, %c0_31] : memref<3x256xbf16, #tpu.memory_space<vmem>>, vector<3x256xbf16>
    %cst_32 = arith.constant dense<0.000000e+00> : vector<256x256xf32>
    %43 = tpu.matmul %1, %42, %cst_32 {dimension_numbers = #tpu.dot_dimension_numbers<[1], [0], [0], [1], [0, 0, 1, 1], [], []>} : vector<256x3xbf16>, vector<3x256xbf16>, vector<256x256xf32> -> vector<256x256xf32>
    %c0_33 = arith.constant 0 : index
    %c0_34 = arith.constant 0 : index
    %44 = vector.load %arg12[%c0_33, %c0_34] : memref<256x256xbf16, #tpu.memory_space<vmem>>, vector<256x256xbf16>
    %cst_35 = arith.constant dense<0.000000e+00> : vector<256x256xf32>
    %45 = tpu.matmul %41, %44, %cst_35 {dimension_numbers = #tpu.dot_dimension_numbers<[1], [0], [0], [1], [0, 0, 1, 1], [], []>} : vector<256x256xbf16>, vector<256x256xbf16>, vector<256x256xf32> -> vector<256x256xf32>
    %46 = arith.addf %43, %45 : vector<256x256xf32>
    %c0_36 = arith.constant 0 : index
    %c0_37 = arith.constant 0 : index
    %47 = vector.load %arg14[%c0_36, %c0_37] : memref<1x256xf32, #tpu.memory_space<vmem>>, vector<1x256xf32>
    %48 = vector.broadcast %47 : vector<1x256xf32> to vector<256x256xf32>
    %49 = arith.addf %46, %48 : vector<256x256xf32>
    %cst_38 = arith.constant 0.000000e+00 : f32
    %50 = vector.broadcast %cst_38 : f32 to vector<256x256xf32>
    %51 = arith.maximumf %49, %50 : vector<256x256xf32>
    %52 = arith.truncf %51 : vector<256x256xf32> to vector<256x256xbf16>
    %c0_39 = arith.constant 0 : index
    %c0_40 = arith.constant 0 : index
    %53 = vector.load %arg15[%c0_39, %c0_40] : memref<256x256xbf16, #tpu.memory_space<vmem>>, vector<256x256xbf16>
    %cst_41 = arith.constant dense<0.000000e+00> : vector<256x256xf32>
    %54 = tpu.matmul %52, %53, %cst_41 {dimension_numbers = #tpu.dot_dimension_numbers<[1], [0], [0], [1], [0, 0, 1, 1], [], []>} : vector<256x256xbf16>, vector<256x256xbf16>, vector<256x256xf32> -> vector<256x256xf32>
    %c0_42 = arith.constant 0 : index
    %c0_43 = arith.constant 0 : index
    %55 = vector.load %arg16[%c0_42, %c0_43] : memref<1x256xf32, #tpu.memory_space<vmem>>, vector<1x256xf32>
    %56 = vector.broadcast %55 : vector<1x256xf32> to vector<256x256xf32>
    %57 = arith.addf %54, %56 : vector<256x256xf32>
    %cst_44 = arith.constant 0.000000e+00 : f32
    %58 = vector.broadcast %cst_44 : f32 to vector<256x256xf32>
    %59 = arith.maximumf %57, %58 : vector<256x256xf32>
    %60 = arith.truncf %59 : vector<256x256xf32> to vector<256x256xbf16>
    %c0_45 = arith.constant 0 : index
    %c0_46 = arith.constant 0 : index
    %61 = vector.load %arg17[%c0_45, %c0_46] : memref<256x256xbf16, #tpu.memory_space<vmem>>, vector<256x256xbf16>
    %cst_47 = arith.constant dense<0.000000e+00> : vector<256x256xf32>
    %62 = tpu.matmul %60, %61, %cst_47 {dimension_numbers = #tpu.dot_dimension_numbers<[1], [0], [0], [1], [0, 0, 1, 1], [], []>} : vector<256x256xbf16>, vector<256x256xbf16>, vector<256x256xf32> -> vector<256x256xf32>
    %c0_48 = arith.constant 0 : index
    %c0_49 = arith.constant 0 : index
    %63 = vector.load %arg18[%c0_48, %c0_49] : memref<1x256xf32, #tpu.memory_space<vmem>>, vector<1x256xf32>
    %64 = vector.broadcast %63 : vector<1x256xf32> to vector<256x256xf32>
    %65 = arith.addf %62, %64 : vector<256x256xf32>
    %cst_50 = arith.constant 0.000000e+00 : f32
    %66 = vector.broadcast %cst_50 : f32 to vector<256x256xf32>
    %67 = arith.maximumf %65, %66 : vector<256x256xf32>
    %68 = arith.truncf %67 : vector<256x256xf32> to vector<256x256xbf16>
    %c0_51 = arith.constant 0 : index
    %c0_52 = arith.constant 0 : index
    %69 = vector.load %arg19[%c0_51, %c0_52] : memref<256x128xbf16, #tpu.memory_space<vmem>>, vector<256x128xbf16>
    %cst_53 = arith.constant dense<0.000000e+00> : vector<256x128xf32>
    %70 = tpu.matmul %68, %69, %cst_53 {dimension_numbers = #tpu.dot_dimension_numbers<[1], [0], [0], [1], [0, 0, 1, 1], [], []>} : vector<256x256xbf16>, vector<256x128xbf16>, vector<256x128xf32> -> vector<256x128xf32>
    %c0_54 = arith.constant 0 : index
    %c0_55 = arith.constant 0 : index
    %71 = vector.load %arg20[%c0_54, %c0_55] : memref<1x128xf32, #tpu.memory_space<vmem>>, vector<1x128xf32>
    %72 = vector.broadcast %71 : vector<1x128xf32> to vector<256x128xf32>
    %73 = arith.addf %70, %72 : vector<256x128xf32>
    %c0_56 = arith.constant 0 : index
    %c0_57 = arith.constant 0 : index
    %74 = vector.load %arg21[%c0_56, %c0_57] : memref<256x128xf32, #tpu.memory_space<vmem>>, vector<256x128xf32>
    tpu.vector_store %arg21[%c0_56, %c0_57], %73 {strides = array<i32>} : memref<256x128xf32, #tpu.memory_space<vmem>>, vector<256x128xf32>,
    return
  }
  func.func @transform_0(%arg0: i32) -> (i32, i32) {
    %c0_i32 = arith.constant 0 : i32
    %c0_i32_0 = arith.constant 0 : i32
    return %arg0, %c0_i32 : i32, i32
  }
  func.func @transform_1(%arg0: i32) -> (i32, i32) {
    %c0_i32 = arith.constant 0 : i32
    %c0_i32_0 = arith.constant 0 : i32
    %c0_i32_1 = arith.constant 0 : i32
    return %c0_i32, %c0_i32_0 : i32, i32
  }
  func.func @transform_2(%arg0: i32) -> (i32, i32) {
    %c0_i32 = arith.constant 0 : i32
    %c0_i32_0 = arith.constant 0 : i32
    %c0_i32_1 = arith.constant 0 : i32
    return %c0_i32, %c0_i32_0 : i32, i32
  }
  func.func @transform_3(%arg0: i32) -> (i32, i32) {
    %c0_i32 = arith.constant 0 : i32
    %c0_i32_0 = arith.constant 0 : i32
    %c0_i32_1 = arith.constant 0 : i32
    return %c0_i32, %c0_i32_0 : i32, i32
  }
  func.func @transform_4(%arg0: i32) -> (i32, i32) {
    %c0_i32 = arith.constant 0 : i32
    %c0_i32_0 = arith.constant 0 : i32
    %c0_i32_1 = arith.constant 0 : i32
    return %c0_i32, %c0_i32_0 : i32, i32
  }
  func.func @transform_5(%arg0: i32) -> (i32, i32) {
    %c0_i32 = arith.constant 0 : i32
    %c0_i32_0 = arith.constant 0 : i32
    %c0_i32_1 = arith.constant 0 : i32
    return %c0_i32, %c0_i32_0 : i32, i32
  }
  func.func @transform_6(%arg0: i32) -> (i32, i32) {
    %c0_i32 = arith.constant 0 : i32
    %c0_i32_0 = arith.constant 0 : i32
    %c0_i32_1 = arith.constant 0 : i32
    return %c0_i32, %c0_i32_0 : i32, i32
  }
  func.func @transform_7(%arg0: i32) -> (i32, i32) {
    %c0_i32 = arith.constant 0 : i32
    %c0_i32_0 = arith.constant 0 : i32
    %c0_i32_1 = arith.constant 0 : i32
    return %c0_i32, %c0_i32_0 : i32, i32
  }
  func.func @transform_8(%arg0: i32) -> (i32, i32) {
    %c0_i32 = arith.constant 0 : i32
    %c0_i32_0 = arith.constant 0 : i32
    %c0_i32_1 = arith.constant 0 : i32
    return %c0_i32, %c0_i32_0 : i32, i32
  }
  func.func @transform_9(%arg0: i32) -> (i32, i32) {
    %c0_i32 = arith.constant 0 : i32
    %c0_i32_0 = arith.constant 0 : i32
    %c0_i32_1 = arith.constant 0 : i32
    return %c0_i32, %c0_i32_0 : i32, i32
  }
  func.func @transform_10(%arg0: i32) -> (i32, i32) {
    %c0_i32 = arith.constant 0 : i32
    %c0_i32_0 = arith.constant 0 : i32
    %c0_i32_1 = arith.constant 0 : i32
    return %c0_i32, %c0_i32_0 : i32, i32
  }
  func.func @transform_11(%arg0: i32) -> (i32, i32) {
    %c0_i32 = arith.constant 0 : i32
    %c0_i32_0 = arith.constant 0 : i32
    %c0_i32_1 = arith.constant 0 : i32
    return %c0_i32, %c0_i32_0 : i32, i32
  }
  func.func @transform_12(%arg0: i32) -> (i32, i32) {
    %c0_i32 = arith.constant 0 : i32
    %c0_i32_0 = arith.constant 0 : i32
    %c0_i32_1 = arith.constant 0 : i32
    return %c0_i32, %c0_i32_0 : i32, i32
  }
  func.func @transform_13(%arg0: i32) -> (i32, i32) {
    %c0_i32 = arith.constant 0 : i32
    %c0_i32_0 = arith.constant 0 : i32
    %c0_i32_1 = arith.constant 0 : i32
    return %c0_i32, %c0_i32_0 : i32, i32
  }
  func.func @transform_14(%arg0: i32) -> (i32, i32) {
    %c0_i32 = arith.constant 0 : i32
    %c0_i32_0 = arith.constant 0 : i32
    %c0_i32_1 = arith.constant 0 : i32
    return %c0_i32, %c0_i32_0 : i32, i32
  }
  func.func @transform_15(%arg0: i32) -> (i32, i32) {
    %c0_i32 = arith.constant 0 : i32
    %c0_i32_0 = arith.constant 0 : i32
    %c0_i32_1 = arith.constant 0 : i32
    return %c0_i32, %c0_i32_0 : i32, i32
  }
  func.func @transform_16(%arg0: i32) -> (i32, i32) {
    %c0_i32 = arith.constant 0 : i32
    %c0_i32_0 = arith.constant 0 : i32
    %c0_i32_1 = arith.constant 0 : i32
    return %c0_i32, %c0_i32_0 : i32, i32
  }
  func.func @transform_17(%arg0: i32) -> (i32, i32) {
    %c0_i32 = arith.constant 0 : i32
    %c0_i32_0 = arith.constant 0 : i32
    %c0_i32_1 = arith.constant 0 : i32
    return %c0_i32, %c0_i32_0 : i32, i32
  }
  func.func @transform_18(%arg0: i32) -> (i32, i32) {
    %c0_i32 = arith.constant 0 : i32
    %c0_i32_0 = arith.constant 0 : i32
    %c0_i32_1 = arith.constant 0 : i32
    return %c0_i32, %c0_i32_0 : i32, i32
  }
  func.func @transform_19(%arg0: i32) -> (i32, i32) {
    %c0_i32 = arith.constant 0 : i32
    %c0_i32_0 = arith.constant 0 : i32
    %c0_i32_1 = arith.constant 0 : i32
    return %c0_i32, %c0_i32_0 : i32, i32
  }
  func.func @transform_20(%arg0: i32) -> (i32, i32) {
    %c0_i32 = arith.constant 0 : i32
    %c0_i32_0 = arith.constant 0 : i32
    return %arg0, %c0_i32 : i32, i32
  }
}

</mosaic_0001>

<bundles_post_ra>
// kernel: nerf_pallas.1
= control target key start
LH: loop header
LB: loop body
LE: loop exit
PB: predicated region body
PF: predicated region fallthrough
CT: control target
= control target key end

     0   :  { %s11554_s0 = inlined_call_operand.vmem [shape: f32[1024,3], index: 0, kind: input, shape index: {}]   ;;  %s11555_s1 = inlined_call_operand.vmem [shape: bf16[3,256], index: 1, kind: input, shape index: {}]   ;;  %s11556_s2 = inlined_call_operand.vmem [shape: f32[1,256], index: 2, kind: input, shape index: {}]   ;;  %s11557_s3 = inlined_call_operand.vmem [shape: bf16[256,256], index: 3, kind: input, shape index: {}]   ;;  %s11558_s4 = inlined_call_operand.vmem [shape: f32[1,256], index: 4, kind: input, shape index: {}]   ;;  %s11559_s5 = inlined_call_operand.vmem [shape: bf16[256,256], index: 5, kind: input, shape index: {}]   ;;  %s11560_s6 = inlined_call_operand.vmem [shape: f32[1,256], index: 6, kind: input, shape index: {}]   ;;  %s11561_s7 = inlined_call_operand.vmem [shape: bf16[256,256], index: 7, kind: input, shape index: {}]   ;;  %s11562_s8 = inlined_call_operand.vmem [shape: f32[1,256], index: 8, kind: input, shape index: {}]   ;;  %s11563_s9 = inlined_call_operand.vmem [shape: bf16[256,256], index: 9, kind: input, shape index: {}]   ;;  %s11564_s10 = inlined_call_operand.vmem [shape: f32[1,256], index: 10, kind: input, shape index: {}]   ;;  %s11565_s11 = inlined_call_operand.vmem [shape: bf16[256,256], index: 11, kind: input, shape index: {}]   ;;  %s11566_s12 = inlined_call_operand.vmem [shape: bf16[3,256], index: 12, kind: input, shape index: {}]   ;;  %s11567_s13 = inlined_call_operand.vmem [shape: f32[1,256], index: 13, kind: input, shape index: {}]   ;;  %s11568_s14 = inlined_call_operand.vmem [shape: bf16[256,256], index: 14, kind: input, shape index: {}]   ;;  %s11569_s15 = inlined_call_operand.vmem [shape: f32[1,256], index: 15, kind: input, shape index: {}]   ;;  %s11570_s16 = inlined_call_operand.vmem [shape: bf16[256,256], index: 16, kind: input, shape index: {}]   ;;  %s11571_s17 = inlined_call_operand.vmem [shape: f32[1,256], index: 17, kind: input, shape index: {}]   ;;  %s11572_s18 = inlined_call_operand.vmem [shape: bf16[256,128], index: 18, kind: input, shape index: {}]   ;;  %s11573_s19 = inlined_call_operand.vmem [shape: f32[1,128], index: 19, kind: input, shape index: {}]   ;;  %s11574_s20 = inlined_call_operand.vmem [shape: f32[1024,128], index: 20, kind: output, shape index: {}]  }
   0x1   :  { %11597 = sst [smem:[#allocation37_spill]] %s11554_s0 }
   0x2   :  { %11598 = sst [smem:[#allocation38_spill]] %s11555_s1  ;;  %s7632_s1 = smov 0  }
   0x3   :  { %11599 = sst [smem:[#allocation39_spill]] %s11556_s2 }
   0x4   :  { %11600 = sst [smem:[#allocation40_spill]] %s11557_s3 }
   0x5   :  { %11601 = sst [smem:[#allocation41_spill]] %s11558_s4 }
   0x6 LB: > { %s6223_s22 = sadd.s32 4294967295, %s7524_s1   ;;  %p6227_p0 = scmp.ge.s32.totalorder %s7524_s1, 1  ;;  %s7524_s1 = sphi %s7632_s1, %s30_s1  }
   0x7   : > { %p563_p1 = scmp.lt.s32.totalorder %s7524_s1, 5 }
   0x9   : > { %p564_p2 = pnand %p6227_p0, %p563_p1 }
   0xb   : > { %567 = sbr.rel (%p564_p2) target bundleno = 2511 (0x9cf), region = 100 }
  0x10   : > { %s11602_s2 = sld [smem:[#allocation38_spill]]  ;;  %vm742_vm0 = vcmask 1040384   ;;  %s6228_s25 = sshll.u32 %s6223_s22, 5  ;;  %vm743_vm1 = vcmask 1041408   ;;  %v7526_v1 = vmov 65535   ;;  %vm693_vm2 = vcmask 23552  }
  0x11   : > { %p622_p3 = scmp.lt.s32.totalorder %s6228_s25, 127  ;;  %v744_v2 = vsel %vm742_vm0, 4294967295, %v7526_v1  ;;  %v3624_v4 = vld [vmem:[%s11566_s12] sm:$0xf]  ;;  %s11603_s29 = sld [smem:[#allocation40_spill]] }
  0x12   : > { %v7645_v3 = vsel %vm743_vm1, %v744_v2, 0  ;;  %s11604_s21 = sld [smem:[#allocation37_spill]] }
  0x13   : > { %s11685_s25 = smov (!%p622_p3, %s6228_s25), 127  ;;  %s11616_s0 = sld [smem:[#allocation41_spill]] }
  0x14   : > { %s11576_s27 = sshll.u32 %s11685_s25, 3  ;;  %s11683_s30 = sshll.u32 %s11685_s25, 3 }
  0x15   : > { %s11464_s23 = scalar_lea.vmem %s11574_s20, %s11683_s30 }
  0x16   : > { %v682_v0 = vld [vmem:[%s11602_s2] sm:$0xf] }
  0x17   : > { %690 = vst [vmem:[#allocation1] ss:$4 sm:$0xff] %v682_v0  ;;  %v6322_v5 = vld [vmem:[%s11603_s29 + $0x70] sm:$0xf]  ;;  %v7273_v6 = vld [vmem:[%s11603_s29 + $0x74] sm:$0xf0] }
  0x18   : > { %s7659_s22 = scalar_lea.vmem %s11604_s21, %s11576_s27  ;;  %v6386_v7 = vld [vmem:[%s11603_s29 + $0xf0] sm:$0xf]  ;;  %v7289_v8 = vld [vmem:[%s11603_s29 + $0xf4] sm:$0xf0]  ;;  %v6323_v17 = vor.u32 %v7273_v6, %v6322_v5  ;;  %v6314_v24 = vld [vmem:[%s11603_s29 + $0x60] sm:$0xf] }
  0x19   : > { %v634_v9 = vld [vmem:[%s7659_s22] sm:$0xff]  ;;  %v635_v10 = vld [vmem:[%s7659_s22 + $0x8] sm:$0xff]  ;;  %v6387_v18 = vor.u32 %v7289_v8, %v6386_v7  ;;  %v652_v20 = vld [vmem:[%s7659_s22 + $0x90] sm:$0xff]  ;;  %s11615_s21 = sld [smem:[#allocation39_spill]] }
  0x1a   : > { %v650_v11 = vld [vmem:[%s7659_s22 + $0x80] sm:$0xff]  ;;  %v651_v16 = vld [vmem:[%s7659_s22 + $0x88] sm:$0xff]  ;;  %v7676_v19 = vpack.c.bf16 %v635_v10, %v634_v9  ;;  %v653_v21 = vld [vmem:[%s7659_s22 + $0x98] sm:$0xff] }
  0x1b   : > { %v7680_v22 = vpack.c.bf16 %v651_v16, %v650_v11  ;;  %v7682_v23 = vpack.c.bf16 %v653_v21, %v652_v20  ;;  %v7271_v25 = vld [vmem:[%s11603_s29 + $0x64] sm:$0xf0]  ;;  %v6378_v26 = vld [vmem:[%s11603_s29 + $0xe0] sm:$0xf]  ;;  %v636_v30 = vld [vmem:[%s7659_s22 + $0x10] sm:$0xff] }
  0x1c   : > { %v7287_v27 = vld [vmem:[%s11603_s29 + $0xe4] sm:$0xf0]  ;;  %v6315_v28 = vor.u32 %v7271_v25, %v6314_v24  ;;  %v637_v31 = vld [vmem:[%s7659_s22 + $0x18] sm:$0xff]  ;;  %v654_v32 = vld [vmem:[%s7659_s22 + $0xa0] sm:$0xff] }
  0x1d   : > { %11605 = vst [vmem:[#allocation2_spill] sm:$0xff] %v7680_v22  ;;  %v6379_v29 = vor.u32 %v7287_v27, %v6378_v26  ;;  %v655_v33 = vld [vmem:[%s7659_s22 + $0xa8] sm:$0xff]  ;;  %v7708_v34 = vpack.c.bf16 %v637_v31, %v636_v30  ;;  %v6306_v36 = vld [vmem:[%s11603_s29 + $0x50] sm:$0xf]  ;;  %v7269_v37 = vld [vmem:[%s11603_s29 + $0x54] sm:$0xf0] }
  0x1e   : > { %v691_v12 = vld.sshfl [vmem:[#allocation1] sm:$0xff pattern:$0x73625140]  ;;  %v692_v13 = vld.sshfl [vmem:[#allocation1 + $0x8] sm:$0xff pattern:$0x73625140]  ;;  %v7710_v35 = vpack.c.bf16 %v655_v33, %v654_v32  ;;  %v6307_v40 = vor.u32 %v7269_v37, %v6306_v36 }
  0x1f   : > { %v746_v14 = vand.u32 %v7645_v3, %v691_v12  ;;  %v748_v15 = vand.u32 %v7645_v3, %v692_v13  ;;  %4174 = vst [vmem:[#allocation1] ss:$4 sm:$0xff] %v3624_v4  ;;  %v6370_v38 = vld [vmem:[%s11603_s29 + $0xd0] sm:$0xf]  ;;  %v7285_v39 = vld [vmem:[%s11603_s29 + $0xd4] sm:$0xf0] }
  0x20   : > { %11606 = vst [vmem:[#allocation3_spill] sm:$0xff] %v7682_v23  ;;  %v6371_v41 = vor.u32 %v7285_v39, %v6370_v38  ;;  %v638_v42 = vld [vmem:[%s7659_s22 + $0x20] sm:$0xff]  ;;  %v639_v43 = vld [vmem:[%s7659_s22 + $0x28] sm:$0xff]  ;;  %v656_v44 = vld [vmem:[%s7659_s22 + $0xb0] sm:$0xff] }
  0x21   : > { %757 = vmatpush.bf16.msra.mxu0 %v746_v14  ;;  %846 = vmatpush.bf16.msra.mxu1 %v748_v15  ;;  %11607 = vst [vmem:[#allocation4_spill] sm:$0xff] %v7710_v35  ;;  %v657_v45 = vld [vmem:[%s7659_s22 + $0xb8] sm:$0xff]  ;;  %v7736_v46 = vpack.c.bf16 %v639_v43, %v638_v42  ;;  %v6298_v48 = vld [vmem:[%s11603_s29 + $0x40] sm:$0xf]  ;;  %v7267_v49 = vld [vmem:[%s11603_s29 + $0x44] sm:$0xf0] }
  0x22   : > { %7499 = vmatpush.bf16.msra.mxu3 %v748_v15  ;;  %7498 = vmatpush.bf16.msra.mxu2 %v746_v14  ;;  %v7738_v47 = vpack.c.bf16 %v657_v45, %v656_v44  ;;  %v6362_v50 = vld [vmem:[%s11603_s29 + $0xc0] sm:$0xf]  ;;  %v7283_v51 = vld [vmem:[%s11603_s29 + $0xc4] sm:$0xf0]  ;;  %v6299_v52 = vor.u32 %v7267_v49, %v6298_v48  ;;  %v640_v54 = vld [vmem:[%s7659_s22 + $0x30] sm:$0xff] }
  0x23   : > { %v6363_v53 = vor.u32 %v7283_v51, %v6362_v50  ;;  %v641_v55 = vld [vmem:[%s7659_s22 + $0x38] sm:$0xff]  ;;  %v658_v56 = vld [vmem:[%s7659_s22 + $0xc0] sm:$0xff]  ;;  %v659_v57 = vld [vmem:[%s7659_s22 + $0xc8] sm:$0xff] }
  0x24   : > { %6232 = vmatmul.msk.bf16.vlgmr.msra.gmra.mxu0 %vm693_vm2, %v7676_v19  ;;  %6248 = vmatmul.msk.bf16.vlgmr.msra.gmra.mxu1 %vm693_vm2, %v7676_v19  ;;  %11608 = vst [vmem:[#allocation5_spill] sm:$0xff] %v7738_v47  ;;  %v7764_v58 = vpack.c.bf16 %v641_v55, %v640_v54  ;;  %v7766_v59 = vpack.c.bf16 %v659_v57, %v658_v56  ;;  %v6290_v60 = vld [vmem:[%s11603_s29 + $0x30] sm:$0xf]  ;;  %v7265_v61 = vld [vmem:[%s11603_s29 + $0x34] sm:$0xf0]  ;;  %v642_v2 = vld [vmem:[%s7659_s22 + $0x40] sm:$0xff] }
  0x25   : > { %6256 = vmatmul.msk.bf16.vlgmr.msra.gmra.mxu3 %vm693_vm2, %v7680_v22  ;;  %6241 = vmatmul.msk.bf16.vlgmr.msra.gmra.mxu2 %vm693_vm2, %v7682_v23  ;;  %v6354_v62 = vld [vmem:[%s11603_s29 + $0xb0] sm:$0xf]  ;;  %v7281_v63 = vld [vmem:[%s11603_s29 + $0xb4] sm:$0xf0]  ;;  %v6291_v0 = vor.u32 %v7265_v61, %v6290_v60  ;;  %v643_v4 = vld [vmem:[%s7659_s22 + $0x48] sm:$0xff] }
  0x26   : > { %1222 = vmatpush.bf16.msrb.mxu2 %v6323_v17  ;;  %1311 = vmatpush.bf16.msrb.mxu3 %v6387_v18  ;;  %11609 = vst [vmem:[#allocation6_spill] sm:$0xff] %v7766_v59  ;;  %v6355_v1 = vor.u32 %v7281_v63, %v6354_v62  ;;  %v660_v5 = vld [vmem:[%s7659_s22 + $0xd0] sm:$0xff]  ;;  %v661_v6 = vld [vmem:[%s7659_s22 + $0xd8] sm:$0xff]  ;;  %v7792_v7 = vpack.c.bf16 %v643_v4, %v642_v2  ;;  %v6282_v9 = vld [vmem:[%s11603_s29 + $0x20] sm:$0xf] }
  0x27   : > { %v7794_v8 = vpack.c.bf16 %v661_v6, %v660_v5  ;;  %v7263_v10 = vld [vmem:[%s11603_s29 + $0x24] sm:$0xf0]  ;;  %v7288_v12 = vld [vmem:[%s11603_s29 + $0xf4] sm:$0xf]  ;;  %v6388_v13 = vld [vmem:[%s11603_s29 + $0xf8] sm:$0xf0] }
  0x28   : > { %v6283_v11 = vor.u32 %v7263_v10, %v6282_v9  ;;  %v6391_v14 = vor.u32 %v7288_v12, %v6388_v13  ;;  %v6346_v15 = vld [vmem:[%s11603_s29 + $0xa0] sm:$0xf]  ;;  %v7279_v16 = vld [vmem:[%s11603_s29 + $0xa4] sm:$0xf0]  ;;  %v644_v18 = vld [vmem:[%s7659_s22 + $0x50] sm:$0xff] }
  0x29   : > { %11610 = vst [vmem:[#allocation7_spill] sm:$0xff] %v7794_v8  ;;  %v6347_v17 = vor.u32 %v7279_v16, %v6346_v15  ;;  %v645_v20 = vld [vmem:[%s7659_s22 + $0x58] sm:$0xff]  ;;  %v662_v21 = vld [vmem:[%s7659_s22 + $0xe0] sm:$0xff]  ;;  %v663_v24 = vld [vmem:[%s7659_s22 + $0xe8] sm:$0xff] }
  0x2a   : > { %1223 = vmatpush.bf16.msrb.mxu2 %v6315_v28  ;;  %1312 = vmatpush.bf16.msrb.mxu3 %v6379_v29  ;;  %v7826_v25 = vpack.c.bf16 %v645_v20, %v644_v18  ;;  %v7828_v26 = vpack.c.bf16 %v663_v24, %v662_v21  ;;  %v7272_v27 = vld [vmem:[%s11603_s29 + $0x74] sm:$0xf]  ;;  %v6324_v28 = vld [vmem:[%s11603_s29 + $0x78] sm:$0xf0]  ;;  %v7286_v29 = vld [vmem:[%s11603_s29 + $0xe4] sm:$0xf] }
  0x2b   : > { %1489 = vmatpush.bf16.msrb.mxu1 %v6391_v14  ;;  %v6327_v30 = vor.u32 %v7272_v27, %v6324_v28  ;;  %v6380_v31 = vld [vmem:[%s11603_s29 + $0xe8] sm:$0xf0]  ;;  %v6274_v32 = vld [vmem:[%s11603_s29 + $0x10] sm:$0xf]  ;;  %v7261_v33 = vld [vmem:[%s11603_s29 + $0x14] sm:$0xf0] }
  0x2c   : > { %11611 = vst [vmem:[#allocation8_spill] sm:$0xff] %v7828_v26  ;;  %v6383_v36 = vor.u32 %v7286_v29, %v6380_v31  ;;  %v6275_v37 = vor.u32 %v7261_v33, %v6274_v32  ;;  %v7270_v38 = vld [vmem:[%s11603_s29 + $0x64] sm:$0xf]  ;;  %v6316_v39 = vld [vmem:[%s11603_s29 + $0x68] sm:$0xf0]  ;;  %v664_v54 = vld [vmem:[%s7659_s22 + $0xf0] sm:$0xff] }
  0x2d   : > { %1400 = vmatpush.bf16.msrb.mxu0 %v6327_v30  ;;  %v6372_v42 = vld [vmem:[%s11603_s29 + $0xd8] sm:$0xf0]  ;;  %v7268_v43 = vld [vmem:[%s11603_s29 + $0x54] sm:$0xf]  ;;  %v7282_v48 = vld [vmem:[%s11603_s29 + $0xc4] sm:$0xf] }
  0x2e   : > { %1224 = vmatpush.bf16.msrb.mxu2 %v6307_v40  ;;  %1313 = vmatpush.bf16.msrb.mxu3 %v6371_v41  ;;  %v6319_v40 = vor.u32 %v7270_v38, %v6316_v39  ;;  %v7284_v41 = vld [vmem:[%s11603_s29 + $0xd4] sm:$0xf]  ;;  %v6308_v45 = vld [vmem:[%s11603_s29 + $0x58] sm:$0xf0]  ;;  %v6364_v49 = vld [vmem:[%s11603_s29 + $0xc8] sm:$0xf0] }
  0x2f   : > { %1490 = vmatpush.bf16.msrb.mxu1 %v6383_v36  ;;  %v6375_v44 = vor.u32 %v7284_v41, %v6372_v42  ;;  %v6311_v50 = vor.u32 %v7268_v43, %v6308_v45  ;;  %v6367_v51 = vor.u32 %v7282_v48, %v6364_v49  ;;  %v665_v55 = vld [vmem:[%s7659_s22 + $0xf8] sm:$0xff]  ;;  %v7266_v56 = vld [vmem:[%s11603_s29 + $0x44] sm:$0xf]  ;;  %v6300_v57 = vld [vmem:[%s11603_s29 + $0x48] sm:$0xf0] }
  0x30   : > { %v7280_v60 = vld [vmem:[%s11603_s29 + $0xb4] sm:$0xf]  ;;  %v6303_v61 = vor.u32 %v7266_v56, %v6300_v57  ;;  %v6356_v62 = vld [vmem:[%s11603_s29 + $0xb8] sm:$0xf0]  ;;  %v7278_v5 = vld [vmem:[%s11603_s29 + $0xa4] sm:$0xf] }
  0x31   : > { %1401 = vmatpush.bf16.msrb.mxu0 %v6319_v40  ;;  %v7264_v2 = vld [vmem:[%s11603_s29 + $0x34] sm:$0xf]  ;;  %v6292_v4 = vld [vmem:[%s11603_s29 + $0x38] sm:$0xf0]  ;;  %v6348_v9 = vld [vmem:[%s11603_s29 + $0xa8] sm:$0xf0] }
  0x32   : > { %1225 = vmatpush.bf16.msrb.mxu2 %v6299_v52  ;;  %1314 = vmatpush.bf16.msrb.mxu3 %v6363_v53  ;;  %v646_v52 = vld [vmem:[%s7659_s22 + $0x60] sm:$0xff]  ;;  %v647_v53 = vld [vmem:[%s7659_s22 + $0x68] sm:$0xff]  ;;  %v6295_v6 = vor.u32 %v7264_v2, %v6292_v4  ;;  %v6351_v12 = vor.u32 %v7278_v5, %v6348_v9  ;;  %v6338_v14 = vld [vmem:[%s11603_s29 + $0x90] sm:$0xf] }
  0x33   : > { %1491 = vmatpush.bf16.msrb.mxu1 %v6375_v44  ;;  %v7896_v63 = vpack.c.bf16 %v647_v53, %v646_v52  ;;  %v6266_v10 = vld [vmem:[%s11603_s29] sm:$0xf]  ;;  %v7277_v15 = vld [vmem:[%s11603_s29 + $0x94] sm:$0xf0]  ;;  %v6284_v18 = vld [vmem:[%s11603_s29 + $0x28] sm:$0xf0] }
  0x34   : > { %6233 = vmatmul.msk.bf16.gmra.mxu0 %vm693_vm2, %v7708_v34  ;;  %6249 = vmatmul.msk.bf16.gmra.mxu1 %vm693_vm2, %v7708_v34  ;;  %v6339_v16 = vor.u32 %v7277_v15, %v6338_v14  ;;  %v7276_v20 = vld [vmem:[%s11603_s29 + $0x94] sm:$0xf]  ;;  %v6340_v24 = vld [vmem:[%s11603_s29 + $0x98] sm:$0xf0]  ;;  %v6330_v28 = vld [vmem:[%s11603_s29 + $0x80] sm:$0xf] }
  0x35   : > { %6257 = vmatmul.msk.bf16.gmra.mxu3 %vm693_vm2, %v7682_v23  ;;  %6242 = vmatmul.msk.bf16.gmra.mxu2 %vm693_vm2, %v7710_v35  ;;  %11612 = vst [vmem:[#allocation9_spill] sm:$0xff] %v7896_v63  ;;  %v6343_v27 = vor.u32 %v7276_v20, %v6340_v24  ;;  %v7275_v29 = vld [vmem:[%s11603_s29 + $0x84] sm:$0xf0]  ;;  %v7260_v30 = vld [vmem:[%s11603_s29 + $0x14] sm:$0xf]  ;;  %v649_v40 = vld [vmem:[%s7659_s22 + $0x78] sm:$0xff] }
  0x36   : > { %1226 = vmatpush.bf16.msrb.mxu2 %v6291_v0  ;;  %1315 = vmatpush.bf16.msrb.mxu3 %v6355_v1  ;;  %v6359_v0 = vor.u32 %v7280_v60, %v6356_v62  ;;  %v7898_v1 = vpack.c.bf16 %v665_v55, %v664_v54  ;;  %v6331_v31 = vor.u32 %v7275_v29, %v6330_v28  ;;  %v6276_v32 = vld [vmem:[%s11603_s29 + $0x18] sm:$0xf0]  ;;  %v7274_v33 = vld [vmem:[%s11603_s29 + $0x84] sm:$0xf]  ;;  %v6332_v36 = vld [vmem:[%s11603_s29 + $0x88] sm:$0xf0] }
  0x37   : > { %1402 = vmatpush.bf16.msrb.mxu0 %v6311_v50  ;;  %1492 = vmatpush.bf16.msrb.mxu1 %v6367_v51  ;;  %v6335_v38 = vor.u32 %v7274_v33, %v6332_v36  ;;  %v648_v39 = vld [vmem:[%s7659_s22 + $0x70] sm:$0xff]  ;;  %v7258_v41 = vld [vmem:[%s11603_s29 + $0x4] sm:$0xf]  ;;  %v6268_v42 = vld [vmem:[%s11603_s29 + $0x8] sm:$0xf0] }
  0x38   : > { %11613 = vst [vmem:[#allocation10_spill] sm:$0xff] %v7898_v1  ;;  %v7970_v43 = vpack.c.bf16 %v649_v40, %v648_v39  ;;  %v6271_v44 = vor.u32 %v7258_v41, %v6268_v42  ;;  %v6450_v45 = vld [vmem:[%s11559_s5 + $0x70] sm:$0xf]  ;;  %v7305_v48 = vld [vmem:[%s11559_s5 + $0x74] sm:$0xf0] }
  0x39   : > { %v6451_v49 = vor.u32 %v7305_v48, %v6450_v45  ;;  %v683_v50 = vld [vmem:[%s11615_s21] sm:$0x3]  ;;  %v6514_v55 = vld [vmem:[%s11559_s5 + $0xf0] sm:$0xf]  ;;  %v7321_v56 = vld [vmem:[%s11559_s5 + $0xf4] sm:$0xf0] }
  0x3a   : > { %1227 = vmatpush.bf16.msrb.mxu2 %v6283_v11  ;;  %1316 = vmatpush.bf16.msrb.mxu3 %v6347_v17  ;;  %v7259_v11 = vld [vmem:[%s11603_s29 + $0x4] sm:$0xf0]  ;;  %v7262_v17 = vld [vmem:[%s11603_s29 + $0x24] sm:$0xf]  ;;  %11614 = vst [vmem:[#allocation11_spill] sm:$0xff] %v7970_v43  ;;  %v7987_v53 = vperm.slane %v683_v50, 1  ;;  %v6515_v57 = vor.u32 %v7321_v56, %v6514_v55 }
  0x3b   : > { %1403 = vmatpush.bf16.msrb.mxu0 %v6303_v61  ;;  %1493 = vmatpush.bf16.msrb.mxu1 %v6359_v0  ;;  %v6267_v13 = vor.u32 %v7259_v11, %v6266_v10  ;;  %v6287_v21 = vor.u32 %v7262_v17, %v6284_v18  ;;  %v7989_v54 = vperm.slane %v683_v50, 0  ;;  %v6442_v24 = vld [vmem:[%s11559_s5 + $0x60] sm:$0xf] }
  0x3e   : > { %1228 = vmatpush.bf16.msrb.mxu2 %v6275_v37  ;;  %1317 = vmatpush.bf16.msrb.mxu3 %v6339_v16  ;;  %v6279_v37 = vor.u32 %v7260_v30, %v6276_v32 }
  0x3f   : > { %1404 = vmatpush.bf16.msrb.mxu0 %v6295_v6  ;;  %1494 = vmatpush.bf16.msrb.mxu1 %v6351_v12 }
  0x42   : > { %1229 = vmatpush.bf16.msrb.mxu2 %v6267_v13  ;;  %1318 = vmatpush.bf16.msrb.mxu3 %v6331_v31 }
  0x43   : > { %1405 = vmatpush.bf16.msrb.mxu0 %v6287_v21  ;;  %1495 = vmatpush.bf16.msrb.mxu1 %v6343_v27  ;;  %v7303_v27 = vld [vmem:[%s11559_s5 + $0x64] sm:$0xf0] }
  0x44   : > { %6234 = vmatmul.msk.bf16.gmra.mxu0 %vm693_vm2, %v7736_v46  ;;  %6250 = vmatmul.msk.bf16.gmra.mxu1 %vm693_vm2, %v7736_v46  ;;  %v6443_v29 = vor.u32 %v7303_v27, %v6442_v24 }
  0x45   : > { %6258 = vmatmul.msk.bf16.gmra.mxu3 %vm693_vm2, %v7710_v35  ;;  %6243 = vmatmul.msk.bf16.gmra.mxu2 %vm693_vm2, %v7738_v47 }
  0x46   : > { %1872 = vmatpush.bf16.msra.mxu2 %v6451_v49  ;;  %1961 = vmatpush.bf16.msra.mxu3 %v6515_v57 }
  0x47   : > { %1406 = vmatpush.bf16.msrb.mxu0 %v6279_v37  ;;  %1496 = vmatpush.bf16.msrb.mxu1 %v6335_v38 }
  0x4a   : > { %1873 = vmatpush.bf16.msra.mxu2 %v6443_v29 }
  0x4b   : > { %1407 = vmatpush.bf16.msrb.mxu0 %v6271_v44 }
  0x54   : > { %6235 = vmatmul.msk.bf16.gmra.mxu0 %vm693_vm2, %v7764_v58  ;;  %6251 = vmatmul.msk.bf16.gmra.mxu1 %vm693_vm2, %v7764_v58 }
  0x55   : > { %6259 = vmatmul.msk.bf16.gmra.mxu3 %vm693_vm2, %v7738_v47  ;;  %6244 = vmatmul.msk.bf16.gmra.mxu2 %vm693_vm2, %v7766_v59  ;;  %v7290_v47 = vld [vmem:[%s11559_s5 + $0x4] sm:$0xf] }
  0x64   : > { %6236 = vmatmul.msk.bf16.gmra.mxu0 %vm693_vm2, %v7792_v7  ;;  %6252 = vmatmul.msk.bf16.gmra.mxu1 %vm693_vm2, %v7792_v7 }
  0x65   : > { %6260 = vmatmul.msk.bf16.gmra.mxu3 %vm693_vm2, %v7766_v59  ;;  %6245 = vmatmul.msk.bf16.gmra.mxu2 %vm693_vm2, %v7794_v8  ;;  %v7292_v59 = vld [vmem:[%s11559_s5 + $0x14] sm:$0xf] }
  0x74   : > { %6237 = vmatmul.msk.bf16.gmra.mxu0 %vm693_vm2, %v7826_v25  ;;  %6253 = vmatmul.msk.bf16.gmra.mxu1 %vm693_vm2, %v7826_v25 }
  0x75   : > { %6261 = vmatmul.msk.bf16.gmra.mxu3 %vm693_vm2, %v7794_v8  ;;  %6246 = vmatmul.msk.bf16.gmra.mxu2 %vm693_vm2, %v7828_v26 }
  0x84   : > { %6238 = vmatmul.msk.bf16.gmra.mxu0 %vm693_vm2, %v7896_v63  ;;  %6254 = vmatmul.msk.bf16.gmra.mxu1 %vm693_vm2, %v7896_v63 }
  0x85   : > { %6262 = vmatmul.msk.bf16.gmra.mxu3 %vm693_vm2, %v7828_v26  ;;  %6247 = vmatmul.msk.bf16.gmra.mxu2 %vm693_vm2, %v7898_v1 }
  0x94   : > { %6239 = vmatmul.msk.bf16.gmra.mxu0 %vm693_vm2, %v7970_v43  ;;  %6255 = vmatmul.msk.bf16.gmra.mxu1 %vm693_vm2, %v7970_v43 }
  0x95   : > { %6263 = vmatmul.msk.bf16.gmra.mxu3 %vm693_vm2, %v7898_v1 }
  0xa1   : > { %v759_v51 = vpop.f32.mrf.mxu0  ;;  %v848_v52 = vpop.f32.mrf.mxu1 }
  0xa2   : > { %v849_v60 = vadd.f32 %v848_v52, %v7987_v53  ;;  %v760_v61 = vadd.f32 %v759_v51, %v7989_v54 }
  0xa4   : > { %6240 = vmatmul.msk.bf16.gmra.mxu0 %vm693_vm2, %v7680_v22  ;;  %v929_v5 = vmax.f32 %v849_v60, 0.0  ;;  %v928_v10 = vmax.f32 %v760_v61, 0.0 }
  0xa8   : > { %v888_v62 = vpop.f32.mrf.mxu3  ;;  %v8001_v0 = vpop.f32.mrf.mxu2 }
  0xa9   : > { %v761_v2 = vpop.f32.mrf.mxu0  ;;  %v850_v4 = vpop.f32.mrf.mxu1  ;;  %v889_v13 = vadd.f32 %v888_v62, %v7987_v53  ;;  %v6506_v62 = vld [vmem:[%s11559_s5 + $0xe0] sm:$0xf] }
  0xaa   : > { %v762_v6 = vadd.f32 %v761_v2, %v7989_v54  ;;  %v851_v9 = vadd.f32 %v850_v4, %v7987_v53  ;;  %v7319_v2 = vld [vmem:[%s11559_s5 + $0xe4] sm:$0xf0] }
  0xab   : > { %v961_v20 = vmax.f32 %v889_v13, 0.0  ;;  %v6507_v4 = vor.u32 %v7319_v2, %v6506_v62 }
  0xac   : > { %v930_v11 = vmax.f32 %v762_v6, 0.0  ;;  %v931_v12 = vmax.f32 %v851_v9, 0.0 }
  0xad   : > { %1962 = vmatpush.bf16.msra.mxu3 %v6507_v4 }
  0xae   : > { %v992_v14 = vpack.c.bf16 %v930_v11, %v928_v10  ;;  %v993_v15 = vpack.c.bf16 %v931_v12, %v929_v5 }
  0xb0   : > { %1230 = vmatmul.bf16.vlgmr.msrb.gmra.mxu2 %v992_v14  ;;  %1319 = vmatmul.bf16.vlgmr.msrb.gmra.mxu3 %v993_v15  ;;  %v890_v16 = vpop.f32.mrf.mxu3  ;;  %v8013_v28 = vpop.f32.mrf.mxu2 }
  0xb1   : > { %1497 = vmatmul.bf16.vlgmr.msrb.gmra.mxu1 %v993_v15  ;;  %v764_v17 = vpop.f32.mrf.mxu0  ;;  %v853_v18 = vpop.f32.mrf.mxu1  ;;  %v891_v21 = vadd.f32 %v890_v16, %v7987_v53 }
  0xb2   : > { %v854_v32 = vadd.f32 %v853_v18, %v7987_v53  ;;  %v765_v33 = vadd.f32 %v764_v17, %v7989_v54 }
  0xb3   : > { %v963_v30 = vmax.f32 %v891_v21, 0.0 }
  0xb4   : > { %1408 = vmatmul.bf16.vlgmr.msrb.gmra.mxu0 %v992_v14  ;;  %v933_v39 = vmax.f32 %v854_v32, 0.0  ;;  %v932_v42 = vmax.f32 %v765_v33, 0.0 }
  0xb5   : > { %v8015_v31 = vpack.c.bf16 %v963_v30, %v961_v20 }
  0xb8   : > { %v893_v36 = vpop.f32.mrf.mxu3  ;;  %v8021_v48 = vpop.f32.mrf.mxu2 }
  0xb9   : > { %v766_v37 = vpop.f32.mrf.mxu0  ;;  %v855_v38 = vpop.f32.mrf.mxu1  ;;  %v894_v49 = vadd.f32 %v893_v36, %v7987_v53 }
  0xba   : > { %v767_v40 = vadd.f32 %v766_v37, %v7989_v54  ;;  %v856_v41 = vadd.f32 %v855_v38, %v7987_v53  ;;  %v6434_v38 = vld [vmem:[%s11559_s5 + $0x50] sm:$0xf] }
  0xbb   : > { %v965_v57 = vmax.f32 %v894_v49, 0.0 }
  0xbc   : > { %v934_v44 = vmax.f32 %v767_v40, 0.0  ;;  %v935_v45 = vmax.f32 %v856_v41, 0.0 }
  0xbe   : > { %v994_v50 = vpack.c.bf16 %v934_v44, %v932_v42  ;;  %v995_v51 = vpack.c.bf16 %v935_v45, %v933_v39  ;;  %v7301_v39 = vld [vmem:[%s11559_s5 + $0x54] sm:$0xf0] }
  0xbf   : > { %v6435_v40 = vor.u32 %v7301_v39, %v6434_v38 }
  0xc0   : > { %1235 = vmatmul.bf16.gmra.mxu2 %v994_v50  ;;  %1324 = vmatmul.bf16.gmra.mxu3 %v995_v51  ;;  %v895_v52 = vpop.f32.mrf.mxu3  ;;  %v8034_v9 = vpop.f32.mrf.mxu2 }
  0xc1   : > { %1502 = vmatmul.bf16.gmra.mxu1 %v995_v51  ;;  %v769_v55 = vpop.f32.mrf.mxu0  ;;  %v858_v56 = vpop.f32.mrf.mxu1  ;;  %v896_v60 = vadd.f32 %v895_v52, %v7987_v53  ;;  %1874 = vmatpush.bf16.msra.mxu2 %v6435_v40 }
  0xc2   : > { %v859_v6 = vadd.f32 %v858_v56, %v7987_v53  ;;  %v770_v10 = vadd.f32 %v769_v55, %v7989_v54 }
  0xc3   : > { %v967_v61 = vmax.f32 %v896_v60, 0.0 }
  0xc4   : > { %1413 = vmatmul.bf16.gmra.mxu0 %v994_v50  ;;  %v937_v14 = vmax.f32 %v859_v6, 0.0  ;;  %v936_v17 = vmax.f32 %v770_v10, 0.0 }
  0xc5   : > { %v8031_v5 = vpack.c.bf16 %v967_v61, %v965_v57 }
  0xc8   : > { %v898_v11 = vpop.f32.mrf.mxu3  ;;  %v8040_v29 = vpop.f32.mrf.mxu2 }
  0xc9   : > { %v771_v12 = vpop.f32.mrf.mxu0  ;;  %v860_v13 = vpop.f32.mrf.mxu1  ;;  %v899_v21 = vadd.f32 %v898_v11, %v7987_v53 }
  0xca   : > { %v772_v15 = vadd.f32 %v771_v12, %v7989_v54  ;;  %v861_v16 = vadd.f32 %v860_v13, %v7987_v53 }
  0xcb   : > { %v969_v36 = vmax.f32 %v899_v21, 0.0 }
  0xcc   : > { %v938_v18 = vmax.f32 %v772_v15, 0.0  ;;  %v939_v20 = vmax.f32 %v861_v16, 0.0 }
  0xce   : > { %v996_v24 = vpack.c.bf16 %v938_v18, %v936_v17  ;;  %v997_v27 = vpack.c.bf16 %v939_v20, %v937_v14  ;;  %v6498_v17 = vld [vmem:[%s11559_s5 + $0xd0] sm:$0xf]  ;;  %v7317_v18 = vld [vmem:[%s11559_s5 + $0xd4] sm:$0xf0] }
  0xcf   : > { %v6499_v20 = vor.u32 %v7317_v18, %v6498_v17 }
  0xd0   : > { %1240 = vmatmul.bf16.gmra.mxu2 %v996_v24  ;;  %1329 = vmatmul.bf16.gmra.mxu3 %v997_v27  ;;  %v900_v30 = vpop.f32.mrf.mxu3  ;;  %v8055_v57 = vpop.f32.mrf.mxu2 }
  0xd1   : > { %1507 = vmatmul.bf16.gmra.mxu1 %v997_v27  ;;  %v774_v32 = vpop.f32.mrf.mxu0  ;;  %v863_v33 = vpop.f32.mrf.mxu1  ;;  %v901_v37 = vadd.f32 %v900_v30, %v7987_v53  ;;  %1963 = vmatpush.bf16.msra.mxu3 %v6499_v20 }
  0xd2   : > { %v864_v44 = vadd.f32 %v863_v33, %v7987_v53  ;;  %v775_v45 = vadd.f32 %v774_v32, %v7989_v54 }
  0xd3   : > { %v971_v41 = vmax.f32 %v901_v37, 0.0 }
  0xd4   : > { %1418 = vmatmul.bf16.gmra.mxu0 %v996_v24  ;;  %v941_v52 = vmax.f32 %v864_v44, 0.0  ;;  %v940_v60 = vmax.f32 %v775_v45, 0.0 }
  0xd5   : > { %v8049_v42 = vpack.c.bf16 %v971_v41, %v969_v36 }
  0xd8   : > { %v903_v49 = vpop.f32.mrf.mxu3  ;;  %v8059_v16 = vpop.f32.mrf.mxu2 }
  0xd9   : > { %v776_v50 = vpop.f32.mrf.mxu0  ;;  %v865_v51 = vpop.f32.mrf.mxu1  ;;  %v904_v2 = vadd.f32 %v903_v49, %v7987_v53 }
  0xda   : > { %v777_v55 = vadd.f32 %v776_v50, %v7989_v54  ;;  %v866_v56 = vadd.f32 %v865_v51, %v7987_v53 }
  0xdb   : > { %v973_v13 = vmax.f32 %v904_v2, 0.0 }
  0xdc   : > { %v942_v61 = vmax.f32 %v777_v55, 0.0  ;;  %v943_v62 = vmax.f32 %v866_v56, 0.0 }
  0xde   : > { %v998_v4 = vpack.c.bf16 %v942_v61, %v940_v60  ;;  %v999_v6 = vpack.c.bf16 %v943_v62, %v941_v52  ;;  %v6426_v61 = vld [vmem:[%s11559_s5 + $0x40] sm:$0xf]  ;;  %v7299_v62 = vld [vmem:[%s11559_s5 + $0x44] sm:$0xf0] }
  0xdf   : > { %v6427_v2 = vor.u32 %v7299_v62, %v6426_v61 }
  0xe0   : > { %1245 = vmatmul.bf16.gmra.mxu2 %v998_v4  ;;  %1334 = vmatmul.bf16.gmra.mxu3 %v999_v6  ;;  %v905_v10 = vpop.f32.mrf.mxu3  ;;  %v8074_v50 = vpop.f32.mrf.mxu2 }
  0xe1   : > { %1512 = vmatmul.bf16.gmra.mxu1 %v999_v6  ;;  %v779_v11 = vpop.f32.mrf.mxu0  ;;  %v868_v12 = vpop.f32.mrf.mxu1  ;;  %v906_v14 = vadd.f32 %v905_v10, %v7987_v53  ;;  %1875 = vmatpush.bf16.msra.mxu2 %v6427_v2 }
  0xe2   : > { %v869_v24 = vadd.f32 %v868_v12, %v7987_v53  ;;  %v780_v27 = vadd.f32 %v779_v11, %v7989_v54 }
  0xe3   : > { %v975_v15 = vmax.f32 %v906_v14, 0.0 }
  0xe4   : > { %1423 = vmatmul.bf16.gmra.mxu0 %v998_v4  ;;  %v945_v36 = vmax.f32 %v869_v24, 0.0  ;;  %v944_v39 = vmax.f32 %v780_v27, 0.0 }
  0xe5   : > { %v8067_v21 = vpack.c.bf16 %v975_v15, %v973_v13 }
  0xe8   : > { %v908_v30 = vpop.f32.mrf.mxu3  ;;  %v8087_v12 = vpop.f32.mrf.mxu2 }
  0xe9   : > { %v781_v32 = vpop.f32.mrf.mxu0  ;;  %v870_v33 = vpop.f32.mrf.mxu1  ;;  %v909_v44 = vadd.f32 %v908_v30, %v7987_v53 }
  0xea   : > { %v782_v37 = vadd.f32 %v781_v32, %v7989_v54  ;;  %v871_v38 = vadd.f32 %v870_v33, %v7987_v53 }
  0xeb   : > { %v977_v56 = vmax.f32 %v909_v44, 0.0 }
  0xec   : > { %v946_v40 = vmax.f32 %v782_v37, 0.0  ;;  %v947_v41 = vmax.f32 %v871_v38, 0.0 }
  0xee   : > { %v1000_v45 = vpack.c.bf16 %v946_v40, %v944_v39  ;;  %v1001_v49 = vpack.c.bf16 %v947_v41, %v945_v36 }
  0xf0   : > { %1250 = vmatmul.bf16.gmra.mxu2 %v1000_v45  ;;  %1339 = vmatmul.bf16.gmra.mxu3 %v1001_v49  ;;  %v910_v51 = vpop.f32.mrf.mxu3  ;;  %v8093_v44 = vpop.f32.mrf.mxu2 }
  0xf1   : > { %1517 = vmatmul.bf16.gmra.mxu1 %v1001_v49  ;;  %v784_v52 = vpop.f32.mrf.mxu0  ;;  %v873_v55 = vpop.f32.mrf.mxu1  ;;  %v911_v60 = vadd.f32 %v910_v51, %v7987_v53  ;;  %v6490_v49 = vld [vmem:[%s11559_s5 + $0xc0] sm:$0xf]  ;;  %v7315_v51 = vld [vmem:[%s11559_s5 + $0xc4] sm:$0xf0] }
  0xf2   : > { %v874_v10 = vadd.f32 %v873_v55, %v7987_v53  ;;  %v785_v11 = vadd.f32 %v784_v52, %v7989_v54  ;;  %v6491_v52 = vor.u32 %v7315_v51, %v6490_v49 }
  0xf3   : > { %v979_v4 = vmax.f32 %v911_v60, 0.0 }
  0xf4   : > { %1428 = vmatmul.bf16.gmra.mxu0 %v1000_v45  ;;  %v949_v17 = vmax.f32 %v874_v10, 0.0  ;;  %v948_v24 = vmax.f32 %v785_v11, 0.0  ;;  %1964 = vmatpush.bf16.msra.mxu3 %v6491_v52 }
  0xf5   : > { %v8083_v6 = vpack.c.bf16 %v979_v4, %v977_v56 }
  0xf8   : > { %v913_v13 = vpop.f32.mrf.mxu3 }
  0xf9   : > { %v786_v14 = vpop.f32.mrf.mxu0  ;;  %v875_v15 = vpop.f32.mrf.mxu1  ;;  %v914_v32 = vadd.f32 %v913_v13, %v7987_v53 }
  0xfa   : > { %v787_v18 = vadd.f32 %v786_v14, %v7989_v54  ;;  %v876_v20 = vadd.f32 %v875_v15, %v7987_v53 }
  0xfb   : > { %v981_v40 = vmax.f32 %v914_v32, 0.0 }
  0xfc   : > { %v950_v27 = vmax.f32 %v787_v18, 0.0  ;;  %v951_v30 = vmax.f32 %v876_v20, 0.0 }
  0xfe   : > { %v1002_v33 = vpack.c.bf16 %v950_v27, %v948_v24  ;;  %v1003_v36 = vpack.c.bf16 %v951_v30, %v949_v17  ;;  %v8107_v17 = vpop.f32.mrf.mxu2 }
 0x100   : > { %1255 = vmatmul.bf16.gmra.mxu2 %v1002_v33  ;;  %1344 = vmatmul.bf16.gmra.mxu3 %v1003_v36  ;;  %v915_v37 = vpop.f32.mrf.mxu3 }
 0x101   : > { %1522 = vmatmul.bf16.gmra.mxu1 %v1003_v36  ;;  %v789_v38 = vpop.f32.mrf.mxu0  ;;  %v878_v39 = vpop.f32.mrf.mxu1  ;;  %v916_v41 = vadd.f32 %v915_v37, %v7987_v53  ;;  %v6418_v37 = vld [vmem:[%s11559_s5 + $0x30] sm:$0xf] }
 0x102   : > { %v879_v56 = vadd.f32 %v878_v39, %v7987_v53  ;;  %v790_v60 = vadd.f32 %v789_v38, %v7989_v54  ;;  %v7297_v38 = vld [vmem:[%s11559_s5 + $0x34] sm:$0xf0] }
 0x103   : > { %v983_v45 = vmax.f32 %v916_v41, 0.0  ;;  %v6419_v39 = vor.u32 %v7297_v38, %v6418_v37 }
 0x104   : > { %1433 = vmatmul.bf16.gmra.mxu0 %v1002_v33  ;;  %v953_v4 = vmax.f32 %v879_v56, 0.0  ;;  %v952_v13 = vmax.f32 %v790_v60, 0.0  ;;  %v7304_v56 = vld [vmem:[%s11559_s5 + $0x74] sm:$0xf]  ;;  %v6452_v60 = vld [vmem:[%s11559_s5 + $0x78] sm:$0xf0] }
 0x105   : > { %v8101_v55 = vpack.c.bf16 %v983_v45, %v981_v40  ;;  %1876 = vmatpush.bf16.msra.mxu2 %v6419_v39 }
 0x106   : > { %v8120_v49 = vpop.f32.mrf.mxu2 }
 0x108   : > { %v918_v61 = vpop.f32.mrf.mxu3 }
 0x109   : > { %v791_v62 = vpop.f32.mrf.mxu0  ;;  %v880_v2 = vpop.f32.mrf.mxu1  ;;  %v919_v18 = vadd.f32 %v918_v61, %v7987_v53  ;;  %v7320_v61 = vld [vmem:[%s11559_s5 + $0xf4] sm:$0xf] }
 0x10a   : > { %v792_v10 = vadd.f32 %v791_v62, %v7989_v54  ;;  %v881_v11 = vadd.f32 %v880_v2, %v7987_v53 }
 0x10b   : > { %v985_v33 = vmax.f32 %v919_v18, 0.0 }
 0x10c   : > { %v954_v14 = vmax.f32 %v792_v10, 0.0  ;;  %v955_v15 = vmax.f32 %v881_v11, 0.0  ;;  %v6516_v10 = vld [vmem:[%s11559_s5 + $0xf8] sm:$0xf0] }
 0x10e   : > { %v1004_v20 = vpack.c.bf16 %v954_v14, %v952_v13  ;;  %v1005_v24 = vpack.c.bf16 %v955_v15, %v953_v4  ;;  %v6455_v4 = vor.u32 %v7304_v56, %v6452_v60  ;;  %v6519_v15 = vor.u32 %v7320_v61, %v6516_v10 }
 0x110   : > { %1260 = vmatmul.bf16.gmra.mxu2 %v1004_v20  ;;  %1349 = vmatmul.bf16.gmra.mxu3 %v1005_v24  ;;  %v920_v27 = vpop.f32.mrf.mxu3 }
 0x111   : > { %1527 = vmatmul.bf16.gmra.mxu1 %v1005_v24  ;;  %v794_v30 = vpop.f32.mrf.mxu0  ;;  %v883_v32 = vpop.f32.mrf.mxu1  ;;  %v921_v36 = vadd.f32 %v920_v27, %v7987_v53  ;;  %2050 = vmatpush.bf16.msra.mxu0 %v6455_v4 }
 0x112   : > { %v884_v45 = vadd.f32 %v883_v32, %v7987_v53  ;;  %v795_v51 = vadd.f32 %v794_v30, %v7989_v54  ;;  %2139 = vmatpush.bf16.msra.mxu1 %v6519_v15 }
 0x113   : > { %v987_v40 = vmax.f32 %v921_v36, 0.0  ;;  %v8138_v36 = vpop.f32.mrf.mxu2 }
 0x114   : > { %1438 = vmatmul.bf16.gmra.mxu0 %v1004_v20  ;;  %v957_v11 = vmax.f32 %v884_v45, 0.0  ;;  %v956_v18 = vmax.f32 %v795_v51, 0.0  ;;  %v6482_v51 = vld [vmem:[%s11559_s5 + $0xb0] sm:$0xf] }
 0x115   : > { %v8117_v41 = vpack.c.bf16 %v987_v40, %v985_v33 }
 0x118   : > { %v923_v52 = vpop.f32.mrf.mxu3 }
 0x119   : > { %v796_v62 = vpop.f32.mrf.mxu0  ;;  %v885_v2 = vpop.f32.mrf.mxu1  ;;  %v924_v27 = vadd.f32 %v923_v52, %v7987_v53  ;;  %v7313_v52 = vld [vmem:[%s11559_s5 + $0xb4] sm:$0xf0] }
 0x11a   : > { %v797_v13 = vadd.f32 %v796_v62, %v7989_v54  ;;  %v886_v14 = vadd.f32 %v885_v2, %v7987_v53  ;;  %v6483_v56 = vor.u32 %v7313_v52, %v6482_v51 }
 0x11b   : > { %v989_v38 = vmax.f32 %v924_v27, 0.0 }
 0x11c   : > { %v958_v20 = vmax.f32 %v797_v13, 0.0  ;;  %v959_v24 = vmax.f32 %v886_v14, 0.0  ;;  %1965 = vmatpush.bf16.msra.mxu3 %v6483_v56  ;;  %v8158_v13 = vld [vmem:[%s11616_s0] sm:$0x3] }
 0x11d   : > { %v8162_v14 = vperm.slane %v8158_v13, 0 }
 0x11e   : > { %v1006_v30 = vpack.c.bf16 %v958_v20, %v956_v18  ;;  %v1007_v32 = vpack.c.bf16 %v959_v24, %v957_v11  ;;  %v6410_v18 = vld [vmem:[%s11559_s5 + $0x20] sm:$0xf]  ;;  %v7295_v20 = vld [vmem:[%s11559_s5 + $0x24] sm:$0xf0] }
 0x11f   : > { %v6411_v24 = vor.u32 %v7295_v20, %v6410_v18 }
 0x120   : > { %1265 = vmatmul.bf16.gmra.mxu2 %v1006_v30  ;;  %1354 = vmatmul.bf16.gmra.mxu3 %v1007_v32  ;;  %v925_v33 = vpop.f32.mrf.mxu3 }
 0x121   : > { %1532 = vmatmul.bf16.gmra.mxu1 %v1007_v32  ;;  %v799_v37 = vpop.f32.mrf.mxu0  ;;  %v926_v39 = vadd.f32 %v925_v33, %v7987_v53  ;;  %v8151_v53 = vpop.f32.mrf.mxu2  ;;  %1877 = vmatpush.bf16.msra.mxu2 %v6411_v24  ;;  %v807_v33 = vadd.f32 %v8013_v28, %v7989_v54  ;;  %v6508_v28 = vld [vmem:[%s11559_s5 + $0xe8] sm:$0xf0] }
 0x122   : > { %v800_v60 = vadd.f32 %v799_v37, %v7989_v54 }
 0x123   : > { %v991_v40 = vmax.f32 %v926_v39, 0.0  ;;  %v7302_v39 = vld [vmem:[%s11559_s5 + $0x64] sm:$0xf] }
 0x124   : > { %1443 = vmatmul.bf16.gmra.mxu0 %v1006_v30  ;;  %v960_v2 = vmax.f32 %v800_v60, 0.0  ;;  %v966_v60 = vmax.f32 %v807_v33, 0.0 }
 0x125   : > { %v8141_v45 = vpack.c.bf16 %v991_v40, %v989_v38  ;;  %v6444_v40 = vld [vmem:[%s11559_s5 + $0x68] sm:$0xf0] }
 0x126   : > { %v6447_v52 = vor.u32 %v7302_v39, %v6444_v40  ;;  %v810_v40 = vadd.f32 %v8021_v48, %v7989_v54 }
 0x128   : > { %2051 = vmatpush.bf16.msra.mxu0 %v6447_v52 }
 0x129   : > { %v801_v61 = vpop.f32.mrf.mxu0 }
 0x12a   : > { %v802_v62 = vadd.f32 %v801_v61, %v7989_v54 }
 0x12c   : > { %v962_v4 = vmax.f32 %v802_v62, 0.0 }
 0x12e   : > { %v8153_v10 = vpop.f32.mrf.mxu1  ;;  %v1008_v11 = vpack.c.bf16 %v962_v4, %v960_v2 }
 0x130   : > { %1270 = vmatmul.bf16.gmra.mxu2 %v1008_v11  ;;  %1359 = vmatmul.bf16.gmra.mxu3 %v8015_v31 }
 0x131   : > { %1537 = vmatmul.bf16.gmra.mxu1 %v8015_v31  ;;  %v8165_v15 = vpop.f32.mrf.mxu0  ;;  %v805_v31 = vadd.f32 %v8001_v0, %v7989_v54  ;;  %v7318_v0 = vld [vmem:[%s11559_s5 + $0xe4] sm:$0xf] }
 0x132   : > { %v6511_v61 = vor.u32 %v7318_v0, %v6508_v28  ;;  %v7311_v28 = vld [vmem:[%s11559_s5 + $0xa4] sm:$0xf0] }
 0x133   : > { %v1231_v27 = vpop.f32.mrf.mxu2  ;;  %v1320_v30 = vpop.f32.mrf.mxu3  ;;  %v964_v56 = vmax.f32 %v805_v31, 0.0 }
 0x134   : > { %v1232_v32 = vadd.f32 %v1231_v27, %v8162_v14  ;;  %1448 = vmatmul.bf16.gmra.mxu0 %v1008_v11  ;;  %2140 = vmatpush.bf16.msra.mxu1 %v6511_v61  ;;  %v968_v61 = vmax.f32 %v810_v40, 0.0 }
 0x135   : > { %v1010_v20 = vpack.c.bf16 %v966_v60, %v964_v56 }
 0x136   : > { %v1321_v37 = vadd.f32 %v1320_v30, %v1232_v32  ;;  %v8178_v38 = vpop.f32.mrf.mxu1 }
 0x138   : > { %v1578_v24 = vmax.f32 %v1321_v37, 0.0  ;;  %v812_v37 = vadd.f32 %v8034_v9, %v7989_v54 }
 0x139   : > { %v8186_v51 = vpop.f32.mrf.mxu0 }
 0x13a   : > { %v970_v48 = vmax.f32 %v812_v37, 0.0 }
 0x13b   : > { %v1233_v62 = vpop.f32.mrf.mxu2  ;;  %v1322_v2 = vpop.f32.mrf.mxu3 }
 0x13c   : > { %v1234_v4 = vadd.f32 %v1233_v62, %v8162_v14 }
 0x13e   : > { %v1323_v11 = vadd.f32 %v1322_v2, %v1234_v4  ;;  %v8195_v18 = vpop.f32.mrf.mxu1 }
 0x140   : > { %v1580_v27 = vmax.f32 %v1323_v11, 0.0  ;;  %1275 = vmatmul.bf16.gmra.mxu2 %v1010_v20  ;;  %1364 = vmatmul.bf16.gmra.mxu3 %v8031_v5 }
 0x141   : > { %1542 = vmatmul.bf16.gmra.mxu1 %v8031_v5  ;;  %v8199_v30 = vpop.f32.mrf.mxu0  ;;  %v6474_v5 = vld [vmem:[%s11559_s5 + $0xa0] sm:$0xf] }
 0x142   : > { %v8201_v32 = vpack.c.bf16 %v1580_v27, %v1578_v24  ;;  %v6475_v56 = vor.u32 %v7311_v28, %v6474_v5 }
 0x143   : > { %v1236_v31 = vpop.f32.mrf.mxu2  ;;  %v1325_v33 = vpop.f32.mrf.mxu3 }
 0x144   : > { %v1237_v39 = vadd.f32 %v1236_v31, %v8162_v14  ;;  %1453 = vmatmul.bf16.gmra.mxu0 %v1010_v20  ;;  %1966 = vmatpush.bf16.msra.mxu3 %v6475_v56  ;;  %v1012_v20 = vpack.c.bf16 %v970_v48, %v968_v61  ;;  %v817_v56 = vadd.f32 %v8055_v57, %v7989_v54  ;;  %v6500_v57 = vld [vmem:[%s11559_s5 + $0xd8] sm:$0xf0] }
 0x146   : > { %v1326_v52 = vadd.f32 %v1325_v33, %v1237_v39  ;;  %v8208_v0 = vpop.f32.mrf.mxu1  ;;  %v6402_v33 = vld [vmem:[%s11559_s5 + $0x10] sm:$0xf]  ;;  %v7293_v39 = vld [vmem:[%s11559_s5 + $0x14] sm:$0xf0] }
 0x147   : > { %v6403_v40 = vor.u32 %v7293_v39, %v6402_v33 }
 0x148   : > { %v1582_v24 = vmax.f32 %v1326_v52, 0.0 }
 0x149   : > { %v8216_v60 = vpop.f32.mrf.mxu0  ;;  %1878 = vmatpush.bf16.msra.mxu2 %v6403_v40 }
 0x14b   : > { %v1238_v62 = vpop.f32.mrf.mxu2  ;;  %v1327_v2 = vpop.f32.mrf.mxu3 }
 0x14c   : > { %v1239_v9 = vadd.f32 %v1238_v62, %v8162_v14  ;;  %v7300_v62 = vld [vmem:[%s11559_s5 + $0x54] sm:$0xf] }
 0x14e   : > { %v1328_v4 = vadd.f32 %v1327_v2, %v1239_v9  ;;  %v8219_v11 = vpop.f32.mrf.mxu1  ;;  %v6436_v2 = vld [vmem:[%s11559_s5 + $0x58] sm:$0xf0] }
 0x150   : > { %v1584_v27 = vmax.f32 %v1328_v4, 0.0  ;;  %1280 = vmatmul.bf16.gmra.mxu2 %v1012_v20  ;;  %1369 = vmatmul.bf16.gmra.mxu3 %v8049_v42  ;;  %v6439_v4 = vor.u32 %v7300_v62, %v6436_v2 }
 0x151   : > { %1547 = vmatmul.bf16.gmra.mxu1 %v8049_v42  ;;  %v8223_v31 = vpop.f32.mrf.mxu0  ;;  %v815_v42 = vadd.f32 %v8040_v29, %v7989_v54  ;;  %v7316_v29 = vld [vmem:[%s11559_s5 + $0xd4] sm:$0xf] }
 0x152   : > { %v8231_v37 = vpack.c.bf16 %v1584_v27, %v1582_v24  ;;  %v974_v24 = vmax.f32 %v817_v56, 0.0  ;;  %v6503_v27 = vor.u32 %v7316_v29, %v6500_v57  ;;  %2052 = vmatpush.bf16.msra.mxu0 %v6439_v4 }
 0x153   : > { %v1241_v52 = vpop.f32.mrf.mxu2  ;;  %v1330_v5 = vpop.f32.mrf.mxu3 }
 0x154   : > { %v1242_v28 = vadd.f32 %v1241_v52, %v8162_v14  ;;  %1458 = vmatmul.bf16.gmra.mxu0 %v1012_v20  ;;  %v972_v20 = vmax.f32 %v815_v42, 0.0  ;;  %2141 = vmatpush.bf16.msra.mxu1 %v6503_v27  ;;  %v820_v27 = vadd.f32 %v8059_v16, %v7989_v54 }
 0x156   : > { %v1331_v61 = vadd.f32 %v1330_v5, %v1242_v28  ;;  %v8238_v48 = vpop.f32.mrf.mxu1  ;;  %v1014_v28 = vpack.c.bf16 %v974_v24, %v972_v20 }
 0x158   : > { %v1586_v62 = vmax.f32 %v1331_v61, 0.0  ;;  %v822_v61 = vadd.f32 %v8074_v50, %v7989_v54 }
 0x159   : > { %v8246_v9 = vpop.f32.mrf.mxu0 }
 0x15a   : > { %v978_v16 = vmax.f32 %v822_v61, 0.0  ;;  %v7291_v61 = vld [vmem:[%s11559_s5 + $0x4] sm:$0xf0] }
 0x15b   : > { %v1243_v33 = vpop.f32.mrf.mxu2  ;;  %v1332_v39 = vpop.f32.mrf.mxu3 }
 0x15c   : > { %v1244_v40 = vadd.f32 %v1243_v33, %v8162_v14  ;;  %v7309_v33 = vld [vmem:[%s11559_s5 + $0x94] sm:$0xf0] }
 0x15e   : > { %v1333_v52 = vadd.f32 %v1332_v39, %v1244_v40  ;;  %v8255_v5 = vpop.f32.mrf.mxu1 }
 0x160   : > { %v1588_v2 = vmax.f32 %v1333_v52, 0.0  ;;  %1285 = vmatmul.bf16.gmra.mxu2 %v1014_v28  ;;  %1374 = vmatmul.bf16.gmra.mxu3 %v8067_v21  ;;  %v976_v52 = vmax.f32 %v820_v27, 0.0  ;;  %v6394_v27 = vld [vmem:[%s11559_s5] sm:$0xf] }
 0x161   : > { %1552 = vmatmul.bf16.gmra.mxu1 %v8067_v21  ;;  %v8259_v42 = vpop.f32.mrf.mxu0  ;;  %v6466_v21 = vld [vmem:[%s11559_s5 + $0x90] sm:$0xf] }
 0x162   : > { %v8261_v56 = vpack.c.bf16 %v1588_v2, %v1586_v62  ;;  %v6467_v39 = vor.u32 %v7309_v33, %v6466_v21  ;;  %v6395_v33 = vor.u32 %v7291_v61, %v6394_v27 }
 0x163   : > { %v1246_v29 = vpop.f32.mrf.mxu2  ;;  %v1335_v4 = vpop.f32.mrf.mxu3 }
 0x164   : > { %v1247_v57 = vadd.f32 %v1246_v29, %v8162_v14  ;;  %1463 = vmatmul.bf16.gmra.mxu0 %v1014_v28  ;;  %1967 = vmatpush.bf16.msra.mxu3 %v6467_v39 }
 0x165   : > { %1879 = vmatpush.bf16.msra.mxu2 %v6395_v33 }
 0x166   : > { %v1336_v20 = vadd.f32 %v1335_v4, %v1247_v57  ;;  %v8268_v24 = vpop.f32.mrf.mxu1  ;;  %v1016_v4 = vpack.c.bf16 %v978_v16, %v976_v52 }
 0x168   : > { %v1590_v57 = vmax.f32 %v1336_v20, 0.0 }
 0x169   : > { %v8276_v40 = vpop.f32.mrf.mxu0 }
 0x16b   : > { %v1248_v28 = vpop.f32.mrf.mxu2  ;;  %v1337_v62 = vpop.f32.mrf.mxu3 }
 0x16c   : > { %v1249_v50 = vadd.f32 %v1248_v28, %v8162_v14  ;;  %v827_v28 = vadd.f32 %v8093_v44, %v7989_v54  ;;  %v6492_v44 = vld [vmem:[%s11559_s5 + $0xc8] sm:$0xf0] }
 0x16e   : > { %v1338_v2 = vadd.f32 %v1337_v62, %v1249_v50  ;;  %v8279_v29 = vpop.f32.mrf.mxu1  ;;  %v982_v61 = vmax.f32 %v827_v28, 0.0 }
 0x170   : > { %v1592_v1 = vmax.f32 %v1338_v2, 0.0  ;;  %1290 = vmatmul.bf16.gmra.mxu2 %v1016_v4  ;;  %1379 = vmatmul.bf16.gmra.mxu3 %v8083_v6  ;;  %v6428_v2 = vld [vmem:[%s11559_s5 + $0x48] sm:$0xf0] }
 0x171   : > { %1557 = vmatmul.bf16.gmra.mxu1 %v8083_v6  ;;  %v8283_v21 = vpop.f32.mrf.mxu0  ;;  %v825_v6 = vadd.f32 %v8087_v12, %v7989_v54  ;;  %v7314_v12 = vld [vmem:[%s11559_s5 + $0xc4] sm:$0xf] }
 0x172   : > { %v8291_v39 = vpack.c.bf16 %v1592_v1, %v1590_v57  ;;  %v7298_v1 = vld [vmem:[%s11559_s5 + $0x44] sm:$0xf]  ;;  %v6495_v33 = vor.u32 %v7314_v12, %v6492_v44 }
 0x173   : > { %v1251_v20 = vpop.f32.mrf.mxu2  ;;  %v1340_v52 = vpop.f32.mrf.mxu3  ;;  %v980_v27 = vmax.f32 %v825_v6, 0.0  ;;  %v6484_v6 = vld [vmem:[%s11559_s5 + $0xb8] sm:$0xf0] }
 0x174   : > { %v1252_v16 = vadd.f32 %v1251_v20, %v8162_v14  ;;  %1468 = vmatmul.bf16.gmra.mxu0 %v1016_v4  ;;  %v6431_v4 = vor.u32 %v7298_v1, %v6428_v2  ;;  %2142 = vmatpush.bf16.msra.mxu1 %v6495_v33  ;;  %v7312_v2 = vld [vmem:[%s11559_s5 + $0xb4] sm:$0xf] }
 0x175   : > { %v1018_v1 = vpack.c.bf16 %v982_v61, %v980_v27 }
 0x176   : > { %v1341_v62 = vadd.f32 %v1340_v52, %v1252_v16  ;;  %v8298_v50 = vpop.f32.mrf.mxu1  ;;  %2053 = vmatpush.bf16.msra.mxu0 %v6431_v4  ;;  %v6487_v4 = vor.u32 %v7312_v2, %v6484_v6  ;;  %v830_v6 = vadd.f32 %v8107_v17, %v7989_v54  ;;  %v7294_v17 = vld [vmem:[%s11559_s5 + $0x24] sm:$0xf] }
 0x178   : > { %v1594_v28 = vmax.f32 %v1341_v62, 0.0  ;;  %2143 = vmatpush.bf16.msra.mxu1 %v6487_v4  ;;  %v7310_v62 = vld [vmem:[%s11559_s5 + $0xa4] sm:$0xf] }
 0x179   : > { %v8306_v57 = vpop.f32.mrf.mxu0 }
 0x17b   : > { %v1253_v20 = vpop.f32.mrf.mxu2  ;;  %v1342_v52 = vpop.f32.mrf.mxu3 }
 0x17c   : > { %v1254_v16 = vadd.f32 %v1253_v20, %v8162_v14  ;;  %v7296_v20 = vld [vmem:[%s11559_s5 + $0x34] sm:$0xf] }
 0x17e   : > { %v1343_v26 = vadd.f32 %v1342_v52, %v1254_v16  ;;  %v8315_v8 = vpop.f32.mrf.mxu1  ;;  %v6476_v16 = vld [vmem:[%s11559_s5 + $0xa8] sm:$0xf0] }
 0x17f   : > { %v6479_v2 = vor.u32 %v7310_v62, %v6476_v16  ;;  %v6468_v62 = vld [vmem:[%s11559_s5 + $0x98] sm:$0xf0]  ;;  %v984_v16 = vmax.f32 %v830_v6, 0.0 }
 0x180   : > { %v1596_v12 = vmax.f32 %v1343_v26, 0.0  ;;  %1295 = vmatmul.bf16.gmra.mxu2 %v1018_v1  ;;  %1384 = vmatmul.bf16.gmra.mxu3 %v8101_v55  ;;  %v6420_v26 = vld [vmem:[%s11559_s5 + $0x38] sm:$0xf0] }
 0x181   : > { %1562 = vmatmul.bf16.gmra.mxu1 %v8101_v55  ;;  %v8325_v44 = vpop.f32.mrf.mxu0  ;;  %v6423_v52 = vor.u32 %v7296_v20, %v6420_v26 }
 0x182   : > { %v8327_v27 = vpack.c.bf16 %v1596_v12, %v1594_v28  ;;  %v832_v28 = vadd.f32 %v8120_v49, %v7989_v54  ;;  %2144 = vmatpush.bf16.msra.mxu1 %v6479_v2  ;;  %v6412_v49 = vld [vmem:[%s11559_s5 + $0x28] sm:$0xf0] }
 0x183   : > { %v1256_v61 = vpop.f32.mrf.mxu2  ;;  %v1345_v33 = vpop.f32.mrf.mxu3  ;;  %2054 = vmatpush.bf16.msra.mxu0 %v6423_v52  ;;  %v6415_v26 = vor.u32 %v7294_v17, %v6412_v49  ;;  %v6404_v17 = vld [vmem:[%s11559_s5 + $0x18] sm:$0xf0]  ;;  %v7306_v49 = vld [vmem:[%s11559_s5 + $0x84] sm:$0xf] }
 0x184   : > { %v1257_v55 = vadd.f32 %v1256_v61, %v8162_v14  ;;  %1473 = vmatmul.bf16.gmra.mxu0 %v1018_v1  ;;  %v6458_v61 = vld [vmem:[%s11559_s5 + $0x80] sm:$0xf]  ;;  %v7307_v1 = vld [vmem:[%s11559_s5 + $0x84] sm:$0xf0]  ;;  %v986_v2 = vmax.f32 %v832_v28, 0.0  ;;  %v6407_v6 = vor.u32 %v7292_v59, %v6404_v17 }
 0x185   : > { %v6459_v20 = vor.u32 %v7307_v1, %v6458_v61  ;;  %v6460_v28 = vld [vmem:[%s11559_s5 + $0x88] sm:$0xf0] }
 0x186   : > { %v1346_v12 = vadd.f32 %v1345_v33, %v1257_v55  ;;  %v8346_v4 = vpop.f32.mrf.mxu1  ;;  %v7308_v33 = vld [vmem:[%s11559_s5 + $0x94] sm:$0xf] }
 0x187   : > { %1968 = vmatpush.bf16.msra.mxu3 %v6459_v20  ;;  %v6471_v52 = vor.u32 %v7308_v33, %v6468_v62  ;;  %2055 = vmatpush.bf16.msra.mxu0 %v6415_v26  ;;  %v6463_v33 = vor.u32 %v7306_v49, %v6460_v28 }
 0x188   : > { %v1598_v59 = vmax.f32 %v1346_v12, 0.0 }
 0x189   : > { %v8366_v55 = vpop.f32.mrf.mxu0  ;;  %2145 = vmatpush.bf16.msra.mxu1 %v6471_v52  ;;  %v1020_v52 = vpack.c.bf16 %v986_v2, %v984_v16  ;;  %v6578_v16 = vld [vmem:[%s11561_s7 + $0x70] sm:$0xf]  ;;  %v7337_v2 = vld [vmem:[%s11561_s7 + $0x74] sm:$0xf0] }
 0x18b   : > { %v1258_v61 = vpop.f32.mrf.mxu2  ;;  %v1347_v1 = vpop.f32.mrf.mxu3  ;;  %2056 = vmatpush.bf16.msra.mxu0 %v6407_v6 }
 0x18c   : > { %v1259_v20 = vadd.f32 %v1258_v61, %v8162_v14  ;;  %v6396_v61 = vld [vmem:[%s11559_s5 + $0x8] sm:$0xf0] }
 0x18d   : > { %2146 = vmatpush.bf16.msra.mxu1 %v6463_v33  ;;  %v6399_v49 = vor.u32 %v7290_v47, %v6396_v61  ;;  %v837_v33 = vadd.f32 %v8151_v53, %v7989_v54 }
 0x18e   : > { %v1348_v26 = vadd.f32 %v1347_v1, %v1259_v20  ;;  %v8381_v62 = vpop.f32.mrf.mxu1  ;;  %v6579_v20 = vor.u32 %v7337_v2, %v6578_v16 }
 0x18f   : > { %2057 = vmatpush.bf16.msra.mxu0 %v6399_v49 }
 0x190   : > { %v1600_v17 = vmax.f32 %v1348_v26, 0.0  ;;  %1300 = vmatmul.bf16.gmra.mxu2 %v1020_v52  ;;  %1389 = vmatmul.bf16.gmra.mxu3 %v8117_v41 }
 0x191   : > { %1567 = vmatmul.bf16.gmra.mxu1 %v8117_v41  ;;  %v8391_v1 = vpop.f32.mrf.mxu0  ;;  %2522 = vmatpush.bf16.msrb.mxu2 %v6579_v20  ;;  %v835_v41 = vadd.f32 %v8138_v36, %v7989_v54  ;;  %v8414_v36 = vperm.slane %v8158_v13, 1 }
 0x192   : > { %v8399_v12 = vpack.c.bf16 %v1600_v17, %v1598_v59  ;;  %v990_v59 = vmax.f32 %v837_v33, 0.0 }
 0x193   : > { %v1261_v6 = vpop.f32.mrf.mxu2  ;;  %v1350_v28 = vpop.f32.mrf.mxu3  ;;  %v988_v49 = vmax.f32 %v835_v41, 0.0  ;;  %v1410_v13 = vadd.f32 %v8165_v15, %v8414_v36 }
 0x194   : > { %v1262_v47 = vadd.f32 %v1261_v6, %v8162_v14  ;;  %1478 = vmatmul.bf16.gmra.mxu0 %v1020_v52 }
 0x195   : > { %v1022_v20 = vpack.c.bf16 %v990_v59, %v988_v49 }
 0x196   : > { %v1351_v26 = vadd.f32 %v1350_v28, %v1262_v47  ;;  %v8406_v61 = vpop.f32.mrf.mxu1  ;;  %v1412_v28 = vadd.f32 %v8186_v51, %v8414_v36 }
 0x198   : > { %v1602_v23 = vmax.f32 %v1351_v26, 0.0  ;;  %v1501_v49 = vadd.f32 %v8178_v38, %v1412_v28 }
 0x199   : > { %v8408_v35 = vpop.f32.mrf.mxu0 }
 0x19b   : > { %v1263_v17 = vpop.f32.mrf.mxu2  ;;  %v1352_v16 = vpop.f32.mrf.mxu3 }
 0x19c   : > { %v1264_v2 = vadd.f32 %v1263_v17, %v8162_v14 }
 0x19e   : > { %v1353_v6 = vadd.f32 %v1352_v16, %v1264_v2  ;;  %v8411_v52 = vpop.f32.mrf.mxu1  ;;  %v1499_v16 = vadd.f32 %v8153_v10, %v1410_v13  ;;  %v1581_v2 = vmax.f32 %v1501_v49, 0.0  ;;  %v6570_v13 = vld [vmem:[%s11561_s7 + $0x60] sm:$0xf]  ;;  %v7335_v49 = vld [vmem:[%s11561_s7 + $0x64] sm:$0xf0] }
 0x1a0   : > { %v1604_v54 = vmax.f32 %v1353_v6, 0.0  ;;  %1305 = vmatmul.bf16.gmra.mxu2 %v1022_v20  ;;  %1394 = vmatmul.bf16.gmra.mxu3 %v8141_v45 }
 0x1a1   : > { %1572 = vmatmul.bf16.gmra.mxu1 %v8141_v45  ;;  %v8418_v53 = vpop.f32.mrf.mxu0  ;;  %v6642_v45 = vld [vmem:[%s11561_s7 + $0xf0] sm:$0xf] }
 0x1a2   : > { %v8422_v47 = vpack.c.bf16 %v1604_v54, %v1602_v23  ;;  %v7353_v23 = vld [vmem:[%s11561_s7 + $0xf4] sm:$0xf0] }
 0x1a3   : > { %v1266_v41 = vpop.f32.mrf.mxu2  ;;  %v1355_v33 = vpop.f32.mrf.mxu3  ;;  %v6643_v51 = vor.u32 %v7353_v23, %v6642_v45  ;;  %v1417_v45 = vadd.f32 %v8216_v60, %v8414_v36  ;;  %v6571_v23 = vor.u32 %v7335_v49, %v6570_v13 }
 0x1a4   : > { %v1267_v26 = vadd.f32 %v1266_v41, %v8162_v14  ;;  %1483 = vmatmul.bf16.gmra.mxu0 %v1022_v20  ;;  %v1579_v20 = vmax.f32 %v1499_v16, 0.0 }
 0x1a5   : > { %2611 = vmatpush.bf16.msrb.mxu3 %v6643_v51  ;;  %2523 = vmatpush.bf16.msrb.mxu2 %v6571_v23 }
 0x1a6   : > { %v1356_v59 = vadd.f32 %v1355_v33, %v1267_v26  ;;  %v8428_v17 = vpop.f32.mrf.mxu1  ;;  %v1643_v28 = vpack.c.bf16 %v1581_v2, %v1579_v20  ;;  %v1415_v2 = vadd.f32 %v8199_v30, %v8414_v36 }
 0x1a8   : > { %v1606_v26 = vmax.f32 %v1356_v59, 0.0  ;;  %v1504_v60 = vadd.f32 %v8195_v18, %v1415_v2  ;;  %v1422_v18 = vadd.f32 %v8246_v9, %v8414_v36  ;;  %v6634_v9 = vld [vmem:[%s11561_s7 + $0xe0] sm:$0xf] }
 0x1a9   : > { %v8437_v15 = vpop.f32.mrf.mxu0 }
 0x1aa   : > { %v1583_v13 = vmax.f32 %v1504_v60, 0.0 }
 0x1ab   : > { %v1268_v6 = vpop.f32.mrf.mxu2  ;;  %v1357_v38 = vpop.f32.mrf.mxu3 }
 0x1ac   : > { %v1269_v54 = vadd.f32 %v1268_v6, %v8162_v14 }
 0x1ae   : > { %v1358_v41 = vadd.f32 %v1357_v38, %v1269_v54  ;;  %v8440_v33 = vpop.f32.mrf.mxu1  ;;  %v1506_v38 = vadd.f32 %v8208_v0, %v1417_v45 }
 0x1b0   : > { %v1608_v22 = vmax.f32 %v1358_v41, 0.0  ;;  %1880 = vmatmul.bf16.vlgmr.msra.gmra.mxu2 %v8201_v32  ;;  %1969 = vmatmul.bf16.vlgmr.msra.gmra.mxu3 %v1643_v28 }
 0x1b1   : > { %2147 = vmatmul.bf16.vlgmr.msra.gmra.mxu1 %v1643_v28  ;;  %v8443_v10 = vpop.f32.mrf.mxu0 }
 0x1b2   : > { %v8453_v59 = vpack.c.bf16 %v1608_v22, %v1606_v26  ;;  %v1585_v22 = vmax.f32 %v1506_v38, 0.0 }
 0x1b3   : > { %v1271_v51 = vpop.f32.mrf.mxu2  ;;  %v1360_v16 = vpop.f32.mrf.mxu3 }
 0x1b4   : > { %v1272_v6 = vadd.f32 %v1271_v51, %v8162_v14  ;;  %2058 = vmatmul.bf16.vlgmr.msra.gmra.mxu0 %v8201_v32  ;;  %v1645_v32 = vpack.c.bf16 %v1585_v22, %v1583_v13 }
 0x1b6   : > { %v1361_v20 = vadd.f32 %v1360_v16, %v1272_v6  ;;  %v8460_v54 = vpop.f32.mrf.mxu1  ;;  %v1420_v6 = vadd.f32 %v8223_v31, %v8414_v36 }
 0x1b8   : > { %v1610_v23 = vmax.f32 %v1361_v20, 0.0  ;;  %v1511_v20 = vadd.f32 %v8238_v48, %v1422_v18  ;;  %v1509_v31 = vadd.f32 %v8219_v11, %v1420_v6  ;;  %v6562_v6 = vld [vmem:[%s11561_s7 + $0x50] sm:$0xf] }
 0x1b9   : > { %v8463_v28 = vpop.f32.mrf.mxu0 }
 0x1bb   : > { %v1273_v41 = vpop.f32.mrf.mxu2  ;;  %v1362_v26 = vpop.f32.mrf.mxu3 }
 0x1bc   : > { %v1274_v30 = vadd.f32 %v1273_v41, %v8162_v14 }
 0x1be   : > { %v1363_v49 = vadd.f32 %v1362_v26, %v1274_v30  ;;  %v8466_v51 = vpop.f32.mrf.mxu1  ;;  %v1587_v30 = vmax.f32 %v1509_v31, 0.0  ;;  %v1425_v31 = vadd.f32 %v8259_v42, %v8414_v36 }
 0x1c0   : > { %v1612_v43 = vmax.f32 %v1363_v49, 0.0  ;;  %1885 = vmatmul.bf16.gmra.mxu2 %v8231_v37  ;;  %1974 = vmatmul.bf16.gmra.mxu3 %v1645_v32 }
 0x1c1   : > { %2152 = vmatmul.bf16.gmra.mxu1 %v1645_v32  ;;  %v8469_v0 = vpop.f32.mrf.mxu0 }
 0x1c2   : > { %v8473_v45 = vpack.c.bf16 %v1612_v43, %v1610_v23  ;;  %v7351_v43 = vld [vmem:[%s11561_s7 + $0xe4] sm:$0xf0] }
 0x1c3   : > { %v1276_v16 = vpop.f32.mrf.mxu2  ;;  %v1365_v2 = vpop.f32.mrf.mxu3  ;;  %v6635_v41 = vor.u32 %v7351_v43, %v6634_v9 }
 0x1c4   : > { %v1277_v38 = vadd.f32 %v1276_v16, %v8162_v14  ;;  %2063 = vmatmul.bf16.gmra.mxu0 %v8231_v37  ;;  %v1589_v37 = vmax.f32 %v1511_v20, 0.0  ;;  %v1427_v20 = vadd.f32 %v8276_v40, %v8414_v36  ;;  %v1514_v40 = vadd.f32 %v8255_v5, %v1425_v31 }
 0x1c5   : > { %2612 = vmatpush.bf16.msrb.mxu3 %v6635_v41  ;;  %v1432_v5 = vadd.f32 %v8306_v57, %v8414_v36  ;;  %v6626_v57 = vld [vmem:[%s11561_s7 + $0xd0] sm:$0xf] }
 0x1c6   : > { %v1366_v60 = vadd.f32 %v1365_v2, %v1277_v38  ;;  %v8480_v22 = vpop.f32.mrf.mxu1  ;;  %v1647_v18 = vpack.c.bf16 %v1589_v37, %v1587_v30  ;;  %v7333_v38 = vld [vmem:[%s11561_s7 + $0x54] sm:$0xf0] }
 0x1c7   : > { %v6563_v9 = vor.u32 %v7333_v38, %v6562_v6 }
 0x1c8   : > { %v1614_v16 = vmax.f32 %v1366_v60, 0.0 }
 0x1c9   : > { %v8489_v26 = vpop.f32.mrf.mxu0  ;;  %2524 = vmatpush.bf16.msrb.mxu2 %v6563_v9 }
 0x1cb   : > { %v1278_v13 = vpop.f32.mrf.mxu2  ;;  %v1367_v48 = vpop.f32.mrf.mxu3 }
 0x1cc   : > { %v1279_v49 = vadd.f32 %v1278_v13, %v8162_v14  ;;  %v1516_v13 = vadd.f32 %v8268_v24, %v1427_v20 }
 0x1ce   : > { %v1368_v32 = vadd.f32 %v1367_v48, %v1279_v49  ;;  %v8492_v23 = vpop.f32.mrf.mxu1 }
 0x1d0   : > { %v1616_v2 = vmax.f32 %v1368_v32, 0.0  ;;  %1890 = vmatmul.bf16.gmra.mxu2 %v8261_v56  ;;  %1979 = vmatmul.bf16.gmra.mxu3 %v1647_v18  ;;  %v1593_v32 = vmax.f32 %v1516_v13, 0.0 }
 0x1d1   : > { %2157 = vmatmul.bf16.gmra.mxu1 %v1647_v18  ;;  %v8495_v11 = vpop.f32.mrf.mxu0 }
 0x1d2   : > { %v8505_v60 = vpack.c.bf16 %v1616_v2, %v1614_v16  ;;  %v1591_v2 = vmax.f32 %v1514_v40, 0.0 }
 0x1d3   : > { %v1281_v43 = vpop.f32.mrf.mxu2  ;;  %v1370_v41 = vpop.f32.mrf.mxu3 }
 0x1d4   : > { %v1282_v37 = vadd.f32 %v1281_v43, %v8162_v14  ;;  %2068 = vmatmul.bf16.gmra.mxu0 %v8261_v56  ;;  %v1649_v56 = vpack.c.bf16 %v1593_v32, %v1591_v2 }
 0x1d6   : > { %v1371_v48 = vadd.f32 %v1370_v41, %v1282_v37  ;;  %v8512_v30 = vpop.f32.mrf.mxu1  ;;  %v1430_v37 = vadd.f32 %v8283_v21, %v8414_v36 }
 0x1d8   : > { %v1618_v9 = vmax.f32 %v1371_v48, 0.0  ;;  %v1521_v48 = vadd.f32 %v8298_v50, %v1432_v5  ;;  %v1519_v21 = vadd.f32 %v8279_v29, %v1430_v37  ;;  %v6554_v37 = vld [vmem:[%s11561_s7 + $0x40] sm:$0xf] }
 0x1d9   : > { %v8515_v49 = vpop.f32.mrf.mxu0 }
 0x1db   : > { %v1283_v18 = vpop.f32.mrf.mxu2  ;;  %v1372_v16 = vpop.f32.mrf.mxu3 }
 0x1dc   : > { %v1284_v42 = vadd.f32 %v1283_v18, %v8162_v14  ;;  %v7349_v18 = vld [vmem:[%s11561_s7 + $0xd4] sm:$0xf0] }
 0x1de   : > { %v1373_v6 = vadd.f32 %v1372_v16, %v1284_v42  ;;  %v8518_v38 = vpop.f32.mrf.mxu1  ;;  %v6627_v16 = vor.u32 %v7349_v18, %v6626_v57 }
 0x1e0   : > { %v1620_v43 = vmax.f32 %v1373_v6, 0.0  ;;  %1895 = vmatmul.bf16.gmra.mxu2 %v8291_v39  ;;  %1984 = vmatmul.bf16.gmra.mxu3 %v1649_v56  ;;  %v1595_v6 = vmax.f32 %v1519_v21, 0.0  ;;  %v1435_v21 = vadd.f32 %v8325_v44, %v8414_v36 }
 0x1e1   : > { %2162 = vmatmul.bf16.gmra.mxu1 %v1649_v56  ;;  %v8521_v24 = vpop.f32.mrf.mxu0  ;;  %2613 = vmatpush.bf16.msrb.mxu3 %v6627_v16 }
 0x1e2   : > { %v8525_v20 = vpack.c.bf16 %v1620_v43, %v1618_v9 }
 0x1e3   : > { %v1286_v41 = vpop.f32.mrf.mxu2  ;;  %v1375_v31 = vpop.f32.mrf.mxu3 }
 0x1e4   : > { %v1287_v13 = vadd.f32 %v1286_v41, %v8162_v14  ;;  %2073 = vmatmul.bf16.gmra.mxu0 %v8291_v39  ;;  %v1597_v39 = vmax.f32 %v1521_v48, 0.0  ;;  %v1437_v48 = vadd.f32 %v8366_v55, %v8414_v36  ;;  %v1524_v55 = vadd.f32 %v8315_v8, %v1435_v21 }
 0x1e5   : > { %v1442_v8 = vadd.f32 %v8408_v35, %v8414_v36  ;;  %v6618_v35 = vld [vmem:[%s11561_s7 + $0xc0] sm:$0xf] }
 0x1e6   : > { %v1376_v40 = vadd.f32 %v1375_v31, %v1287_v13  ;;  %v8532_v32 = vpop.f32.mrf.mxu1  ;;  %v1651_v5 = vpack.c.bf16 %v1597_v39, %v1595_v6  ;;  %v7331_v13 = vld [vmem:[%s11561_s7 + $0x44] sm:$0xf0] }
 0x1e7   : > { %v6555_v57 = vor.u32 %v7331_v13, %v6554_v37 }
 0x1e8   : > { %v1622_v41 = vmax.f32 %v1376_v40, 0.0 }
 0x1e9   : > { %v8541_v2 = vpop.f32.mrf.mxu0  ;;  %2525 = vmatpush.bf16.msrb.mxu2 %v6555_v57 }
 0x1eb   : > { %v1288_v42 = vpop.f32.mrf.mxu2  ;;  %v1377_v50 = vpop.f32.mrf.mxu3 }
 0x1ec   : > { %v1289_v56 = vadd.f32 %v1288_v42, %v8162_v14  ;;  %v1526_v42 = vadd.f32 %v8346_v4, %v1437_v48 }
 0x1ee   : > { %v1378_v9 = vadd.f32 %v1377_v50, %v1289_v56  ;;  %v8544_v43 = vpop.f32.mrf.mxu1 }
 0x1f0   : > { %v1624_v31 = vmax.f32 %v1378_v9, 0.0  ;;  %1900 = vmatmul.bf16.gmra.mxu2 %v8327_v27  ;;  %1989 = vmatmul.bf16.gmra.mxu3 %v1651_v5  ;;  %v1601_v9 = vmax.f32 %v1526_v42, 0.0 }
 0x1f1   : > { %2167 = vmatmul.bf16.gmra.mxu1 %v1651_v5  ;;  %v8547_v29 = vpop.f32.mrf.mxu0 }
 0x1f2   : > { %v8557_v40 = vpack.c.bf16 %v1624_v31, %v1622_v41  ;;  %v1599_v31 = vmax.f32 %v1524_v55, 0.0 }
 0x1f3   : > { %v1291_v18 = vpop.f32.mrf.mxu2  ;;  %v1380_v16 = vpop.f32.mrf.mxu3 }
 0x1f4   : > { %v1292_v39 = vadd.f32 %v1291_v18, %v8162_v14  ;;  %2078 = vmatmul.bf16.gmra.mxu0 %v8327_v27  ;;  %v1653_v27 = vpack.c.bf16 %v1601_v9, %v1599_v31 }
 0x1f6   : > { %v1381_v50 = vadd.f32 %v1380_v16, %v1292_v39  ;;  %v8564_v6 = vpop.f32.mrf.mxu1  ;;  %v1440_v39 = vadd.f32 %v8391_v1, %v8414_v36 }
 0x1f8   : > { %v1626_v57 = vmax.f32 %v1381_v50, 0.0  ;;  %v1531_v50 = vadd.f32 %v8406_v61, %v1442_v8  ;;  %v1529_v1 = vadd.f32 %v8381_v62, %v1440_v39  ;;  %v6546_v39 = vld [vmem:[%s11561_s7 + $0x30] sm:$0xf] }
 0x1f9   : > { %v8567_v56 = vpop.f32.mrf.mxu0 }
 0x1fb   : > { %v1293_v5 = vpop.f32.mrf.mxu2  ;;  %v1382_v41 = vpop.f32.mrf.mxu3 }
 0x1fc   : > { %v1294_v44 = vadd.f32 %v1293_v5, %v8162_v14  ;;  %v7347_v5 = vld [vmem:[%s11561_s7 + $0xc4] sm:$0xf0] }
 0x1fe   : > { %v1383_v37 = vadd.f32 %v1382_v41, %v1294_v44  ;;  %v8570_v13 = vpop.f32.mrf.mxu1  ;;  %v6619_v41 = vor.u32 %v7347_v5, %v6618_v35 }
 0x200   : > { %v1628_v18 = vmax.f32 %v1383_v37, 0.0  ;;  %1905 = vmatmul.bf16.gmra.mxu2 %v8399_v12  ;;  %1994 = vmatmul.bf16.gmra.mxu3 %v1653_v27  ;;  %v1603_v37 = vmax.f32 %v1529_v1, 0.0  ;;  %v1445_v1 = vadd.f32 %v8418_v53, %v8414_v36  ;;  %v6580_v53 = vld [vmem:[%s11561_s7 + $0x78] sm:$0xf0] }
 0x201   : > { %2172 = vmatmul.bf16.gmra.mxu1 %v1653_v27  ;;  %v8573_v4 = vpop.f32.mrf.mxu0  ;;  %2614 = vmatpush.bf16.msrb.mxu3 %v6619_v41 }
 0x202   : > { %v8577_v48 = vpack.c.bf16 %v1628_v18, %v1626_v57 }
 0x203   : > { %v1296_v16 = vpop.f32.mrf.mxu2  ;;  %v1385_v21 = vpop.f32.mrf.mxu3 }
 0x204   : > { %v1297_v42 = vadd.f32 %v1296_v16, %v8162_v14  ;;  %2083 = vmatmul.bf16.gmra.mxu0 %v8399_v12  ;;  %v1605_v12 = vmax.f32 %v1531_v50, 0.0  ;;  %v1447_v50 = vadd.f32 %v8437_v15, %v8414_v36  ;;  %v1534_v15 = vadd.f32 %v8411_v52, %v1445_v1 }
 0x206   : > { %v1386_v55 = vadd.f32 %v1385_v21, %v1297_v42  ;;  %v8584_v9 = vpop.f32.mrf.mxu1  ;;  %v1655_v8 = vpack.c.bf16 %v1605_v12, %v1603_v37  ;;  %v7329_v42 = vld [vmem:[%s11561_s7 + $0x34] sm:$0xf0] }
 0x207   : > { %v6547_v35 = vor.u32 %v7329_v42, %v6546_v39  ;;  %v1607_v42 = vmax.f32 %v1534_v15, 0.0 }
 0x208   : > { %v1630_v16 = vmax.f32 %v1386_v55, 0.0 }
 0x209   : > { %v8593_v31 = vpop.f32.mrf.mxu0  ;;  %2526 = vmatpush.bf16.msrb.mxu2 %v6547_v35 }
 0x20b   : > { %v1298_v44 = vpop.f32.mrf.mxu2  ;;  %v1387_v61 = vpop.f32.mrf.mxu3 }
 0x20c   : > { %v1299_v27 = vadd.f32 %v1298_v44, %v8162_v14  ;;  %v1536_v44 = vadd.f32 %v8428_v17, %v1447_v50  ;;  %v6644_v17 = vld [vmem:[%s11561_s7 + $0xf8] sm:$0xf0] }
 0x20e   : > { %v1388_v57 = vadd.f32 %v1387_v61, %v1299_v27  ;;  %v8596_v18 = vpop.f32.mrf.mxu1  ;;  %v7336_v27 = vld [vmem:[%s11561_s7 + $0x74] sm:$0xf]  ;;  %v1609_v52 = vmax.f32 %v1536_v44, 0.0  ;;  %v1452_v44 = vadd.f32 %v8463_v28, %v8414_v36  ;;  %v6610_v28 = vld [vmem:[%s11561_s7 + $0xb0] sm:$0xf] }
 0x210   : > { %v1632_v21 = vmax.f32 %v1388_v57, 0.0  ;;  %1910 = vmatmul.bf16.gmra.mxu2 %v8422_v47  ;;  %1999 = vmatmul.bf16.gmra.mxu3 %v1655_v8 }
 0x211   : > { %2177 = vmatmul.bf16.gmra.mxu1 %v1655_v8  ;;  %v8599_v62 = vpop.f32.mrf.mxu0  ;;  %v6583_v8 = vor.u32 %v7336_v27, %v6580_v53 }
 0x212   : > { %v8609_v55 = vpack.c.bf16 %v1632_v21, %v1630_v16 }
 0x213   : > { %v1301_v5 = vpop.f32.mrf.mxu2  ;;  %v1390_v41 = vpop.f32.mrf.mxu3  ;;  %2700 = vmatpush.bf16.msrb.mxu0 %v6583_v8 }
 0x214   : > { %v1302_v12 = vadd.f32 %v1301_v5, %v8162_v14  ;;  %2088 = vmatmul.bf16.gmra.mxu0 %v8422_v47  ;;  %v7352_v47 = vld [vmem:[%s11561_s7 + $0xf4] sm:$0xf] }
 0x215   : > { %v6647_v16 = vor.u32 %v7352_v47, %v6644_v17  ;;  %v1450_v47 = vadd.f32 %v8443_v10, %v8414_v36 }
 0x216   : > { %v1391_v61 = vadd.f32 %v1390_v41, %v1302_v12  ;;  %v8616_v37 = vpop.f32.mrf.mxu1  ;;  %v1657_v41 = vpack.c.bf16 %v1609_v52, %v1607_v42 }
 0x217   : > { %2789 = vmatpush.bf16.msrb.mxu1 %v6647_v16  ;;  %v1539_v10 = vadd.f32 %v8440_v33, %v1450_v47 }
 0x218   : > { %v1634_v1 = vmax.f32 %v1391_v61, 0.0  ;;  %v1541_v61 = vadd.f32 %v8460_v54, %v1452_v44 }
 0x219   : > { %v8625_v57 = vpop.f32.mrf.mxu0 }
 0x21b   : > { %v1303_v21 = vpop.f32.mrf.mxu2  ;;  %v1392_v39 = vpop.f32.mrf.mxu3 }
 0x21c   : > { %v1304_v50 = vadd.f32 %v1303_v21, %v8162_v14  ;;  %v7345_v21 = vld [vmem:[%s11561_s7 + $0xb4] sm:$0xf0] }
 0x21e   : > { %v1393_v35 = vadd.f32 %v1392_v39, %v1304_v50  ;;  %v8634_v5 = vpop.f32.mrf.mxu1  ;;  %v6611_v39 = vor.u32 %v7345_v21, %v6610_v28 }
 0x220   : > { %v1636_v12 = vmax.f32 %v1393_v35, 0.0  ;;  %1915 = vmatmul.bf16.gmra.mxu2 %v8453_v59  ;;  %2004 = vmatmul.bf16.gmra.mxu3 %v1657_v41  ;;  %v1611_v35 = vmax.f32 %v1539_v10, 0.0 }
 0x221   : > { %2182 = vmatmul.bf16.gmra.mxu1 %v1657_v41  ;;  %v8637_v27 = vpop.f32.mrf.mxu0  ;;  %2615 = vmatpush.bf16.msrb.mxu3 %v6611_v39 }
 0x222   : > { %v8641_v53 = vpack.c.bf16 %v1636_v12, %v1634_v1 }
 0x223   : > { %v1306_v15 = vpop.f32.mrf.mxu2  ;;  %v1395_v8 = vpop.f32.mrf.mxu3 }
 0x224   : > { %v1307_v17 = vadd.f32 %v1306_v15, %v8162_v14  ;;  %2093 = vmatmul.bf16.gmra.mxu0 %v8453_v59  ;;  %v1613_v59 = vmax.f32 %v1541_v61, 0.0  ;;  %v8665_v15 = vld [vmem:[%s11560_s6] sm:$0x3]  ;;  %v7327_v61 = vld [vmem:[%s11561_s7 + $0x24] sm:$0xf0] }
 0x225   : > { %v8669_v47 = vperm.slane %v8665_v15, 0 }
 0x226   : > { %v1396_v52 = vadd.f32 %v1395_v8, %v1307_v17  ;;  %v8648_v16 = vpop.f32.mrf.mxu1  ;;  %v1659_v44 = vpack.c.bf16 %v1613_v59, %v1611_v35  ;;  %v1455_v59 = vadd.f32 %v8469_v0, %v8414_v36  ;;  %v6572_v0 = vld [vmem:[%s11561_s7 + $0x68] sm:$0xf0] }
 0x228   : > { %v1638_v8 = vmax.f32 %v1396_v52, 0.0  ;;  %v1457_v52 = vadd.f32 %v8489_v26, %v8414_v36  ;;  %v1544_v26 = vadd.f32 %v8466_v51, %v1455_v59 }
 0x229   : > { %v8657_v42 = vpop.f32.mrf.mxu0 }
 0x22b   : > { %v1308_v50 = vpop.f32.mrf.mxu2  ;;  %v1397_v54 = vpop.f32.mrf.mxu3 }
 0x22c   : > { %v1309_v41 = vadd.f32 %v1308_v50, %v8162_v14  ;;  %v6538_v14 = vld [vmem:[%s11561_s7 + $0x20] sm:$0xf] }
 0x22d   : > { %v6539_v28 = vor.u32 %v7327_v61, %v6538_v14 }
 0x22e   : > { %v1398_v1 = vadd.f32 %v1397_v54, %v1309_v41  ;;  %v8660_v12 = vpop.f32.mrf.mxu1  ;;  %v1546_v54 = vadd.f32 %v8480_v22, %v1457_v52  ;;  %v6636_v22 = vld [vmem:[%s11561_s7 + $0xe8] sm:$0xf0]  ;;  %v1615_v52 = vmax.f32 %v1544_v26, 0.0 }
 0x22f   : > { %2527 = vmatpush.bf16.msrb.mxu2 %v6539_v28 }
 0x230   : > { %v1640_v33 = vmax.f32 %v1398_v1, 0.0  ;;  %1920 = vmatmul.bf16.gmra.mxu2 %v8473_v45  ;;  %2009 = vmatmul.bf16.gmra.mxu3 %v1659_v44  ;;  %v7334_v1 = vld [vmem:[%s11561_s7 + $0x64] sm:$0xf]  ;;  %v1617_v51 = vmax.f32 %v1546_v54, 0.0  ;;  %v1462_v54 = vadd.f32 %v8515_v49, %v8414_v36  ;;  %v6602_v49 = vld [vmem:[%s11561_s7 + $0xa0] sm:$0xf] }
 0x231   : > { %2187 = vmatmul.bf16.gmra.mxu1 %v1659_v44  ;;  %v8671_v17 = vpop.f32.mrf.mxu0 }
 0x232   : > { %v8681_v21 = vpack.c.bf16 %v1640_v33, %v1638_v8  ;;  %v6575_v8 = vor.u32 %v7334_v1, %v6572_v0  ;;  %v1661_v59 = vpack.c.bf16 %v1617_v51, %v1615_v52 }
 0x233   : > { %v1881_v39 = vpop.f32.mrf.mxu2  ;;  %v1970_v10 = vpop.f32.mrf.mxu3 }
 0x234   : > { %v1882_v50 = vadd.f32 %v1881_v39, %v8669_v47  ;;  %2098 = vmatmul.bf16.gmra.mxu0 %v8473_v45  ;;  %v7350_v45 = vld [vmem:[%s11561_s7 + $0xe4] sm:$0xf] }
 0x235   : > { %v6639_v33 = vor.u32 %v7350_v45, %v6636_v22  ;;  %2701 = vmatpush.bf16.msrb.mxu0 %v6575_v8  ;;  %v1460_v22 = vadd.f32 %v8495_v11, %v8414_v36 }
 0x236   : > { %v1971_v35 = vadd.f32 %v1970_v10, %v1882_v50  ;;  %v8688_v41 = vpop.f32.mrf.mxu1 }
 0x237   : > { %2790 = vmatpush.bf16.msrb.mxu1 %v6639_v33  ;;  %v1549_v11 = vadd.f32 %v8492_v23, %v1460_v22  ;;  %v6530_v22 = vld [vmem:[%s11561_s7 + $0x10] sm:$0xf] }
 0x238   : > { %v2228_v50 = vmax.f32 %v1971_v35, 0.0  ;;  %v1551_v35 = vadd.f32 %v8512_v30, %v1462_v54 }
 0x239   : > { %v8697_v44 = vpop.f32.mrf.mxu0 }
 0x23b   : > { %v1883_v14 = vpop.f32.mrf.mxu2  ;;  %v1972_v61 = vpop.f32.mrf.mxu3 }
 0x23c   : > { %v1884_v28 = vadd.f32 %v1883_v14, %v8669_v47 }
 0x23e   : > { %v1973_v39 = vadd.f32 %v1972_v61, %v1884_v28  ;;  %v8706_v10 = vpop.f32.mrf.mxu1  ;;  %v7343_v61 = vld [vmem:[%s11561_s7 + $0xa4] sm:$0xf0] }
 0x23f   : > { %v6603_v52 = vor.u32 %v7343_v61, %v6602_v49  ;;  %v1467_v49 = vadd.f32 %v8541_v2, %v8414_v36 }
 0x240   : > { %v2230_v1 = vmax.f32 %v1973_v39, 0.0  ;;  %1925 = vmatmul.bf16.gmra.mxu2 %v8505_v60  ;;  %2014 = vmatmul.bf16.gmra.mxu3 %v1661_v59 }
 0x241   : > { %2192 = vmatmul.bf16.gmra.mxu1 %v1661_v59  ;;  %v8709_v0 = vpop.f32.mrf.mxu0  ;;  %2616 = vmatpush.bf16.msrb.mxu3 %v6603_v52  ;;  %v1619_v59 = vmax.f32 %v1549_v11, 0.0 }
 0x242   : > { %v8713_v8 = vpack.c.bf16 %v2230_v1, %v2228_v50 }
 0x243   : > { %v1886_v26 = vpop.f32.mrf.mxu2  ;;  %v1975_v45 = vpop.f32.mrf.mxu3 }
 0x244   : > { %v1887_v51 = vadd.f32 %v1886_v26, %v8669_v47  ;;  %2103 = vmatmul.bf16.gmra.mxu0 %v8505_v60  ;;  %v1621_v60 = vmax.f32 %v1551_v35, 0.0  ;;  %v7325_v35 = vld [vmem:[%s11561_s7 + $0x14] sm:$0xf0] }
 0x245   : > { %v6531_v61 = vor.u32 %v7325_v35, %v6530_v22 }
 0x246   : > { %v1976_v33 = vadd.f32 %v1975_v45, %v1887_v51  ;;  %v8720_v14 = vpop.f32.mrf.mxu1  ;;  %v1663_v26 = vpack.c.bf16 %v1621_v60, %v1619_v59  ;;  %v1465_v60 = vadd.f32 %v8521_v24, %v8414_v36  ;;  %v6564_v24 = vld [vmem:[%s11561_s7 + $0x58] sm:$0xf0] }
 0x247   : > { %2528 = vmatpush.bf16.msrb.mxu2 %v6531_v61 }
 0x248   : > { %v2232_v45 = vmax.f32 %v1976_v33, 0.0  ;;  %v1554_v2 = vadd.f32 %v8518_v38, %v1465_v60 }
 0x249   : > { %v8729_v28 = vpop.f32.mrf.mxu0 }
 0x24b   : > { %v1888_v39 = vpop.f32.mrf.mxu2  ;;  %v1977_v30 = vpop.f32.mrf.mxu3 }
 0x24c   : > { %v1889_v50 = vadd.f32 %v1888_v39, %v8669_v47 }
 0x24e   : > { %v1978_v1 = vadd.f32 %v1977_v30, %v1889_v50  ;;  %v8732_v54 = vpop.f32.mrf.mxu1  ;;  %v1556_v30 = vadd.f32 %v8532_v32, %v1467_v49  ;;  %v6628_v32 = vld [vmem:[%s11561_s7 + $0xd8] sm:$0xf0]  ;;  %v1623_v49 = vmax.f32 %v1554_v2, 0.0 }
 0x250   : > { %v2234_v51 = vmax.f32 %v1978_v1, 0.0  ;;  %1930 = vmatmul.bf16.gmra.mxu2 %v8525_v20  ;;  %2019 = vmatmul.bf16.gmra.mxu3 %v1663_v26  ;;  %v7332_v1 = vld [vmem:[%s11561_s7 + $0x54] sm:$0xf]  ;;  %v1625_v38 = vmax.f32 %v1556_v30, 0.0  ;;  %v1472_v30 = vadd.f32 %v8567_v56, %v8414_v36  ;;  %v6594_v56 = vld [vmem:[%s11561_s7 + $0x90] sm:$0xf] }
 0x251   : > { %2197 = vmatmul.bf16.gmra.mxu1 %v1663_v26  ;;  %v8735_v23 = vpop.f32.mrf.mxu0 }
 0x252   : > { %v8745_v33 = vpack.c.bf16 %v2234_v51, %v2232_v45  ;;  %v6567_v45 = vor.u32 %v7332_v1, %v6564_v24  ;;  %v1665_v60 = vpack.c.bf16 %v1625_v38, %v1623_v49 }
 0x253   : > { %v1891_v52 = vpop.f32.mrf.mxu2  ;;  %v1980_v11 = vpop.f32.mrf.mxu3 }
 0x254   : > { %v1892_v39 = vadd.f32 %v1891_v52, %v8669_v47  ;;  %2108 = vmatmul.bf16.gmra.mxu0 %v8525_v20  ;;  %v7348_v20 = vld [vmem:[%s11561_s7 + $0xd4] sm:$0xf] }
 0x255   : > { %v6631_v51 = vor.u32 %v7348_v20, %v6628_v32  ;;  %2702 = vmatpush.bf16.msrb.mxu0 %v6567_v45  ;;  %v1470_v32 = vadd.f32 %v8547_v29, %v8414_v36 }
 0x256   : > { %v1981_v59 = vadd.f32 %v1980_v11, %v1892_v39  ;;  %v8752_v50 = vpop.f32.mrf.mxu1 }
 0x257   : > { %2791 = vmatpush.bf16.msrb.mxu1 %v6631_v51  ;;  %v1559_v29 = vadd.f32 %v8544_v43, %v1470_v32  ;;  %v6522_v32 = vld [vmem:[%s11561_s7] sm:$0xf] }
 0x258   : > { %v2236_v39 = vmax.f32 %v1981_v59, 0.0  ;;  %v1561_v59 = vadd.f32 %v8564_v6, %v1472_v30 }
 0x259   : > { %v8761_v26 = vpop.f32.mrf.mxu0 }
 0x25b   : > { %v1893_v22 = vpop.f32.mrf.mxu2  ;;  %v1982_v35 = vpop.f32.mrf.mxu3 }
 0x25c   : > { %v1894_v61 = vadd.f32 %v1893_v22, %v8669_v47 }
 0x25e   : > { %v1983_v52 = vadd.f32 %v1982_v35, %v1894_v61  ;;  %v8770_v11 = vpop.f32.mrf.mxu1  ;;  %v7341_v35 = vld [vmem:[%s11561_s7 + $0x94] sm:$0xf0] }
 0x25f   : > { %v6595_v49 = vor.u32 %v7341_v35, %v6594_v56  ;;  %v1477_v56 = vadd.f32 %v8593_v31, %v8414_v36 }
 0x260   : > { %v2238_v1 = vmax.f32 %v1983_v52, 0.0  ;;  %1935 = vmatmul.bf16.gmra.mxu2 %v8557_v40  ;;  %2024 = vmatmul.bf16.gmra.mxu3 %v1665_v60 }
 0x261   : > { %2202 = vmatmul.bf16.gmra.mxu1 %v1665_v60  ;;  %v8773_v24 = vpop.f32.mrf.mxu0  ;;  %2617 = vmatpush.bf16.msrb.mxu3 %v6595_v49  ;;  %v1627_v60 = vmax.f32 %v1559_v29, 0.0 }
 0x262   : > { %v8777_v45 = vpack.c.bf16 %v2238_v1, %v2236_v39 }
 0x263   : > { %v1896_v2 = vpop.f32.mrf.mxu2  ;;  %v1985_v20 = vpop.f32.mrf.mxu3 }
 0x264   : > { %v1897_v38 = vadd.f32 %v1896_v2, %v8669_v47  ;;  %2113 = vmatmul.bf16.gmra.mxu0 %v8557_v40  ;;  %v1629_v40 = vmax.f32 %v1561_v59, 0.0  ;;  %v7323_v59 = vld [vmem:[%s11561_s7 + $0x4] sm:$0xf0] }
 0x265   : > { %v6523_v35 = vor.u32 %v7323_v59, %v6522_v32 }
 0x266   : > { %v1986_v51 = vadd.f32 %v1985_v20, %v1897_v38  ;;  %v8784_v22 = vpop.f32.mrf.mxu1  ;;  %v1667_v2 = vpack.c.bf16 %v1629_v40, %v1627_v60  ;;  %v1475_v40 = vadd.f32 %v8573_v4, %v8414_v36  ;;  %v6556_v4 = vld [vmem:[%s11561_s7 + $0x48] sm:$0xf0] }
 0x267   : > { %2529 = vmatpush.bf16.msrb.mxu2 %v6523_v35 }
 0x268   : > { %v2240_v20 = vmax.f32 %v1986_v51, 0.0  ;;  %v1564_v31 = vadd.f32 %v8570_v13, %v1475_v40 }
 0x269   : > { %v8793_v61 = vpop.f32.mrf.mxu0 }
 0x26b   : > { %v1898_v52 = vpop.f32.mrf.mxu2  ;;  %v1987_v6 = vpop.f32.mrf.mxu3 }
 0x26c   : > { %v1899_v39 = vadd.f32 %v1898_v52, %v8669_v47 }
 0x26e   : > { %v1988_v1 = vadd.f32 %v1987_v6, %v1899_v39  ;;  %v8796_v30 = vpop.f32.mrf.mxu1  ;;  %v1566_v6 = vadd.f32 %v8584_v9, %v1477_v56  ;;  %v6620_v9 = vld [vmem:[%s11561_s7 + $0xc8] sm:$0xf0]  ;;  %v1631_v56 = vmax.f32 %v1564_v31, 0.0 }
 0x270   : > { %v2242_v38 = vmax.f32 %v1988_v1, 0.0  ;;  %1940 = vmatmul.bf16.gmra.mxu2 %v8577_v48  ;;  %2029 = vmatmul.bf16.gmra.mxu3 %v1667_v2  ;;  %v7330_v1 = vld [vmem:[%s11561_s7 + $0x44] sm:$0xf]  ;;  %v1633_v13 = vmax.f32 %v1566_v6, 0.0  ;;  %v6612_v6 = vld [vmem:[%s11561_s7 + $0xb8] sm:$0xf0] }
 0x271   : > { %2207 = vmatmul.bf16.gmra.mxu1 %v1667_v2  ;;  %v8799_v43 = vpop.f32.mrf.mxu0 }
 0x272   : > { %v8809_v51 = vpack.c.bf16 %v2242_v38, %v2240_v20  ;;  %v6559_v20 = vor.u32 %v7330_v1, %v6556_v4  ;;  %v1669_v40 = vpack.c.bf16 %v1633_v13, %v1631_v56 }
 0x273   : > { %v1901_v49 = vpop.f32.mrf.mxu2  ;;  %v1990_v29 = vpop.f32.mrf.mxu3 }
 0x274   : > { %v1902_v52 = vadd.f32 %v1901_v49, %v8669_v47  ;;  %2118 = vmatmul.bf16.gmra.mxu0 %v8577_v48  ;;  %v7346_v48 = vld [vmem:[%s11561_s7 + $0xc4] sm:$0xf] }
 0x275   : > { %v6623_v38 = vor.u32 %v7346_v48, %v6620_v9  ;;  %2703 = vmatpush.bf16.msrb.mxu0 %v6559_v20  ;;  %v1482_v48 = vadd.f32 %v8625_v57, %v8414_v36  ;;  %v1480_v57 = vadd.f32 %v8599_v62, %v8414_v36  ;;  %v7339_v62 = vld [vmem:[%s11561_s7 + $0x84] sm:$0xf0] }
 0x276   : > { %v1991_v60 = vadd.f32 %v1990_v29, %v1902_v52  ;;  %v8816_v39 = vpop.f32.mrf.mxu1  ;;  %v7344_v52 = vld [vmem:[%s11561_s7 + $0xb4] sm:$0xf] }
 0x277   : > { %2792 = vmatpush.bf16.msrb.mxu1 %v6623_v38  ;;  %v6615_v31 = vor.u32 %v7344_v52, %v6612_v6  ;;  %v1571_v52 = vadd.f32 %v8616_v37, %v1482_v48  ;;  %v6540_v37 = vld [vmem:[%s11561_s7 + $0x28] sm:$0xf0]  ;;  %v7340_v48 = vld [vmem:[%s11561_s7 + $0x94] sm:$0xf] }
 0x278   : > { %v2244_v1 = vmax.f32 %v1991_v60, 0.0  ;;  %v7328_v60 = vld [vmem:[%s11561_s7 + $0x34] sm:$0xf] }
 0x279   : > { %v8825_v2 = vpop.f32.mrf.mxu0 }
 0x27b   : > { %v1903_v32 = vpop.f32.mrf.mxu2  ;;  %v1992_v59 = vpop.f32.mrf.mxu3  ;;  %2793 = vmatpush.bf16.msrb.mxu1 %v6615_v31  ;;  %v7326_v31 = vld [vmem:[%s11561_s7 + $0x24] sm:$0xf] }
 0x27c   : > { %v1904_v35 = vadd.f32 %v1903_v32, %v8669_v47  ;;  %v6548_v32 = vld [vmem:[%s11561_s7 + $0x38] sm:$0xf0] }
 0x27e   : > { %v1993_v49 = vadd.f32 %v1992_v59, %v1904_v35  ;;  %v8834_v29 = vpop.f32.mrf.mxu1  ;;  %v7342_v59 = vld [vmem:[%s11561_s7 + $0xa4] sm:$0xf]  ;;  %v6551_v35 = vor.u32 %v7328_v60, %v6548_v32  ;;  %v6596_v60 = vld [vmem:[%s11561_s7 + $0x98] sm:$0xf0] }
 0x280   : > { %v2246_v4 = vmax.f32 %v1993_v49, 0.0  ;;  %1945 = vmatmul.bf16.gmra.mxu2 %v8609_v55  ;;  %2034 = vmatmul.bf16.gmra.mxu3 %v1669_v40  ;;  %v6604_v49 = vld [vmem:[%s11561_s7 + $0xa8] sm:$0xf0] }
 0x281   : > { %2212 = vmatmul.bf16.gmra.mxu1 %v1669_v40  ;;  %v8843_v20 = vpop.f32.mrf.mxu0  ;;  %v6607_v40 = vor.u32 %v7342_v59, %v6604_v49  ;;  %2704 = vmatpush.bf16.msrb.mxu0 %v6551_v35  ;;  %v6599_v59 = vor.u32 %v7340_v48, %v6596_v60  ;;  %v7322_v60 = vld [vmem:[%s11561_s7 + $0x4] sm:$0xf] }
 0x282   : > { %v8847_v9 = vpack.c.bf16 %v2246_v4, %v2244_v1  ;;  %v6586_v4 = vld [vmem:[%s11561_s7 + $0x80] sm:$0xf] }
 0x283   : > { %v1906_v13 = vpop.f32.mrf.mxu2  ;;  %v1995_v38 = vpop.f32.mrf.mxu3  ;;  %2794 = vmatpush.bf16.msrb.mxu1 %v6607_v40  ;;  %v7324_v40 = vld [vmem:[%s11561_s7 + $0x14] sm:$0xf] }
 0x284   : > { %v1907_v56 = vadd.f32 %v1906_v13, %v8669_v47  ;;  %2123 = vmatmul.bf16.gmra.mxu0 %v8609_v55  ;;  %v6587_v55 = vor.u32 %v7339_v62, %v6586_v4  ;;  %v1569_v13 = vadd.f32 %v8596_v18, %v1480_v57  ;;  %v6532_v18 = vld [vmem:[%s11561_s7 + $0x18] sm:$0xf0]  ;;  %v7338_v57 = vld [vmem:[%s11561_s7 + $0x84] sm:$0xf] }
 0x286   : > { %v1996_v6 = vadd.f32 %v1995_v38, %v1907_v56  ;;  %v8866_v1 = vpop.f32.mrf.mxu1  ;;  %v6543_v38 = vor.u32 %v7326_v31, %v6540_v37  ;;  %2618 = vmatpush.bf16.msrb.mxu3 %v6587_v55  ;;  %v1637_v56 = vmax.f32 %v1571_v52, 0.0  ;;  %v1635_v4 = vmax.f32 %v1569_v13, 0.0  ;;  %v6588_v55 = vld [vmem:[%s11561_s7 + $0x88] sm:$0xf0] }
 0x287   : > { %2795 = vmatpush.bf16.msrb.mxu1 %v6599_v59  ;;  %v6535_v52 = vor.u32 %v7324_v40, %v6532_v18  ;;  %v6591_v31 = vor.u32 %v7338_v57, %v6588_v55  ;;  %v6524_v13 = vld [vmem:[%s11561_s7 + $0x8] sm:$0xf0]  ;;  %v7369_v18 = vld [vmem:[%s11563_s9 + $0x74] sm:$0xf0]  ;;  %v1487_v57 = vadd.f32 %v8657_v42, %v8414_v36  ;;  %v1485_v55 = vadd.f32 %v8637_v27, %v8414_v36 }
 0x288   : > { %2705 = vmatpush.bf16.msrb.mxu0 %v6543_v38  ;;  %v1671_v38 = vpack.c.bf16 %v1637_v56, %v1635_v4  ;;  %v2248_v59 = vmax.f32 %v1996_v6, 0.0  ;;  %v6527_v40 = vor.u32 %v7322_v60, %v6524_v13  ;;  %v6706_v56 = vld [vmem:[%s11563_s9 + $0x70] sm:$0xf] }
 0x289   : > { %v8887_v32 = vpop.f32.mrf.mxu0  ;;  %v6707_v6 = vor.u32 %v7369_v18, %v6706_v56  ;;  %v1574_v42 = vadd.f32 %v8634_v5, %v1485_v55 }
 0x28b   : > { %v1908_v35 = vpop.f32.mrf.mxu2  ;;  %v1997_v49 = vpop.f32.mrf.mxu3  ;;  %2796 = vmatpush.bf16.msrb.mxu1 %v6591_v31  ;;  %3172 = vmatpush.bf16.msra.mxu2 %v6707_v6  ;;  %v1639_v56 = vmax.f32 %v1574_v42, 0.0  ;;  %v8937_v6 = vperm.slane %v8665_v15, 1 }
 0x28c   : > { %v1909_v62 = vadd.f32 %v1908_v35, %v8669_v47  ;;  %2706 = vmatpush.bf16.msrb.mxu0 %v6535_v52 }
 0x28e   : > { %v1998_v37 = vadd.f32 %v1997_v49, %v1909_v62  ;;  %v8902_v48 = vpop.f32.mrf.mxu1 }
 0x290   : > { %v2250_v35 = vmax.f32 %v1998_v37, 0.0  ;;  %1950 = vmatmul.bf16.gmra.mxu2 %v8641_v53  ;;  %2039 = vmatmul.bf16.gmra.mxu3 %v1671_v38  ;;  %v1576_v37 = vadd.f32 %v8648_v16, %v1487_v57 }
 0x291   : > { %2217 = vmatmul.bf16.gmra.mxu1 %v1671_v38  ;;  %v8911_v49 = vpop.f32.mrf.mxu0  ;;  %2707 = vmatpush.bf16.msrb.mxu0 %v6527_v40 }
 0x292   : > { %v8921_v4 = vpack.c.bf16 %v2250_v35, %v2248_v59  ;;  %v1641_v59 = vmax.f32 %v1576_v37, 0.0  ;;  %v2060_v37 = vadd.f32 %v8671_v17, %v8937_v6 }
 0x293   : > { %v1911_v62 = vpop.f32.mrf.mxu2  ;;  %v2000_v52 = vpop.f32.mrf.mxu3 }
 0x294   : > { %v1912_v31 = vadd.f32 %v1911_v62, %v8669_v47  ;;  %2128 = vmatmul.bf16.gmra.mxu0 %v8641_v53  ;;  %v1673_v53 = vpack.c.bf16 %v1641_v59, %v1639_v56  ;;  %v2062_v62 = vadd.f32 %v8697_v44, %v8937_v6  ;;  %v6770_v44 = vld [vmem:[%s11563_s9 + $0xf0] sm:$0xf]  ;;  %v2149_v17 = vadd.f32 %v8660_v12, %v2060_v37  ;;  %v6698_v37 = vld [vmem:[%s11563_s9 + $0x60] sm:$0xf] }
 0x296   : > { %v2001_v38 = vadd.f32 %v2000_v52, %v1912_v31  ;;  %v8928_v60 = vpop.f32.mrf.mxu1 }
 0x298   : > { %v2252_v16 = vmax.f32 %v2001_v38, 0.0  ;;  %v2151_v38 = vadd.f32 %v8688_v41, %v2062_v62 }
 0x299   : > { %v8931_v13 = vpop.f32.mrf.mxu0 }
 0x29b   : > { %v1913_v35 = vpop.f32.mrf.mxu2  ;;  %v2002_v40 = vpop.f32.mrf.mxu3 }
 0x29c   : > { %v1914_v36 = vadd.f32 %v1913_v35, %v8669_v47  ;;  %v7385_v35 = vld [vmem:[%s11563_s9 + $0xf4] sm:$0xf0] }
 0x29e   : > { %v2003_v27 = vadd.f32 %v2002_v40, %v1914_v36  ;;  %v8934_v18 = vpop.f32.mrf.mxu1  ;;  %v6771_v40 = vor.u32 %v7385_v35, %v6770_v44 }
 0x2a0   : > { %v2254_v57 = vmax.f32 %v2003_v27, 0.0  ;;  %1955 = vmatmul.bf16.gmra.mxu2 %v8681_v21  ;;  %2044 = vmatmul.bf16.gmra.mxu3 %v1673_v53  ;;  %v2229_v27 = vmax.f32 %v2149_v17, 0.0  ;;  %v2065_v17 = vadd.f32 %v8709_v0, %v8937_v6 }
 0x2a1   : > { %2222 = vmatmul.bf16.gmra.mxu1 %v1673_v53  ;;  %v8940_v5 = vpop.f32.mrf.mxu0  ;;  %3261 = vmatpush.bf16.msra.mxu3 %v6771_v40 }
 0x2a2   : > { %v8944_v52 = vpack.c.bf16 %v2254_v57, %v2252_v16 }
 0x2a3   : > { %v1916_v55 = vpop.f32.mrf.mxu2  ;;  %v2005_v31 = vpop.f32.mrf.mxu3 }
 0x2a4   : > { %v1917_v15 = vadd.f32 %v1916_v55, %v8669_v47  ;;  %2133 = vmatmul.bf16.gmra.mxu0 %v8681_v21  ;;  %v2231_v21 = vmax.f32 %v2151_v38, 0.0  ;;  %v2067_v38 = vadd.f32 %v8729_v28, %v8937_v6  ;;  %v2154_v28 = vadd.f32 %v8706_v10, %v2065_v17 }
 0x2a5   : > { %v2072_v10 = vadd.f32 %v8761_v26, %v8937_v6  ;;  %v6762_v26 = vld [vmem:[%s11563_s9 + $0xe0] sm:$0xf] }
 0x2a6   : > { %v2006_v42 = vadd.f32 %v2005_v31, %v1917_v15  ;;  %v8951_v59 = vpop.f32.mrf.mxu1  ;;  %v2293_v16 = vpack.c.bf16 %v2231_v21, %v2229_v27  ;;  %v7367_v15 = vld [vmem:[%s11563_s9 + $0x64] sm:$0xf0] }
 0x2a7   : > { %v6699_v44 = vor.u32 %v7367_v15, %v6698_v37 }
 0x2a8   : > { %v2256_v55 = vmax.f32 %v2006_v42, 0.0 }
 0x2a9   : > { %v8960_v56 = vpop.f32.mrf.mxu0  ;;  %3173 = vmatpush.bf16.msra.mxu2 %v6699_v44 }
 0x2ab   : > { %v1918_v36 = vpop.f32.mrf.mxu2  ;;  %v2007_v41 = vpop.f32.mrf.mxu3 }
 0x2ac   : > { %v1919_v53 = vadd.f32 %v1918_v36, %v8669_v47  ;;  %v2156_v36 = vadd.f32 %v8720_v14, %v2067_v38 }
 0x2ae   : > { %v2008_v57 = vadd.f32 %v2007_v41, %v1919_v53  ;;  %v8963_v62 = vpop.f32.mrf.mxu1 }
 0x2b0   : > { %v2258_v31 = vmax.f32 %v2008_v57, 0.0  ;;  %2530 = vmatmul.bf16.vlgmr.msrb.gmra.mxu2 %v8713_v8  ;;  %2619 = vmatmul.bf16.vlgmr.msrb.gmra.mxu3 %v2293_v16 }
 0x2b1   : > { %2797 = vmatmul.bf16.vlgmr.msrb.gmra.mxu1 %v2293_v16  ;;  %v8966_v12 = vpop.f32.mrf.mxu0  ;;  %v2235_v16 = vmax.f32 %v2156_v36, 0.0 }
 0x2b2   : > { %v8976_v42 = vpack.c.bf16 %v2258_v31, %v2256_v55  ;;  %v2233_v31 = vmax.f32 %v2154_v28, 0.0 }
 0x2b3   : > { %v1921_v35 = vpop.f32.mrf.mxu2  ;;  %v2010_v40 = vpop.f32.mrf.mxu3 }
 0x2b4   : > { %v1922_v21 = vadd.f32 %v1921_v35, %v8669_v47  ;;  %2708 = vmatmul.bf16.vlgmr.msrb.gmra.mxu0 %v8713_v8  ;;  %v2295_v8 = vpack.c.bf16 %v2235_v16, %v2233_v31 }
 0x2b6   : > { %v2011_v41 = vadd.f32 %v2010_v40, %v1922_v21  ;;  %v8983_v27 = vpop.f32.mrf.mxu1  ;;  %v2070_v21 = vadd.f32 %v8735_v23, %v8937_v6 }
 0x2b8   : > { %v2260_v44 = vmax.f32 %v2011_v41, 0.0  ;;  %v2161_v41 = vadd.f32 %v8752_v50, %v2072_v10  ;;  %v2159_v23 = vadd.f32 %v8732_v54, %v2070_v21  ;;  %v6690_v21 = vld [vmem:[%s11563_s9 + $0x50] sm:$0xf] }
 0x2b9   : > { %v8986_v53 = vpop.f32.mrf.mxu0 }
 0x2bb   : > { %v1923_v57 = vpop.f32.mrf.mxu2  ;;  %v2012_v55 = vpop.f32.mrf.mxu3 }
 0x2bc   : > { %v1924_v0 = vadd.f32 %v1923_v57, %v8669_v47  ;;  %v7383_v57 = vld [vmem:[%s11563_s9 + $0xe4] sm:$0xf0] }
 0x2be   : > { %v2013_v37 = vadd.f32 %v2012_v55, %v1924_v0  ;;  %v8989_v15 = vpop.f32.mrf.mxu1  ;;  %v6763_v55 = vor.u32 %v7383_v57, %v6762_v26 }
 0x2c0   : > { %v2262_v35 = vmax.f32 %v2013_v37, 0.0  ;;  %2535 = vmatmul.bf16.gmra.mxu2 %v8745_v33  ;;  %2624 = vmatmul.bf16.gmra.mxu3 %v2295_v8  ;;  %v2237_v37 = vmax.f32 %v2159_v23, 0.0  ;;  %v2075_v23 = vadd.f32 %v8773_v24, %v8937_v6 }
 0x2c1   : > { %2802 = vmatmul.bf16.gmra.mxu1 %v2295_v8  ;;  %v8992_v14 = vpop.f32.mrf.mxu0  ;;  %3262 = vmatpush.bf16.msra.mxu3 %v6763_v55 }
 0x2c2   : > { %v8996_v38 = vpack.c.bf16 %v2262_v35, %v2260_v44 }
 0x2c3   : > { %v1926_v40 = vpop.f32.mrf.mxu2  ;;  %v2015_v17 = vpop.f32.mrf.mxu3 }
 0x2c4   : > { %v1927_v36 = vadd.f32 %v1926_v40, %v8669_v47  ;;  %2713 = vmatmul.bf16.gmra.mxu0 %v8745_v33  ;;  %v2239_v33 = vmax.f32 %v2161_v41, 0.0  ;;  %v2077_v41 = vadd.f32 %v8793_v61, %v8937_v6  ;;  %v2164_v61 = vadd.f32 %v8770_v11, %v2075_v23 }
 0x2c5   : > { %v2082_v11 = vadd.f32 %v8825_v2, %v8937_v6  ;;  %v6754_v2 = vld [vmem:[%s11563_s9 + $0xd0] sm:$0xf] }
 0x2c6   : > { %v2016_v28 = vadd.f32 %v2015_v17, %v1927_v36  ;;  %v9003_v16 = vpop.f32.mrf.mxu1  ;;  %v2297_v10 = vpack.c.bf16 %v2239_v33, %v2237_v37  ;;  %v7365_v36 = vld [vmem:[%s11563_s9 + $0x54] sm:$0xf0] }
 0x2c7   : > { %v6691_v26 = vor.u32 %v7365_v36, %v6690_v21 }
 0x2c8   : > { %v2264_v40 = vmax.f32 %v2016_v28, 0.0 }
 0x2c9   : > { %v9012_v31 = vpop.f32.mrf.mxu0  ;;  %3174 = vmatpush.bf16.msra.mxu2 %v6691_v26 }
 0x2cb   : > { %v1928_v0 = vpop.f32.mrf.mxu2  ;;  %v2017_v50 = vpop.f32.mrf.mxu3 }
 0x2cc   : > { %v1929_v8 = vadd.f32 %v1928_v0, %v8669_v47  ;;  %v2166_v0 = vadd.f32 %v8784_v22, %v2077_v41 }
 0x2ce   : > { %v2018_v44 = vadd.f32 %v2017_v50, %v1929_v8  ;;  %v9015_v35 = vpop.f32.mrf.mxu1 }
 0x2d0   : > { %v2266_v17 = vmax.f32 %v2018_v44, 0.0  ;;  %2540 = vmatmul.bf16.gmra.mxu2 %v8777_v45  ;;  %2629 = vmatmul.bf16.gmra.mxu3 %v2297_v10  ;;  %v2243_v44 = vmax.f32 %v2166_v0, 0.0 }
 0x2d1   : > { %2807 = vmatmul.bf16.gmra.mxu1 %v2297_v10  ;;  %v9018_v54 = vpop.f32.mrf.mxu0 }
 0x2d2   : > { %v9028_v28 = vpack.c.bf16 %v2266_v17, %v2264_v40  ;;  %v2241_v17 = vmax.f32 %v2164_v61, 0.0 }
 0x2d3   : > { %v1931_v57 = vpop.f32.mrf.mxu2  ;;  %v2020_v55 = vpop.f32.mrf.mxu3 }
 0x2d4   : > { %v1932_v33 = vadd.f32 %v1931_v57, %v8669_v47  ;;  %2718 = vmatmul.bf16.gmra.mxu0 %v8777_v45  ;;  %v2299_v45 = vpack.c.bf16 %v2243_v44, %v2241_v17 }
 0x2d6   : > { %v2021_v50 = vadd.f32 %v2020_v55, %v1932_v33  ;;  %v9035_v37 = vpop.f32.mrf.mxu1  ;;  %v2080_v33 = vadd.f32 %v8799_v43, %v8937_v6 }
 0x2d8   : > { %v2268_v26 = vmax.f32 %v2021_v50, 0.0  ;;  %v2171_v50 = vadd.f32 %v8816_v39, %v2082_v11  ;;  %v2169_v43 = vadd.f32 %v8796_v30, %v2080_v33  ;;  %v6682_v33 = vld [vmem:[%s11563_s9 + $0x40] sm:$0xf] }
 0x2d9   : > { %v9038_v8 = vpop.f32.mrf.mxu0 }
 0x2db   : > { %v1933_v10 = vpop.f32.mrf.mxu2  ;;  %v2022_v40 = vpop.f32.mrf.mxu3 }
 0x2dc   : > { %v1934_v24 = vadd.f32 %v1933_v10, %v8669_v47  ;;  %v7381_v10 = vld [vmem:[%s11563_s9 + $0xd4] sm:$0xf0] }
 0x2de   : > { %v2023_v21 = vadd.f32 %v2022_v40, %v1934_v24  ;;  %v9041_v36 = vpop.f32.mrf.mxu1  ;;  %v6755_v40 = vor.u32 %v7381_v10, %v6754_v2 }
 0x2e0   : > { %v2270_v57 = vmax.f32 %v2023_v21, 0.0  ;;  %2545 = vmatmul.bf16.gmra.mxu2 %v8809_v51  ;;  %2634 = vmatmul.bf16.gmra.mxu3 %v2299_v45  ;;  %v2245_v21 = vmax.f32 %v2169_v43, 0.0  ;;  %v2085_v43 = vadd.f32 %v8843_v20, %v8937_v6 }
 0x2e1   : > { %2812 = vmatmul.bf16.gmra.mxu1 %v2299_v45  ;;  %v9044_v22 = vpop.f32.mrf.mxu0  ;;  %3263 = vmatpush.bf16.msra.mxu3 %v6755_v40 }
 0x2e2   : > { %v9048_v41 = vpack.c.bf16 %v2270_v57, %v2268_v26 }
 0x2e3   : > { %v1936_v55 = vpop.f32.mrf.mxu2  ;;  %v2025_v23 = vpop.f32.mrf.mxu3 }
 0x2e4   : > { %v1937_v0 = vadd.f32 %v1936_v55, %v8669_v47  ;;  %2723 = vmatmul.bf16.gmra.mxu0 %v8809_v51  ;;  %v2247_v51 = vmax.f32 %v2171_v50, 0.0  ;;  %v2087_v50 = vadd.f32 %v8887_v32, %v8937_v6  ;;  %v2174_v32 = vadd.f32 %v8834_v29, %v2085_v43 }
 0x2e5   : > { %v2092_v29 = vadd.f32 %v8931_v13, %v8937_v6  ;;  %v6746_v13 = vld [vmem:[%s11563_s9 + $0xc0] sm:$0xf] }
 0x2e6   : > { %v2026_v61 = vadd.f32 %v2025_v23, %v1937_v0  ;;  %v9055_v44 = vpop.f32.mrf.mxu1  ;;  %v2301_v11 = vpack.c.bf16 %v2247_v51, %v2245_v21  ;;  %v7363_v0 = vld [vmem:[%s11563_s9 + $0x44] sm:$0xf0] }
 0x2e7   : > { %v6683_v2 = vor.u32 %v7363_v0, %v6682_v33 }
 0x2e8   : > { %v2272_v55 = vmax.f32 %v2026_v61, 0.0 }
 0x2e9   : > { %v9064_v17 = vpop.f32.mrf.mxu0  ;;  %3175 = vmatpush.bf16.msra.mxu2 %v6683_v2 }
 0x2eb   : > { %v1938_v24 = vpop.f32.mrf.mxu2  ;;  %v2027_v39 = vpop.f32.mrf.mxu3 }
 0x2ec   : > { %v1939_v45 = vadd.f32 %v1938_v24, %v8669_v47  ;;  %v2176_v24 = vadd.f32 %v8866_v1, %v2087_v50 }
 0x2ee   : > { %v2028_v26 = vadd.f32 %v2027_v39, %v1939_v45  ;;  %v9067_v57 = vpop.f32.mrf.mxu1 }
 0x2f0   : > { %v2274_v23 = vmax.f32 %v2028_v26, 0.0  ;;  %2550 = vmatmul.bf16.gmra.mxu2 %v8847_v9  ;;  %2639 = vmatmul.bf16.gmra.mxu3 %v2301_v11  ;;  %v2251_v26 = vmax.f32 %v2176_v24, 0.0 }
 0x2f1   : > { %2817 = vmatmul.bf16.gmra.mxu1 %v2301_v11  ;;  %v9070_v30 = vpop.f32.mrf.mxu0 }
 0x2f2   : > { %v9080_v61 = vpack.c.bf16 %v2274_v23, %v2272_v55  ;;  %v2249_v23 = vmax.f32 %v2174_v32, 0.0 }
 0x2f3   : > { %v1941_v10 = vpop.f32.mrf.mxu2  ;;  %v2030_v40 = vpop.f32.mrf.mxu3 }
 0x2f4   : > { %v1942_v51 = vadd.f32 %v1941_v10, %v8669_v47  ;;  %2728 = vmatmul.bf16.gmra.mxu0 %v8847_v9  ;;  %v2303_v9 = vpack.c.bf16 %v2251_v26, %v2249_v23 }
 0x2f6   : > { %v2031_v39 = vadd.f32 %v2030_v40, %v1942_v51  ;;  %v9087_v21 = vpop.f32.mrf.mxu1  ;;  %v2090_v51 = vadd.f32 %v8911_v49, %v8937_v6 }
 0x2f8   : > { %v2276_v2 = vmax.f32 %v2031_v39, 0.0  ;;  %v2181_v39 = vadd.f32 %v8928_v60, %v2092_v29  ;;  %v2179_v49 = vadd.f32 %v8902_v48, %v2090_v51  ;;  %v6674_v51 = vld [vmem:[%s11563_s9 + $0x30] sm:$0xf] }
 0x2f9   : > { %v9090_v45 = vpop.f32.mrf.mxu0 }
 0x2fb   : > { %v1943_v11 = vpop.f32.mrf.mxu2  ;;  %v2032_v55 = vpop.f32.mrf.mxu3 }
 0x2fc   : > { %v1944_v20 = vadd.f32 %v1943_v11, %v8669_v47  ;;  %v7379_v11 = vld [vmem:[%s11563_s9 + $0xc4] sm:$0xf0] }
 0x2fe   : > { %v2033_v33 = vadd.f32 %v2032_v55, %v1944_v20  ;;  %v9093_v0 = vpop.f32.mrf.mxu1  ;;  %v6747_v55 = vor.u32 %v7379_v11, %v6746_v13 }
 0x300   : > { %v2278_v10 = vmax.f32 %v2033_v33, 0.0  ;;  %2555 = vmatmul.bf16.gmra.mxu2 %v8921_v4  ;;  %2644 = vmatmul.bf16.gmra.mxu3 %v2303_v9  ;;  %v2253_v33 = vmax.f32 %v2179_v49, 0.0  ;;  %v2095_v49 = vadd.f32 %v8940_v5, %v8937_v6  ;;  %v6708_v5 = vld [vmem:[%s11563_s9 + $0x78] sm:$0xf0] }
 0x301   : > { %2822 = vmatmul.bf16.gmra.mxu1 %v2303_v9  ;;  %v9096_v1 = vpop.f32.mrf.mxu0  ;;  %3264 = vmatpush.bf16.msra.mxu3 %v6747_v55 }
 0x302   : > { %v9100_v50 = vpack.c.bf16 %v2278_v10, %v2276_v2 }
 0x303   : > { %v1946_v40 = vpop.f32.mrf.mxu2  ;;  %v2035_v43 = vpop.f32.mrf.mxu3 }
 0x304   : > { %v1947_v24 = vadd.f32 %v1946_v40, %v8669_v47  ;;  %2733 = vmatmul.bf16.gmra.mxu0 %v8921_v4  ;;  %v2255_v4 = vmax.f32 %v2181_v39, 0.0  ;;  %v2097_v39 = vadd.f32 %v8960_v56, %v8937_v6  ;;  %v2184_v56 = vadd.f32 %v8934_v18, %v2095_v49 }
 0x306   : > { %v2036_v32 = vadd.f32 %v2035_v43, %v1947_v24  ;;  %v9107_v26 = vpop.f32.mrf.mxu1  ;;  %v2305_v29 = vpack.c.bf16 %v2255_v4, %v2253_v33  ;;  %v7361_v24 = vld [vmem:[%s11563_s9 + $0x34] sm:$0xf0] }
 0x307   : > { %v6675_v13 = vor.u32 %v7361_v24, %v6674_v51  ;;  %v2257_v24 = vmax.f32 %v2184_v56, 0.0 }
 0x308   : > { %v2280_v40 = vmax.f32 %v2036_v32, 0.0 }
 0x309   : > { %v9116_v23 = vpop.f32.mrf.mxu0  ;;  %3176 = vmatpush.bf16.msra.mxu2 %v6675_v13 }
 0x30b   : > { %v1948_v20 = vpop.f32.mrf.mxu2  ;;  %v2037_v60 = vpop.f32.mrf.mxu3 }
 0x30c   : > { %v1949_v9 = vadd.f32 %v1948_v20, %v8669_v47  ;;  %v2186_v20 = vadd.f32 %v8951_v59, %v2097_v39  ;;  %v6772_v59 = vld [vmem:[%s11563_s9 + $0xf8] sm:$0xf0] }
 0x30e   : > { %v2038_v2 = vadd.f32 %v2037_v60, %v1949_v9  ;;  %v9119_v10 = vpop.f32.mrf.mxu1  ;;  %v7368_v9 = vld [vmem:[%s11563_s9 + $0x74] sm:$0xf]  ;;  %v2259_v18 = vmax.f32 %v2186_v20, 0.0  ;;  %v2102_v20 = vadd.f32 %v8986_v53, %v8937_v6  ;;  %v6738_v53 = vld [vmem:[%s11563_s9 + $0xb0] sm:$0xf] }
 0x310   : > { %v2282_v43 = vmax.f32 %v2038_v2, 0.0  ;;  %2560 = vmatmul.bf16.gmra.mxu2 %v8944_v52  ;;  %2649 = vmatmul.bf16.gmra.mxu3 %v2305_v29 }
 0x311   : > { %2827 = vmatmul.bf16.gmra.mxu1 %v2305_v29  ;;  %v9122_v48 = vpop.f32.mrf.mxu0  ;;  %v6711_v29 = vor.u32 %v7368_v9, %v6708_v5 }
 0x312   : > { %v9132_v32 = vpack.c.bf16 %v2282_v43, %v2280_v40 }
 0x313   : > { %v1951_v11 = vpop.f32.mrf.mxu2  ;;  %v2040_v55 = vpop.f32.mrf.mxu3  ;;  %3350 = vmatpush.bf16.msra.mxu0 %v6711_v29 }
 0x314   : > { %v1952_v4 = vadd.f32 %v1951_v11, %v8669_v47  ;;  %2738 = vmatmul.bf16.gmra.mxu0 %v8944_v52  ;;  %v7384_v52 = vld [vmem:[%s11563_s9 + $0xf4] sm:$0xf] }
 0x315   : > { %v6775_v40 = vor.u32 %v7384_v52, %v6772_v59  ;;  %v2100_v52 = vadd.f32 %v8966_v12, %v8937_v6 }
 0x316   : > { %v2041_v60 = vadd.f32 %v2040_v55, %v1952_v4  ;;  %v9139_v33 = vpop.f32.mrf.mxu1  ;;  %v2307_v55 = vpack.c.bf16 %v2259_v18, %v2257_v24 }
 0x317   : > { %3439 = vmatpush.bf16.msra.mxu1 %v6775_v40  ;;  %v2189_v12 = vadd.f32 %v8963_v62, %v2100_v52 }
 0x318   : > { %v2284_v49 = vmax.f32 %v2041_v60, 0.0  ;;  %v2191_v60 = vadd.f32 %v8983_v27, %v2102_v20 }
 0x319   : > { %v9148_v2 = vpop.f32.mrf.mxu0 }
 0x31b   : > { %v1953_v43 = vpop.f32.mrf.mxu2  ;;  %v2042_v51 = vpop.f32.mrf.mxu3 }
 0x31c   : > { %v1954_v39 = vadd.f32 %v1953_v43, %v8669_v47  ;;  %v7377_v43 = vld [vmem:[%s11563_s9 + $0xb4] sm:$0xf0] }
 0x31e   : > { %v2043_v13 = vadd.f32 %v2042_v51, %v1954_v39  ;;  %v9157_v11 = vpop.f32.mrf.mxu1  ;;  %v6739_v51 = vor.u32 %v7377_v43, %v6738_v53 }
 0x320   : > { %v2286_v4 = vmax.f32 %v2043_v13, 0.0  ;;  %2565 = vmatmul.bf16.gmra.mxu2 %v8976_v42  ;;  %2654 = vmatmul.bf16.gmra.mxu3 %v2307_v55  ;;  %v2261_v13 = vmax.f32 %v2189_v12, 0.0 }
 0x321   : > { %2832 = vmatmul.bf16.gmra.mxu1 %v2307_v55  ;;  %v9160_v9 = vpop.f32.mrf.mxu0  ;;  %3265 = vmatpush.bf16.msra.mxu3 %v6739_v51 }
 0x322   : > { %v9164_v5 = vpack.c.bf16 %v2286_v4, %v2284_v49 }
 0x323   : > { %v1956_v56 = vpop.f32.mrf.mxu2  ;;  %v2045_v29 = vpop.f32.mrf.mxu3 }
 0x324   : > { %v1957_v59 = vadd.f32 %v1956_v56, %v8669_v47  ;;  %2743 = vmatmul.bf16.gmra.mxu0 %v8976_v42  ;;  %v2263_v42 = vmax.f32 %v2191_v60, 0.0  ;;  %v9188_v56 = vld [vmem:[%s11562_s8] sm:$0x3]  ;;  %v7359_v60 = vld [vmem:[%s11563_s9 + $0x24] sm:$0xf0] }
 0x325   : > { %v9192_v52 = vperm.slane %v9188_v56, 0 }
 0x326   : > { %v2046_v18 = vadd.f32 %v2045_v29, %v1957_v59  ;;  %v9171_v40 = vpop.f32.mrf.mxu1  ;;  %v2309_v20 = vpack.c.bf16 %v2263_v42, %v2261_v13  ;;  %v2105_v42 = vadd.f32 %v8992_v14, %v8937_v6  ;;  %v6700_v14 = vld [vmem:[%s11563_s9 + $0x68] sm:$0xf0] }
 0x328   : > { %v2288_v29 = vmax.f32 %v2046_v18, 0.0  ;;  %v2107_v18 = vadd.f32 %v9012_v31, %v8937_v6  ;;  %v2194_v31 = vadd.f32 %v8989_v15, %v2105_v42 }
 0x329   : > { %v9180_v24 = vpop.f32.mrf.mxu0 }
 0x32b   : > { %v1958_v39 = vpop.f32.mrf.mxu2  ;;  %v2047_v27 = vpop.f32.mrf.mxu3 }
 0x32c   : > { %v1959_v55 = vadd.f32 %v1958_v39, %v8669_v47  ;;  %v6666_v47 = vld [vmem:[%s11563_s9 + $0x20] sm:$0xf] }
 0x32d   : > { %v6667_v53 = vor.u32 %v7359_v60, %v6666_v47 }
 0x32e   : > { %v2048_v49 = vadd.f32 %v2047_v27, %v1959_v55  ;;  %v9183_v4 = vpop.f32.mrf.mxu1  ;;  %v2196_v27 = vadd.f32 %v9003_v16, %v2107_v18  ;;  %v6764_v16 = vld [vmem:[%s11563_s9 + $0xe8] sm:$0xf0]  ;;  %v2265_v18 = vmax.f32 %v2194_v31, 0.0 }
 0x32f   : > { %3177 = vmatpush.bf16.msra.mxu2 %v6667_v53 }
 0x330   : > { %v2290_v62 = vmax.f32 %v2048_v49, 0.0  ;;  %2570 = vmatmul.bf16.gmra.mxu2 %v8996_v38  ;;  %2659 = vmatmul.bf16.gmra.mxu3 %v2309_v20  ;;  %v7366_v49 = vld [vmem:[%s11563_s9 + $0x64] sm:$0xf]  ;;  %v2267_v15 = vmax.f32 %v2196_v27, 0.0  ;;  %v2112_v27 = vadd.f32 %v9038_v8, %v8937_v6  ;;  %v6730_v8 = vld [vmem:[%s11563_s9 + $0xa0] sm:$0xf] }
 0x331   : > { %2837 = vmatmul.bf16.gmra.mxu1 %v2309_v20  ;;  %v9194_v59 = vpop.f32.mrf.mxu0 }
 0x332   : > { %v9204_v43 = vpack.c.bf16 %v2290_v62, %v2288_v29  ;;  %v6703_v29 = vor.u32 %v7366_v49, %v6700_v14  ;;  %v2311_v42 = vpack.c.bf16 %v2267_v15, %v2265_v18 }
 0x333   : > { %v2531_v51 = vpop.f32.mrf.mxu2  ;;  %v2620_v12 = vpop.f32.mrf.mxu3 }
 0x334   : > { %v2532_v39 = vadd.f32 %v2531_v51, %v9192_v52  ;;  %2748 = vmatmul.bf16.gmra.mxu0 %v8996_v38  ;;  %v7382_v38 = vld [vmem:[%s11563_s9 + $0xe4] sm:$0xf] }
 0x335   : > { %v6767_v62 = vor.u32 %v7382_v38, %v6764_v16  ;;  %3351 = vmatpush.bf16.msra.mxu0 %v6703_v29  ;;  %v2110_v16 = vadd.f32 %v9018_v54, %v8937_v6 }
 0x336   : > { %v2621_v13 = vadd.f32 %v2620_v12, %v2532_v39  ;;  %v9211_v55 = vpop.f32.mrf.mxu1 }
 0x337   : > { %3440 = vmatpush.bf16.msra.mxu1 %v6767_v62  ;;  %v2199_v54 = vadd.f32 %v9015_v35, %v2110_v16  ;;  %v6658_v16 = vld [vmem:[%s11563_s9 + $0x10] sm:$0xf] }
 0x338   : > { %v2878_v39 = vmax.f32 %v2621_v13, 0.0  ;;  %v2201_v13 = vadd.f32 %v9035_v37, %v2112_v27 }
 0x339   : > { %v9220_v20 = vpop.f32.mrf.mxu0 }
 0x33b   : > { %v2533_v47 = vpop.f32.mrf.mxu2  ;;  %v2622_v60 = vpop.f32.mrf.mxu3 }
 0x33c   : > { %v2534_v53 = vadd.f32 %v2533_v47, %v9192_v52 }
 0x33e   : > { %v2623_v51 = vadd.f32 %v2622_v60, %v2534_v53  ;;  %v9229_v12 = vpop.f32.mrf.mxu1  ;;  %v7375_v60 = vld [vmem:[%s11563_s9 + $0xa4] sm:$0xf0] }
 0x33f   : > { %v6731_v18 = vor.u32 %v7375_v60, %v6730_v8  ;;  %v2117_v8 = vadd.f32 %v9064_v17, %v8937_v6 }
 0x340   : > { %v2880_v49 = vmax.f32 %v2623_v51, 0.0  ;;  %2575 = vmatmul.bf16.gmra.mxu2 %v9028_v28  ;;  %2664 = vmatmul.bf16.gmra.mxu3 %v2311_v42 }
 0x341   : > { %2842 = vmatmul.bf16.gmra.mxu1 %v2311_v42  ;;  %v9232_v14 = vpop.f32.mrf.mxu0  ;;  %3266 = vmatpush.bf16.msra.mxu3 %v6731_v18  ;;  %v2269_v42 = vmax.f32 %v2199_v54, 0.0 }
 0x342   : > { %v9236_v29 = vpack.c.bf16 %v2880_v49, %v2878_v39 }
 0x343   : > { %v2536_v31 = vpop.f32.mrf.mxu2  ;;  %v2625_v38 = vpop.f32.mrf.mxu3 }
 0x344   : > { %v2537_v15 = vadd.f32 %v2536_v31, %v9192_v52  ;;  %2753 = vmatmul.bf16.gmra.mxu0 %v9028_v28  ;;  %v2271_v28 = vmax.f32 %v2201_v13, 0.0  ;;  %v7357_v13 = vld [vmem:[%s11563_s9 + $0x14] sm:$0xf0] }
 0x345   : > { %v6659_v60 = vor.u32 %v7357_v13, %v6658_v16 }
 0x346   : > { %v2626_v62 = vadd.f32 %v2625_v38, %v2537_v15  ;;  %v9243_v47 = vpop.f32.mrf.mxu1  ;;  %v2313_v31 = vpack.c.bf16 %v2271_v28, %v2269_v42  ;;  %v2115_v28 = vadd.f32 %v9044_v22, %v8937_v6  ;;  %v6692_v22 = vld [vmem:[%s11563_s9 + $0x58] sm:$0xf0] }
 0x347   : > { %3178 = vmatpush.bf16.msra.mxu2 %v6659_v60 }
 0x348   : > { %v2882_v38 = vmax.f32 %v2626_v62, 0.0  ;;  %v2204_v17 = vadd.f32 %v9041_v36, %v2115_v28 }
 0x349   : > { %v9252_v53 = vpop.f32.mrf.mxu0 }
 0x34b   : > { %v2538_v51 = vpop.f32.mrf.mxu2  ;;  %v2627_v37 = vpop.f32.mrf.mxu3 }
 0x34c   : > { %v2539_v39 = vadd.f32 %v2538_v51, %v9192_v52 }
 0x34e   : > { %v2628_v49 = vadd.f32 %v2627_v37, %v2539_v39  ;;  %v9255_v27 = vpop.f32.mrf.mxu1  ;;  %v2206_v37 = vadd.f32 %v9055_v44, %v2117_v8  ;;  %v6756_v44 = vld [vmem:[%s11563_s9 + $0xd8] sm:$0xf0]  ;;  %v2273_v8 = vmax.f32 %v2204_v17, 0.0 }
 0x350   : > { %v2884_v15 = vmax.f32 %v2628_v49, 0.0  ;;  %2580 = vmatmul.bf16.gmra.mxu2 %v9048_v41  ;;  %2669 = vmatmul.bf16.gmra.mxu3 %v2313_v31  ;;  %v7364_v49 = vld [vmem:[%s11563_s9 + $0x54] sm:$0xf]  ;;  %v2275_v36 = vmax.f32 %v2206_v37, 0.0  ;;  %v2122_v37 = vadd.f32 %v9090_v45, %v8937_v6  ;;  %v6722_v45 = vld [vmem:[%s11563_s9 + $0x90] sm:$0xf] }
 0x351   : > { %2847 = vmatmul.bf16.gmra.mxu1 %v2313_v31  ;;  %v9258_v35 = vpop.f32.mrf.mxu0 }
 0x352   : > { %v9268_v62 = vpack.c.bf16 %v2884_v15, %v2882_v38  ;;  %v6695_v38 = vor.u32 %v7364_v49, %v6692_v22  ;;  %v2315_v28 = vpack.c.bf16 %v2275_v36, %v2273_v8 }
 0x353   : > { %v2541_v18 = vpop.f32.mrf.mxu2  ;;  %v2630_v54 = vpop.f32.mrf.mxu3 }
 0x354   : > { %v2542_v51 = vadd.f32 %v2541_v18, %v9192_v52  ;;  %2758 = vmatmul.bf16.gmra.mxu0 %v9048_v41  ;;  %v7380_v41 = vld [vmem:[%s11563_s9 + $0xd4] sm:$0xf] }
 0x355   : > { %v6759_v15 = vor.u32 %v7380_v41, %v6756_v44  ;;  %3352 = vmatpush.bf16.msra.mxu0 %v6695_v38  ;;  %v2120_v44 = vadd.f32 %v9070_v30, %v8937_v6 }
 0x356   : > { %v2631_v42 = vadd.f32 %v2630_v54, %v2542_v51  ;;  %v9275_v39 = vpop.f32.mrf.mxu1 }
 0x357   : > { %3441 = vmatpush.bf16.msra.mxu1 %v6759_v15  ;;  %v2209_v30 = vadd.f32 %v9067_v57, %v2120_v44  ;;  %v6650_v44 = vld [vmem:[%s11563_s9] sm:$0xf] }
 0x358   : > { %v2886_v51 = vmax.f32 %v2631_v42, 0.0  ;;  %v2211_v42 = vadd.f32 %v9087_v21, %v2122_v37 }
 0x359   : > { %v9284_v31 = vpop.f32.mrf.mxu0 }
 0x35b   : > { %v2543_v16 = vpop.f32.mrf.mxu2  ;;  %v2632_v13 = vpop.f32.mrf.mxu3 }
 0x35c   : > { %v2544_v60 = vadd.f32 %v2543_v16, %v9192_v52 }
 0x35e   : > { %v2633_v18 = vadd.f32 %v2632_v13, %v2544_v60  ;;  %v9293_v54 = vpop.f32.mrf.mxu1  ;;  %v7373_v13 = vld [vmem:[%s11563_s9 + $0x94] sm:$0xf0] }
 0x35f   : > { %v6723_v8 = vor.u32 %v7373_v13, %v6722_v45  ;;  %v2127_v45 = vadd.f32 %v9116_v23, %v8937_v6 }
 0x360   : > { %v2888_v49 = vmax.f32 %v2633_v18, 0.0  ;;  %2585 = vmatmul.bf16.gmra.mxu2 %v9080_v61  ;;  %2674 = vmatmul.bf16.gmra.mxu3 %v2315_v28 }
 0x361   : > { %2852 = vmatmul.bf16.gmra.mxu1 %v2315_v28  ;;  %v9296_v22 = vpop.f32.mrf.mxu0  ;;  %3267 = vmatpush.bf16.msra.mxu3 %v6723_v8  ;;  %v2277_v28 = vmax.f32 %v2209_v30, 0.0 }
 0x362   : > { %v9300_v38 = vpack.c.bf16 %v2888_v49, %v2886_v51 }
 0x363   : > { %v2546_v17 = vpop.f32.mrf.mxu2  ;;  %v2635_v41 = vpop.f32.mrf.mxu3 }
 0x364   : > { %v2547_v36 = vadd.f32 %v2546_v17, %v9192_v52  ;;  %2763 = vmatmul.bf16.gmra.mxu0 %v9080_v61  ;;  %v2279_v61 = vmax.f32 %v2211_v42, 0.0  ;;  %v7355_v42 = vld [vmem:[%s11563_s9 + $0x4] sm:$0xf0] }
 0x365   : > { %v6651_v13 = vor.u32 %v7355_v42, %v6650_v44 }
 0x366   : > { %v2636_v15 = vadd.f32 %v2635_v41, %v2547_v36  ;;  %v9307_v16 = vpop.f32.mrf.mxu1  ;;  %v2317_v17 = vpack.c.bf16 %v2279_v61, %v2277_v28  ;;  %v2125_v61 = vadd.f32 %v9096_v1, %v8937_v6  ;;  %v6684_v1 = vld [vmem:[%s11563_s9 + $0x48] sm:$0xf0] }
 0x367   : > { %3179 = vmatpush.bf16.msra.mxu2 %v6651_v13 }
 0x368   : > { %v2890_v41 = vmax.f32 %v2636_v15, 0.0  ;;  %v2214_v23 = vadd.f32 %v9093_v0, %v2125_v61 }
 0x369   : > { %v9316_v60 = vpop.f32.mrf.mxu0 }
 0x36b   : > { %v2548_v18 = vpop.f32.mrf.mxu2  ;;  %v2637_v21 = vpop.f32.mrf.mxu3 }
 0x36c   : > { %v2549_v51 = vadd.f32 %v2548_v18, %v9192_v52 }
 0x36e   : > { %v2638_v49 = vadd.f32 %v2637_v21, %v2549_v51  ;;  %v9319_v37 = vpop.f32.mrf.mxu1  ;;  %v2216_v21 = vadd.f32 %v9107_v26, %v2127_v45  ;;  %v6748_v26 = vld [vmem:[%s11563_s9 + $0xc8] sm:$0xf0]  ;;  %v2281_v45 = vmax.f32 %v2214_v23, 0.0 }
 0x370   : > { %v2892_v36 = vmax.f32 %v2638_v49, 0.0  ;;  %2590 = vmatmul.bf16.gmra.mxu2 %v9100_v50  ;;  %2679 = vmatmul.bf16.gmra.mxu3 %v2317_v17  ;;  %v7362_v49 = vld [vmem:[%s11563_s9 + $0x44] sm:$0xf]  ;;  %v2283_v0 = vmax.f32 %v2216_v21, 0.0  ;;  %v6740_v21 = vld [vmem:[%s11563_s9 + $0xb8] sm:$0xf0] }
 0x371   : > { %2857 = vmatmul.bf16.gmra.mxu1 %v2317_v17  ;;  %v9322_v57 = vpop.f32.mrf.mxu0 }
 0x372   : > { %v9332_v15 = vpack.c.bf16 %v2892_v36, %v2890_v41  ;;  %v6687_v41 = vor.u32 %v7362_v49, %v6684_v1  ;;  %v2319_v61 = vpack.c.bf16 %v2283_v0, %v2281_v45 }
 0x373   : > { %v2551_v8 = vpop.f32.mrf.mxu2  ;;  %v2640_v30 = vpop.f32.mrf.mxu3 }
 0x374   : > { %v2552_v18 = vadd.f32 %v2551_v8, %v9192_v52  ;;  %2768 = vmatmul.bf16.gmra.mxu0 %v9100_v50  ;;  %v7378_v50 = vld [vmem:[%s11563_s9 + $0xc4] sm:$0xf] }
 0x375   : > { %v6751_v36 = vor.u32 %v7378_v50, %v6748_v26  ;;  %3353 = vmatpush.bf16.msra.mxu0 %v6687_v41  ;;  %v2132_v50 = vadd.f32 %v9148_v2, %v8937_v6  ;;  %v2130_v2 = vadd.f32 %v9122_v48, %v8937_v6  ;;  %v7371_v48 = vld [vmem:[%s11563_s9 + $0x84] sm:$0xf0] }
 0x376   : > { %v2641_v28 = vadd.f32 %v2640_v30, %v2552_v18  ;;  %v9339_v51 = vpop.f32.mrf.mxu1  ;;  %v7376_v18 = vld [vmem:[%s11563_s9 + $0xb4] sm:$0xf] }
 0x377   : > { %3442 = vmatpush.bf16.msra.mxu1 %v6751_v36  ;;  %v6743_v23 = vor.u32 %v7376_v18, %v6740_v21  ;;  %v2221_v18 = vadd.f32 %v9139_v33, %v2132_v50  ;;  %v6668_v33 = vld [vmem:[%s11563_s9 + $0x28] sm:$0xf0]  ;;  %v7372_v50 = vld [vmem:[%s11563_s9 + $0x94] sm:$0xf] }
 0x378   : > { %v2894_v49 = vmax.f32 %v2641_v28, 0.0  ;;  %v7360_v28 = vld [vmem:[%s11563_s9 + $0x34] sm:$0xf] }
 0x379   : > { %v9348_v17 = vpop.f32.mrf.mxu0 }
 0x37b   : > { %v2553_v44 = vpop.f32.mrf.mxu2  ;;  %v2642_v42 = vpop.f32.mrf.mxu3  ;;  %3443 = vmatpush.bf16.msra.mxu1 %v6743_v23  ;;  %v7358_v23 = vld [vmem:[%s11563_s9 + $0x24] sm:$0xf] }
 0x37c   : > { %v2554_v13 = vadd.f32 %v2553_v44, %v9192_v52  ;;  %v6676_v44 = vld [vmem:[%s11563_s9 + $0x38] sm:$0xf0] }
 0x37e   : > { %v2643_v8 = vadd.f32 %v2642_v42, %v2554_v13  ;;  %v9357_v30 = vpop.f32.mrf.mxu1  ;;  %v7374_v42 = vld [vmem:[%s11563_s9 + $0xa4] sm:$0xf]  ;;  %v6679_v13 = vor.u32 %v7360_v28, %v6676_v44  ;;  %v6724_v28 = vld [vmem:[%s11563_s9 + $0x98] sm:$0xf0] }
 0x380   : > { %v2896_v1 = vmax.f32 %v2643_v8, 0.0  ;;  %2595 = vmatmul.bf16.gmra.mxu2 %v9132_v32  ;;  %2684 = vmatmul.bf16.gmra.mxu3 %v2319_v61  ;;  %v6732_v8 = vld [vmem:[%s11563_s9 + $0xa8] sm:$0xf0] }
 0x381   : > { %2862 = vmatmul.bf16.gmra.mxu1 %v2319_v61  ;;  %v9366_v41 = vpop.f32.mrf.mxu0  ;;  %v6735_v61 = vor.u32 %v7374_v42, %v6732_v8  ;;  %3354 = vmatpush.bf16.msra.mxu0 %v6679_v13  ;;  %v6727_v42 = vor.u32 %v7372_v50, %v6724_v28  ;;  %v7354_v28 = vld [vmem:[%s11563_s9 + $0x4] sm:$0xf] }
 0x382   : > { %v9370_v26 = vpack.c.bf16 %v2896_v1, %v2894_v49  ;;  %v6714_v1 = vld [vmem:[%s11563_s9 + $0x80] sm:$0xf] }
 0x383   : > { %v2556_v0 = vpop.f32.mrf.mxu2  ;;  %v2645_v36 = vpop.f32.mrf.mxu3  ;;  %3444 = vmatpush.bf16.msra.mxu1 %v6735_v61  ;;  %v7356_v61 = vld [vmem:[%s11563_s9 + $0x14] sm:$0xf] }
 0x384   : > { %v2557_v45 = vadd.f32 %v2556_v0, %v9192_v52  ;;  %2773 = vmatmul.bf16.gmra.mxu0 %v9132_v32  ;;  %v6715_v32 = vor.u32 %v7371_v48, %v6714_v1  ;;  %v2219_v0 = vadd.f32 %v9119_v10, %v2130_v2  ;;  %v6660_v10 = vld [vmem:[%s11563_s9 + $0x18] sm:$0xf0]  ;;  %v7370_v2 = vld [vmem:[%s11563_s9 + $0x84] sm:$0xf] }
 0x386   : > { %v2646_v21 = vadd.f32 %v2645_v36, %v2557_v45  ;;  %v9389_v49 = vpop.f32.mrf.mxu1  ;;  %v6671_v36 = vor.u32 %v7358_v23, %v6668_v33  ;;  %3268 = vmatpush.bf16.msra.mxu3 %v6715_v32  ;;  %v2287_v45 = vmax.f32 %v2221_v18, 0.0  ;;  %v2285_v1 = vmax.f32 %v2219_v0, 0.0  ;;  %v6716_v32 = vld [vmem:[%s11563_s9 + $0x88] sm:$0xf0] }
 0x387   : > { %3445 = vmatpush.bf16.msra.mxu1 %v6727_v42  ;;  %v6663_v18 = vor.u32 %v7356_v61, %v6660_v10  ;;  %v6719_v23 = vor.u32 %v7370_v2, %v6716_v32  ;;  %v6652_v0 = vld [vmem:[%s11563_s9 + $0x8] sm:$0xf0]  ;;  %v7401_v10 = vld [vmem:[%s11565_s11 + $0x74] sm:$0xf0]  ;;  %v2137_v2 = vadd.f32 %v9180_v24, %v8937_v6  ;;  %v2135_v32 = vadd.f32 %v9160_v9, %v8937_v6 }
 0x388   : > { %3355 = vmatpush.bf16.msra.mxu0 %v6671_v36  ;;  %v2321_v36 = vpack.c.bf16 %v2287_v45, %v2285_v1  ;;  %v2898_v42 = vmax.f32 %v2646_v21, 0.0  ;;  %v6655_v61 = vor.u32 %v7354_v28, %v6652_v0  ;;  %v6834_v45 = vld [vmem:[%s11565_s11 + $0x70] sm:$0xf] }
 0x389   : > { %v9410_v44 = vpop.f32.mrf.mxu0  ;;  %v6835_v21 = vor.u32 %v7401_v10, %v6834_v45  ;;  %v2224_v24 = vadd.f32 %v9157_v11, %v2135_v32 }
 0x38b   : > { %v2558_v13 = vpop.f32.mrf.mxu2  ;;  %v2647_v8 = vpop.f32.mrf.mxu3  ;;  %3446 = vmatpush.bf16.msra.mxu1 %v6719_v23  ;;  %3817 = vmatpush.bf16.msrb.mxu2 %v6835_v21  ;;  %v2289_v45 = vmax.f32 %v2224_v24, 0.0  ;;  %v9460_v21 = vperm.slane %v9188_v56, 1 }
 0x38c   : > { %v2559_v48 = vadd.f32 %v2558_v13, %v9192_v52  ;;  %3356 = vmatpush.bf16.msra.mxu0 %v6663_v18 }
 0x38e   : > { %v2648_v33 = vadd.f32 %v2647_v8, %v2559_v48  ;;  %v9425_v50 = vpop.f32.mrf.mxu1 }
 0x390   : > { %v2900_v13 = vmax.f32 %v2648_v33, 0.0  ;;  %2600 = vmatmul.bf16.gmra.mxu2 %v9164_v5  ;;  %2689 = vmatmul.bf16.gmra.mxu3 %v2321_v36  ;;  %v2226_v33 = vadd.f32 %v9171_v40, %v2137_v2 }
 0x391   : > { %2867 = vmatmul.bf16.gmra.mxu1 %v2321_v36  ;;  %v9434_v8 = vpop.f32.mrf.mxu0  ;;  %3357 = vmatpush.bf16.msra.mxu0 %v6655_v61 }
 0x392   : > { %v9444_v1 = vpack.c.bf16 %v2900_v13, %v2898_v42  ;;  %v2291_v42 = vmax.f32 %v2226_v33, 0.0  ;;  %v2710_v33 = vadd.f32 %v9194_v59, %v9460_v21 }
 0x393   : > { %v2561_v48 = vpop.f32.mrf.mxu2  ;;  %v2650_v18 = vpop.f32.mrf.mxu3 }
 0x394   : > { %v2562_v23 = vadd.f32 %v2561_v48, %v9192_v52  ;;  %2778 = vmatmul.bf16.gmra.mxu0 %v9164_v5  ;;  %v2323_v5 = vpack.c.bf16 %v2291_v42, %v2289_v45  ;;  %v2712_v48 = vadd.f32 %v9220_v20, %v9460_v21  ;;  %v6898_v20 = vld [vmem:[%s11565_s11 + $0xf0] sm:$0xf]  ;;  %v2799_v59 = vadd.f32 %v9183_v4, %v2710_v33  ;;  %v6826_v33 = vld [vmem:[%s11565_s11 + $0x60] sm:$0xf] }
 0x396   : > { %v2651_v36 = vadd.f32 %v2650_v18, %v2562_v23  ;;  %v9451_v28 = vpop.f32.mrf.mxu1 }
 0x398   : > { %v2902_v40 = vmax.f32 %v2651_v36, 0.0  ;;  %v2801_v36 = vadd.f32 %v9211_v55, %v2712_v48 }
 0x399   : > { %v9454_v0 = vpop.f32.mrf.mxu0 }
 0x39b   : > { %v2563_v13 = vpop.f32.mrf.mxu2  ;;  %v2652_v61 = vpop.f32.mrf.mxu3 }
 0x39c   : > { %v2564_v6 = vadd.f32 %v2563_v13, %v9192_v52  ;;  %v7417_v13 = vld [vmem:[%s11565_s11 + $0xf4] sm:$0xf0] }
 0x39e   : > { %v2653_v9 = vadd.f32 %v2652_v61, %v2564_v6  ;;  %v9457_v10 = vpop.f32.mrf.mxu1  ;;  %v6899_v61 = vor.u32 %v7417_v13, %v6898_v20 }
 0x3a0   : > { %v2904_v2 = vmax.f32 %v2653_v9, 0.0  ;;  %2605 = vmatmul.bf16.gmra.mxu2 %v9204_v43  ;;  %2694 = vmatmul.bf16.gmra.mxu3 %v2323_v5  ;;  %v2879_v9 = vmax.f32 %v2799_v59, 0.0  ;;  %v2715_v59 = vadd.f32 %v9232_v14, %v9460_v21 }
 0x3a1   : > { %2872 = vmatmul.bf16.gmra.mxu1 %v2323_v5  ;;  %v9463_v11 = vpop.f32.mrf.mxu0  ;;  %3906 = vmatpush.bf16.msrb.mxu3 %v6899_v61 }
 0x3a2   : > { %v9467_v18 = vpack.c.bf16 %v2904_v2, %v2902_v40 }
 0x3a3   : > { %v2566_v32 = vpop.f32.mrf.mxu2  ;;  %v2655_v23 = vpop.f32.mrf.mxu3 }
 0x3a4   : > { %v2567_v56 = vadd.f32 %v2566_v32, %v9192_v52  ;;  %2783 = vmatmul.bf16.gmra.mxu0 %v9204_v43  ;;  %v2881_v43 = vmax.f32 %v2801_v36, 0.0  ;;  %v2717_v36 = vadd.f32 %v9252_v53, %v9460_v21  ;;  %v2804_v53 = vadd.f32 %v9229_v12, %v2715_v59 }
 0x3a5   : > { %v2722_v12 = vadd.f32 %v9284_v31, %v9460_v21  ;;  %v6890_v31 = vld [vmem:[%s11565_s11 + $0xe0] sm:$0xf] }
 0x3a6   : > { %v2656_v24 = vadd.f32 %v2655_v23, %v2567_v56  ;;  %v9474_v42 = vpop.f32.mrf.mxu1  ;;  %v2943_v40 = vpack.c.bf16 %v2881_v43, %v2879_v9  ;;  %v7399_v56 = vld [vmem:[%s11565_s11 + $0x64] sm:$0xf0] }
 0x3a7   : > { %v6827_v20 = vor.u32 %v7399_v56, %v6826_v33 }
 0x3a8   : > { %v2906_v32 = vmax.f32 %v2656_v24, 0.0 }
 0x3a9   : > { %v9483_v45 = vpop.f32.mrf.mxu0  ;;  %3818 = vmatpush.bf16.msrb.mxu2 %v6827_v20 }
 0x3ab   : > { %v2568_v6 = vpop.f32.mrf.mxu2  ;;  %v2657_v55 = vpop.f32.mrf.mxu3 }
 0x3ac   : > { %v2569_v5 = vadd.f32 %v2568_v6, %v9192_v52  ;;  %v2806_v6 = vadd.f32 %v9243_v47, %v2717_v36 }
 0x3ae   : > { %v2658_v2 = vadd.f32 %v2657_v55, %v2569_v5  ;;  %v9486_v48 = vpop.f32.mrf.mxu1 }
 0x3b0   : > { %v2908_v23 = vmax.f32 %v2658_v2, 0.0  ;;  %3180 = vmatmul.bf16.vlgmr.msra.gmra.mxu2 %v9236_v29  ;;  %3269 = vmatmul.bf16.vlgmr.msra.gmra.mxu3 %v2943_v40 }
 0x3b1   : > { %3447 = vmatmul.bf16.vlgmr.msra.gmra.mxu1 %v2943_v40  ;;  %v9489_v4 = vpop.f32.mrf.mxu0  ;;  %v2885_v40 = vmax.f32 %v2806_v6, 0.0 }
 0x3b2   : > { %v9499_v24 = vpack.c.bf16 %v2908_v23, %v2906_v32  ;;  %v2883_v23 = vmax.f32 %v2804_v53, 0.0 }
 0x3b3   : > { %v2571_v13 = vpop.f32.mrf.mxu2  ;;  %v2660_v61 = vpop.f32.mrf.mxu3 }
 0x3b4   : > { %v2572_v43 = vadd.f32 %v2571_v13, %v9192_v52  ;;  %3358 = vmatmul.bf16.vlgmr.msra.gmra.mxu0 %v9236_v29  ;;  %v2945_v29 = vpack.c.bf16 %v2885_v40, %v2883_v23 }
 0x3b6   : > { %v2661_v55 = vadd.f32 %v2660_v61, %v2572_v43  ;;  %v9506_v9 = vpop.f32.mrf.mxu1  ;;  %v2720_v43 = vadd.f32 %v9258_v35, %v9460_v21 }
 0x3b8   : > { %v2910_v20 = vmax.f32 %v2661_v55, 0.0  ;;  %v2811_v55 = vadd.f32 %v9275_v39, %v2722_v12  ;;  %v2809_v35 = vadd.f32 %v9255_v27, %v2720_v43  ;;  %v6818_v43 = vld [vmem:[%s11565_s11 + $0x50] sm:$0xf] }
 0x3b9   : > { %v9509_v5 = vpop.f32.mrf.mxu0 }
 0x3bb   : > { %v2573_v2 = vpop.f32.mrf.mxu2  ;;  %v2662_v32 = vpop.f32.mrf.mxu3 }
 0x3bc   : > { %v2574_v14 = vadd.f32 %v2573_v2, %v9192_v52  ;;  %v7415_v2 = vld [vmem:[%s11565_s11 + $0xe4] sm:$0xf0] }
 0x3be   : > { %v2663_v33 = vadd.f32 %v2662_v32, %v2574_v14  ;;  %v9512_v56 = vpop.f32.mrf.mxu1  ;;  %v6891_v32 = vor.u32 %v7415_v2, %v6890_v31 }
 0x3c0   : > { %v2912_v13 = vmax.f32 %v2663_v33, 0.0  ;;  %3185 = vmatmul.bf16.gmra.mxu2 %v9268_v62  ;;  %3274 = vmatmul.bf16.gmra.mxu3 %v2945_v29  ;;  %v2887_v33 = vmax.f32 %v2809_v35, 0.0  ;;  %v2725_v35 = vadd.f32 %v9296_v22, %v9460_v21 }
 0x3c1   : > { %3452 = vmatmul.bf16.gmra.mxu1 %v2945_v29  ;;  %v9515_v47 = vpop.f32.mrf.mxu0  ;;  %3907 = vmatpush.bf16.msrb.mxu3 %v6891_v32 }
 0x3c2   : > { %v9519_v36 = vpack.c.bf16 %v2912_v13, %v2910_v20 }
 0x3c3   : > { %v2576_v61 = vpop.f32.mrf.mxu2  ;;  %v2665_v59 = vpop.f32.mrf.mxu3 }
 0x3c4   : > { %v2577_v6 = vadd.f32 %v2576_v61, %v9192_v52  ;;  %3363 = vmatmul.bf16.gmra.mxu0 %v9268_v62  ;;  %v2889_v62 = vmax.f32 %v2811_v55, 0.0  ;;  %v2727_v55 = vadd.f32 %v9316_v60, %v9460_v21  ;;  %v2814_v60 = vadd.f32 %v9293_v54, %v2725_v35 }
 0x3c5   : > { %v2732_v54 = vadd.f32 %v9348_v17, %v9460_v21  ;;  %v6882_v17 = vld [vmem:[%s11565_s11 + $0xd0] sm:$0xf] }
 0x3c6   : > { %v2666_v53 = vadd.f32 %v2665_v59, %v2577_v6  ;;  %v9526_v40 = vpop.f32.mrf.mxu1  ;;  %v2947_v12 = vpack.c.bf16 %v2889_v62, %v2887_v33  ;;  %v7397_v6 = vld [vmem:[%s11565_s11 + $0x54] sm:$0xf0] }
 0x3c7   : > { %v6819_v31 = vor.u32 %v7397_v6, %v6818_v43 }
 0x3c8   : > { %v2914_v61 = vmax.f32 %v2666_v53, 0.0 }
 0x3c9   : > { %v9535_v23 = vpop.f32.mrf.mxu0  ;;  %3819 = vmatpush.bf16.msrb.mxu2 %v6819_v31 }
 0x3cb   : > { %v2578_v14 = vpop.f32.mrf.mxu2  ;;  %v2667_v39 = vpop.f32.mrf.mxu3 }
 0x3cc   : > { %v2579_v29 = vadd.f32 %v2578_v14, %v9192_v52  ;;  %v2816_v14 = vadd.f32 %v9307_v16, %v2727_v55 }
 0x3ce   : > { %v2668_v20 = vadd.f32 %v2667_v39, %v2579_v29  ;;  %v9538_v13 = vpop.f32.mrf.mxu1 }
 0x3d0   : > { %v2916_v59 = vmax.f32 %v2668_v20, 0.0  ;;  %3190 = vmatmul.bf16.gmra.mxu2 %v9300_v38  ;;  %3279 = vmatmul.bf16.gmra.mxu3 %v2947_v12  ;;  %v2893_v20 = vmax.f32 %v2816_v14, 0.0 }
 0x3d1   : > { %3457 = vmatmul.bf16.gmra.mxu1 %v2947_v12  ;;  %v9541_v27 = vpop.f32.mrf.mxu0 }
 0x3d2   : > { %v9551_v53 = vpack.c.bf16 %v2916_v59, %v2914_v61  ;;  %v2891_v59 = vmax.f32 %v2814_v60, 0.0 }
 0x3d3   : > { %v2581_v2 = vpop.f32.mrf.mxu2  ;;  %v2670_v32 = vpop.f32.mrf.mxu3 }
 0x3d4   : > { %v2582_v62 = vadd.f32 %v2581_v2, %v9192_v52  ;;  %3368 = vmatmul.bf16.gmra.mxu0 %v9300_v38  ;;  %v2949_v38 = vpack.c.bf16 %v2893_v20, %v2891_v59 }
 0x3d6   : > { %v2671_v39 = vadd.f32 %v2670_v32, %v2582_v62  ;;  %v9558_v33 = vpop.f32.mrf.mxu1  ;;  %v2730_v62 = vadd.f32 %v9322_v57, %v9460_v21 }
 0x3d8   : > { %v2918_v31 = vmax.f32 %v2671_v39, 0.0  ;;  %v2821_v39 = vadd.f32 %v9339_v51, %v2732_v54  ;;  %v2819_v57 = vadd.f32 %v9319_v37, %v2730_v62  ;;  %v6810_v62 = vld [vmem:[%s11565_s11 + $0x40] sm:$0xf] }
 0x3d9   : > { %v9561_v29 = vpop.f32.mrf.mxu0 }
 0x3db   : > { %v2583_v12 = vpop.f32.mrf.mxu2  ;;  %v2672_v61 = vpop.f32.mrf.mxu3 }
 0x3dc   : > { %v2584_v22 = vadd.f32 %v2583_v12, %v9192_v52  ;;  %v7413_v12 = vld [vmem:[%s11565_s11 + $0xd4] sm:$0xf0] }
 0x3de   : > { %v2673_v43 = vadd.f32 %v2672_v61, %v2584_v22  ;;  %v9564_v6 = vpop.f32.mrf.mxu1  ;;  %v6883_v61 = vor.u32 %v7413_v12, %v6882_v17 }
 0x3e0   : > { %v2920_v2 = vmax.f32 %v2673_v43, 0.0  ;;  %3195 = vmatmul.bf16.gmra.mxu2 %v9332_v15  ;;  %3284 = vmatmul.bf16.gmra.mxu3 %v2949_v38  ;;  %v2895_v43 = vmax.f32 %v2819_v57, 0.0  ;;  %v2735_v57 = vadd.f32 %v9366_v41, %v9460_v21 }
 0x3e1   : > { %3462 = vmatmul.bf16.gmra.mxu1 %v2949_v38  ;;  %v9567_v16 = vpop.f32.mrf.mxu0  ;;  %3908 = vmatpush.bf16.msrb.mxu3 %v6883_v61 }
 0x3e2   : > { %v9571_v55 = vpack.c.bf16 %v2920_v2, %v2918_v31 }
 0x3e3   : > { %v2586_v32 = vpop.f32.mrf.mxu2  ;;  %v2675_v35 = vpop.f32.mrf.mxu3 }
 0x3e4   : > { %v2587_v14 = vadd.f32 %v2586_v32, %v9192_v52  ;;  %3373 = vmatmul.bf16.gmra.mxu0 %v9332_v15  ;;  %v2897_v15 = vmax.f32 %v2821_v39, 0.0  ;;  %v2737_v39 = vadd.f32 %v9410_v44, %v9460_v21  ;;  %v2824_v44 = vadd.f32 %v9357_v30, %v2735_v57 }
 0x3e5   : > { %v2742_v30 = vadd.f32 %v9454_v0, %v9460_v21  ;;  %v6874_v0 = vld [vmem:[%s11565_s11 + $0xc0] sm:$0xf] }
 0x3e6   : > { %v2676_v60 = vadd.f32 %v2675_v35, %v2587_v14  ;;  %v9578_v20 = vpop.f32.mrf.mxu1  ;;  %v2951_v54 = vpack.c.bf16 %v2897_v15, %v2895_v43  ;;  %v7395_v14 = vld [vmem:[%s11565_s11 + $0x44] sm:$0xf0] }
 0x3e7   : > { %v6811_v17 = vor.u32 %v7395_v14, %v6810_v62 }
 0x3e8   : > { %v2922_v32 = vmax.f32 %v2676_v60, 0.0 }
 0x3e9   : > { %v9587_v59 = vpop.f32.mrf.mxu0  ;;  %3820 = vmatpush.bf16.msrb.mxu2 %v6811_v17 }
 0x3eb   : > { %v2588_v22 = vpop.f32.mrf.mxu2  ;;  %v2677_v51 = vpop.f32.mrf.mxu3 }
 0x3ec   : > { %v2589_v38 = vadd.f32 %v2588_v22, %v9192_v52  ;;  %v2826_v22 = vadd.f32 %v9389_v49, %v2737_v39 }
 0x3ee   : > { %v2678_v31 = vadd.f32 %v2677_v51, %v2589_v38  ;;  %v9590_v2 = vpop.f32.mrf.mxu1 }
 0x3f0   : > { %v2924_v35 = vmax.f32 %v2678_v31, 0.0  ;;  %3200 = vmatmul.bf16.gmra.mxu2 %v9370_v26  ;;  %3289 = vmatmul.bf16.gmra.mxu3 %v2951_v54  ;;  %v2901_v31 = vmax.f32 %v2826_v22, 0.0 }
 0x3f1   : > { %3467 = vmatmul.bf16.gmra.mxu1 %v2951_v54  ;;  %v9593_v37 = vpop.f32.mrf.mxu0 }
 0x3f2   : > { %v9603_v60 = vpack.c.bf16 %v2924_v35, %v2922_v32  ;;  %v2899_v35 = vmax.f32 %v2824_v44, 0.0 }
 0x3f3   : > { %v2591_v12 = vpop.f32.mrf.mxu2  ;;  %v2680_v61 = vpop.f32.mrf.mxu3 }
 0x3f4   : > { %v2592_v15 = vadd.f32 %v2591_v12, %v9192_v52  ;;  %3378 = vmatmul.bf16.gmra.mxu0 %v9370_v26  ;;  %v2953_v26 = vpack.c.bf16 %v2901_v31, %v2899_v35 }
 0x3f6   : > { %v2681_v51 = vadd.f32 %v2680_v61, %v2592_v15  ;;  %v9610_v43 = vpop.f32.mrf.mxu1  ;;  %v2740_v15 = vadd.f32 %v9434_v8, %v9460_v21 }
 0x3f8   : > { %v2926_v17 = vmax.f32 %v2681_v51, 0.0  ;;  %v2831_v51 = vadd.f32 %v9451_v28, %v2742_v30  ;;  %v2829_v8 = vadd.f32 %v9425_v50, %v2740_v15  ;;  %v6802_v15 = vld [vmem:[%s11565_s11 + $0x30] sm:$0xf] }
 0x3f9   : > { %v9613_v38 = vpop.f32.mrf.mxu0 }
 0x3fb   : > { %v2593_v54 = vpop.f32.mrf.mxu2  ;;  %v2682_v32 = vpop.f32.mrf.mxu3 }
 0x3fc   : > { %v2594_v41 = vadd.f32 %v2593_v54, %v9192_v52  ;;  %v7411_v54 = vld [vmem:[%s11565_s11 + $0xc4] sm:$0xf0] }
 0x3fe   : > { %v2683_v62 = vadd.f32 %v2682_v32, %v2594_v41  ;;  %v9616_v14 = vpop.f32.mrf.mxu1  ;;  %v6875_v32 = vor.u32 %v7411_v54, %v6874_v0 }
 0x400   : > { %v2928_v12 = vmax.f32 %v2683_v62, 0.0  ;;  %3205 = vmatmul.bf16.gmra.mxu2 %v9444_v1  ;;  %3294 = vmatmul.bf16.gmra.mxu3 %v2953_v26  ;;  %v2903_v62 = vmax.f32 %v2829_v8, 0.0  ;;  %v2745_v8 = vadd.f32 %v9463_v11, %v9460_v21 }
 0x401   : > { %3472 = vmatmul.bf16.gmra.mxu1 %v2953_v26  ;;  %v9619_v49 = vpop.f32.mrf.mxu0  ;;  %3909 = vmatpush.bf16.msrb.mxu3 %v6875_v32 }
 0x402   : > { %v9623_v39 = vpack.c.bf16 %v2928_v12, %v2926_v17 }
 0x403   : > { %v2596_v61 = vpop.f32.mrf.mxu2  ;;  %v2685_v57 = vpop.f32.mrf.mxu3 }
 0x404   : > { %v2597_v22 = vadd.f32 %v2596_v61, %v9192_v52  ;;  %3383 = vmatmul.bf16.gmra.mxu0 %v9444_v1  ;;  %v2905_v1 = vmax.f32 %v2831_v51, 0.0  ;;  %v2747_v51 = vadd.f32 %v9483_v45, %v9460_v21  ;;  %v2834_v45 = vadd.f32 %v9457_v10, %v2745_v8 }
 0x405   : > { %v2752_v10 = vadd.f32 %v9509_v5, %v9460_v21  ;;  %v6866_v5 = vld [vmem:[%s11565_s11 + $0xb0] sm:$0xf] }
 0x406   : > { %v2686_v44 = vadd.f32 %v2685_v57, %v2597_v22  ;;  %v9630_v31 = vpop.f32.mrf.mxu1  ;;  %v2955_v30 = vpack.c.bf16 %v2905_v1, %v2903_v62  ;;  %v7393_v22 = vld [vmem:[%s11565_s11 + $0x34] sm:$0xf0] }
 0x407   : > { %v6803_v0 = vor.u32 %v7393_v22, %v6802_v15 }
 0x408   : > { %v2930_v61 = vmax.f32 %v2686_v44, 0.0 }
 0x409   : > { %v9639_v35 = vpop.f32.mrf.mxu0  ;;  %3821 = vmatpush.bf16.msrb.mxu2 %v6803_v0 }
 0x40b   : > { %v2598_v41 = vpop.f32.mrf.mxu2  ;;  %v2687_v28 = vpop.f32.mrf.mxu3 }
 0x40c   : > { %v2599_v26 = vadd.f32 %v2598_v41, %v9192_v52  ;;  %v2836_v41 = vadd.f32 %v9474_v42, %v2747_v51 }
 0x40e   : > { %v2688_v17 = vadd.f32 %v2687_v28, %v2599_v26  ;;  %v9642_v12 = vpop.f32.mrf.mxu1 }
 0x410   : > { %v2932_v57 = vmax.f32 %v2688_v17, 0.0  ;;  %3210 = vmatmul.bf16.gmra.mxu2 %v9467_v18  ;;  %3299 = vmatmul.bf16.gmra.mxu3 %v2955_v30  ;;  %v2909_v17 = vmax.f32 %v2836_v41, 0.0 }
 0x411   : > { %3477 = vmatmul.bf16.gmra.mxu1 %v2955_v30  ;;  %v9645_v50 = vpop.f32.mrf.mxu0 }
 0x412   : > { %v9655_v44 = vpack.c.bf16 %v2932_v57, %v2930_v61  ;;  %v2907_v57 = vmax.f32 %v2834_v45, 0.0 }
 0x413   : > { %v2601_v54 = vpop.f32.mrf.mxu2  ;;  %v2690_v32 = vpop.f32.mrf.mxu3 }
 0x414   : > { %v2602_v1 = vadd.f32 %v2601_v54, %v9192_v52  ;;  %3388 = vmatmul.bf16.gmra.mxu0 %v9467_v18  ;;  %v2957_v18 = vpack.c.bf16 %v2909_v17, %v2907_v57 }
 0x416   : > { %v2691_v28 = vadd.f32 %v2690_v32, %v2602_v1  ;;  %v9662_v62 = vpop.f32.mrf.mxu1  ;;  %v2750_v1 = vadd.f32 %v9489_v4, %v9460_v21 }
 0x418   : > { %v2934_v0 = vmax.f32 %v2691_v28, 0.0  ;;  %v2841_v28 = vadd.f32 %v9506_v9, %v2752_v10  ;;  %v2839_v4 = vadd.f32 %v9486_v48, %v2750_v1 }
 0x419   : > { %v9665_v26 = vpop.f32.mrf.mxu0 }
 0x41b   : > { %v2603_v30 = vpop.f32.mrf.mxu2  ;;  %v2692_v61 = vpop.f32.mrf.mxu3 }
 0x41c   : > { %v2604_v11 = vadd.f32 %v2603_v30, %v9192_v52  ;;  %v7409_v30 = vld [vmem:[%s11565_s11 + $0xb4] sm:$0xf0] }
 0x41e   : > { %v2693_v15 = vadd.f32 %v2692_v61, %v2604_v11  ;;  %v9668_v22 = vpop.f32.mrf.mxu1  ;;  %v6867_v61 = vor.u32 %v7409_v30, %v6866_v5 }
 0x420   : > { %v2936_v54 = vmax.f32 %v2693_v15, 0.0  ;;  %3215 = vmatmul.bf16.gmra.mxu2 %v9499_v24  ;;  %3304 = vmatmul.bf16.gmra.mxu3 %v2957_v18  ;;  %v2911_v15 = vmax.f32 %v2839_v4, 0.0 }
 0x421   : > { %3482 = vmatmul.bf16.gmra.mxu1 %v2957_v18  ;;  %v9671_v42 = vpop.f32.mrf.mxu0  ;;  %3910 = vmatpush.bf16.msrb.mxu3 %v6867_v61 }
 0x422   : > { %v9675_v51 = vpack.c.bf16 %v2936_v54, %v2934_v0 }
 0x423   : > { %v2606_v32 = vpop.f32.mrf.mxu2  ;;  %v2695_v8 = vpop.f32.mrf.mxu3 }
 0x424   : > { %v2607_v41 = vadd.f32 %v2606_v32, %v9192_v52  ;;  %3393 = vmatmul.bf16.gmra.mxu0 %v9499_v24  ;;  %v2913_v24 = vmax.f32 %v2841_v28, 0.0  ;;  %v9699_v32 = vld [vmem:[%s11564_s10] sm:$0x3]  ;;  %v7391_v28 = vld [vmem:[%s11565_s11 + $0x24] sm:$0xf0] }
 0x425   : > { %v9703_v1 = vperm.slane %v9699_v32, 0 }
 0x426   : > { %v2696_v45 = vadd.f32 %v2695_v8, %v2607_v41  ;;  %v9682_v17 = vpop.f32.mrf.mxu1  ;;  %v2959_v10 = vpack.c.bf16 %v2913_v24, %v2911_v15  ;;  %v2755_v24 = vadd.f32 %v9515_v47, %v9460_v21  ;;  %v6900_v47 = vld [vmem:[%s11565_s11 + $0xf8] sm:$0xf0] }
 0x428   : > { %v2938_v8 = vmax.f32 %v2696_v45, 0.0  ;;  %v2757_v45 = vadd.f32 %v9535_v23, %v9460_v21  ;;  %v2844_v23 = vadd.f32 %v9512_v56, %v2755_v24 }
 0x429   : > { %v9691_v57 = vpop.f32.mrf.mxu0 }
 0x42b   : > { %v2608_v11 = vpop.f32.mrf.mxu2  ;;  %v2697_v9 = vpop.f32.mrf.mxu3 }
 0x42c   : > { %v2609_v18 = vadd.f32 %v2608_v11, %v9192_v52  ;;  %v6794_v52 = vld [vmem:[%s11565_s11 + $0x20] sm:$0xf] }
 0x42d   : > { %v6795_v5 = vor.u32 %v7391_v28, %v6794_v52 }
 0x42e   : > { %v2698_v0 = vadd.f32 %v2697_v9, %v2609_v18  ;;  %v9694_v54 = vpop.f32.mrf.mxu1  ;;  %v2846_v9 = vadd.f32 %v9526_v40, %v2757_v45  ;;  %v2915_v40 = vmax.f32 %v2844_v23, 0.0 }
 0x42f   : > { %3822 = vmatpush.bf16.msrb.mxu2 %v6795_v5 }
 0x430   : > { %v2940_v48 = vmax.f32 %v2698_v0, 0.0  ;;  %3220 = vmatmul.bf16.gmra.mxu2 %v9519_v36  ;;  %3309 = vmatmul.bf16.gmra.mxu3 %v2959_v10  ;;  %v7416_v0 = vld [vmem:[%s11565_s11 + $0xf4] sm:$0xf] }
 0x431   : > { %3487 = vmatmul.bf16.gmra.mxu1 %v2959_v10  ;;  %v9705_v41 = vpop.f32.mrf.mxu0 }
 0x432   : > { %v9715_v30 = vpack.c.bf16 %v2940_v48, %v2938_v8  ;;  %v6903_v8 = vor.u32 %v7416_v0, %v6900_v47  ;;  %v2760_v47 = vadd.f32 %v9541_v27, %v9460_v21 }
 0x433   : > { %v3181_v61 = vpop.f32.mrf.mxu2  ;;  %v3270_v4 = vpop.f32.mrf.mxu3 }
 0x434   : > { %v3182_v11 = vadd.f32 %v3181_v61, %v9703_v1  ;;  %3398 = vmatmul.bf16.gmra.mxu0 %v9519_v36  ;;  %v2917_v36 = vmax.f32 %v2846_v9, 0.0  ;;  %4084 = vmatpush.bf16.msrb.mxu1 %v6903_v8  ;;  %v2849_v27 = vadd.f32 %v9538_v13, %v2760_v47 }
 0x436   : > { %v3271_v15 = vadd.f32 %v3270_v4, %v3182_v11  ;;  %v9722_v18 = vpop.f32.mrf.mxu1  ;;  %v2961_v5 = vpack.c.bf16 %v2917_v36, %v2915_v40  ;;  %v2762_v11 = vadd.f32 %v9561_v29, %v9460_v21  ;;  %v6858_v29 = vld [vmem:[%s11565_s11 + $0xa0] sm:$0xf] }
 0x438   : > { %v3528_v61 = vmax.f32 %v3271_v15, 0.0  ;;  %v2851_v15 = vadd.f32 %v9558_v33, %v2762_v11  ;;  %v6836_v33 = vld [vmem:[%s11565_s11 + $0x78] sm:$0xf0]  ;;  %v2919_v11 = vmax.f32 %v2849_v27, 0.0  ;;  %v2767_v27 = vadd.f32 %v9587_v59, %v9460_v21 }
 0x439   : > { %v9731_v10 = vpop.f32.mrf.mxu0 }
 0x43b   : > { %v3183_v48 = vpop.f32.mrf.mxu2  ;;  %v3272_v52 = vpop.f32.mrf.mxu3 }
 0x43c   : > { %v3184_v28 = vadd.f32 %v3183_v48, %v9703_v1 }
 0x43e   : > { %v3273_v45 = vadd.f32 %v3272_v52, %v3184_v28  ;;  %v9734_v56 = vpop.f32.mrf.mxu1  ;;  %v7407_v52 = vld [vmem:[%s11565_s11 + $0xa4] sm:$0xf0] }
 0x43f   : > { %v6859_v40 = vor.u32 %v7407_v52, %v6858_v29 }
 0x440   : > { %v3530_v4 = vmax.f32 %v3273_v45, 0.0  ;;  %3225 = vmatmul.bf16.gmra.mxu2 %v9551_v53  ;;  %3314 = vmatmul.bf16.gmra.mxu3 %v2961_v5 }
 0x441   : > { %3492 = vmatmul.bf16.gmra.mxu1 %v2961_v5  ;;  %v9737_v24 = vpop.f32.mrf.mxu0  ;;  %3911 = vmatpush.bf16.msrb.mxu3 %v6859_v40  ;;  %v2921_v5 = vmax.f32 %v2851_v15, 0.0  ;;  %v6786_v15 = vld [vmem:[%s11565_s11 + $0x10] sm:$0xf]  ;;  %v7389_v40 = vld [vmem:[%s11565_s11 + $0x14] sm:$0xf0] }
 0x442   : > { %v9741_v9 = vpack.c.bf16 %v3530_v4, %v3528_v61 }
 0x443   : > { %v3186_v23 = vpop.f32.mrf.mxu2  ;;  %v3275_v0 = vpop.f32.mrf.mxu3  ;;  %v2963_v47 = vpack.c.bf16 %v2921_v5, %v2919_v11  ;;  %v2856_v11 = vadd.f32 %v9578_v20, %v2767_v27 }
 0x444   : > { %v3187_v8 = vadd.f32 %v3186_v23, %v9703_v1  ;;  %3403 = vmatmul.bf16.gmra.mxu0 %v9551_v53  ;;  %v7400_v53 = vld [vmem:[%s11565_s11 + $0x74] sm:$0xf] }
 0x445   : > { %v9765_v45 = vor.u32 %v7400_v53, %v6836_v33  ;;  %v6787_v53 = vor.u32 %v7389_v40, %v6786_v15 }
 0x446   : > { %v3276_v36 = vadd.f32 %v3275_v0, %v3187_v8  ;;  %v9748_v48 = vpop.f32.mrf.mxu1 }
 0x447   : > { %3995 = vmatpush.bf16.msrb.mxu0 %v9765_v45  ;;  %3823 = vmatpush.bf16.msrb.mxu2 %v6787_v53 }
 0x448   : > { %v3532_v8 = vmax.f32 %v3276_v36, 0.0 }
 0x449   : > { %v9763_v28 = vpop.f32.mrf.mxu0 }
 0x44b   : > { %v3188_v61 = vpop.f32.mrf.mxu2  ;;  %v3277_v4 = vpop.f32.mrf.mxu3 }
 0x44c   : > { %v3189_v13 = vadd.f32 %v3188_v61, %v9703_v1  ;;  %v2765_v61 = vadd.f32 %v9567_v16, %v9460_v21  ;;  %v6892_v16 = vld [vmem:[%s11565_s11 + $0xe8] sm:$0xf0] }
 0x44e   : > { %v3278_v23 = vadd.f32 %v3277_v4, %v3189_v13  ;;  %v9769_v0 = vpop.f32.mrf.mxu1  ;;  %v2854_v59 = vadd.f32 %v9564_v6, %v2765_v61 }
 0x450   : > { %v3534_v29 = vmax.f32 %v3278_v23, 0.0  ;;  %3230 = vmatmul.bf16.gmra.mxu2 %v9571_v55  ;;  %3319 = vmatmul.bf16.gmra.mxu3 %v2963_v47  ;;  %v2923_v20 = vmax.f32 %v2854_v59, 0.0 }
 0x451   : > { %3497 = vmatmul.bf16.gmra.mxu1 %v2963_v47  ;;  %v9772_v52 = vpop.f32.mrf.mxu0  ;;  %v7414_v47 = vld [vmem:[%s11565_s11 + $0xe4] sm:$0xf] }
 0x452   : > { %v9782_v36 = vpack.c.bf16 %v3534_v29, %v3532_v8  ;;  %v6895_v29 = vor.u32 %v7414_v47, %v6892_v16 }
 0x453   : > { %v3191_v33 = vpop.f32.mrf.mxu2  ;;  %v3280_v5 = vpop.f32.mrf.mxu3 }
 0x454   : > { %v3192_v4 = vadd.f32 %v3191_v33, %v9703_v1  ;;  %3408 = vmatmul.bf16.gmra.mxu0 %v9571_v55  ;;  %v2925_v55 = vmax.f32 %v2856_v11, 0.0  ;;  %4085 = vmatpush.bf16.msrb.mxu1 %v6895_v29  ;;  %v2772_v11 = vadd.f32 %v9613_v38, %v9460_v21  ;;  %v2770_v29 = vadd.f32 %v9593_v37, %v9460_v21  ;;  %v6850_v38 = vld [vmem:[%s11565_s11 + $0x90] sm:$0xf] }
 0x456   : > { %v3281_v13 = vadd.f32 %v3280_v5, %v3192_v4  ;;  %v9789_v23 = vpop.f32.mrf.mxu1  ;;  %v2965_v33 = vpack.c.bf16 %v2925_v55, %v2923_v20  ;;  %v7405_v20 = vld [vmem:[%s11565_s11 + $0x94] sm:$0xf0]  ;;  %v2859_v37 = vadd.f32 %v9590_v2, %v2770_v29 }
 0x458   : > { %v3536_v5 = vmax.f32 %v3281_v13, 0.0  ;;  %v2861_v13 = vadd.f32 %v9610_v43, %v2772_v11  ;;  %v6828_v43 = vld [vmem:[%s11565_s11 + $0x68] sm:$0xf0] }
 0x459   : > { %v9798_v8 = vpop.f32.mrf.mxu0 }
 0x45b   : > { %v3193_v15 = vpop.f32.mrf.mxu2  ;;  %v3282_v40 = vpop.f32.mrf.mxu3 }
 0x45c   : > { %v3194_v27 = vadd.f32 %v3193_v15, %v9703_v1 }
 0x45e   : > { %v3283_v53 = vadd.f32 %v3282_v40, %v3194_v27  ;;  %v9801_v6 = vpop.f32.mrf.mxu1  ;;  %v6851_v27 = vor.u32 %v7405_v20, %v6850_v38 }
 0x460   : > { %v3538_v61 = vmax.f32 %v3283_v53, 0.0  ;;  %3235 = vmatmul.bf16.gmra.mxu2 %v9603_v60  ;;  %3324 = vmatmul.bf16.gmra.mxu3 %v2965_v33 }
 0x461   : > { %3502 = vmatmul.bf16.gmra.mxu1 %v2965_v33  ;;  %v9804_v4 = vpop.f32.mrf.mxu0  ;;  %3912 = vmatpush.bf16.msrb.mxu3 %v6851_v27  ;;  %v7387_v27 = vld [vmem:[%s11565_s11 + $0x4] sm:$0xf0] }
 0x462   : > { %v9808_v47 = vpack.c.bf16 %v3538_v61, %v3536_v5  ;;  %v2929_v5 = vmax.f32 %v2861_v13, 0.0  ;;  %v6778_v13 = vld [vmem:[%s11565_s11] sm:$0xf] }
 0x463   : > { %v3196_v59 = vpop.f32.mrf.mxu2  ;;  %v3285_v16 = vpop.f32.mrf.mxu3 }
 0x464   : > { %v3197_v55 = vadd.f32 %v3196_v59, %v9703_v1  ;;  %3413 = vmatmul.bf16.gmra.mxu0 %v9603_v60  ;;  %v7398_v60 = vld [vmem:[%s11565_s11 + $0x64] sm:$0xf]  ;;  %v2927_v59 = vmax.f32 %v2859_v37, 0.0  ;;  %v2777_v37 = vadd.f32 %v9639_v35, %v9460_v21  ;;  %v7412_v35 = vld [vmem:[%s11565_s11 + $0xd4] sm:$0xf] }
 0x465   : > { %v6831_v33 = vor.u32 %v7398_v60, %v6828_v43  ;;  %v6779_v60 = vor.u32 %v7387_v27, %v6778_v13  ;;  %v7396_v13 = vld [vmem:[%s11565_s11 + $0x54] sm:$0xf]  ;;  %v6820_v27 = vld [vmem:[%s11565_s11 + $0x58] sm:$0xf0] }
 0x466   : > { %v3286_v15 = vadd.f32 %v3285_v16, %v3197_v55  ;;  %v9815_v40 = vpop.f32.mrf.mxu1  ;;  %v2967_v55 = vpack.c.bf16 %v2929_v5, %v2927_v59  ;;  %v2866_v59 = vadd.f32 %v9630_v31, %v2777_v37 }
 0x467   : > { %3996 = vmatpush.bf16.msrb.mxu0 %v6831_v33  ;;  %3824 = vmatpush.bf16.msrb.mxu2 %v6779_v60 }
 0x468   : > { %v3540_v38 = vmax.f32 %v3286_v15, 0.0 }
 0x469   : > { %v9830_v53 = vpop.f32.mrf.mxu0 }
 0x46b   : > { %v3198_v61 = vpop.f32.mrf.mxu2  ;;  %v3287_v11 = vpop.f32.mrf.mxu3  ;;  %7500 = vmatpush.bf16.msra.mxu2 %v9765_v45  ;;  %v2933_v45 = vmax.f32 %v2866_v59, 0.0 }
 0x46c   : > { %v3199_v16 = vadd.f32 %v3198_v61, %v9703_v1  ;;  %v2775_v61 = vadd.f32 %v9619_v49, %v9460_v21  ;;  %v6884_v49 = vld [vmem:[%s11565_s11 + $0xd8] sm:$0xf0] }
 0x46e   : > { %v3288_v2 = vadd.f32 %v3287_v11, %v3199_v16  ;;  %v9833_v29 = vpop.f32.mrf.mxu1 }
 0x46f   : > { %7501 = vmatpush.bf16.msra.mxu2 %v6831_v33  ;;  %v6823_v33 = vor.u32 %v7396_v13, %v6820_v27 }
 0x470   : > { %v3542_v20 = vmax.f32 %v3288_v2, 0.0  ;;  %3240 = vmatmul.bf16.gmra.mxu2 %v9623_v39  ;;  %3329 = vmatmul.bf16.gmra.mxu3 %v2967_v55 }
 0x471   : > { %3507 = vmatmul.bf16.gmra.mxu1 %v2967_v55  ;;  %v9836_v63 = vpop.f32.mrf.mxu0  ;;  %v2864_v55 = vadd.f32 %v9616_v14, %v2775_v61  ;;  %v7410_v14 = vld [vmem:[%s11565_s11 + $0xc4] sm:$0xf]  ;;  %3997 = vmatpush.bf16.msrb.mxu0 %v6823_v33 }
 0x472   : > { %v9846_v15 = vpack.c.bf16 %v3542_v20, %v3540_v38  ;;  %v6887_v38 = vor.u32 %v7412_v35, %v6884_v49  ;;  %v7394_v35 = vld [vmem:[%s11565_s11 + $0x44] sm:$0xf]  ;;  %v6812_v49 = vld [vmem:[%s11565_s11 + $0x48] sm:$0xf0] }
 0x473   : > { %v3201_v43 = vpop.f32.mrf.mxu2  ;;  %v3290_v5 = vpop.f32.mrf.mxu3  ;;  %v2931_v37 = vmax.f32 %v2864_v55, 0.0  ;;  %7502 = vmatpush.bf16.msra.mxu2 %v6823_v33  ;;  %v7408_v55 = vld [vmem:[%s11565_s11 + $0xb4] sm:$0xf] }
 0x474   : > { %v3202_v11 = vadd.f32 %v3201_v43, %v9703_v1  ;;  %3418 = vmatmul.bf16.gmra.mxu0 %v9623_v39  ;;  %4086 = vmatpush.bf16.msrb.mxu1 %v6887_v38  ;;  %v6876_v43 = vld [vmem:[%s11565_s11 + $0xc8] sm:$0xf0]  ;;  %v7392_v33 = vld [vmem:[%s11565_s11 + $0x34] sm:$0xf] }
 0x475   : > { %v2969_v59 = vpack.c.bf16 %v2933_v45, %v2931_v37  ;;  %v6815_v45 = vor.u32 %v7394_v35, %v6812_v49  ;;  %v6860_v35 = vld [vmem:[%s11565_s11 + $0xa8] sm:$0xf0] }
 0x476   : > { %v3291_v16 = vadd.f32 %v3290_v5, %v3202_v11  ;;  %v9854_v2 = vpop.f32.mrf.mxu1  ;;  %v6879_v5 = vor.u32 %v7410_v14, %v6876_v43  ;;  %v2782_v14 = vadd.f32 %v9665_v26, %v9460_v21  ;;  %v6804_v43 = vld [vmem:[%s11565_s11 + $0x38] sm:$0xf0]  ;;  %v2780_v26 = vadd.f32 %v9645_v50, %v9460_v21  ;;  %v7403_v50 = vld [vmem:[%s11565_s11 + $0x84] sm:$0xf0] }
 0x477   : > { %3998 = vmatpush.bf16.msrb.mxu0 %v6815_v45  ;;  %7503 = vmatpush.bf16.msra.mxu2 %v6815_v45  ;;  %v6842_v45 = vld [vmem:[%s11565_s11 + $0x80] sm:$0xf] }
 0x478   : > { %4087 = vmatpush.bf16.msrb.mxu1 %v6879_v5  ;;  %v3544_v38 = vmax.f32 %v3291_v16, 0.0  ;;  %v7406_v5 = vld [vmem:[%s11565_s11 + $0xa4] sm:$0xf] }
 0x479   : > { %v9863_v39 = vpop.f32.mrf.mxu0  ;;  %v6863_v49 = vor.u32 %v7406_v5, %v6860_v35  ;;  %v7388_v35 = vld [vmem:[%s11565_s11 + $0x14] sm:$0xf] }
 0x47b   : > { %v3203_v31 = vpop.f32.mrf.mxu2  ;;  %v3292_v20 = vpop.f32.mrf.mxu3 }
 0x47c   : > { %v3204_v60 = vadd.f32 %v3203_v31, %v9703_v1 }
 0x47e   : > { %v3293_v61 = vadd.f32 %v3292_v20, %v3204_v60  ;;  %v9878_v11 = vpop.f32.mrf.mxu1  ;;  %v6868_v20 = vld [vmem:[%s11565_s11 + $0xb8] sm:$0xf0] }
 0x47f   : > { %v6871_v27 = vor.u32 %v7408_v55, %v6868_v20  ;;  %v2871_v55 = vadd.f32 %v9662_v62, %v2782_v14  ;;  %v7390_v20 = vld [vmem:[%s11565_s11 + $0x24] sm:$0xf]  ;;  %v6796_v62 = vld [vmem:[%s11565_s11 + $0x28] sm:$0xf0]  ;;  %v2869_v14 = vadd.f32 %v9642_v12, %v2780_v26  ;;  %v6788_v12 = vld [vmem:[%s11565_s11 + $0x18] sm:$0xf0] }
 0x480   : > { %v3546_v31 = vmax.f32 %v3293_v61, 0.0  ;;  %3245 = vmatmul.bf16.gmra.mxu2 %v9655_v44  ;;  %3334 = vmatmul.bf16.gmra.mxu3 %v2969_v59  ;;  %v7402_v26 = vld [vmem:[%s11565_s11 + $0x84] sm:$0xf] }
 0x481   : > { %3512 = vmatmul.bf16.gmra.mxu1 %v2969_v59  ;;  %v9893_v13 = vpop.f32.mrf.mxu0  ;;  %v6807_v59 = vor.u32 %v7392_v33, %v6804_v43  ;;  %v2937_v5 = vmax.f32 %v2871_v55, 0.0 }
 0x482   : > { %v9897_v37 = vpack.c.bf16 %v3546_v31, %v3544_v38  ;;  %4088 = vmatpush.bf16.msrb.mxu1 %v6871_v27  ;;  %v7404_v27 = vld [vmem:[%s11565_s11 + $0x94] sm:$0xf] }
 0x483   : > { %v3206_v16 = vpop.f32.mrf.mxu2  ;;  %v3295_v60 = vpop.f32.mrf.mxu3  ;;  %3999 = vmatpush.bf16.msrb.mxu0 %v6807_v59  ;;  %7504 = vmatpush.bf16.msra.mxu2 %v6807_v59 }
 0x484   : > { %v3207_v61 = vadd.f32 %v3206_v16, %v9703_v1  ;;  %3423 = vmatmul.bf16.gmra.mxu0 %v9655_v44  ;;  %v6843_v44 = vor.u32 %v7403_v50, %v6842_v45  ;;  %v6799_v16 = vor.u32 %v7390_v20, %v6796_v62  ;;  %v6791_v45 = vor.u32 %v7388_v35, %v6788_v12  ;;  %v6844_v50 = vld [vmem:[%s11565_s11 + $0x88] sm:$0xf0] }
 0x486   : > { %v3296_v38 = vadd.f32 %v3295_v60, %v3207_v61  ;;  %v9916_v31 = vpop.f32.mrf.mxu1  ;;  %4089 = vmatpush.bf16.msrb.mxu1 %v6863_v49  ;;  %v6852_v60 = vld [vmem:[%s11565_s11 + $0x98] sm:$0xf0]  ;;  %3913 = vmatpush.bf16.msrb.mxu3 %v6843_v44  ;;  %v2935_v49 = vmax.f32 %v2869_v14, 0.0  ;;  %v6847_v44 = vor.u32 %v7402_v26, %v6844_v50  ;;  %v6780_v14 = vld [vmem:[%s11565_s11 + $0x8] sm:$0xf0] }
 0x487   : > { %v6855_v43 = vor.u32 %v7404_v27, %v6852_v60  ;;  %4000 = vmatpush.bf16.msrb.mxu0 %v6799_v16  ;;  %7505 = vmatpush.bf16.msra.mxu2 %v6799_v16  ;;  %v7386_v16 = vld [vmem:[%s11565_s11 + $0x4] sm:$0xf] }
 0x488   : > { %v2971_v27 = vpack.c.bf16 %v2937_v5, %v2935_v49  ;;  %v3548_v60 = vmax.f32 %v3296_v38, 0.0  ;;  %v2787_v5 = vadd.f32 %v9691_v57, %v9460_v21  ;;  %v2785_v38 = vadd.f32 %v9671_v42, %v9460_v21 }
 0x489   : > { %v9937_v33 = vpop.f32.mrf.mxu0 }
 0x48a   : > { %4090 = vmatpush.bf16.msrb.mxu1 %v6855_v43  ;;  %v2874_v57 = vadd.f32 %v9668_v22, %v2785_v38 }
 0x48b   : > { %v3208_v61 = vpop.f32.mrf.mxu2  ;;  %v3297_v59 = vpop.f32.mrf.mxu3  ;;  %4001 = vmatpush.bf16.msrb.mxu0 %v6791_v45  ;;  %7506 = vmatpush.bf16.msra.mxu2 %v6791_v45 }
 0x48c   : > { %v3209_v55 = vadd.f32 %v3208_v61, %v9703_v1  ;;  %v6783_v61 = vor.u32 %v7386_v16, %v6780_v14  ;;  %v2939_v14 = vmax.f32 %v2874_v57, 0.0 }
 0x48e   : > { %v3298_v20 = vadd.f32 %v3297_v59, %v3209_v55  ;;  %v9952_v62 = vpop.f32.mrf.mxu1  ;;  %4091 = vmatpush.bf16.msrb.mxu1 %v6847_v44  ;;  %v2876_v55 = vadd.f32 %v9682_v17, %v2787_v5 }
 0x48f   : > { %4002 = vmatpush.bf16.msrb.mxu0 %v6783_v61  ;;  %7507 = vmatpush.bf16.msra.mxu2 %v6783_v61 }
 0x490   : > { %v3550_v43 = vmax.f32 %v3298_v20, 0.0  ;;  %3250 = vmatmul.bf16.gmra.mxu2 %v9675_v51  ;;  %3339 = vmatmul.bf16.gmra.mxu3 %v2971_v27  ;;  %v2941_v20 = vmax.f32 %v2876_v55, 0.0 }
 0x491   : > { %3517 = vmatmul.bf16.gmra.mxu1 %v2971_v27  ;;  %v9961_v59 = vpop.f32.mrf.mxu0 }
 0x492   : > { %v9965_v35 = vpack.c.bf16 %v3550_v43, %v3548_v60  ;;  %v2973_v43 = vpack.c.bf16 %v2941_v20, %v2939_v14  ;;  %v4176_v20 = vld.sshfl [vmem:[#allocation1 + $0x8] sm:$0xff pattern:$0x73625140] }
 0x493   : > { %v3211_v12 = vpop.f32.mrf.mxu2  ;;  %v3300_v26 = vpop.f32.mrf.mxu3 }
 0x494   : > { %v3212_v49 = vadd.f32 %v3211_v12, %v9703_v1  ;;  %3428 = vmatmul.bf16.gmra.mxu0 %v9675_v51  ;;  %v9981_v51 = vperm.slane %v9699_v32, 1 }
 0x496   : > { %v3301_v45 = vadd.f32 %v3300_v26, %v3212_v49  ;;  %v9972_v50 = vpop.f32.mrf.mxu1  ;;  %v3362_v5 = vadd.f32 %v9731_v10, %v9981_v51  ;;  %v3360_v49 = vadd.f32 %v9705_v41, %v9981_v51 }
 0x498   : > { %v3552_v17 = vmax.f32 %v3301_v45, 0.0  ;;  %v3451_v55 = vadd.f32 %v9722_v18, %v3362_v5  ;;  %v3449_v10 = vadd.f32 %v9694_v54, %v3360_v49 }
 0x499   : > { %v9975_v44 = vpop.f32.mrf.mxu0 }
 0x49a   : > { %v3531_v14 = vmax.f32 %v3451_v55, 0.0  ;;  %v3365_v55 = vadd.f32 %v9737_v24, %v9981_v51 }
 0x49b   : > { %v3213_v27 = vpop.f32.mrf.mxu2  ;;  %v3302_v16 = vpop.f32.mrf.mxu3 }
 0x49c   : > { %v3214_v60 = vadd.f32 %v3213_v27, %v9703_v1  ;;  %v4179_v27 = vand.u32 %v4176_v20, %v7645_v3 }
 0x49e   : > { %v3303_v21 = vadd.f32 %v3302_v16, %v3214_v60  ;;  %v9978_v42 = vpop.f32.mrf.mxu1  ;;  %4277 = vmatpush.bf16.msra.mxu3 %v4179_v27 }
 0x4a0   : > { %v3554_v61 = vmax.f32 %v3303_v21, 0.0  ;;  %3255 = vmatmul.bf16.gmra.mxu2 %v9715_v30  ;;  %3344 = vmatmul.bf16.gmra.mxu3 %v2973_v43  ;;  %v3529_v21 = vmax.f32 %v3449_v10, 0.0 }
 0x4a1   : > { %3522 = vmatmul.bf16.gmra.mxu1 %v2973_v43  ;;  %v9984_v22 = vpop.f32.mrf.mxu0 }
 0x4a2   : > { %v9988_v12 = vpack.c.bf16 %v3554_v61, %v3552_v17 }
 0x4a3   : > { %v3216_v26 = vpop.f32.mrf.mxu2  ;;  %v3305_v38 = vpop.f32.mrf.mxu3 }
 0x4a4   : > { %v3217_v32 = vadd.f32 %v3216_v26, %v9703_v1  ;;  %3433 = vmatmul.bf16.gmra.mxu0 %v9715_v30  ;;  %v3593_v30 = vpack.c.bf16 %v3531_v14, %v3529_v21  ;;  %v3367_v26 = vadd.f32 %v9763_v28, %v9981_v51  ;;  %v3454_v14 = vadd.f32 %v9734_v56, %v3365_v55 }
 0x4a5   : > { %v3372_v56 = vadd.f32 %v9798_v8, %v9981_v51  ;;  %v3370_v55 = vadd.f32 %v9772_v52, %v9981_v51 }
 0x4a6   : > { %v3306_v45 = vadd.f32 %v3305_v38, %v3217_v32  ;;  %v9995_v57 = vpop.f32.mrf.mxu1 }
 0x4a8   : > { %v3556_v61 = vmax.f32 %v3306_v45, 0.0  ;;  %v3456_v45 = vadd.f32 %v9748_v48, %v3367_v26 }
 0x4a9   : > { %v9999_v16 = vpop.f32.mrf.mxu0 }
 0x4aa   : > { %v3535_v28 = vmax.f32 %v3456_v45, 0.0  ;;  %v3461_v45 = vadd.f32 %v9789_v23, %v3372_v56 }
 0x4ab   : > { %v3218_v60 = vpop.f32.mrf.mxu2  ;;  %v3307_v41 = vpop.f32.mrf.mxu3 }
 0x4ac   : > { %v3219_v43 = vadd.f32 %v3218_v60, %v9703_v1  ;;  %v3539_v8 = vmax.f32 %v3461_v45, 0.0 }
 0x4ae   : > { %v3308_v17 = vadd.f32 %v3307_v41, %v3219_v43  ;;  %v10002_v18 = vpop.f32.mrf.mxu1  ;;  %v3533_v43 = vmax.f32 %v3454_v14, 0.0 }
 0x4b0   : > { %v3558_v5 = vmax.f32 %v3308_v17, 0.0  ;;  %3825 = vmatmul.bf16.vlgmr.msrb.gmra.mxu2 %v9741_v9  ;;  %3914 = vmatmul.bf16.vlgmr.msrb.gmra.mxu3 %v3593_v30 }
 0x4b1   : > { %4092 = vmatmul.bf16.vlgmr.msrb.gmra.mxu1 %v3593_v30  ;;  %v10005_v54 = vpop.f32.mrf.mxu0 }
 0x4b2   : > { %v10009_v38 = vpack.c.bf16 %v3558_v5, %v3556_v61  ;;  %v3595_v61 = vpack.c.bf16 %v3535_v28, %v3533_v43  ;;  %v3459_v28 = vadd.f32 %v9769_v0, %v3370_v55  ;;  %v3377_v0 = vadd.f32 %v9830_v53, %v9981_v51 }
 0x4b3   : > { %v3221_v49 = vpop.f32.mrf.mxu2  ;;  %v3310_v32 = vpop.f32.mrf.mxu3  ;;  %v3375_v55 = vadd.f32 %v9804_v4, %v9981_v51 }
 0x4b4   : > { %v3222_v20 = vadd.f32 %v3221_v49, %v9703_v1  ;;  %4003 = vmatmul.bf16.vlgmr.msrb.gmra.mxu0 %v9741_v9  ;;  %v3466_v45 = vadd.f32 %v9815_v40, %v3377_v0 }
 0x4b6   : > { %v3311_v27 = vadd.f32 %v3310_v32, %v3222_v20  ;;  %v10016_v10 = vpop.f32.mrf.mxu1  ;;  %v3543_v53 = vmax.f32 %v3466_v45, 0.0 }
 0x4b8   : > { %v3560_v9 = vmax.f32 %v3311_v27, 0.0 }
 0x4b9   : > { %v10019_v60 = vpop.f32.mrf.mxu0 }
 0x4bb   : > { %v3223_v41 = vpop.f32.mrf.mxu2  ;;  %v3312_v21 = vpop.f32.mrf.mxu3 }
 0x4bc   : > { %v3224_v30 = vadd.f32 %v3223_v41, %v9703_v1 }
 0x4be   : > { %v3313_v24 = vadd.f32 %v3312_v21, %v3224_v30  ;;  %v10022_v17 = vpop.f32.mrf.mxu1  ;;  %v3537_v30 = vmax.f32 %v3459_v28, 0.0 }
 0x4c0   : > { %v3562_v5 = vmax.f32 %v3313_v24, 0.0  ;;  %3830 = vmatmul.bf16.gmra.mxu2 %v9782_v36  ;;  %3919 = vmatmul.bf16.gmra.mxu3 %v3595_v61 }
 0x4c1   : > { %4097 = vmatmul.bf16.gmra.mxu1 %v3595_v61  ;;  %v10025_v48 = vpop.f32.mrf.mxu0 }
 0x4c2   : > { %v10029_v26 = vpack.c.bf16 %v3562_v5, %v3560_v9  ;;  %v3597_v9 = vpack.c.bf16 %v3539_v8, %v3537_v30  ;;  %v3464_v8 = vadd.f32 %v9801_v6, %v3375_v55  ;;  %v3382_v6 = vadd.f32 %v9863_v39, %v9981_v51 }
 0x4c3   : > { %v3226_v49 = vpop.f32.mrf.mxu2  ;;  %v3315_v32 = vpop.f32.mrf.mxu3  ;;  %v3380_v55 = vadd.f32 %v9836_v63, %v9981_v51 }
 0x4c4   : > { %v3227_v20 = vadd.f32 %v3226_v49, %v9703_v1  ;;  %4008 = vmatmul.bf16.gmra.mxu0 %v9782_v36  ;;  %v3471_v45 = vadd.f32 %v9854_v2, %v3382_v6 }
 0x4c6   : > { %v3316_v27 = vadd.f32 %v3315_v32, %v3227_v20  ;;  %v10036_v14 = vpop.f32.mrf.mxu1  ;;  %v3547_v39 = vmax.f32 %v3471_v45, 0.0 }
 0x4c8   : > { %v3564_v36 = vmax.f32 %v3316_v27, 0.0 }
 0x4c9   : > { %v10039_v41 = vpop.f32.mrf.mxu0 }
 0x4cb   : > { %v3228_v21 = vpop.f32.mrf.mxu2  ;;  %v3317_v43 = vpop.f32.mrf.mxu3 }
 0x4cc   : > { %v3229_v24 = vadd.f32 %v3228_v21, %v9703_v1 }
 0x4ce   : > { %v3318_v52 = vadd.f32 %v3317_v43, %v3229_v24  ;;  %v10042_v61 = vpop.f32.mrf.mxu1  ;;  %v3541_v24 = vmax.f32 %v3464_v8, 0.0 }
 0x4d0   : > { %v3566_v5 = vmax.f32 %v3318_v52, 0.0  ;;  %3835 = vmatmul.bf16.gmra.mxu2 %v9808_v47  ;;  %3924 = vmatmul.bf16.gmra.mxu3 %v3597_v9 }
 0x4d1   : > { %4102 = vmatmul.bf16.gmra.mxu1 %v3597_v9  ;;  %v10045_v23 = vpop.f32.mrf.mxu0 }
 0x4d2   : > { %v10049_v56 = vpack.c.bf16 %v3566_v5, %v3564_v36  ;;  %v3599_v36 = vpack.c.bf16 %v3543_v53, %v3541_v24  ;;  %v3469_v53 = vadd.f32 %v9833_v29, %v3380_v55  ;;  %v3387_v29 = vadd.f32 %v9937_v33, %v9981_v51 }
 0x4d3   : > { %v3231_v49 = vpop.f32.mrf.mxu2  ;;  %v3320_v32 = vpop.f32.mrf.mxu3  ;;  %v3385_v55 = vadd.f32 %v9893_v13, %v9981_v51 }
 0x4d4   : > { %v3232_v20 = vadd.f32 %v3231_v49, %v9703_v1  ;;  %4013 = vmatmul.bf16.gmra.mxu0 %v9808_v47  ;;  %v3476_v45 = vadd.f32 %v9916_v31, %v3387_v29 }
 0x4d6   : > { %v3321_v27 = vadd.f32 %v3320_v32, %v3232_v20  ;;  %v10056_v28 = vpop.f32.mrf.mxu1  ;;  %v3551_v33 = vmax.f32 %v3476_v45, 0.0 }
 0x4d8   : > { %v3568_v47 = vmax.f32 %v3321_v27, 0.0 }
 0x4d9   : > { %v10059_v21 = vpop.f32.mrf.mxu0 }
 0x4db   : > { %v3233_v43 = vpop.f32.mrf.mxu2  ;;  %v3322_v30 = vpop.f32.mrf.mxu3 }
 0x4dc   : > { %v3234_v52 = vadd.f32 %v3233_v43, %v9703_v1 }
 0x4de   : > { %v3323_v4 = vadd.f32 %v3322_v30, %v3234_v52  ;;  %v10062_v9 = vpop.f32.mrf.mxu1  ;;  %v3545_v52 = vmax.f32 %v3469_v53, 0.0 }
 0x4e0   : > { %v3570_v5 = vmax.f32 %v3323_v4, 0.0  ;;  %3840 = vmatmul.bf16.gmra.mxu2 %v9846_v15  ;;  %3929 = vmatmul.bf16.gmra.mxu3 %v3599_v36 }
 0x4e1   : > { %4107 = vmatmul.bf16.gmra.mxu1 %v3599_v36  ;;  %v10065_v40 = vpop.f32.mrf.mxu0 }
 0x4e2   : > { %v10069_v0 = vpack.c.bf16 %v3570_v5, %v3568_v47  ;;  %v3601_v47 = vpack.c.bf16 %v3547_v39, %v3545_v52  ;;  %v3474_v39 = vadd.f32 %v9878_v11, %v3385_v55  ;;  %v3392_v11 = vadd.f32 %v9975_v44, %v9981_v51 }
 0x4e3   : > { %v3236_v49 = vpop.f32.mrf.mxu2  ;;  %v3325_v32 = vpop.f32.mrf.mxu3  ;;  %v3390_v55 = vadd.f32 %v9961_v59, %v9981_v51 }
 0x4e4   : > { %v3237_v20 = vadd.f32 %v3236_v49, %v9703_v1  ;;  %4018 = vmatmul.bf16.gmra.mxu0 %v9846_v15  ;;  %v3481_v45 = vadd.f32 %v9972_v50, %v3392_v11 }
 0x4e6   : > { %v3326_v27 = vadd.f32 %v3325_v32, %v3237_v20  ;;  %v10076_v8 = vpop.f32.mrf.mxu1  ;;  %v3555_v44 = vmax.f32 %v3481_v45, 0.0 }
 0x4e8   : > { %v3572_v15 = vmax.f32 %v3326_v27, 0.0 }
 0x4e9   : > { %v10079_v43 = vpop.f32.mrf.mxu0 }
 0x4eb   : > { %v3238_v30 = vpop.f32.mrf.mxu2  ;;  %v3327_v24 = vpop.f32.mrf.mxu3 }
 0x4ec   : > { %v3239_v4 = vadd.f32 %v3238_v30, %v9703_v1 }
 0x4ee   : > { %v3328_v63 = vadd.f32 %v3327_v24, %v3239_v4  ;;  %v10082_v36 = vpop.f32.mrf.mxu1  ;;  %v3549_v4 = vmax.f32 %v3474_v39, 0.0 }
 0x4f0   : > { %v3574_v5 = vmax.f32 %v3328_v63, 0.0  ;;  %3845 = vmatmul.bf16.gmra.mxu2 %v9897_v37  ;;  %3934 = vmatmul.bf16.gmra.mxu3 %v3601_v47 }
 0x4f1   : > { %4112 = vmatmul.bf16.gmra.mxu1 %v3601_v47  ;;  %v10085_v2 = vpop.f32.mrf.mxu0 }
 0x4f2   : > { %v10089_v6 = vpack.c.bf16 %v3574_v5, %v3572_v15  ;;  %v3603_v15 = vpack.c.bf16 %v3551_v33, %v3549_v4  ;;  %v3479_v33 = vadd.f32 %v9952_v62, %v3390_v55  ;;  %v3397_v62 = vadd.f32 %v9999_v16, %v9981_v51 }
 0x4f3   : > { %v3241_v49 = vpop.f32.mrf.mxu2  ;;  %v3330_v32 = vpop.f32.mrf.mxu3  ;;  %v3395_v55 = vadd.f32 %v9984_v22, %v9981_v51 }
 0x4f4   : > { %v3242_v20 = vadd.f32 %v3241_v49, %v9703_v1  ;;  %4023 = vmatmul.bf16.gmra.mxu0 %v9897_v37  ;;  %v3486_v45 = vadd.f32 %v9995_v57, %v3397_v62 }
 0x4f6   : > { %v3331_v27 = vadd.f32 %v3330_v32, %v3242_v20  ;;  %v10096_v53 = vpop.f32.mrf.mxu1  ;;  %v3559_v16 = vmax.f32 %v3486_v45, 0.0 }
 0x4f8   : > { %v3576_v37 = vmax.f32 %v3331_v27, 0.0 }
 0x4f9   : > { %v10099_v30 = vpop.f32.mrf.mxu0 }
 0x4fb   : > { %v3243_v24 = vpop.f32.mrf.mxu2  ;;  %v3332_v52 = vpop.f32.mrf.mxu3 }
 0x4fc   : > { %v3244_v63 = vadd.f32 %v3243_v24, %v9703_v1 }
 0x4fe   : > { %v3333_v13 = vadd.f32 %v3332_v52, %v3244_v63  ;;  %v10102_v47 = vpop.f32.mrf.mxu1  ;;  %v3553_v63 = vmax.f32 %v3479_v33, 0.0 }
 0x500   : > { %v3578_v5 = vmax.f32 %v3333_v13, 0.0  ;;  %3850 = vmatmul.bf16.gmra.mxu2 %v9965_v35  ;;  %3939 = vmatmul.bf16.gmra.mxu3 %v3603_v15 }
 0x501   : > { %4117 = vmatmul.bf16.gmra.mxu1 %v3603_v15  ;;  %v10105_v31 = vpop.f32.mrf.mxu0 }
 0x502   : > { %v10109_v29 = vpack.c.bf16 %v3578_v5, %v3576_v37  ;;  %v3605_v37 = vpack.c.bf16 %v3555_v44, %v3553_v63  ;;  %v3484_v44 = vadd.f32 %v9978_v42, %v3395_v55  ;;  %v3402_v42 = vadd.f32 %v10019_v60, %v9981_v51 }
 0x503   : > { %v3246_v49 = vpop.f32.mrf.mxu2  ;;  %v3335_v32 = vpop.f32.mrf.mxu3  ;;  %v3400_v55 = vadd.f32 %v10005_v54, %v9981_v51 }
 0x504   : > { %v3247_v20 = vadd.f32 %v3246_v49, %v9703_v1  ;;  %4028 = vmatmul.bf16.gmra.mxu0 %v9965_v35  ;;  %v3491_v45 = vadd.f32 %v10016_v10, %v3402_v42 }
 0x506   : > { %v3336_v27 = vadd.f32 %v3335_v32, %v3247_v20  ;;  %v10116_v39 = vpop.f32.mrf.mxu1  ;;  %v3563_v60 = vmax.f32 %v3491_v45, 0.0 }
 0x508   : > { %v3580_v35 = vmax.f32 %v3336_v27, 0.0 }
 0x509   : > { %v10119_v24 = vpop.f32.mrf.mxu0 }
 0x50b   : > { %v3248_v52 = vpop.f32.mrf.mxu2  ;;  %v3337_v4 = vpop.f32.mrf.mxu3 }
 0x50c   : > { %v3249_v13 = vadd.f32 %v3248_v52, %v9703_v1 }
 0x50e   : > { %v3338_v59 = vadd.f32 %v3337_v4, %v3249_v13  ;;  %v10122_v15 = vpop.f32.mrf.mxu1  ;;  %v3557_v13 = vmax.f32 %v3484_v44, 0.0 }
 0x510   : > { %v3582_v5 = vmax.f32 %v3338_v59, 0.0  ;;  %3855 = vmatmul.bf16.gmra.mxu2 %v9988_v12  ;;  %3944 = vmatmul.bf16.gmra.mxu3 %v3605_v37 }
 0x511   : > { %4122 = vmatmul.bf16.gmra.mxu1 %v3605_v37  ;;  %v10125_v50 = vpop.f32.mrf.mxu0 }
 0x512   : > { %v10129_v11 = vpack.c.bf16 %v3582_v5, %v3580_v35  ;;  %v3607_v35 = vpack.c.bf16 %v3559_v16, %v3557_v13  ;;  %v3489_v16 = vadd.f32 %v10002_v18, %v3400_v55  ;;  %v3407_v18 = vadd.f32 %v10039_v41, %v9981_v51  ;;  %v7058_v41 = vld [vmem:[%s11568_s14 + $0xf0] sm:$0xf] }
 0x513   : > { %v3251_v49 = vpop.f32.mrf.mxu2  ;;  %v3340_v32 = vpop.f32.mrf.mxu3 }
 0x514   : > { %v3252_v20 = vadd.f32 %v3251_v49, %v9703_v1  ;;  %4033 = vmatmul.bf16.gmra.mxu0 %v9988_v12  ;;  %v3496_v45 = vadd.f32 %v10036_v14, %v3407_v18 }
 0x516   : > { %v3341_v27 = vadd.f32 %v3340_v32, %v3252_v20  ;;  %v10136_v33 = vpop.f32.mrf.mxu1 }
 0x518   : > { %v3584_v12 = vmax.f32 %v3341_v27, 0.0 }
 0x519   : > { %v10139_v52 = vpop.f32.mrf.mxu0 }
 0x51b   : > { %v3253_v4 = vpop.f32.mrf.mxu2  ;;  %v3342_v63 = vpop.f32.mrf.mxu3 }
 0x51c   : > { %v3254_v59 = vadd.f32 %v3253_v4, %v9703_v1 }
 0x51e   : > { %v3343_v22 = vadd.f32 %v3342_v63, %v3254_v59  ;;  %v10142_v37 = vpop.f32.mrf.mxu1  ;;  %v3561_v59 = vmax.f32 %v3489_v16, 0.0  ;;  %v7449_v16 = vld [vmem:[%s11568_s14 + $0xf4] sm:$0xf0] }
 0x520   : > { %v3586_v5 = vmax.f32 %v3343_v22, 0.0  ;;  %3860 = vmatmul.bf16.gmra.mxu2 %v10009_v38  ;;  %3949 = vmatmul.bf16.gmra.mxu3 %v3607_v35 }
 0x521   : > { %4127 = vmatmul.bf16.gmra.mxu1 %v3607_v35  ;;  %v10145_v57 = vpop.f32.mrf.mxu0 }
 0x522   : > { %v10149_v62 = vpack.c.bf16 %v3586_v5, %v3584_v12  ;;  %v3609_v12 = vpack.c.bf16 %v3563_v60, %v3561_v59  ;;  %v7059_v60 = vor.u32 %v7449_v16, %v7058_v41 }
 0x523   : > { %v3256_v49 = vpop.f32.mrf.mxu2  ;;  %v3345_v32 = vpop.f32.mrf.mxu3 }
 0x524   : > { %v3257_v20 = vadd.f32 %v3256_v49, %v9703_v1  ;;  %4038 = vmatmul.bf16.gmra.mxu0 %v10009_v38  ;;  %4812 = vmatpush.bf16.msra.mxu1 %v7059_v60 }
 0x526   : > { %v3346_v27 = vadd.f32 %v3345_v32, %v3257_v20  ;;  %v10156_v44 = vpop.f32.mrf.mxu1 }
 0x528   : > { %v3588_v5 = vmax.f32 %v3346_v27, 0.0 }
 0x529   : > { %v10159_v4 = vpop.f32.mrf.mxu0 }
 0x52b   : > { %v3258_v63 = vpop.f32.mrf.mxu2  ;;  %v3347_v13 = vpop.f32.mrf.mxu3 }
 0x52c   : > { %v3259_v22 = vadd.f32 %v3258_v63, %v9703_v1  ;;  %v3405_v1 = vadd.f32 %v10025_v48, %v9981_v51  ;;  %v3567_v48 = vmax.f32 %v3496_v45, 0.0  ;;  %v7433_v45 = vld [vmem:[%s11568_s14 + $0x74] sm:$0xf0] }
 0x52e   : > { %v3348_v54 = vadd.f32 %v3347_v13, %v3259_v22  ;;  %v4093_v35 = vpop.f32.mrf.mxu1  ;;  %v3494_v63 = vadd.f32 %v10022_v17, %v3405_v1  ;;  %v3412_v17 = vadd.f32 %v10059_v21, %v9981_v51  ;;  %v6994_v1 = vld [vmem:[%s11568_s14 + $0x70] sm:$0xf] }
 0x52f   : > { %v6995_v21 = vor.u32 %v7433_v45, %v6994_v1  ;;  %v7050_v1 = vld [vmem:[%s11568_s14 + $0xe0] sm:$0xf] }
 0x530   : > { %v3590_v38 = vmax.f32 %v3348_v54, 0.0  ;;  %3865 = vmatmul.bf16.gmra.mxu2 %v10029_v26  ;;  %3954 = vmatmul.bf16.gmra.mxu3 %v3609_v12  ;;  %v3565_v14 = vmax.f32 %v3494_v63, 0.0 }
 0x531   : > { %4132 = vmatmul.bf16.gmra.mxu1 %v3609_v12  ;;  %v4004_v10 = vpop.f32.mrf.mxu0  ;;  %4723 = vmatpush.bf16.msra.mxu0 %v6995_v21 }
 0x532   : > { %v10165_v42 = vadd.f32 %v4093_v35, %v4004_v10  ;;  %v10167_v49 = vpack.c.bf16 %v3590_v38, %v3588_v5  ;;  %v3611_v12 = vpack.c.bf16 %v3567_v48, %v3565_v14 }
 0x533   : > { %v3826_v32 = vpop.f32.mrf.mxu2  ;;  %v3915_v55 = vpop.f32.mrf.mxu3 }
 0x534   : > { %v10171_v20 = vadd.f32 %v3915_v55, %v3826_v32  ;;  %4043 = vmatmul.bf16.gmra.mxu0 %v10029_v26  ;;  %v3410_v32 = vadd.f32 %v10045_v23, %v9981_v51 }
 0x536   : > { %v4095_v27 = vpop.f32.mrf.mxu1  ;;  %v3499_v16 = vadd.f32 %v10042_v61, %v3410_v32 }
 0x538   : > { %v3569_v48 = vmax.f32 %v3499_v16, 0.0 }
 0x539   : > { %v4006_v13 = vpop.f32.mrf.mxu0 }
 0x53a   : > { %v10182_v59 = vadd.f32 %v4095_v27, %v4006_v13  ;;  %v3501_v27 = vadd.f32 %v10056_v28, %v3412_v17  ;;  %v3415_v17 = vadd.f32 %v10065_v40, %v9981_v51 }
 0x53b   : > { %v3828_v26 = vpop.f32.mrf.mxu2  ;;  %v3917_v22 = vpop.f32.mrf.mxu3 }
 0x53c   : > { %v10184_v54 = vadd.f32 %v3917_v22, %v3828_v26  ;;  %v3571_v60 = vmax.f32 %v3501_v27, 0.0  ;;  %v3504_v21 = vadd.f32 %v10062_v9, %v3415_v17  ;;  %v3422_v9 = vadd.f32 %v10099_v30, %v9981_v51 }
 0x53e   : > { %v4098_v35 = vpop.f32.mrf.mxu1  ;;  %v3613_v14 = vpack.c.bf16 %v3571_v60, %v3569_v48  ;;  %v3511_v30 = vadd.f32 %v10096_v53, %v3422_v9  ;;  %v3427_v53 = vadd.f32 %v10119_v24, %v9981_v51  ;;  %v7445_v24 = vld [vmem:[%s11568_s14 + $0xd4] sm:$0xf0] }
 0x540   : > { %3870 = vmatmul.bf16.gmra.mxu2 %v10049_v56  ;;  %3959 = vmatmul.bf16.gmra.mxu3 %v3611_v12 }
 0x541   : > { %4137 = vmatmul.bf16.gmra.mxu1 %v3611_v12  ;;  %v4009_v5 = vpop.f32.mrf.mxu0 }
 0x542   : > { %v10189_v38 = vadd.f32 %v4098_v35, %v4009_v5  ;;  %v3417_v35 = vadd.f32 %v10079_v43, %v9981_v51  ;;  %v7447_v43 = vld [vmem:[%s11568_s14 + $0xe4] sm:$0xf0] }
 0x543   : > { %v3831_v10 = vpop.f32.mrf.mxu2  ;;  %v3920_v18 = vpop.f32.mrf.mxu3  ;;  %v7051_v45 = vor.u32 %v7447_v43, %v7050_v1  ;;  %v3579_v43 = vmax.f32 %v3511_v30, 0.0 }
 0x544   : > { %v10193_v55 = vadd.f32 %v3920_v18, %v3831_v10  ;;  %4048 = vmatmul.bf16.gmra.mxu0 %v10049_v56  ;;  %v3506_v18 = vadd.f32 %v10076_v8, %v3417_v35  ;;  %v3573_v8 = vmax.f32 %v3504_v21, 0.0 }
 0x545   : > { %4813 = vmatpush.bf16.msra.mxu1 %v7051_v45 }
 0x546   : > { %v4100_v41 = vpop.f32.mrf.mxu1  ;;  %v3575_v40 = vmax.f32 %v3506_v18, 0.0 }
 0x549   : > { %v4011_v23 = vpop.f32.mrf.mxu0 }
 0x54a   : > { %v10204_v63 = vadd.f32 %v4100_v41, %v4011_v23 }
 0x54b   : > { %v3833_v56 = vpop.f32.mrf.mxu2  ;;  %v3922_v13 = vpop.f32.mrf.mxu3 }
 0x54c   : > { %v10206_v26 = vadd.f32 %v3922_v13, %v3833_v56  ;;  %v3615_v56 = vpack.c.bf16 %v3575_v40, %v3573_v8 }
 0x54e   : > { %v4103_v22 = vpop.f32.mrf.mxu1 }
 0x550   : > { %3875 = vmatmul.bf16.gmra.mxu2 %v10069_v0  ;;  %3964 = vmatmul.bf16.gmra.mxu3 %v3613_v14 }
 0x551   : > { %4142 = vmatmul.bf16.gmra.mxu1 %v3613_v14  ;;  %v4014_v28 = vpop.f32.mrf.mxu0  ;;  %v7431_v14 = vld [vmem:[%s11568_s14 + $0x64] sm:$0xf0] }
 0x552   : > { %v10211_v61 = vadd.f32 %v4103_v22, %v4014_v28  ;;  %v6986_v22 = vld [vmem:[%s11568_s14 + $0x60] sm:$0xf] }
 0x553   : > { %v3836_v12 = vpop.f32.mrf.mxu2  ;;  %v3925_v5 = vpop.f32.mrf.mxu3 }
 0x554   : > { %v10215_v10 = vadd.f32 %v3925_v5, %v3836_v12  ;;  %4053 = vmatmul.bf16.gmra.mxu0 %v10069_v0  ;;  %v6987_v12 = vor.u32 %v7431_v14, %v6986_v22  ;;  %v3420_v5 = vadd.f32 %v10085_v2, %v9981_v51  ;;  %v7042_v22 = vld [vmem:[%s11568_s14 + $0xd0] sm:$0xf] }
 0x555   : > { %v7043_v14 = vor.u32 %v7445_v24, %v7042_v22 }
 0x556   : > { %v4105_v32 = vpop.f32.mrf.mxu1  ;;  %4724 = vmatpush.bf16.msra.mxu0 %v6987_v12 }
 0x557   : > { %4814 = vmatpush.bf16.msra.mxu1 %v7043_v14 }
 0x559   : > { %v4016_v27 = vpop.f32.mrf.mxu0 }
 0x55a   : > { %v10226_v41 = vadd.f32 %v4105_v32, %v4016_v27  ;;  %v3509_v32 = vadd.f32 %v10082_v36, %v3420_v5 }
 0x55b   : > { %v3838_v0 = vpop.f32.mrf.mxu2  ;;  %v3927_v16 = vpop.f32.mrf.mxu3 }
 0x55c   : > { %v10228_v23 = vadd.f32 %v3927_v16, %v3838_v0  ;;  %v3577_v27 = vmax.f32 %v3509_v32, 0.0 }
 0x55e   : > { %v4108_v60 = vpop.f32.mrf.mxu1  ;;  %v3617_v0 = vpack.c.bf16 %v3579_v43, %v3577_v27 }
 0x560   : > { %3880 = vmatmul.bf16.gmra.mxu2 %v10089_v6  ;;  %3969 = vmatmul.bf16.gmra.mxu3 %v3615_v56 }
 0x561   : > { %4147 = vmatmul.bf16.gmra.mxu1 %v3615_v56  ;;  %v4019_v13 = vpop.f32.mrf.mxu0 }
 0x562   : > { %v10233_v48 = vadd.f32 %v4108_v60, %v4019_v13  ;;  %v3425_v60 = vadd.f32 %v10105_v31, %v9981_v51  ;;  %v3516_v13 = vadd.f32 %v10116_v39, %v3427_v53  ;;  %v3430_v53 = vadd.f32 %v10125_v50, %v9981_v51 }
 0x563   : > { %v3841_v28 = vpop.f32.mrf.mxu2  ;;  %v3930_v35 = vpop.f32.mrf.mxu3 }
 0x564   : > { %v10243_v17 = vadd.f32 %v3930_v35, %v3841_v28  ;;  %4058 = vmatmul.bf16.gmra.mxu0 %v10089_v6  ;;  %v3514_v28 = vadd.f32 %v10102_v47, %v3425_v60  ;;  %v3583_v35 = vmax.f32 %v3516_v13, 0.0  ;;  %v6978_v47 = vld [vmem:[%s11568_s14 + $0x50] sm:$0xf]  ;;  %v3519_v13 = vadd.f32 %v10122_v15, %v3430_v53 }
 0x565   : > { %v3437_v15 = vadd.f32 %v10159_v4, %v9981_v51  ;;  %v7443_v4 = vld [vmem:[%s11568_s14 + $0xc4] sm:$0xf0] }
 0x566   : > { %v10247_v18 = vpop.f32.mrf.mxu1  ;;  %v3581_v39 = vmax.f32 %v3514_v28, 0.0  ;;  %v3585_v28 = vmax.f32 %v3519_v13, 0.0 }
 0x568   : > { %v3619_v32 = vpack.c.bf16 %v3583_v35, %v3581_v39 }
 0x569   : > { %v10250_v1 = vpop.f32.mrf.mxu0 }
 0x56b   : > { %v3843_v45 = vpop.f32.mrf.mxu2  ;;  %v3932_v21 = vpop.f32.mrf.mxu3 }
 0x56c   : > { %v10252_v40 = vadd.f32 %v3932_v21, %v3843_v45  ;;  %v7429_v45 = vld [vmem:[%s11568_s14 + $0x54] sm:$0xf0]  ;;  %v3432_v21 = vadd.f32 %v10139_v52, %v9981_v51 }
 0x56e   : > { %v4113_v2 = vpop.f32.mrf.mxu1 }
 0x570   : > { %3885 = vmatmul.bf16.gmra.mxu2 %v10109_v29  ;;  %3974 = vmatmul.bf16.gmra.mxu3 %v3617_v0 }
 0x571   : > { %4152 = vmatmul.bf16.gmra.mxu1 %v3617_v0  ;;  %v4024_v6 = vpop.f32.mrf.mxu0 }
 0x572   : > { %v10257_v16 = vadd.f32 %v4113_v2, %v4024_v6  ;;  %v6979_v2 = vor.u32 %v7429_v45, %v6978_v47  ;;  %v3526_v45 = vadd.f32 %v10156_v44, %v3437_v15 }
 0x573   : > { %v3846_v36 = vpop.f32.mrf.mxu2  ;;  %v3935_v8 = vpop.f32.mrf.mxu3 }
 0x574   : > { %v10261_v56 = vadd.f32 %v3935_v8, %v3846_v36  ;;  %4063 = vmatmul.bf16.gmra.mxu0 %v10109_v29  ;;  %v3521_v8 = vadd.f32 %v10136_v33, %v3432_v21 }
 0x575   : > { %4725 = vmatpush.bf16.msra.mxu0 %v6979_v2 }
 0x576   : > { %v10265_v9 = vpop.f32.mrf.mxu1  ;;  %v3587_v22 = vmax.f32 %v3521_v8, 0.0 }
 0x579   : > { %v10274_v31 = vpop.f32.mrf.mxu0 }
 0x57b   : > { %v3848_v29 = vpop.f32.mrf.mxu2  ;;  %v3937_v12 = vpop.f32.mrf.mxu3 }
 0x57c   : > { %v10276_v5 = vadd.f32 %v3937_v12, %v3848_v29  ;;  %v3621_v29 = vpack.c.bf16 %v3587_v22, %v3585_v28  ;;  %v6970_v22 = vld [vmem:[%s11568_s14 + $0x40] sm:$0xf] }
 0x57e   : > { %v4118_v30 = vpop.f32.mrf.mxu1 }
 0x580   : > { %3890 = vmatmul.bf16.gmra.mxu2 %v10129_v11  ;;  %3979 = vmatmul.bf16.gmra.mxu3 %v3619_v32 }
 0x581   : > { %4157 = vmatmul.bf16.gmra.mxu1 %v3619_v32  ;;  %v4029_v43 = vpop.f32.mrf.mxu0 }
 0x582   : > { %v10287_v27 = vadd.f32 %v4118_v30, %v4029_v43  ;;  %v3435_v43 = vadd.f32 %v10145_v57, %v9981_v51  ;;  %v3591_v57 = vmax.f32 %v3526_v45, 0.0  ;;  %v6996_v45 = vld [vmem:[%s11568_s14 + $0x78] sm:$0xf0] }
 0x583   : > { %v3851_v0 = vpop.f32.mrf.mxu2  ;;  %v3940_v6 = vpop.f32.mrf.mxu3 }
 0x584   : > { %v10291_v36 = vadd.f32 %v3940_v6, %v3851_v0  ;;  %4068 = vmatmul.bf16.gmra.mxu0 %v10129_v11  ;;  %v4175_v11 = vld.sshfl [vmem:[#allocation1] sm:$0xff pattern:$0x73625140]  ;;  %v3524_v0 = vadd.f32 %v10142_v37, %v3435_v43  ;;  %v7432_v43 = vld [vmem:[%s11568_s14 + $0x74] sm:$0xf] }
 0x585   : > { %v4177_v12 = vand.u32 %v4175_v11, %v7645_v3  ;;  %v7034_v3 = vld [vmem:[%s11568_s14 + $0xc0] sm:$0xf] }
 0x586   : > { %v10295_v60 = vpop.f32.mrf.mxu1  ;;  %v7035_v2 = vor.u32 %v7443_v4, %v7034_v3  ;;  %v3589_v44 = vmax.f32 %v3524_v0, 0.0  ;;  %v6999_v0 = vor.u32 %v7432_v43, %v6996_v45 }
 0x587   : > { %4188 = vmatpush.bf16.msrb.mxu2 %v4177_v12  ;;  %v7060_v12 = vld [vmem:[%s11568_s14 + $0xf8] sm:$0xf0] }
 0x588   : > { %4815 = vmatpush.bf16.msra.mxu1 %v7035_v2  ;;  %v3623_v13 = vpack.c.bf16 %v3591_v57, %v3589_v44 }
 0x589   : > { %v10298_v52 = vpop.f32.mrf.mxu0 }
 0x58b   : > { %v3853_v24 = vpop.f32.mrf.mxu2  ;;  %v3942_v14 = vpop.f32.mrf.mxu3 }
 0x58c   : > { %v10300_v35 = vadd.f32 %v3942_v14, %v3853_v24  ;;  %v7427_v24 = vld [vmem:[%s11568_s14 + $0x44] sm:$0xf0] }
 0x58d   : > { %v6971_v37 = vor.u32 %v7427_v24, %v6970_v22  ;;  %v7026_v24 = vld [vmem:[%s11568_s14 + $0xb0] sm:$0xf] }
 0x58e   : > { %v4123_v50 = vpop.f32.mrf.mxu1 }
 0x58f   : > { %4726 = vmatpush.bf16.msra.mxu0 %v6971_v37 }
 0x590   : > { %3895 = vmatmul.bf16.gmra.mxu2 %v10149_v62  ;;  %3984 = vmatmul.bf16.gmra.mxu3 %v3621_v29 }
 0x591   : > { %4162 = vmatmul.bf16.gmra.mxu1 %v3621_v29  ;;  %v4034_v33 = vpop.f32.mrf.mxu0 }
 0x592   : > { %v10306_v39 = vadd.f32 %v4123_v50, %v4034_v33  ;;  %v7448_v33 = vld [vmem:[%s11568_s14 + $0xf4] sm:$0xf] }
 0x593   : > { %v3856_v30 = vpop.f32.mrf.mxu2  ;;  %v3945_v32 = vpop.f32.mrf.mxu3  ;;  %v7063_v15 = vor.u32 %v7448_v33, %v7060_v12  ;;  %v6962_v12 = vld [vmem:[%s11568_s14 + $0x30] sm:$0xf] }
 0x594   : > { %v10310_v47 = vadd.f32 %v3945_v32, %v3856_v30  ;;  %4073 = vmatmul.bf16.gmra.mxu0 %v10149_v62 }
 0x595   : > { %4990 = vmatpush.bf16.msrb.mxu3 %v7063_v15  ;;  %v7425_v15 = vld [vmem:[%s11568_s14 + $0x34] sm:$0xf0] }
 0x596   : > { %v10314_v21 = vpop.f32.mrf.mxu1  ;;  %v6963_v43 = vor.u32 %v7425_v15, %v6962_v12 }
 0x598   : > { %4727 = vmatpush.bf16.msra.mxu0 %v6963_v43 }
 0x599   : > { %v10323_v51 = vpop.f32.mrf.mxu0 }
 0x59b   : > { %v3858_v62 = vpop.f32.mrf.mxu2  ;;  %v3947_v6 = vpop.f32.mrf.mxu3 }
 0x59c   : > { %v10325_v53 = vadd.f32 %v3947_v6, %v3858_v62 }
 0x59e   : > { %v4128_v8 = vpop.f32.mrf.mxu1 }
 0x5a0   : > { %3900 = vmatmul.bf16.gmra.mxu2 %v10167_v49  ;;  %3989 = vmatmul.bf16.gmra.mxu3 %v3623_v13 }
 0x5a1   : > { %4167 = vmatmul.bf16.gmra.mxu1 %v3623_v13  ;;  %v4039_v14 = vpop.f32.mrf.mxu0 }
 0x5a2   : > { %v10334_v28 = vadd.f32 %v4128_v8, %v4039_v14 }
 0x5a3   : > { %v3861_v50 = vpop.f32.mrf.mxu2  ;;  %v3950_v29 = vpop.f32.mrf.mxu3 }
 0x5a4   : > { %v10336_v11 = vadd.f32 %v3950_v29, %v3861_v50 }
 0x5a6   : > { %v10344_v30 = vpop.f32.mrf.mxu1 }
 0x5a9   : > { %v10346_v32 = vpop.f32.mrf.mxu0 }
 0x5ab   : > { %v3863_v3 = vpop.f32.mrf.mxu2  ;;  %v3952_v4 = vpop.f32.mrf.mxu3 }
 0x5ac   : > { %v10354_v2 = vadd.f32 %v3952_v4, %v3863_v3 }
 0x5ae   : > { %v4133_v57 = vpop.f32.mrf.mxu1 }
 0x5b0   : > { %4078 = vmatmul.bf16.vlgmr.msra.gmra.mxu2 %v10167_v49  ;;  %6920 = vmatmul.msk.bf16.vlgmr.msra.gmra.mxu3 %vm693_vm2, %v7676_v19  ;;  %v7441_v49 = vld [vmem:[%s11568_s14 + $0xb4] sm:$0xf0] }
 0x5b1   : > { %v4044_v62 = vpop.f32.mrf.mxu0  ;;  %4901 = vmatpush.bf16.msra.mxu2 %v6999_v0  ;;  %v7027_v37 = vor.u32 %v7441_v49, %v7026_v24  ;;  %v7430_v0 = vld [vmem:[%s11568_s14 + $0x64] sm:$0xf]  ;;  %v7052_v49 = vld [vmem:[%s11568_s14 + $0xe8] sm:$0xf0] }
 0x5b2   : > { %v10359_v6 = vadd.f32 %v4133_v57, %v4044_v62  ;;  %v6988_v57 = vld [vmem:[%s11568_s14 + $0x68] sm:$0xf0] }
 0x5b3   : > { %v3866_v44 = vpop.f32.mrf.mxu2  ;;  %v3955_v8 = vpop.f32.mrf.mxu3  ;;  %4816 = vmatpush.bf16.msra.mxu1 %v7027_v37 }
 0x5b4   : > { %v10361_v13 = vadd.f32 %v3955_v8, %v3866_v44  ;;  %v6991_v8 = vor.u32 %v7430_v0, %v6988_v57 }
 0x5b6   : > { %v10363_v22 = vpop.f32.mrf.mxu1  ;;  %4902 = vmatpush.bf16.msra.mxu2 %v6991_v8 }
 0x5b9   : > { %v10371_v14 = vpop.f32.mrf.mxu0 }
 0x5bb   : > { %v3868_v50 = vpop.f32.mrf.mxu2  ;;  %v3957_v29 = vpop.f32.mrf.mxu3 }
 0x5bc   : > { %v10373_v33 = vadd.f32 %v3957_v29, %v3868_v50 }
 0x5be   : > { %v4138_v45 = vpop.f32.mrf.mxu1 }
 0x5c0   : > { %6904 = vmatmul.msk.bf16.vlgmr.msrb.gmra.mxu2 %vm693_vm2, %v7676_v19  ;;  %6921 = vmatmul.msk.bf16.gmra.mxu3 %vm693_vm2, %v7708_v34  ;;  %v7446_v19 = vld [vmem:[%s11568_s14 + $0xe4] sm:$0xf] }
 0x5c1   : > { %v4049_v3 = vpop.f32.mrf.mxu0  ;;  %v7055_v37 = vor.u32 %v7446_v19, %v7052_v49  ;;  %v7018_v19 = vld [vmem:[%s11568_s14 + $0xa0] sm:$0xf] }
 0x5c2   : > { %v10385_v4 = vadd.f32 %v4138_v45, %v4049_v3 }
 0x5c3   : > { %v3871_v62 = vpop.f32.mrf.mxu2  ;;  %v3960_v44 = vpop.f32.mrf.mxu3  ;;  %4991 = vmatpush.bf16.msrb.mxu3 %v7055_v37 }
 0x5c4   : > { %v10393_v24 = vadd.f32 %v3960_v44, %v3871_v62 }
 0x5c6   : > { %v10401_v50 = vpop.f32.mrf.mxu1 }
 0x5c9   : > { %v10403_v29 = vpop.f32.mrf.mxu0 }
 0x5cb   : > { %v3873_v12 = vpop.f32.mrf.mxu2  ;;  %v3962_v15 = vpop.f32.mrf.mxu3 }
 0x5cc   : > { %v10405_v43 = vadd.f32 %v3962_v15, %v3873_v12  ;;  %v6954_v12 = vld [vmem:[%s11568_s14 + $0x20] sm:$0xf]  ;;  %v7423_v15 = vld [vmem:[%s11568_s14 + $0x24] sm:$0xf0] }
 0x5ce   : > { %11617 = vst [vmem:[#allocation12_spill] sm:$0xff] %v10405_v43  ;;  %v4143_v45 = vpop.f32.mrf.mxu1 }
 0x5d0   : > { %6905 = vmatmul.msk.bf16.gmra.mxu2 %vm693_vm2, %v7708_v34  ;;  %6922 = vmatmul.msk.bf16.gmra.mxu3 %vm693_vm2, %v7736_v46  ;;  %v7439_v34 = vld [vmem:[%s11568_s14 + $0xa4] sm:$0xf0] }
 0x5d1   : > { %v4054_v3 = vpop.f32.mrf.mxu0  ;;  %v7019_v49 = vor.u32 %v7439_v34, %v7018_v19 }
 0x5d2   : > { %v10411_v0 = vadd.f32 %v4143_v45, %v4054_v3 }
 0x5d3   : > { %v3876_v57 = vpop.f32.mrf.mxu2  ;;  %v3965_v62 = vpop.f32.mrf.mxu3  ;;  %4817 = vmatpush.bf16.msra.mxu1 %v7019_v49  ;;  %v7428_v49 = vld [vmem:[%s11568_s14 + $0x54] sm:$0xf] }
 0x5d4   : > { %v10413_v44 = vadd.f32 %v3965_v62, %v3876_v57  ;;  %v6955_v57 = vor.u32 %v7423_v15, %v6954_v12  ;;  %v6980_v12 = vld [vmem:[%s11568_s14 + $0x58] sm:$0xf0] }
 0x5d6   : > { %11618 = vst [vmem:[#allocation13_spill] sm:$0xff] %v10413_v44  ;;  %v10415_v8 = vpop.f32.mrf.mxu1  ;;  %4728 = vmatpush.bf16.msra.mxu0 %v6955_v57 }
 0x5d7   : > { %11619 = vst [vmem:[#allocation14_spill] sm:$0xff] %v10415_v8 }
 0x5d9   : > { %v10423_v37 = vpop.f32.mrf.mxu0 }
 0x5da   : > { %11620 = vst [vmem:[#allocation15_spill] sm:$0xff] %v10423_v37 }
 0x5db   : > { %v3878_v45 = vpop.f32.mrf.mxu2  ;;  %v3967_v3 = vpop.f32.mrf.mxu3 }
 0x5dc   : > { %v10431_v62 = vadd.f32 %v3967_v3, %v3878_v45  ;;  %v6983_v3 = vor.u32 %v7428_v49, %v6980_v12 }
 0x5de   : > { %11621 = vst [vmem:[#allocation16_spill] sm:$0xff] %v10431_v62  ;;  %v4148_v44 = vpop.f32.mrf.mxu1  ;;  %4903 = vmatpush.bf16.msra.mxu2 %v6983_v3 }
 0x5e0   : > { %6906 = vmatmul.msk.bf16.gmra.mxu2 %vm693_vm2, %v7736_v46  ;;  %6923 = vmatmul.msk.bf16.gmra.mxu3 %vm693_vm2, %v7764_v58  ;;  %v7444_v46 = vld [vmem:[%s11568_s14 + $0xd4] sm:$0xf] }
 0x5e1   : > { %v4059_v19 = vpop.f32.mrf.mxu0 }
 0x5e2   : > { %v10437_v34 = vadd.f32 %v4148_v44, %v4059_v19  ;;  %v7044_v44 = vld [vmem:[%s11568_s14 + $0xd8] sm:$0xf0] }
 0x5e3   : > { %v3881_v15 = vpop.f32.mrf.mxu2  ;;  %v3970_v45 = vpop.f32.mrf.mxu3  ;;  %v7047_v19 = vor.u32 %v7444_v46, %v7044_v44 }
 0x5e4   : > { %11622 = vst [vmem:[#allocation17_spill] sm:$0xff] %v10437_v34  ;;  %v10445_v57 = vadd.f32 %v3970_v45, %v3881_v15 }
 0x5e5   : > { %4992 = vmatpush.bf16.msrb.mxu3 %v7047_v19 }
 0x5e6   : > { %11623 = vst [vmem:[#allocation18_spill] sm:$0xff] %v10445_v57  ;;  %v10453_v62 = vpop.f32.mrf.mxu1 }
 0x5e7   : > { %11624 = vst [vmem:[#allocation19_spill] sm:$0xff] %v10453_v62  ;;  %v11648_v62 = vld [vmem:[#allocation3_spill] sm:$0xff] }
 0x5e9   : > { %v10455_v34 = vpop.f32.mrf.mxu0 }
 0x5ea   : > { %11625 = vst [vmem:[#allocation20_spill] sm:$0xff] %v10455_v34 }
 0x5eb   : > { %v3883_v43 = vpop.f32.mrf.mxu2  ;;  %v3972_v8 = vpop.f32.mrf.mxu3 }
 0x5ec   : > { %v10457_v49 = vadd.f32 %v3972_v8, %v3883_v43  ;;  %v7010_v43 = vld [vmem:[%s11568_s14 + $0x90] sm:$0xf] }
 0x5ed   : > { %v6946_v8 = vld [vmem:[%s11568_s14 + $0x10] sm:$0xf] }
 0x5ee   : > { %11626 = vst [vmem:[#allocation21_spill] sm:$0xff] %v10457_v49  ;;  %v4153_v12 = vpop.f32.mrf.mxu1 }
 0x5f0   : > { %6907 = vmatmul.msk.bf16.gmra.mxu2 %vm693_vm2, %v7764_v58  ;;  %6924 = vmatmul.msk.bf16.gmra.mxu3 %vm693_vm2, %v7792_v7  ;;  %v7437_v58 = vld [vmem:[%s11568_s14 + $0x94] sm:$0xf0] }
 0x5f1   : > { %v4064_v15 = vpop.f32.mrf.mxu0 }
 0x5f2   : > { %v10463_v45 = vadd.f32 %v4153_v12, %v4064_v15  ;;  %v7011_v12 = vor.u32 %v7437_v58, %v7010_v43  ;;  %v7421_v15 = vld [vmem:[%s11568_s14 + $0x14] sm:$0xf0]  ;;  %v7426_v43 = vld [vmem:[%s11568_s14 + $0x44] sm:$0xf]  ;;  %v6972_v58 = vld [vmem:[%s11568_s14 + $0x48] sm:$0xf0] }
 0x5f3   : > { %v3886_v3 = vpop.f32.mrf.mxu2  ;;  %v3975_v46 = vpop.f32.mrf.mxu3 }
 0x5f4   : > { %11627 = vst [vmem:[#allocation22_spill] sm:$0xff] %v10463_v45  ;;  %v10465_v44 = vadd.f32 %v3975_v46, %v3886_v3  ;;  %v6947_v3 = vor.u32 %v7421_v15, %v6946_v8  ;;  %4818 = vmatpush.bf16.msra.mxu1 %v7011_v12  ;;  %v6975_v12 = vor.u32 %v7426_v43, %v6972_v58 }
 0x5f6   : > { %11628 = vst [vmem:[#allocation23_spill] sm:$0xff] %v10465_v44  ;;  %v10467_v19 = vpop.f32.mrf.mxu1  ;;  %4729 = vmatpush.bf16.msra.mxu0 %v6947_v3  ;;  %4904 = vmatpush.bf16.msra.mxu2 %v6975_v12  ;;  %v11637_v12 = vld [vmem:[#allocation9_spill] sm:$0xff] }
 0x5f7   : > { %11629 = vst [vmem:[#allocation24_spill] sm:$0xff] %v10467_v19 }
 0x5f9   : > { %v10481_v46 = vpop.f32.mrf.mxu0 }
 0x5fa   : > { %11630 = vst [vmem:[#allocation25_spill] sm:$0xff] %v10481_v46 }
 0x5fb   : > { %v3888_v44 = vpop.f32.mrf.mxu2  ;;  %v3977_v49 = vpop.f32.mrf.mxu3 }
 0x5fc   : > { %v10483_v19 = vadd.f32 %v3977_v49, %v3888_v44 }
 0x5fe   : > { %11631 = vst [vmem:[#allocation26_spill] sm:$0xff] %v10483_v19  ;;  %v4158_v45 = vpop.f32.mrf.mxu1  ;;  %v7036_v19 = vld [vmem:[%s11568_s14 + $0xc8] sm:$0xf0] }
 0x600   : > { %6908 = vmatmul.msk.bf16.gmra.mxu2 %vm693_vm2, %v7792_v7  ;;  %6925 = vmatmul.msk.bf16.gmra.mxu3 %vm693_vm2, %v7826_v25  ;;  %v7442_v7 = vld [vmem:[%s11568_s14 + $0xc4] sm:$0xf] }
 0x601   : > { %v4069_v8 = vpop.f32.mrf.mxu0  ;;  %v7039_v46 = vor.u32 %v7442_v7, %v7036_v19 }
 0x602   : > { %v10495_v15 = vadd.f32 %v4158_v45, %v4069_v8 }
 0x603   : > { %v3891_v49 = vpop.f32.mrf.mxu2  ;;  %v3980_v44 = vpop.f32.mrf.mxu3  ;;  %4993 = vmatpush.bf16.msrb.mxu3 %v7039_v46  ;;  %v6938_v46 = vld [vmem:[%s11568_s14] sm:$0xf] }
 0x604   : > { %11632 = vst [vmem:[#allocation27_spill] sm:$0xff] %v10495_v15  ;;  %v10497_v3 = vadd.f32 %v3980_v44, %v3891_v49 }
 0x606   : > { %11633 = vst [vmem:[#allocation28_spill] sm:$0xff] %v10497_v3  ;;  %v10505_v57 = vpop.f32.mrf.mxu1 }
 0x607   : > { %11634 = vst [vmem:[#allocation29_spill] sm:$0xff] %v10505_v57 }
 0x609   : > { %v10507_v43 = vpop.f32.mrf.mxu0 }
 0x60a   : > { %11635 = vst [vmem:[#allocation30_spill] sm:$0xff] %v10507_v43 }
 0x60b   : > { %v3893_v45 = vpop.f32.mrf.mxu2  ;;  %v3982_v58 = vpop.f32.mrf.mxu3 }
 0x60c   : > { %v10509_v8 = vadd.f32 %v3982_v58, %v3893_v45  ;;  %v7419_v45 = vld [vmem:[%s11568_s14 + $0x4] sm:$0xf0] }
 0x60d   : > { %v6939_v58 = vor.u32 %v7419_v45, %v6938_v46  ;;  %v7424_v46 = vld [vmem:[%s11568_s14 + $0x34] sm:$0xf]  ;;  %v6964_v45 = vld [vmem:[%s11568_s14 + $0x38] sm:$0xf0] }
 0x60e   : > { %11636 = vst [vmem:[#allocation31_spill] sm:$0xff] %v10509_v8  ;;  %v4163_v49 = vpop.f32.mrf.mxu1  ;;  %v11641_v8 = vld [vmem:[#allocation11_spill] sm:$0xff] }
 0x60f   : > { %4730 = vmatpush.bf16.msra.mxu0 %v6939_v58  ;;  %v6967_v58 = vor.u32 %v7424_v46, %v6964_v45  ;;  %v11645_v46 = vld [vmem:[#allocation2_spill] sm:$0xff] }
 0x610   : > { %6909 = vmatmul.msk.bf16.gmra.mxu2 %vm693_vm2, %v7826_v25  ;;  %6926 = vmatmul.msk.bf16.gmra.mxu3 %vm693_vm2, %v11637_v12  ;;  %v7002_v25 = vld [vmem:[%s11568_s14 + $0x80] sm:$0xf] }
 0x611   : > { %v4074_v44 = vpop.f32.mrf.mxu0  ;;  %4905 = vmatpush.bf16.msra.mxu2 %v6967_v58 }
 0x612   : > { %v10515_v3 = vadd.f32 %v4163_v49, %v4074_v44  ;;  %v7435_v49 = vld [vmem:[%s11568_s14 + $0x84] sm:$0xf0] }
 0x613   : > { %v3896_v19 = vpop.f32.mrf.mxu2  ;;  %v3985_v7 = vpop.f32.mrf.mxu3  ;;  %v7003_v44 = vor.u32 %v7435_v49, %v7002_v25 }
 0x614   : > { %11638 = vst [vmem:[#allocation9_spill] sm:$0xff] %v10515_v3  ;;  %v10517_v57 = vadd.f32 %v3985_v7, %v3896_v19 }
 0x615   : > { %4819 = vmatpush.bf16.msra.mxu1 %v7003_v44 }
 0x616   : > { %11639 = vst [vmem:[#allocation32_spill] sm:$0xff] %v10517_v57  ;;  %v10545_v44 = vpop.f32.mrf.mxu1 }
 0x617   : > { %11643 = vst [vmem:[#allocation34_spill] sm:$0xff] %v10545_v44 }
 0x61b   : > { %v3898_v19 = vpop.f32.mrf.mxu2  ;;  %v3987_v7 = vpop.f32.mrf.mxu3 }
 0x61c   : > { %v10531_v57 = vadd.f32 %v3987_v7, %v3898_v19  ;;  %v7028_v7 = vld [vmem:[%s11568_s14 + $0xb8] sm:$0xf0] }
 0x61e   : > { %11640 = vst [vmem:[#allocation33_spill] sm:$0xff] %v10531_v57  ;;  %v4168_v45 = vpop.f32.mrf.mxu1 }
 0x620   : > { %6910 = vmatmul.msk.bf16.gmra.mxu2 %vm693_vm2, %v11637_v12  ;;  %6927 = vmatmul.msk.bf16.gmra.mxu3 %vm693_vm2, %v11641_v8  ;;  %v7440_v12 = vld [vmem:[%s11568_s14 + $0xb4] sm:$0xf] }
 0x621   : > { %v7031_v57 = vor.u32 %v7440_v12, %v7028_v7  ;;  %v4359_v12 = vld [vmem:[%s11567_s13] sm:$0x3] }
 0x623   : > { %v3901_v25 = vpop.f32.mrf.mxu2  ;;  %v3990_v49 = vpop.f32.mrf.mxu3  ;;  %4994 = vmatpush.bf16.msrb.mxu3 %v7031_v57  ;;  %v10565_v57 = vperm.slane %v4359_v12, 1 }
 0x624   : > { %v10543_v19 = vadd.f32 %v3990_v49, %v3901_v25 }
 0x626   : > { %11642 = vst [vmem:[#allocation11_spill] sm:$0xff] %v10543_v19 }
 0x62b   : > { %v3903_v3 = vpop.f32.mrf.mxu2  ;;  %v3992_v43 = vpop.f32.mrf.mxu3 }
 0x62c   : > { %v10553_v15 = vadd.f32 %v3992_v43, %v3903_v3  ;;  %v7122_v3 = vld [vmem:[%s11570_s16 + $0x70] sm:$0xf]  ;;  %v7465_v43 = vld [vmem:[%s11570_s16 + $0x74] sm:$0xf0] }
 0x62e   : > { %11644 = vst [vmem:[#allocation35_spill] sm:$0xff] %v10553_v15 }
 0x630   : > { %6911 = vmatmul.msk.bf16.gmra.mxu2 %vm693_vm2, %v11641_v8  ;;  %6928 = vmatmul.msk.bf16.gmra.mxu3 %vm693_vm2, %v11645_v46  ;;  %v7123_v8 = vor.u32 %v7465_v43, %v7122_v3 }
 0x632   : > { %5373 = vmatpush.bf16.msrb.mxu0 %v7123_v8  ;;  %v10598_v8 = vperm.slane %v4359_v12, 0 }
 0x633   : > { %v4079_v25 = vpop.f32.mrf.mxu2  ;;  %v4279_v49 = vpop.f32.mrf.mxu3 }
 0x634   : > { %v10559_v58 = vadd.f32 %v4168_v45, %v4079_v25  ;;  %v4280_v7 = vadd.f32 %v4279_v49, %v10165_v42  ;;  %v7186_v45 = vld [vmem:[%s11570_s16 + $0xf0] sm:$0xf]  ;;  %v7481_v25 = vld [vmem:[%s11570_s16 + $0xf4] sm:$0xf0] }
 0x635   : > { %v7187_v42 = vor.u32 %v7481_v25, %v7186_v45  ;;  %v7422_v45 = vld [vmem:[%s11568_s14 + $0x24] sm:$0xf] }
 0x636   : > { %11646 = vst [vmem:[#allocation2_spill] sm:$0xff] %v10559_v58  ;;  %v4366_v19 = vadd.f32 %v10565_v57, %v4280_v7  ;;  %v6956_v7 = vld [vmem:[%s11568_s14 + $0x28] sm:$0xf0] }
 0x637   : > { %5462 = vmatpush.bf16.msrb.mxu1 %v7187_v42  ;;  %v7438_v42 = vld [vmem:[%s11568_s14 + $0xa4] sm:$0xf] }
 0x638   : > { %v4430_v43 = vmax.f32 %v4366_v19, 0.0 }
 0x63b   : > { %v10579_v49 = vpop.f32.mrf.mxu2  ;;  %v4281_v15 = vpop.f32.mrf.mxu3 }
 0x63c   : > { %11647 = vst [vmem:[#allocation36_spill] sm:$0xff] %v10579_v49  ;;  %v4282_v58 = vadd.f32 %v4281_v15, %v10182_v59  ;;  %v6959_v59 = vor.u32 %v7422_v45, %v6956_v7 }
 0x63e   : > { %v4368_v3 = vadd.f32 %v10565_v57, %v4282_v58  ;;  %4906 = vmatpush.bf16.msra.mxu2 %v6959_v59 }
 0x640   : > { %v4432_v44 = vmax.f32 %v4368_v3, 0.0  ;;  %6912 = vmatmul.msk.bf16.gmra.mxu2 %vm693_vm2, %v11645_v46  ;;  %6929 = vmatmul.msk.bf16.gmra.mxu3 %vm693_vm2, %v11648_v62 }
 0x642   : > { %v10594_v15 = vpack.c.bf16 %v4432_v44, %v4430_v43  ;;  %v7020_v44 = vld [vmem:[%s11568_s14 + $0xa8] sm:$0xf0] }
 0x643   : > { %v4190_v58 = vpop.f32.mrf.mxu2  ;;  %v4284_v19 = vpop.f32.mrf.mxu3  ;;  %v7023_v3 = vor.u32 %v7438_v42, %v7020_v44  ;;  %v11649_v42 = vld [vmem:[#allocation4_spill] sm:$0xff] }
 0x644   : > { %4820 = vmatmul.bf16.vlgmr.msra.gmra.mxu1 %v10594_v15  ;;  %v4191_v46 = vadd.f32 %v4190_v58, %v10171_v20  ;;  %v4285_v25 = vadd.f32 %v4284_v19, %v10189_v38 }
 0x645   : > { %4995 = vmatpush.bf16.msrb.mxu3 %v7023_v3 }
 0x646   : > { %v4365_v7 = vadd.f32 %v10598_v8, %v4191_v46  ;;  %v4370_v20 = vadd.f32 %v10565_v57, %v4285_v25 }
 0x648   : > { %v4429_v19 = vmax.f32 %v4365_v7, 0.0  ;;  %v4434_v49 = vmax.f32 %v4370_v20, 0.0 }
 0x64b   : > { %v4192_v43 = vpop.f32.mrf.mxu2  ;;  %v4286_v45 = vpop.f32.mrf.mxu3 }
 0x64c   : > { %v4193_v12 = vadd.f32 %v4192_v43, %v10184_v54  ;;  %v4287_v38 = vadd.f32 %v4286_v45, %v10204_v63  ;;  %v7479_v43 = vld [vmem:[%s11570_s16 + $0xe4] sm:$0xf0] }
 0x64e   : > { %v4367_v59 = vadd.f32 %v10598_v8, %v4193_v12  ;;  %v4372_v58 = vadd.f32 %v10565_v57, %v4287_v38 }
 0x650   : > { %v4431_v34 = vmax.f32 %v4367_v59, 0.0  ;;  %v4436_v37 = vmax.f32 %v4372_v58, 0.0  ;;  %6913 = vmatmul.msk.bf16.gmra.mxu2 %vm693_vm2, %v11648_v62  ;;  %6930 = vmatmul.msk.bf16.gmra.mxu3 %vm693_vm2, %v11649_v42  ;;  %v7114_v62 = vld [vmem:[%s11570_s16 + $0x60] sm:$0xf] }
 0x652   : > { %v10617_v46 = vpack.c.bf16 %v4431_v34, %v4429_v19  ;;  %v10619_v25 = vpack.c.bf16 %v4436_v37, %v4434_v49  ;;  %v7463_v34 = vld [vmem:[%s11570_s16 + $0x64] sm:$0xf0]  ;;  %v7178_v49 = vld [vmem:[%s11570_s16 + $0xe0] sm:$0xf] }
 0x653   : > { %v4195_v54 = vpop.f32.mrf.mxu2  ;;  %v4289_v63 = vpop.f32.mrf.mxu3  ;;  %v7115_v37 = vor.u32 %v7463_v34, %v7114_v62 }
 0x654   : > { %4731 = vmatmul.bf16.vlgmr.msra.gmra.mxu0 %v10617_v46  ;;  %4825 = vmatmul.bf16.gmra.mxu1 %v10619_v25  ;;  %v4196_v44 = vadd.f32 %v4195_v54, %v10193_v55  ;;  %v4290_v3 = vadd.f32 %v4289_v63, %v10211_v61  ;;  %v7179_v55 = vor.u32 %v7479_v43, %v7178_v49 }
 0x655   : > { %5374 = vmatpush.bf16.msrb.mxu0 %v7115_v37 }
 0x656   : > { %v4369_v61 = vadd.f32 %v10598_v8, %v4196_v44  ;;  %v4374_v45 = vadd.f32 %v10565_v57, %v4290_v3  ;;  %5463 = vmatpush.bf16.msrb.mxu1 %v7179_v55  ;;  %v11650_v44 = vld [vmem:[#allocation5_spill] sm:$0xff] }
 0x658   : > { %v4433_v19 = vmax.f32 %v4369_v61, 0.0  ;;  %v4438_v54 = vmax.f32 %v4374_v45, 0.0  ;;  %v7436_v61 = vld [vmem:[%s11568_s14 + $0x94] sm:$0xf]  ;;  %v7012_v45 = vld [vmem:[%s11568_s14 + $0x98] sm:$0xf0] }
 0x65b   : > { %v4197_v7 = vpop.f32.mrf.mxu2  ;;  %v4291_v20 = vpop.f32.mrf.mxu3 }
 0x65c   : > { %v4198_v12 = vadd.f32 %v4197_v7, %v10206_v26  ;;  %v4292_v38 = vadd.f32 %v4291_v20, %v10226_v41  ;;  %v7420_v26 = vld [vmem:[%s11568_s14 + $0x14] sm:$0xf]  ;;  %v6948_v41 = vld [vmem:[%s11568_s14 + $0x18] sm:$0xf0]  ;;  %v7015_v7 = vor.u32 %v7436_v61, %v7012_v45  ;;  %v4111_v20 = vadd.f32 %v10247_v18, %v10250_v1  ;;  %v11651_v18 = vld [vmem:[#allocation6_spill] sm:$0xff] }
 0x65d   : > { %v6951_v3 = vor.u32 %v7420_v26, %v6948_v41  ;;  %v7170_v45 = vld [vmem:[%s11570_s16 + $0xd0] sm:$0xf] }
 0x65e   : > { %v4371_v59 = vadd.f32 %v10598_v8, %v4198_v12  ;;  %v4376_v58 = vadd.f32 %v10565_v57, %v4292_v38  ;;  %4996 = vmatpush.bf16.msrb.mxu3 %v7015_v7  ;;  %v7477_v7 = vld [vmem:[%s11570_s16 + $0xd4] sm:$0xf0] }
 0x65f   : > { %4907 = vmatpush.bf16.msra.mxu2 %v6951_v3 }
 0x660   : > { %v4435_v63 = vmax.f32 %v4371_v59, 0.0  ;;  %v4440_v62 = vmax.f32 %v4376_v58, 0.0  ;;  %6914 = vmatmul.msk.bf16.gmra.mxu2 %vm693_vm2, %v11649_v42  ;;  %6931 = vmatmul.msk.bf16.gmra.mxu3 %vm693_vm2, %v11650_v44 }
 0x662   : > { %v10653_v34 = vpack.c.bf16 %v4435_v63, %v4433_v19  ;;  %v10655_v37 = vpack.c.bf16 %v4440_v62, %v4438_v54 }
 0x663   : > { %v4200_v49 = vpop.f32.mrf.mxu2  ;;  %v4294_v43 = vpop.f32.mrf.mxu3 }
 0x664   : > { %4736 = vmatmul.bf16.gmra.mxu0 %v10653_v34  ;;  %4830 = vmatmul.bf16.gmra.mxu1 %v10655_v37  ;;  %v4201_v42 = vadd.f32 %v4200_v49, %v10215_v10  ;;  %v4295_v55 = vadd.f32 %v4294_v43, %v10233_v48 }
 0x666   : > { %v4373_v59 = vadd.f32 %v10598_v8, %v4201_v42  ;;  %v4378_v10 = vadd.f32 %v10565_v57, %v4295_v55  ;;  %v7461_v55 = vld [vmem:[%s11570_s16 + $0x54] sm:$0xf0] }
 0x668   : > { %v4437_v63 = vmax.f32 %v4373_v59, 0.0  ;;  %v4442_v62 = vmax.f32 %v4378_v10, 0.0 }
 0x66b   : > { %v4202_v12 = vpop.f32.mrf.mxu2  ;;  %v4296_v38 = vpop.f32.mrf.mxu3 }
 0x66c   : > { %v4203_v48 = vadd.f32 %v4202_v12, %v10228_v23  ;;  %v4297_v58 = vadd.f32 %v4296_v38, %v4111_v20 }
 0x66e   : > { %v4375_v19 = vadd.f32 %v10598_v8, %v4203_v48  ;;  %v4380_v54 = vadd.f32 %v10565_v57, %v4297_v58 }
 0x670   : > { %v4439_v26 = vmax.f32 %v4375_v19, 0.0  ;;  %v4444_v41 = vmax.f32 %v4380_v54, 0.0  ;;  %6915 = vmatmul.msk.bf16.gmra.mxu2 %vm693_vm2, %v11650_v44  ;;  %6932 = vmatmul.msk.bf16.gmra.mxu3 %vm693_vm2, %v11651_v18  ;;  %v7106_v44 = vld [vmem:[%s11570_s16 + $0x50] sm:$0xf] }
 0x671   : > { %v7107_v61 = vor.u32 %v7461_v55, %v7106_v44  ;;  %v7434_v55 = vld [vmem:[%s11568_s14 + $0x84] sm:$0xf] }
 0x672   : > { %v10678_v1 = vpack.c.bf16 %v4439_v26, %v4437_v63  ;;  %v10680_v3 = vpack.c.bf16 %v4444_v41, %v4442_v62  ;;  %v6940_v26 = vld [vmem:[%s11568_s14 + $0x8] sm:$0xf0] }
 0x673   : > { %v4205_v23 = vpop.f32.mrf.mxu2  ;;  %v4299_v49 = vpop.f32.mrf.mxu3  ;;  %5375 = vmatpush.bf16.msrb.mxu0 %v7107_v61  ;;  %v7004_v61 = vld [vmem:[%s11568_s14 + $0x88] sm:$0xf0] }
 0x674   : > { %4741 = vmatmul.bf16.gmra.mxu0 %v10678_v1  ;;  %4835 = vmatmul.bf16.gmra.mxu1 %v10680_v3  ;;  %v4206_v43 = vadd.f32 %v4205_v23, %v10243_v17  ;;  %v4300_v42 = vadd.f32 %v4299_v49, %v10257_v16  ;;  %v4116_v17 = vadd.f32 %v10265_v9, %v10274_v31  ;;  %v11652_v31 = vld [vmem:[#allocation7_spill] sm:$0xff] }
 0x675   : > { %v7171_v16 = vor.u32 %v7477_v7, %v7170_v45  ;;  %v7007_v45 = vor.u32 %v7434_v55, %v7004_v61  ;;  %v4121_v7 = vadd.f32 %v10295_v60, %v10298_v52  ;;  %v11653_v60 = vld [vmem:[#allocation8_spill] sm:$0xff] }
 0x676   : > { %v4377_v20 = vadd.f32 %v10598_v8, %v4206_v43  ;;  %v4382_v12 = vadd.f32 %v10565_v57, %v4300_v42 }
 0x677   : > { %5464 = vmatpush.bf16.msrb.mxu1 %v7171_v16  ;;  %4997 = vmatpush.bf16.msrb.mxu3 %v7007_v45 }
 0x678   : > { %v4441_v54 = vmax.f32 %v4377_v20, 0.0  ;;  %v4446_v63 = vmax.f32 %v4382_v12, 0.0 }
 0x67b   : > { %v4207_v38 = vpop.f32.mrf.mxu2  ;;  %v4301_v59 = vpop.f32.mrf.mxu3 }
 0x67c   : > { %v4208_v10 = vadd.f32 %v4207_v38, %v10252_v40  ;;  %v4302_v48 = vadd.f32 %v4301_v59, %v4116_v17  ;;  %v7418_v40 = vld [vmem:[%s11568_s14 + $0x4] sm:$0xf] }
 0x67d   : > { %v6943_v41 = vor.u32 %v7418_v40, %v6940_v26  ;;  %v7459_v40 = vld [vmem:[%s11570_s16 + $0x44] sm:$0xf0] }
 0x67e   : > { %v4379_v58 = vadd.f32 %v10598_v8, %v4208_v10  ;;  %v4384_v19 = vadd.f32 %v10565_v57, %v4302_v48 }
 0x67f   : > { %4908 = vmatpush.bf16.msra.mxu2 %v6943_v41  ;;  %v7162_v41 = vld [vmem:[%s11570_s16 + $0xc0] sm:$0xf] }
 0x680   : > { %v4443_v62 = vmax.f32 %v4379_v58, 0.0  ;;  %v4448_v9 = vmax.f32 %v4384_v19, 0.0  ;;  %6916 = vmatmul.msk.bf16.gmra.mxu2 %vm693_vm2, %v11651_v18  ;;  %6933 = vmatmul.msk.bf16.gmra.mxu3 %vm693_vm2, %v11652_v31 }
 0x682   : > { %v10715_v23 = vpack.c.bf16 %v4443_v62, %v4441_v54  ;;  %v10717_v49 = vpack.c.bf16 %v4448_v9, %v4446_v63 }
 0x683   : > { %v4210_v43 = vpop.f32.mrf.mxu2  ;;  %v4304_v42 = vpop.f32.mrf.mxu3 }
 0x684   : > { %4746 = vmatmul.bf16.gmra.mxu0 %v10715_v23  ;;  %4840 = vmatmul.bf16.gmra.mxu1 %v10717_v49  ;;  %v4211_v18 = vadd.f32 %v4210_v43, %v10261_v56  ;;  %v4305_v44 = vadd.f32 %v4304_v42, %v10287_v27  ;;  %v7475_v43 = vld [vmem:[%s11570_s16 + $0xc4] sm:$0xf0] }
 0x686   : > { %v4381_v20 = vadd.f32 %v10598_v8, %v4211_v18  ;;  %v4386_v56 = vadd.f32 %v10565_v57, %v4305_v44 }
 0x688   : > { %v4445_v10 = vmax.f32 %v4381_v20, 0.0  ;;  %v4450_v48 = vmax.f32 %v4386_v56, 0.0 }
 0x68b   : > { %v4212_v17 = vpop.f32.mrf.mxu2  ;;  %v4306_v16 = vpop.f32.mrf.mxu3 }
 0x68c   : > { %v4213_v27 = vadd.f32 %v4212_v17, %v10276_v5  ;;  %v4307_v12 = vadd.f32 %v4306_v16, %v4121_v7 }
 0x68e   : > { %v4383_v38 = vadd.f32 %v10598_v8, %v4213_v27  ;;  %v4388_v59 = vadd.f32 %v10565_v57, %v4307_v12  ;;  %v7124_v27 = vld [vmem:[%s11570_s16 + $0x78] sm:$0xf0] }
 0x690   : > { %v4447_v58 = vmax.f32 %v4383_v38, 0.0  ;;  %v4452_v19 = vmax.f32 %v4388_v59, 0.0  ;;  %6917 = vmatmul.msk.bf16.gmra.mxu2 %vm693_vm2, %v11652_v31  ;;  %6934 = vmatmul.msk.bf16.gmra.mxu3 %vm693_vm2, %v11653_v60  ;;  %v7098_v31 = vld [vmem:[%s11570_s16 + $0x40] sm:$0xf] }
 0x691   : > { %v7099_v26 = vor.u32 %v7459_v40, %v7098_v31 }
 0x692   : > { %v10740_v52 = vpack.c.bf16 %v4447_v58, %v4445_v10  ;;  %v10742_v54 = vpack.c.bf16 %v4452_v19, %v4450_v48 }
 0x693   : > { %v4215_v5 = vpop.f32.mrf.mxu2  ;;  %v4309_v63 = vpop.f32.mrf.mxu3  ;;  %5376 = vmatpush.bf16.msrb.mxu0 %v7099_v26 }
 0x694   : > { %4751 = vmatmul.bf16.gmra.mxu0 %v10740_v52  ;;  %4845 = vmatmul.bf16.gmra.mxu1 %v10742_v54  ;;  %v4216_v62 = vadd.f32 %v4215_v5, %v10291_v36  ;;  %v4310_v9 = vadd.f32 %v4309_v63, %v10306_v39  ;;  %v4126_v36 = vadd.f32 %v10314_v21, %v10323_v51  ;;  %v11654_v51 = vld [vmem:[#allocation10_spill] sm:$0xff]  ;;  %v7188_v5 = vld [vmem:[%s11570_s16 + $0xf8] sm:$0xf0] }
 0x695   : > { %v7163_v39 = vor.u32 %v7475_v43, %v7162_v41 }
 0x696   : > { %v4385_v44 = vadd.f32 %v10598_v8, %v4216_v62  ;;  %v4390_v55 = vadd.f32 %v10565_v57, %v4310_v9  ;;  %v4131_v62 = vadd.f32 %v10344_v30, %v10346_v32 }
 0x697   : > { %5465 = vmatpush.bf16.msrb.mxu1 %v7163_v39 }
 0x698   : > { %v4449_v16 = vmax.f32 %v4385_v44, 0.0  ;;  %v4454_v20 = vmax.f32 %v4390_v55, 0.0 }
 0x69b   : > { %v4217_v42 = vpop.f32.mrf.mxu2  ;;  %v4311_v18 = vpop.f32.mrf.mxu3 }
 0x69c   : > { %v4218_v61 = vadd.f32 %v4217_v42, %v10300_v35  ;;  %v4312_v45 = vadd.f32 %v4311_v18, %v4126_v36  ;;  %v7464_v35 = vld [vmem:[%s11570_s16 + $0x74] sm:$0xf] }
 0x69d   : > { %v7127_v59 = vor.u32 %v7464_v35, %v7124_v27 }
 0x69e   : > { %v4387_v7 = vadd.f32 %v10598_v8, %v4218_v61  ;;  %v4392_v17 = vadd.f32 %v10565_v57, %v4312_v45  ;;  %v7090_v45 = vld [vmem:[%s11570_s16 + $0x30] sm:$0xf] }
 0x69f   : > { %5551 = vmatpush.bf16.msrb.mxu2 %v7127_v59 }
 0x6a0   : > { %v4451_v56 = vmax.f32 %v4387_v7, 0.0  ;;  %v4456_v21 = vmax.f32 %v4392_v17, 0.0  ;;  %6918 = vmatmul.msk.bf16.gmra.mxu2 %vm693_vm2, %v11653_v60  ;;  %6935 = vmatmul.msk.bf16.gmra.mxu3 %vm693_vm2, %v11654_v51  ;;  %v7480_v60 = vld [vmem:[%s11570_s16 + $0xf4] sm:$0xf]  ;;  %v10815_v7 = vpop.f32.mrf.mxu1 }
 0x6a1   : > { %v7191_v63 = vor.u32 %v7480_v60, %v7188_v5 }
 0x6a2   : > { %v10777_v12 = vpack.c.bf16 %v4451_v56, %v4449_v16  ;;  %v10779_v38 = vpack.c.bf16 %v4456_v21, %v4454_v20  ;;  %v7154_v16 = vld [vmem:[%s11570_s16 + $0xb0] sm:$0xf] }
 0x6a3   : > { %v4220_v10 = vpop.f32.mrf.mxu2  ;;  %v4314_v48 = vpop.f32.mrf.mxu3  ;;  %5640 = vmatpush.bf16.msra.mxu3 %v7191_v63 }
 0x6a4   : > { %4756 = vmatmul.bf16.gmra.mxu0 %v10777_v12  ;;  %4850 = vmatmul.bf16.gmra.mxu1 %v10779_v38  ;;  %v4221_v58 = vadd.f32 %v4220_v10, %v10310_v47  ;;  %v4315_v19 = vadd.f32 %v4314_v48, %v10334_v28 }
 0x6a6   : > { %v4389_v40 = vadd.f32 %v10598_v8, %v4221_v58  ;;  %v4394_v47 = vadd.f32 %v10565_v57, %v4315_v19 }
 0x6a8   : > { %v4453_v36 = vmax.f32 %v4389_v40, 0.0  ;;  %v4458_v39 = vmax.f32 %v4394_v47, 0.0  ;;  %v7478_v47 = vld [vmem:[%s11570_s16 + $0xe4] sm:$0xf] }
 0x6ab   : > { %v4222_v9 = vpop.f32.mrf.mxu2  ;;  %v4316_v31 = vpop.f32.mrf.mxu3 }
 0x6ac   : > { %v4223_v28 = vadd.f32 %v4222_v9, %v10325_v53  ;;  %v4317_v26 = vadd.f32 %v4316_v31, %v4131_v62  ;;  %v7462_v9 = vld [vmem:[%s11570_s16 + $0x64] sm:$0xf] }
 0x6ae   : > { %v4391_v41 = vadd.f32 %v10598_v8, %v4223_v28  ;;  %v4396_v43 = vadd.f32 %v10565_v57, %v4317_v26  ;;  %v7180_v28 = vld [vmem:[%s11570_s16 + $0xe8] sm:$0xf0]  ;;  %v10852_v26 = vpop.f32.mrf.mxu0 }
 0x6b0   : > { %v4455_v42 = vmax.f32 %v4391_v41, 0.0  ;;  %v4460_v18 = vmax.f32 %v4396_v43, 0.0  ;;  %6919 = vmatmul.msk.bf16.gmra.mxu2 %vm693_vm2, %v11654_v51  ;;  %4998 = vmatmul.bf16.vlgmr.msrb.gmra.mxu3 %v10594_v15  ;;  %v7457_v15 = vld [vmem:[%s11570_s16 + $0x34] sm:$0xf0]  ;;  %v7183_v43 = vor.u32 %v7478_v47, %v7180_v28 }
 0x6b1   : > { %v7091_v17 = vor.u32 %v7457_v15, %v7090_v45 }
 0x6b2   : > { %v10801_v30 = vpack.c.bf16 %v4455_v42, %v4453_v36  ;;  %v10803_v32 = vpack.c.bf16 %v4460_v18, %v4458_v39  ;;  %v4141_v36 = vadd.f32 %v10401_v50, %v10403_v29  ;;  %5641 = vmatpush.bf16.msra.mxu3 %v7183_v43 }
 0x6b3   : > { %v4225_v44 = vpop.f32.mrf.mxu2  ;;  %v4319_v53 = vpop.f32.mrf.mxu3  ;;  %5377 = vmatpush.bf16.msrb.mxu0 %v7091_v17 }
 0x6b4   : > { %4761 = vmatmul.bf16.gmra.mxu0 %v10801_v30  ;;  %4855 = vmatmul.bf16.gmra.mxu1 %v10803_v32  ;;  %v4226_v55 = vadd.f32 %v4225_v44, %v10336_v11  ;;  %v4320_v61 = vadd.f32 %v4319_v53, %v10359_v6  ;;  %v7473_v11 = vld [vmem:[%s11570_s16 + $0xb4] sm:$0xf0]  ;;  %v4136_v6 = vadd.f32 %v10363_v22, %v10371_v14 }
 0x6b5   : > { %v7155_v20 = vor.u32 %v7473_v11, %v7154_v16 }
 0x6b6   : > { %v4393_v51 = vadd.f32 %v10598_v8, %v4226_v55  ;;  %v4398_v35 = vadd.f32 %v10565_v57, %v4320_v61 }
 0x6b7   : > { %5466 = vmatpush.bf16.msrb.mxu1 %v7155_v20 }
 0x6b8   : > { %v4457_v58 = vmax.f32 %v4393_v51, 0.0  ;;  %v4462_v19 = vmax.f32 %v4398_v35, 0.0 }
 0x6bb   : > { %v4227_v56 = vpop.f32.mrf.mxu2  ;;  %v4321_v21 = vpop.f32.mrf.mxu3 }
 0x6bc   : > { %v4228_v27 = vadd.f32 %v4227_v56, %v10354_v2  ;;  %v4322_v59 = vadd.f32 %v4321_v21, %v4136_v6 }
 0x6be   : > { %v4395_v10 = vadd.f32 %v10598_v8, %v4228_v27  ;;  %v4400_v48 = vadd.f32 %v10565_v57, %v4322_v59  ;;  %v7455_v27 = vld [vmem:[%s11570_s16 + $0x24] sm:$0xf0] }
 0x6c0   : > { %v4459_v60 = vmax.f32 %v4395_v10, 0.0  ;;  %v4464_v22 = vmax.f32 %v4400_v48, 0.0  ;;  %4909 = vmatmul.bf16.vlgmr.msra.gmra.mxu2 %v10617_v46  ;;  %5003 = vmatmul.bf16.gmra.mxu3 %v10619_v25  ;;  %v7116_v46 = vld [vmem:[%s11570_s16 + $0x68] sm:$0xf0] }
 0x6c1   : > { %v4821_v14 = vpop.f32.mrf.mxu1  ;;  %v7119_v25 = vor.u32 %v7462_v9, %v7116_v46 }
 0x6c2   : > { %v10832_v5 = vpack.c.bf16 %v4459_v60, %v4457_v58  ;;  %v10834_v63 = vpack.c.bf16 %v4464_v22, %v4462_v19  ;;  %v7146_v58 = vld [vmem:[%s11570_s16 + $0xa0] sm:$0xf]  ;;  %v11656_v19 = vld [vmem:[#allocation14_spill] sm:$0xff] }
 0x6c3   : > { %v4230_v2 = vpop.f32.mrf.mxu2  ;;  %v4324_v62 = vpop.f32.mrf.mxu3  ;;  %5552 = vmatpush.bf16.msrb.mxu2 %v7119_v25 }
 0x6c4   : > { %4766 = vmatmul.bf16.gmra.mxu0 %v10832_v5  ;;  %4860 = vmatmul.bf16.gmra.mxu1 %v10834_v63  ;;  %v4231_v31 = vadd.f32 %v4230_v2, %v10361_v13  ;;  %v4325_v40 = vadd.f32 %v4324_v62, %v10385_v4  ;;  %v10859_v4 = vld [vmem:[%s11569_s15] sm:$0x3] }
 0x6c5   : > { %v10867_v50 = vperm.slane %v10859_v4, 0 }
 0x6c6   : > { %v4397_v42 = vadd.f32 %v10598_v8, %v4231_v31  ;;  %v4402_v18 = vadd.f32 %v10565_v57, %v4325_v40  ;;  %v11657_v31 = vld [vmem:[#allocation12_spill] sm:$0xff] }
 0x6c8   : > { %v4461_v29 = vmax.f32 %v4397_v42, 0.0  ;;  %v4466_v45 = vmax.f32 %v4402_v18, 0.0 }
 0x6c9   : > { %v4823_v41 = vpop.f32.mrf.mxu1 }
 0x6cb   : > { %v4232_v39 = vpop.f32.mrf.mxu2  ;;  %v4326_v13 = vpop.f32.mrf.mxu3 }
 0x6cc   : > { %v4233_v44 = vadd.f32 %v4232_v39, %v10373_v33  ;;  %v4327_v53 = vadd.f32 %v4326_v13, %v4141_v36 }
 0x6ce   : > { %v4399_v55 = vadd.f32 %v10598_v8, %v4233_v44  ;;  %v4404_v61 = vadd.f32 %v10565_v57, %v4327_v53 }
 0x6d0   : > { %v4463_v15 = vmax.f32 %v4399_v55, 0.0  ;;  %v4468_v17 = vmax.f32 %v4404_v61, 0.0  ;;  %4914 = vmatmul.bf16.gmra.mxu2 %v10653_v34  ;;  %5008 = vmatmul.bf16.gmra.mxu3 %v10655_v37  ;;  %v7082_v37 = vld [vmem:[%s11570_s16 + $0x20] sm:$0xf] }
 0x6d1   : > { %v4732_v16 = vpop.f32.mrf.mxu0  ;;  %v4826_v11 = vpop.f32.mrf.mxu1  ;;  %v7083_v48 = vor.u32 %v7455_v27, %v7082_v37 }
 0x6d2   : > { %v4733_v33 = vadd.f32 %v4732_v16, %v10867_v50  ;;  %v10872_v6 = vpack.c.bf16 %v4463_v15, %v4461_v29  ;;  %v10874_v20 = vpack.c.bf16 %v4468_v17, %v4466_v45 }
 0x6d3   : > { %v4235_v56 = vpop.f32.mrf.mxu2  ;;  %v4329_v21 = vpop.f32.mrf.mxu3  ;;  %5378 = vmatpush.bf16.msrb.mxu0 %v7083_v48  ;;  %v11660_v48 = vld [vmem:[#allocation20_spill] sm:$0xff] }
 0x6d4   : > { %v4822_v51 = vadd.f32 %v4821_v14, %v4733_v33  ;;  %4771 = vmatmul.bf16.gmra.mxu0 %v10872_v6  ;;  %4865 = vmatmul.bf16.gmra.mxu1 %v10874_v20  ;;  %v4236_v35 = vadd.f32 %v4235_v56, %v10393_v24  ;;  %v4330_v34 = vadd.f32 %v4329_v21, %v10411_v0  ;;  %v7471_v24 = vld [vmem:[%s11570_s16 + $0xa4] sm:$0xf0]  ;;  %v11655_v0 = vld [vmem:[#allocation15_spill] sm:$0xff]  ;;  %v11658_v33 = vld [vmem:[#allocation13_spill] sm:$0xff] }
 0x6d5   : > { %v4146_v60 = vadd.f32 %v11656_v19, %v11655_v0  ;;  %v7147_v14 = vor.u32 %v7471_v24, %v7146_v58  ;;  %v11661_v58 = vld [vmem:[#allocation19_spill] sm:$0xff] }
 0x6d6   : > { %v4401_v2 = vadd.f32 %v10598_v8, %v4236_v35  ;;  %v4406_v46 = vadd.f32 %v10565_v57, %v4330_v34  ;;  %v5079_v28 = vmax.f32 %v4822_v51, 0.0  ;;  %v11659_v51 = vld [vmem:[#allocation17_spill] sm:$0xff]  ;;  %v7172_v34 = vld [vmem:[%s11570_s16 + $0xd8] sm:$0xf0]  ;;  %v4151_v24 = vadd.f32 %v11661_v58, %v11660_v48 }
 0x6d7   : > { %5467 = vmatpush.bf16.msrb.mxu1 %v7147_v14 }
 0x6d8   : > { %v4465_v13 = vmax.f32 %v4401_v2, 0.0  ;;  %v4470_v42 = vmax.f32 %v4406_v46, 0.0 }
 0x6d9   : > { %v4734_v59 = vpop.f32.mrf.mxu0  ;;  %v4828_v10 = vpop.f32.mrf.mxu1 }
 0x6da   : > { %v4735_v22 = vadd.f32 %v4734_v59, %v10867_v50 }
 0x6db   : > { %v4237_v62 = vpop.f32.mrf.mxu2  ;;  %v4331_v9 = vpop.f32.mrf.mxu3 }
 0x6dc   : > { %v4824_v25 = vadd.f32 %v4823_v41, %v4735_v22  ;;  %v4238_v40 = vadd.f32 %v4237_v62, %v11657_v31  ;;  %v4332_v47 = vadd.f32 %v4331_v9, %v4146_v60  ;;  %v11662_v62 = vld [vmem:[#allocation16_spill] sm:$0xff] }
 0x6de   : > { %v5081_v43 = vmax.f32 %v4824_v25, 0.0  ;;  %v4403_v36 = vadd.f32 %v10598_v8, %v4238_v40  ;;  %v4408_v39 = vadd.f32 %v10565_v57, %v4332_v47 }
 0x6e0   : > { %v10900_v18 = vpack.c.bf16 %v5081_v43, %v5079_v28  ;;  %v4467_v44 = vmax.f32 %v4403_v36, 0.0  ;;  %v4472_v53 = vmax.f32 %v4408_v39, 0.0  ;;  %4919 = vmatmul.bf16.gmra.mxu2 %v10678_v1  ;;  %5013 = vmatmul.bf16.gmra.mxu3 %v10680_v3  ;;  %v7460_v1 = vld [vmem:[%s11570_s16 + $0x54] sm:$0xf]  ;;  %v7108_v3 = vld [vmem:[%s11570_s16 + $0x58] sm:$0xf0] }
 0x6e1   : > { %v4737_v41 = vpop.f32.mrf.mxu0  ;;  %v4831_v55 = vpop.f32.mrf.mxu1  ;;  %v7111_v21 = vor.u32 %v7460_v1, %v7108_v3  ;;  %v7074_v3 = vld [vmem:[%s11570_s16 + $0x10] sm:$0xf] }
 0x6e2   : > { %v4738_v61 = vadd.f32 %v4737_v41, %v10867_v50  ;;  %v10905_v29 = vpack.c.bf16 %v4467_v44, %v4465_v13  ;;  %v10907_v45 = vpack.c.bf16 %v4472_v53, %v4470_v42 }
 0x6e3   : > { %v4240_v15 = vpop.f32.mrf.mxu2  ;;  %v4334_v17 = vpop.f32.mrf.mxu3  ;;  %5553 = vmatpush.bf16.msrb.mxu2 %v7111_v21 }
 0x6e4   : > { %v4827_v16 = vadd.f32 %v4826_v11, %v4738_v61  ;;  %4776 = vmatmul.bf16.gmra.mxu0 %v10905_v29  ;;  %4870 = vmatmul.bf16.gmra.mxu1 %v10907_v45  ;;  %v4241_v56 = vadd.f32 %v4240_v15, %v11658_v33  ;;  %v4335_v35 = vadd.f32 %v4334_v17, %v11659_v51  ;;  %v7476_v11 = vld [vmem:[%s11570_s16 + $0xd4] sm:$0xf]  ;;  %v7453_v33 = vld [vmem:[%s11570_s16 + $0x14] sm:$0xf0] }
 0x6e5   : > { %v7175_v59 = vor.u32 %v7476_v11, %v7172_v34  ;;  %v7075_v51 = vor.u32 %v7453_v33, %v7074_v3  ;;  %v11665_v11 = vld [vmem:[#allocation25_spill] sm:$0xff]  ;;  %v11666_v34 = vld [vmem:[#allocation24_spill] sm:$0xff]  ;;  %v7164_v33 = vld [vmem:[%s11570_s16 + $0xc8] sm:$0xf0] }
 0x6e6   : > { %v4405_v19 = vadd.f32 %v10598_v8, %v4241_v56  ;;  %v4410_v14 = vadd.f32 %v10565_v57, %v4335_v35  ;;  %v5083_v25 = vmax.f32 %v4827_v16, 0.0  ;;  %v7469_v35 = vld [vmem:[%s11570_s16 + $0x94] sm:$0xf0] }
 0x6e7   : > { %5642 = vmatpush.bf16.msra.mxu3 %v7175_v59  ;;  %5379 = vmatpush.bf16.msrb.mxu0 %v7075_v51 }
 0x6e8   : > { %v4469_v28 = vmax.f32 %v4405_v19, 0.0  ;;  %v4474_v43 = vmax.f32 %v4410_v14, 0.0 }
 0x6e9   : > { %v4739_v37 = vpop.f32.mrf.mxu0  ;;  %v4833_v27 = vpop.f32.mrf.mxu1 }
 0x6ea   : > { %v4740_v0 = vadd.f32 %v4739_v37, %v10867_v50  ;;  %v4156_v37 = vadd.f32 %v11666_v34, %v11665_v11  ;;  %v11671_v11 = vld [vmem:[#allocation29_spill] sm:$0xff] }
 0x6eb   : > { %v4242_v60 = vpop.f32.mrf.mxu2  ;;  %v4336_v22 = vpop.f32.mrf.mxu3 }
 0x6ec   : > { %v4829_v2 = vadd.f32 %v4828_v10, %v4740_v0  ;;  %v4243_v9 = vadd.f32 %v4242_v60, %v11662_v62  ;;  %v4337_v46 = vadd.f32 %v4336_v22, %v4151_v24  ;;  %v11667_v22 = vld [vmem:[#allocation21_spill] sm:$0xff] }
 0x6ee   : > { %v5085_v31 = vmax.f32 %v4829_v2, 0.0  ;;  %v4407_v40 = vadd.f32 %v10598_v8, %v4243_v9  ;;  %v4412_v47 = vadd.f32 %v10565_v57, %v4337_v46 }
 0x6f0   : > { %v4471_v36 = vmax.f32 %v4407_v40, 0.0  ;;  %v4476_v39 = vmax.f32 %v4412_v47, 0.0  ;;  %4924 = vmatmul.bf16.gmra.mxu2 %v10715_v23  ;;  %5018 = vmatmul.bf16.gmra.mxu3 %v10717_v49  ;;  %v10935_v13 = vpack.c.bf16 %v5085_v31, %v5083_v25  ;;  %v11663_v23 = vld [vmem:[#allocation18_spill] sm:$0xff] }
 0x6f1   : > { %v4742_v10 = vpop.f32.mrf.mxu0  ;;  %v4836_v42 = vpop.f32.mrf.mxu1  ;;  %v11664_v49 = vld [vmem:[#allocation22_spill] sm:$0xff] }
 0x6f2   : > { %v4743_v44 = vadd.f32 %v4742_v10, %v10867_v50  ;;  %v10938_v53 = vpack.c.bf16 %v4471_v36, %v4469_v28  ;;  %v10940_v41 = vpack.c.bf16 %v4476_v39, %v4474_v43 }
 0x6f3   : > { %v4245_v61 = vpop.f32.mrf.mxu2  ;;  %v4339_v15 = vpop.f32.mrf.mxu3 }
 0x6f4   : > { %v4832_v17 = vadd.f32 %v4831_v55, %v4743_v44  ;;  %4781 = vmatmul.bf16.gmra.mxu0 %v10938_v53  ;;  %4875 = vmatmul.bf16.gmra.mxu1 %v10940_v41  ;;  %v4246_v16 = vadd.f32 %v4245_v61, %v11663_v23  ;;  %v4340_v1 = vadd.f32 %v4339_v15, %v11664_v49  ;;  %v7138_v55 = vld [vmem:[%s11570_s16 + $0x90] sm:$0xf] }
 0x6f5   : > { %v7139_v48 = vor.u32 %v7469_v35, %v7138_v55  ;;  %v11668_v23 = vld [vmem:[#allocation23_spill] sm:$0xff]  ;;  %v11670_v35 = vld [vmem:[#allocation30_spill] sm:$0xff] }
 0x6f6   : > { %v4409_v58 = vadd.f32 %v10598_v8, %v4246_v16  ;;  %v4414_v19 = vadd.f32 %v10565_v57, %v4340_v1  ;;  %v5087_v62 = vmax.f32 %v4832_v17, 0.0  ;;  %v11669_v1 = vld [vmem:[#allocation27_spill] sm:$0xff]  ;;  %v4161_v34 = vadd.f32 %v11671_v11, %v11670_v35 }
 0x6f7   : > { %5468 = vmatpush.bf16.msrb.mxu1 %v7139_v48 }
 0x6f8   : > { %v4473_v31 = vmax.f32 %v4409_v58, 0.0  ;;  %v4478_v40 = vmax.f32 %v4414_v19, 0.0  ;;  %v11672_v19 = vld [vmem:[#allocation26_spill] sm:$0xff] }
 0x6f9   : > { %v4744_v56 = vpop.f32.mrf.mxu0  ;;  %v4838_v21 = vpop.f32.mrf.mxu1 }
 0x6fa   : > { %v4745_v59 = vadd.f32 %v4744_v56, %v10867_v50 }
 0x6fb   : > { %v4247_v24 = vpop.f32.mrf.mxu2  ;;  %v4341_v0 = vpop.f32.mrf.mxu3 }
 0x6fc   : > { %v4834_v60 = vadd.f32 %v4833_v27, %v4745_v59  ;;  %v4248_v14 = vadd.f32 %v4247_v24, %v11667_v22  ;;  %v4342_v2 = vadd.f32 %v4341_v0, %v4156_v37 }
 0x6fe   : > { %v5089_v9 = vmax.f32 %v4834_v60, 0.0  ;;  %v4411_v46 = vadd.f32 %v10598_v8, %v4248_v14  ;;  %v4416_v25 = vadd.f32 %v10565_v57, %v4342_v2 }
 0x700   : > { %v4475_v47 = vmax.f32 %v4411_v46, 0.0  ;;  %v4480_v28 = vmax.f32 %v4416_v25, 0.0  ;;  %4929 = vmatmul.bf16.gmra.mxu2 %v10740_v52  ;;  %5023 = vmatmul.bf16.gmra.mxu3 %v10742_v54  ;;  %v10968_v43 = vpack.c.bf16 %v5089_v9, %v5087_v62  ;;  %v7458_v52 = vld [vmem:[%s11570_s16 + $0x44] sm:$0xf]  ;;  %v7100_v54 = vld [vmem:[%s11570_s16 + $0x48] sm:$0xf0] }
 0x701   : > { %v4747_v27 = vpop.f32.mrf.mxu0  ;;  %v4841_v36 = vpop.f32.mrf.mxu1  ;;  %v7103_v49 = vor.u32 %v7458_v52, %v7100_v54 }
 0x702   : > { %v4748_v39 = vadd.f32 %v4747_v27, %v10867_v50  ;;  %v10971_v10 = vpack.c.bf16 %v4475_v47, %v4473_v31  ;;  %v10973_v44 = vpack.c.bf16 %v4480_v28, %v4478_v40 }
 0x703   : > { %v4250_v61 = vpop.f32.mrf.mxu2  ;;  %v4344_v15 = vpop.f32.mrf.mxu3  ;;  %5554 = vmatpush.bf16.msrb.mxu2 %v7103_v49  ;;  %v7451_v49 = vld [vmem:[%s11570_s16 + $0x4] sm:$0xf0] }
 0x704   : > { %v4837_v17 = vadd.f32 %v4836_v42, %v4748_v39  ;;  %4786 = vmatmul.bf16.gmra.mxu0 %v10971_v10  ;;  %4880 = vmatmul.bf16.gmra.mxu1 %v10973_v44  ;;  %v4251_v16 = vadd.f32 %v4250_v61, %v11668_v23  ;;  %v4345_v3 = vadd.f32 %v4344_v15, %v11669_v1  ;;  %v7474_v42 = vld [vmem:[%s11570_s16 + $0xc4] sm:$0xf] }
 0x705   : > { %v7167_v55 = vor.u32 %v7474_v42, %v7164_v33  ;;  %v7467_v33 = vld [vmem:[%s11570_s16 + $0x84] sm:$0xf0] }
 0x706   : > { %v4413_v59 = vadd.f32 %v10598_v8, %v4251_v16  ;;  %v4418_v24 = vadd.f32 %v10565_v57, %v4345_v3  ;;  %v5091_v14 = vmax.f32 %v4837_v17, 0.0  ;;  %v7066_v16 = vld [vmem:[%s11570_s16] sm:$0xf] }
 0x707   : > { %5643 = vmatpush.bf16.msra.mxu3 %v7167_v55  ;;  %v7067_v42 = vor.u32 %v7451_v49, %v7066_v16  ;;  %v7156_v49 = vld [vmem:[%s11570_s16 + $0xb8] sm:$0xf0] }
 0x708   : > { %v4477_v46 = vmax.f32 %v4413_v59, 0.0  ;;  %v4482_v25 = vmax.f32 %v4418_v24, 0.0  ;;  %v11676_v24 = vld [vmem:[#allocation31_spill] sm:$0xff] }
 0x709   : > { %v4749_v56 = vpop.f32.mrf.mxu0  ;;  %v4843_v51 = vpop.f32.mrf.mxu1  ;;  %5380 = vmatpush.bf16.msrb.mxu0 %v7067_v42 }
 0x70a   : > { %v4750_v37 = vadd.f32 %v4749_v56, %v10867_v50  ;;  %v11675_v56 = vld [vmem:[#allocation34_spill] sm:$0xff] }
 0x70b   : > { %v4252_v48 = vpop.f32.mrf.mxu2  ;;  %v4346_v58 = vpop.f32.mrf.mxu3  ;;  %v4166_v55 = vadd.f32 %v11675_v56, %v10852_v26 }
 0x70c   : > { %v4839_v0 = vadd.f32 %v4838_v21, %v4750_v37  ;;  %v4253_v60 = vadd.f32 %v4252_v48, %v11672_v19  ;;  %v4347_v22 = vadd.f32 %v4346_v58, %v4161_v34 }
 0x70e   : > { %v5093_v2 = vmax.f32 %v4839_v0, 0.0  ;;  %v4415_v62 = vadd.f32 %v10598_v8, %v4253_v60  ;;  %v4420_v9 = vadd.f32 %v10565_v57, %v4347_v22 }
 0x710   : > { %v4479_v31 = vmax.f32 %v4415_v62, 0.0  ;;  %v4484_v40 = vmax.f32 %v4420_v9, 0.0  ;;  %4934 = vmatmul.bf16.gmra.mxu2 %v10777_v12  ;;  %5028 = vmatmul.bf16.gmra.mxu3 %v10779_v38  ;;  %v11001_v47 = vpack.c.bf16 %v5093_v2, %v5091_v14  ;;  %v11673_v12 = vld [vmem:[#allocation28_spill] sm:$0xff]  ;;  %v11674_v38 = vld [vmem:[#allocation9_spill] sm:$0xff] }
 0x711   : > { %v4752_v21 = vpop.f32.mrf.mxu0  ;;  %v4846_v28 = vpop.f32.mrf.mxu1 }
 0x712   : > { %v4753_v27 = vadd.f32 %v4752_v21, %v10867_v50  ;;  %v11004_v39 = vpack.c.bf16 %v4479_v31, %v4477_v46  ;;  %v11006_v61 = vpack.c.bf16 %v4484_v40, %v4482_v25 }
 0x713   : > { %v4255_v15 = vpop.f32.mrf.mxu2  ;;  %v4349_v17 = vpop.f32.mrf.mxu3 }
 0x714   : > { %v4842_v52 = vadd.f32 %v4841_v36, %v4753_v27  ;;  %4791 = vmatmul.bf16.gmra.mxu0 %v11004_v39  ;;  %4885 = vmatmul.bf16.gmra.mxu1 %v11006_v61  ;;  %v4256_v54 = vadd.f32 %v4255_v15, %v11673_v12  ;;  %v4350_v23 = vadd.f32 %v4349_v17, %v11674_v38  ;;  %v7130_v36 = vld [vmem:[%s11570_s16 + $0x80] sm:$0xf]  ;;  %v11677_v12 = vld [vmem:[#allocation32_spill] sm:$0xff] }
 0x715   : > { %v7131_v11 = vor.u32 %v7467_v33, %v7130_v36  ;;  %v11679_v33 = vld [vmem:[#allocation36_spill] sm:$0xff] }
 0x716   : > { %v4417_v34 = vadd.f32 %v10598_v8, %v4256_v54  ;;  %v4422_v48 = vadd.f32 %v10565_v57, %v4350_v23  ;;  %v5095_v60 = vmax.f32 %v4842_v52, 0.0  ;;  %v11678_v23 = vld [vmem:[#allocation2_spill] sm:$0xff]  ;;  %v4171_v56 = vadd.f32 %v10815_v7, %v11679_v33 }
 0x717   : > { %5469 = vmatpush.bf16.msrb.mxu1 %v7131_v11 }
 0x718   : > { %v4481_v2 = vmax.f32 %v4417_v34, 0.0  ;;  %v4486_v62 = vmax.f32 %v4422_v48, 0.0  ;;  %v11680_v48 = vld [vmem:[#allocation33_spill] sm:$0xff] }
 0x719   : > { %v4754_v1 = vpop.f32.mrf.mxu0  ;;  %v4848_v3 = vpop.f32.mrf.mxu1 }
 0x71a   : > { %v4755_v35 = vadd.f32 %v4754_v1, %v10867_v50 }
 0x71b   : > { %v4257_v37 = vpop.f32.mrf.mxu2  ;;  %v4351_v59 = vpop.f32.mrf.mxu3 }
 0x71c   : > { %v4844_v58 = vadd.f32 %v4843_v51, %v4755_v35  ;;  %v4258_v0 = vadd.f32 %v4257_v37, %v11676_v24  ;;  %v4352_v19 = vadd.f32 %v4351_v59, %v4166_v55 }
 0x71e   : > { %v5097_v22 = vmax.f32 %v4844_v58, 0.0  ;;  %v4419_v14 = vadd.f32 %v10598_v8, %v4258_v0  ;;  %v4424_v26 = vadd.f32 %v10565_v57, %v4352_v19 }
 0x720   : > { %v4483_v9 = vmax.f32 %v4419_v14, 0.0  ;;  %v4488_v46 = vmax.f32 %v4424_v26, 0.0  ;;  %4939 = vmatmul.bf16.gmra.mxu2 %v10801_v30  ;;  %5033 = vmatmul.bf16.gmra.mxu3 %v10803_v32  ;;  %v11034_v25 = vpack.c.bf16 %v5097_v22, %v5095_v60  ;;  %v7456_v30 = vld [vmem:[%s11570_s16 + $0x34] sm:$0xf]  ;;  %v7092_v32 = vld [vmem:[%s11570_s16 + $0x38] sm:$0xf0] }
 0x721   : > { %v4757_v51 = vpop.f32.mrf.mxu0  ;;  %v4851_v31 = vpop.f32.mrf.mxu1  ;;  %v7095_v38 = vor.u32 %v7456_v30, %v7092_v32  ;;  %v7497_v30 = vld [vmem:[%s11572_s18 + $0x78] sm:$0xff] }
 0x722   : > { %v4758_v40 = vadd.f32 %v4757_v51, %v10867_v50  ;;  %v11037_v21 = vpack.c.bf16 %v4483_v9, %v4481_v2  ;;  %v11039_v27 = vpack.c.bf16 %v4488_v46, %v4486_v62  ;;  %6046 = vmatpush.bf16.msra.mxu1 %v7497_v30 }
 0x723   : > { %v4260_v15 = vpop.f32.mrf.mxu2  ;;  %v4354_v17 = vpop.f32.mrf.mxu3  ;;  %5555 = vmatpush.bf16.msrb.mxu2 %v7095_v38 }
 0x724   : > { %v4847_v52 = vadd.f32 %v4846_v28, %v4758_v40  ;;  %4796 = vmatmul.bf16.gmra.mxu0 %v11037_v21  ;;  %4890 = vmatmul.bf16.gmra.mxu1 %v11039_v27  ;;  %v4261_v54 = vadd.f32 %v4260_v15, %v11677_v12  ;;  %v4355_v16 = vadd.f32 %v4354_v17, %v11678_v23  ;;  %v7472_v28 = vld [vmem:[%s11570_s16 + $0xb4] sm:$0xf] }
 0x725   : > { %v7159_v36 = vor.u32 %v7472_v28, %v7156_v49  ;;  %v11682_v28 = vld [vmem:[#allocation35_spill] sm:$0xff] }
 0x726   : > { %v4421_v35 = vadd.f32 %v10598_v8, %v4261_v54  ;;  %v4426_v37 = vadd.f32 %v10565_v57, %v4355_v16  ;;  %v5099_v0 = vmax.f32 %v4847_v52, 0.0 }
 0x727   : > { %5644 = vmatpush.bf16.msra.mxu3 %v7159_v36 }
 0x728   : > { %v4485_v7 = vmax.f32 %v4421_v35, 0.0  ;;  %v4490_v14 = vmax.f32 %v4426_v37, 0.0 }
 0x729   : > { %v4759_v1 = vpop.f32.mrf.mxu0  ;;  %v4853_v42 = vpop.f32.mrf.mxu1 }
 0x72a   : > { %v4760_v55 = vadd.f32 %v4759_v1, %v10867_v50 }
 0x72b   : > { %v4262_v11 = vpop.f32.mrf.mxu2  ;;  %v4356_v34 = vpop.f32.mrf.mxu3 }
 0x72c   : > { %v4849_v59 = vadd.f32 %v4848_v3, %v4760_v55  ;;  %v4263_v58 = vadd.f32 %v4262_v11, %v11680_v48  ;;  %v4357_v24 = vadd.f32 %v4356_v34, %v4171_v56 }
 0x72e   : > { %v5101_v19 = vmax.f32 %v4849_v59, 0.0  ;;  %v4423_v60 = vadd.f32 %v10598_v8, %v4263_v58  ;;  %v4428_v22 = vadd.f32 %v10565_v57, %v4357_v24  ;;  %v11095_v24 = vperm.slane %v10859_v4, 1  ;;  %v7148_v4 = vld [vmem:[%s11570_s16 + $0xa8] sm:$0xf0] }
 0x730   : > { %v4487_v26 = vmax.f32 %v4423_v60, 0.0  ;;  %v4492_v2 = vmax.f32 %v4428_v22, 0.0  ;;  %4944 = vmatmul.bf16.gmra.mxu2 %v10832_v5  ;;  %5038 = vmatmul.bf16.gmra.mxu3 %v10834_v63  ;;  %v11067_v62 = vpack.c.bf16 %v5101_v19, %v5099_v0  ;;  %v11681_v5 = vld [vmem:[#allocation11_spill] sm:$0xff]  ;;  %v7489_v63 = vld [vmem:[%s11572_s18 + $0x38] sm:$0xff]  ;;  %v7470_v19 = vld [vmem:[%s11570_s16 + $0xa4] sm:$0xf] }
 0x731   : > { %v4762_v3 = vpop.f32.mrf.mxu0  ;;  %v4856_v9 = vpop.f32.mrf.mxu1  ;;  %5957 = vmatpush.bf16.msra.mxu0 %v7489_v63 }
 0x732   : > { %v4763_v46 = vadd.f32 %v4762_v3, %v10867_v50  ;;  %v11070_v51 = vpack.c.bf16 %v4487_v26, %v4485_v7  ;;  %v11072_v40 = vpack.c.bf16 %v4492_v2, %v4490_v14  ;;  %v7151_v7 = vor.u32 %v7470_v19, %v7148_v4 }
 0x733   : > { %v4265_v15 = vpop.f32.mrf.mxu2  ;;  %v4999_v57 = vpop.f32.mrf.mxu3 }
 0x734   : > { %v4852_v17 = vadd.f32 %v4851_v31, %v4763_v46  ;;  %4801 = vmatmul.bf16.gmra.mxu0 %v11070_v51  ;;  %4895 = vmatmul.bf16.gmra.mxu1 %v11072_v40  ;;  %v4266_v52 = vadd.f32 %v4265_v15, %v11681_v5 }
 0x735   : > { %5645 = vmatpush.bf16.msra.mxu3 %v7151_v7 }
 0x736   : > { %v4425_v23 = vadd.f32 %v10598_v8, %v4266_v52  ;;  %v5103_v1 = vmax.f32 %v4852_v17, 0.0 }
 0x738   : > { %v4489_v56 = vmax.f32 %v4425_v23, 0.0 }
 0x739   : > { %v4764_v32 = vpop.f32.mrf.mxu0  ;;  %v4858_v12 = vpop.f32.mrf.mxu1 }
 0x73a   : > { %v4765_v54 = vadd.f32 %v4764_v32, %v10867_v50 }
 0x73b   : > { %v4267_v31 = vpop.f32.mrf.mxu2  ;;  %v5001_v38 = vpop.f32.mrf.mxu3 }
 0x73c   : > { %v4854_v16 = vadd.f32 %v4853_v42, %v4765_v54  ;;  %v4268_v49 = vadd.f32 %v4267_v31, %v11682_v28 }
 0x73e   : > { %v5105_v36 = vmax.f32 %v4854_v16, 0.0  ;;  %v4427_v33 = vadd.f32 %v10598_v8, %v4268_v49  ;;  %v7454_v8 = vld [vmem:[%s11570_s16 + $0x24] sm:$0xf] }
 0x740   : > { %v4491_v55 = vmax.f32 %v4427_v33, 0.0  ;;  %4949 = vmatmul.bf16.gmra.mxu2 %v10872_v6  ;;  %5043 = vmatmul.bf16.gmra.mxu3 %v10874_v20  ;;  %v11089_v35 = vpack.c.bf16 %v5105_v36, %v5103_v1  ;;  %v7084_v6 = vld [vmem:[%s11570_s16 + $0x28] sm:$0xf0] }
 0x741   : > { %v4767_v11 = vpop.f32.mrf.mxu0  ;;  %v4861_v34 = vpop.f32.mrf.mxu1  ;;  %v7087_v20 = vor.u32 %v7454_v8, %v7084_v6 }
 0x742   : > { %v4768_v37 = vadd.f32 %v4767_v11, %v10867_v50  ;;  %v11092_v59 = vpack.c.bf16 %v4491_v55, %v4489_v56 }
 0x743   : > { %v4910_v42 = vpop.f32.mrf.mxu2  ;;  %v5004_v48 = vpop.f32.mrf.mxu3  ;;  %5556 = vmatpush.bf16.msrb.mxu2 %v7087_v20 }
 0x744   : > { %v4857_v58 = vadd.f32 %v4856_v9, %v4768_v37  ;;  %4806 = vmatmul.bf16.gmra.mxu0 %v11092_v59  ;;  %v4911_v0 = vadd.f32 %v4910_v42, %v11095_v24 }
 0x746   : > { %v5000_v3 = vadd.f32 %v4999_v57, %v4911_v0  ;;  %v5107_v15 = vmax.f32 %v4857_v58, 0.0 }
 0x748   : > { %v5080_v52 = vmax.f32 %v5000_v3, 0.0 }
 0x749   : > { %v4769_v60 = vpop.f32.mrf.mxu0  ;;  %v4863_v22 = vpop.f32.mrf.mxu1 }
 0x74a   : > { %v4770_v14 = vadd.f32 %v4769_v60, %v10867_v50 }
 0x74b   : > { %v4912_v26 = vpop.f32.mrf.mxu2  ;;  %v5006_v2 = vpop.f32.mrf.mxu3 }
 0x74c   : > { %v4859_v9 = vadd.f32 %v4858_v12, %v4770_v14  ;;  %v4913_v46 = vadd.f32 %v4912_v26, %v11095_v24  ;;  %v7468_v26 = vld [vmem:[%s11570_s16 + $0x94] sm:$0xf] }
 0x74e   : > { %v5109_v17 = vmax.f32 %v4859_v9, 0.0  ;;  %v5002_v5 = vadd.f32 %v5001_v38, %v4913_v46 }
 0x750   : > { %v5082_v63 = vmax.f32 %v5002_v5, 0.0  ;;  %4954 = vmatmul.bf16.gmra.mxu2 %v10905_v29  ;;  %5048 = vmatmul.bf16.gmra.mxu3 %v10907_v45  ;;  %v11115_v30 = vpack.c.bf16 %v5109_v17, %v5107_v15  ;;  %v7488_v29 = vld [vmem:[%s11572_s18 + $0x30] sm:$0xff] }
 0x751   : > { %v4772_v32 = vpop.f32.mrf.mxu0  ;;  %v4866_v54 = vpop.f32.mrf.mxu1  ;;  %v7496_v45 = vld [vmem:[%s11572_s18 + $0x70] sm:$0xff]  ;;  %5958 = vmatpush.bf16.msra.mxu0 %v7488_v29 }
 0x752   : > { %v11117_v31 = vpack.c.bf16 %v5082_v63, %v5080_v52  ;;  %v4773_v57 = vadd.f32 %v4772_v32, %v10867_v50  ;;  %6047 = vmatpush.bf16.msra.mxu1 %v7496_v45 }
 0x753   : > { %v4915_v12 = vpop.f32.mrf.mxu2  ;;  %v5009_v23 = vpop.f32.mrf.mxu3 }
 0x754   : > { %v4862_v16 = vadd.f32 %v4861_v34, %v4773_v57  ;;  %5381 = vmatmul.bf16.vlgmr.msrb.gmra.mxu0 %v10900_v18  ;;  %5470 = vmatmul.bf16.vlgmr.msrb.gmra.mxu1 %v11117_v31  ;;  %v4916_v38 = vadd.f32 %v4915_v12, %v11095_v24 }
 0x756   : > { %v5005_v56 = vadd.f32 %v5004_v48, %v4916_v38  ;;  %v5111_v34 = vmax.f32 %v4862_v16, 0.0 }
 0x758   : > { %v5084_v58 = vmax.f32 %v5005_v56, 0.0 }
 0x759   : > { %v4774_v28 = vpop.f32.mrf.mxu0  ;;  %v4868_v49 = vpop.f32.mrf.mxu1 }
 0x75a   : > { %v4775_v1 = vadd.f32 %v4774_v28, %v10867_v50 }
 0x75b   : > { %v4917_v36 = vpop.f32.mrf.mxu2  ;;  %v5011_v33 = vpop.f32.mrf.mxu3 }
 0x75c   : > { %v4864_v55 = vadd.f32 %v4863_v22, %v4775_v1  ;;  %v4918_v11 = vadd.f32 %v4917_v36, %v11095_v24 }
 0x75e   : > { %v5113_v37 = vmax.f32 %v4864_v55, 0.0  ;;  %v5007_v42 = vadd.f32 %v5006_v2, %v4918_v11  ;;  %v7140_v2 = vld [vmem:[%s11570_s16 + $0x98] sm:$0xf0] }
 0x75f   : > { %v7143_v46 = vor.u32 %v7468_v26, %v7140_v2 }
 0x760   : > { %v5086_v8 = vmax.f32 %v5007_v42, 0.0  ;;  %4959 = vmatmul.bf16.gmra.mxu2 %v10938_v53  ;;  %5053 = vmatmul.bf16.gmra.mxu3 %v10940_v41  ;;  %v11133_v6 = vpack.c.bf16 %v5113_v37, %v5111_v34  ;;  %v7452_v53 = vld [vmem:[%s11570_s16 + $0x14] sm:$0xf]  ;;  %v7076_v41 = vld [vmem:[%s11570_s16 + $0x18] sm:$0xf0] }
 0x761   : > { %v4777_v20 = vpop.f32.mrf.mxu0  ;;  %v4871_v0 = vpop.f32.mrf.mxu1  ;;  %v7079_v7 = vor.u32 %v7452_v53, %v7076_v41  ;;  %5646 = vmatpush.bf16.msra.mxu3 %v7143_v46 }
 0x762   : > { %v4778_v19 = vadd.f32 %v4777_v20, %v10867_v50  ;;  %v11136_v4 = vpack.c.bf16 %v5086_v8, %v5084_v58 }
 0x763   : > { %v4920_v48 = vpop.f32.mrf.mxu2  ;;  %v5014_v60 = vpop.f32.mrf.mxu3  ;;  %5557 = vmatpush.bf16.msrb.mxu2 %v7079_v7 }
 0x764   : > { %v4867_v22 = vadd.f32 %v4866_v54, %v4778_v19  ;;  %5386 = vmatmul.bf16.gmra.mxu0 %v10935_v13  ;;  %5475 = vmatmul.bf16.gmra.mxu1 %v11136_v4  ;;  %v4921_v14 = vadd.f32 %v4920_v48, %v11095_v24 }
 0x766   : > { %v5010_v52 = vadd.f32 %v5009_v23, %v4921_v14  ;;  %v5115_v54 = vmax.f32 %v4867_v22, 0.0 }
 0x768   : > { %v5088_v16 = vmax.f32 %v5010_v52, 0.0 }
 0x769   : > { %v4779_v3 = vpop.f32.mrf.mxu0  ;;  %v4873_v9 = vpop.f32.mrf.mxu1 }
 0x76a   : > { %v4780_v15 = vadd.f32 %v4779_v3, %v10867_v50 }
 0x76b   : > { %v4922_v17 = vpop.f32.mrf.mxu2  ;;  %v5016_v5 = vpop.f32.mrf.mxu3 }
 0x76c   : > { %v4869_v63 = vadd.f32 %v4868_v49, %v4780_v15  ;;  %v4923_v32 = vadd.f32 %v4922_v17, %v11095_v24  ;;  %v7466_v17 = vld [vmem:[%s11570_s16 + $0x84] sm:$0xf] }
 0x76e   : > { %v5117_v57 = vmax.f32 %v4869_v63, 0.0  ;;  %v5012_v12 = vadd.f32 %v5011_v33, %v4923_v32 }
 0x770   : > { %v5090_v38 = vmax.f32 %v5012_v12, 0.0  ;;  %4964 = vmatmul.bf16.gmra.mxu2 %v10971_v10  ;;  %5058 = vmatmul.bf16.gmra.mxu3 %v10973_v44  ;;  %v11157_v29 = vpack.c.bf16 %v5117_v57, %v5115_v54  ;;  %v7487_v10 = vld [vmem:[%s11572_s18 + $0x28] sm:$0xff] }
 0x771   : > { %v4782_v45 = vpop.f32.mrf.mxu0  ;;  %v4876_v28 = vpop.f32.mrf.mxu1  ;;  %v7495_v44 = vld [vmem:[%s11572_s18 + $0x68] sm:$0xff]  ;;  %5959 = vmatpush.bf16.msra.mxu0 %v7487_v10 }
 0x772   : > { %v4783_v1 = vadd.f32 %v4782_v45, %v10867_v50  ;;  %v11160_v36 = vpack.c.bf16 %v5090_v38, %v5088_v16  ;;  %6048 = vmatpush.bf16.msra.mxu1 %v7495_v44 }
 0x773   : > { %v4925_v23 = vpop.f32.mrf.mxu2  ;;  %v5019_v49 = vpop.f32.mrf.mxu3 }
 0x774   : > { %v4872_v56 = vadd.f32 %v4871_v0, %v4783_v1  ;;  %5391 = vmatmul.bf16.gmra.mxu0 %v10968_v43  ;;  %5480 = vmatmul.bf16.gmra.mxu1 %v11160_v36  ;;  %v4926_v33 = vadd.f32 %v4925_v23, %v11095_v24 }
 0x776   : > { %v5015_v58 = vadd.f32 %v5014_v60, %v4926_v33  ;;  %v5119_v0 = vmax.f32 %v4872_v56, 0.0 }
 0x778   : > { %v5092_v22 = vmax.f32 %v5015_v58, 0.0 }
 0x779   : > { %v4784_v55 = vpop.f32.mrf.mxu0  ;;  %v4878_v11 = vpop.f32.mrf.mxu1 }
 0x77a   : > { %v4785_v34 = vadd.f32 %v4784_v55, %v10867_v50 }
 0x77b   : > { %v4927_v37 = vpop.f32.mrf.mxu2  ;;  %v5021_v42 = vpop.f32.mrf.mxu3 }
 0x77c   : > { %v4874_v8 = vadd.f32 %v4873_v9, %v4785_v34  ;;  %v4928_v20 = vadd.f32 %v4927_v37, %v11095_v24 }
 0x77e   : > { %v5121_v19 = vmax.f32 %v4874_v8, 0.0  ;;  %v5017_v48 = vadd.f32 %v5016_v5, %v4928_v20  ;;  %v7132_v5 = vld [vmem:[%s11570_s16 + $0x88] sm:$0xf0] }
 0x77f   : > { %v7135_v63 = vor.u32 %v7466_v17, %v7132_v5 }
 0x780   : > { %v5094_v53 = vmax.f32 %v5017_v48, 0.0  ;;  %4969 = vmatmul.bf16.gmra.mxu2 %v11004_v39  ;;  %5063 = vmatmul.bf16.gmra.mxu3 %v11006_v61  ;;  %v11175_v41 = vpack.c.bf16 %v5121_v19, %v5119_v0  ;;  %v7450_v39 = vld [vmem:[%s11570_s16 + $0x4] sm:$0xf]  ;;  %v7068_v61 = vld [vmem:[%s11570_s16 + $0x8] sm:$0xf0] }
 0x781   : > { %v4787_v7 = vpop.f32.mrf.mxu0  ;;  %v4881_v26 = vpop.f32.mrf.mxu1  ;;  %v7071_v46 = vor.u32 %v7450_v39, %v7068_v61  ;;  %5647 = vmatpush.bf16.msra.mxu3 %v7135_v63 }
 0x782   : > { %v4788_v14 = vadd.f32 %v4787_v7, %v10867_v50  ;;  %v11178_v2 = vpack.c.bf16 %v5094_v53, %v5092_v22 }
 0x783   : > { %v4930_v60 = vpop.f32.mrf.mxu2  ;;  %v5024_v3 = vpop.f32.mrf.mxu3  ;;  %5558 = vmatpush.bf16.msrb.mxu2 %v7071_v46 }
 0x784   : > { %v4877_v9 = vadd.f32 %v4876_v28, %v4788_v14  ;;  %5396 = vmatmul.bf16.gmra.mxu0 %v11001_v47  ;;  %5485 = vmatmul.bf16.gmra.mxu1 %v11178_v2  ;;  %v4931_v15 = vadd.f32 %v4930_v60, %v11095_v24 }
 0x786   : > { %v5020_v12 = vadd.f32 %v5019_v49, %v4931_v15  ;;  %v5123_v28 = vmax.f32 %v4877_v9, 0.0 }
 0x788   : > { %v5096_v56 = vmax.f32 %v5020_v12, 0.0 }
 0x789   : > { %v4789_v52 = vpop.f32.mrf.mxu0  ;;  %v4883_v38 = vpop.f32.mrf.mxu1 }
 0x78a   : > { %v4790_v32 = vadd.f32 %v4789_v52, %v10867_v50 }
 0x78b   : > { %v4932_v54 = vpop.f32.mrf.mxu2  ;;  %v5026_v57 = vpop.f32.mrf.mxu3 }
 0x78c   : > { %v4879_v16 = vadd.f32 %v4878_v11, %v4790_v32  ;;  %v4933_v45 = vadd.f32 %v4932_v54, %v11095_v24 }
 0x78e   : > { %v5125_v1 = vmax.f32 %v4879_v16, 0.0  ;;  %v5022_v23 = vadd.f32 %v5021_v42, %v4933_v45 }
 0x790   : > { %v5098_v33 = vmax.f32 %v5022_v23, 0.0  ;;  %4974 = vmatmul.bf16.gmra.mxu2 %v11037_v21  ;;  %5068 = vmatmul.bf16.gmra.mxu3 %v11039_v27  ;;  %v11199_v10 = vpack.c.bf16 %v5125_v1, %v5123_v28  ;;  %v7486_v21 = vld [vmem:[%s11572_s18 + $0x20] sm:$0xff] }
 0x791   : > { %v4792_v44 = vpop.f32.mrf.mxu0  ;;  %v4886_v42 = vpop.f32.mrf.mxu1  ;;  %v7494_v27 = vld [vmem:[%s11572_s18 + $0x60] sm:$0xff]  ;;  %5960 = vmatpush.bf16.msra.mxu0 %v7486_v21 }
 0x792   : > { %v4793_v55 = vadd.f32 %v4792_v44, %v10867_v50  ;;  %v11202_v34 = vpack.c.bf16 %v5098_v33, %v5096_v56  ;;  %6049 = vmatpush.bf16.msra.mxu1 %v7494_v27 }
 0x793   : > { %v4935_v49 = vpop.f32.mrf.mxu2  ;;  %v5029_v11 = vpop.f32.mrf.mxu3 }
 0x794   : > { %v4882_v37 = vadd.f32 %v4881_v26, %v4793_v55  ;;  %5401 = vmatmul.bf16.gmra.mxu0 %v11034_v25  ;;  %5490 = vmatmul.bf16.gmra.mxu1 %v11202_v34  ;;  %v4936_v58 = vadd.f32 %v4935_v49, %v11095_v24 }
 0x796   : > { %v5025_v48 = vadd.f32 %v5024_v3, %v4936_v58  ;;  %v5127_v7 = vmax.f32 %v4882_v37, 0.0 }
 0x798   : > { %v5100_v60 = vmax.f32 %v5025_v48, 0.0 }
 0x799   : > { %v4794_v8 = vpop.f32.mrf.mxu0  ;;  %v4888_v9 = vpop.f32.mrf.mxu1 }
 0x79a   : > { %v4795_v20 = vadd.f32 %v4794_v8, %v10867_v50 }
 0x79b   : > { %v4937_v0 = vpop.f32.mrf.mxu2  ;;  %v5031_v19 = vpop.f32.mrf.mxu3 }
 0x79c   : > { %v4884_v22 = vadd.f32 %v4883_v38, %v4795_v20  ;;  %v4938_v53 = vadd.f32 %v4937_v0, %v11095_v24 }
 0x79e   : > { %v5129_v14 = vmax.f32 %v4884_v22, 0.0  ;;  %v5027_v26 = vadd.f32 %v5026_v57, %v4938_v53 }
 0x7a0   : > { %v5102_v39 = vmax.f32 %v5027_v26, 0.0  ;;  %4979 = vmatmul.bf16.gmra.mxu2 %v11070_v51  ;;  %5073 = vmatmul.bf16.gmra.mxu3 %v11072_v40  ;;  %v11217_v61 = vpack.c.bf16 %v5129_v14, %v5127_v7 }
 0x7a1   : > { %v4797_v46 = vpop.f32.mrf.mxu0  ;;  %v4891_v51 = vpop.f32.mrf.mxu1 }
 0x7a2   : > { %v4798_v15 = vadd.f32 %v4797_v46, %v10867_v50  ;;  %v11220_v17 = vpack.c.bf16 %v5102_v39, %v5100_v60 }
 0x7a3   : > { %v4940_v3 = vpop.f32.mrf.mxu2  ;;  %v5034_v5 = vpop.f32.mrf.mxu3 }
 0x7a4   : > { %v4887_v52 = vadd.f32 %v4886_v42, %v4798_v15  ;;  %5406 = vmatmul.bf16.gmra.mxu0 %v11067_v62  ;;  %5495 = vmatmul.bf16.gmra.mxu1 %v11220_v17  ;;  %v4941_v63 = vadd.f32 %v4940_v3, %v11095_v24 }
 0x7a6   : > { %v5030_v12 = vadd.f32 %v5029_v11, %v4941_v63  ;;  %v5131_v45 = vmax.f32 %v4887_v52, 0.0 }
 0x7a8   : > { %v5104_v23 = vmax.f32 %v5030_v12, 0.0 }
 0x7a9   : > { %v4799_v32 = vpop.f32.mrf.mxu0  ;;  %v4893_v58 = vpop.f32.mrf.mxu1 }
 0x7aa   : > { %v4800_v40 = vadd.f32 %v4799_v32, %v10867_v50 }
 0x7ab   : > { %v4942_v54 = vpop.f32.mrf.mxu2  ;;  %v5036_v57 = vpop.f32.mrf.mxu3 }
 0x7ac   : > { %v4889_v16 = vadd.f32 %v4888_v9, %v4800_v40  ;;  %v4943_v38 = vadd.f32 %v4942_v54, %v11095_v24 }
 0x7ae   : > { %v5133_v28 = vmax.f32 %v4889_v16, 0.0  ;;  %v5032_v1 = vadd.f32 %v5031_v19, %v4943_v38 }
 0x7b0   : > { %v5106_v56 = vmax.f32 %v5032_v1, 0.0  ;;  %4984 = vmatmul.bf16.gmra.mxu2 %v11092_v59  ;;  %5648 = vmatmul.bf16.vlgmr.msra.gmra.mxu3 %v11117_v31  ;;  %v11229_v33 = vpack.c.bf16 %v5133_v28, %v5131_v45  ;;  %v7485_v59 = vld [vmem:[%s11572_s18 + $0x18] sm:$0xff] }
 0x7b1   : > { %v4802_v44 = vpop.f32.mrf.mxu0  ;;  %v7493_v31 = vld [vmem:[%s11572_s18 + $0x58] sm:$0xff]  ;;  %5961 = vmatpush.bf16.msra.mxu0 %v7485_v59  ;;  %v4896_v26 = vpop.f32.mrf.mxu1 }
 0x7b2   : > { %v4803_v55 = vadd.f32 %v4802_v44, %v10867_v50  ;;  %v11232_v49 = vpack.c.bf16 %v5106_v56, %v5104_v23  ;;  %6050 = vmatpush.bf16.msra.mxu1 %v7493_v31 }
 0x7b3   : > { %v4945_v11 = vpop.f32.mrf.mxu2  ;;  %v5039_v37 = vpop.f32.mrf.mxu3 }
 0x7b4   : > { %v4892_v42 = vadd.f32 %v4891_v51, %v4803_v55  ;;  %5411 = vmatmul.bf16.gmra.mxu0 %v11089_v35  ;;  %5500 = vmatmul.bf16.gmra.mxu1 %v11232_v49  ;;  %v4946_v21 = vadd.f32 %v4945_v11, %v11095_v24 }
 0x7b6   : > { %v5035_v19 = vadd.f32 %v5034_v5, %v4946_v21  ;;  %v5135_v53 = vmax.f32 %v4892_v42, 0.0 }
 0x7b8   : > { %v5108_v60 = vmax.f32 %v5035_v19, 0.0 }
 0x7b9   : > { %v4804_v27 = vpop.f32.mrf.mxu0  ;;  %v4898_v51 = vpop.f32.mrf.mxu1 }
 0x7ba   : > { %v4805_v8 = vadd.f32 %v4804_v27, %v10867_v50 }
 0x7bb   : > { %v4947_v20 = vpop.f32.mrf.mxu2  ;;  %v5041_v0 = vpop.f32.mrf.mxu3 }
 0x7bc   : > { %v4894_v48 = vadd.f32 %v4893_v58, %v4805_v8  ;;  %v4948_v22 = vadd.f32 %v4947_v20, %v11095_v24 }
 0x7be   : > { %v5137_v7 = vmax.f32 %v4894_v48, 0.0  ;;  %v5037_v14 = vadd.f32 %v5036_v57, %v4948_v22  ;;  %v11259_v57 = vld [vmem:[%s11571_s17] sm:$0x3] }
 0x7bf   : > { %v11263_v23 = vperm.slane %v11259_v57, 0 }
 0x7c0   : > { %v5110_v9 = vmax.f32 %v5037_v14, 0.0  ;;  %5559 = vmatmul.bf16.vlgmr.msrb.gmra.mxu2 %v10900_v18  ;;  %5653 = vmatmul.bf16.gmra.mxu3 %v11136_v4  ;;  %v11247_v39 = vpack.c.bf16 %v5137_v7, %v5135_v53 }
 0x7c1   : > { %v4807_v46 = vpop.f32.mrf.mxu0 }
 0x7c2   : > { %v4808_v15 = vadd.f32 %v4807_v46, %v10867_v50  ;;  %v11250_v3 = vpack.c.bf16 %v5110_v9, %v5108_v60 }
 0x7c3   : > { %v4950_v5 = vpop.f32.mrf.mxu2  ;;  %v5044_v52 = vpop.f32.mrf.mxu3 }
 0x7c4   : > { %v4897_v63 = vadd.f32 %v4896_v26, %v4808_v15  ;;  %5416 = vmatmul.bf16.gmra.mxu0 %v11115_v30  ;;  %5505 = vmatmul.bf16.gmra.mxu1 %v11250_v3  ;;  %v4951_v32 = vadd.f32 %v4950_v5, %v11095_v24 }
 0x7c6   : > { %v5040_v12 = vadd.f32 %v5039_v37, %v4951_v32  ;;  %v5139_v45 = vmax.f32 %v4897_v63, 0.0 }
 0x7c8   : > { %v5112_v56 = vmax.f32 %v5040_v12, 0.0 }
 0x7c9   : > { %v4809_v18 = vpop.f32.mrf.mxu0 }
 0x7ca   : > { %v4810_v4 = vadd.f32 %v4809_v18, %v10867_v50 }
 0x7cb   : > { %v4952_v40 = vpop.f32.mrf.mxu2  ;;  %v5046_v54 = vpop.f32.mrf.mxu3 }
 0x7cc   : > { %v4899_v16 = vadd.f32 %v4898_v51, %v4810_v4  ;;  %v4953_v38 = vadd.f32 %v4952_v40, %v11095_v24 }
 0x7ce   : > { %v5141_v28 = vmax.f32 %v4899_v16, 0.0  ;;  %v5042_v1 = vadd.f32 %v5041_v0, %v4953_v38 }
 0x7d0   : > { %v5114_v44 = vmax.f32 %v5042_v1, 0.0  ;;  %5564 = vmatmul.bf16.gmra.mxu2 %v10935_v13  ;;  %5658 = vmatmul.bf16.gmra.mxu3 %v11160_v36  ;;  %v11267_v50 = vpack.c.bf16 %v5141_v28, %v5139_v45  ;;  %v7484_v13 = vld [vmem:[%s11572_s18 + $0x10] sm:$0xff] }
 0x7d1   : > { %v5382_v55 = vpop.f32.mrf.mxu0  ;;  %v5471_v11 = vpop.f32.mrf.mxu1  ;;  %v7492_v36 = vld [vmem:[%s11572_s18 + $0x50] sm:$0xff]  ;;  %5962 = vmatpush.bf16.msra.mxu0 %v7484_v13 }
 0x7d2   : > { %v5383_v37 = vadd.f32 %v5382_v55, %v11263_v23  ;;  %v11270_v42 = vpack.c.bf16 %v5114_v44, %v5112_v56  ;;  %6051 = vmatpush.bf16.msra.mxu1 %v7492_v36 }
 0x7d3   : > { %v4955_v58 = vpop.f32.mrf.mxu2  ;;  %v5049_v21 = vpop.f32.mrf.mxu3 }
 0x7d4   : > { %v5472_v59 = vadd.f32 %v5471_v11, %v5383_v37  ;;  %5421 = vmatmul.bf16.gmra.mxu0 %v11133_v6  ;;  %5510 = vmatmul.bf16.gmra.mxu1 %v11270_v42  ;;  %v4956_v31 = vadd.f32 %v4955_v58, %v11095_v24 }
 0x7d6   : > { %v5045_v48 = vadd.f32 %v5044_v52, %v4956_v31  ;;  %v5729_v7 = vmax.f32 %v5472_v59, 0.0 }
 0x7d8   : > { %v5116_v60 = vmax.f32 %v5045_v48, 0.0 }
 0x7d9   : > { %v5384_v27 = vpop.f32.mrf.mxu0  ;;  %v5473_v8 = vpop.f32.mrf.mxu1 }
 0x7da   : > { %v5385_v20 = vadd.f32 %v5384_v27, %v11263_v23 }
 0x7db   : > { %v4957_v0 = vpop.f32.mrf.mxu2  ;;  %v5051_v19 = vpop.f32.mrf.mxu3 }
 0x7dc   : > { %v5474_v22 = vadd.f32 %v5473_v8, %v5385_v20  ;;  %v4958_v53 = vadd.f32 %v4957_v0, %v11095_v24 }
 0x7de   : > { %v5731_v14 = vmax.f32 %v5474_v22, 0.0  ;;  %v5047_v26 = vadd.f32 %v5046_v54, %v4958_v53 }
 0x7e0   : > { %v11283_v9 = vpack.c.bf16 %v5731_v14, %v5729_v7  ;;  %v5118_v46 = vmax.f32 %v5047_v26, 0.0  ;;  %5569 = vmatmul.bf16.gmra.mxu2 %v10968_v43  ;;  %5663 = vmatmul.bf16.gmra.mxu3 %v11178_v2 }
 0x7e1   : > { %v5387_v15 = vpop.f32.mrf.mxu0  ;;  %v5476_v5 = vpop.f32.mrf.mxu1 }
 0x7e2   : > { %v5388_v63 = vadd.f32 %v5387_v15, %v11263_v23  ;;  %v11288_v32 = vpack.c.bf16 %v5118_v46, %v5116_v60 }
 0x7e3   : > { %v4960_v52 = vpop.f32.mrf.mxu2  ;;  %v5054_v51 = vpop.f32.mrf.mxu3 }
 0x7e4   : > { %v5477_v18 = vadd.f32 %v5476_v5, %v5388_v63  ;;  %5426 = vmatmul.bf16.gmra.mxu0 %v11157_v29  ;;  %5515 = vmatmul.bf16.gmra.mxu1 %v11288_v32  ;;  %v4961_v4 = vadd.f32 %v4960_v52, %v11095_v24 }
 0x7e6   : > { %v5050_v16 = vadd.f32 %v5049_v21, %v4961_v4  ;;  %v5733_v28 = vmax.f32 %v5477_v18, 0.0 }
 0x7e8   : > { %v5120_v44 = vmax.f32 %v5050_v16, 0.0 }
 0x7e9   : > { %v5389_v40 = vpop.f32.mrf.mxu0  ;;  %v5478_v54 = vpop.f32.mrf.mxu1 }
 0x7ea   : > { %v5390_v43 = vadd.f32 %v5389_v40, %v11263_v23 }
 0x7eb   : > { %v4962_v2 = vpop.f32.mrf.mxu2  ;;  %v5056_v12 = vpop.f32.mrf.mxu3 }
 0x7ec   : > { %v5479_v38 = vadd.f32 %v5478_v54, %v5390_v43  ;;  %v4963_v45 = vadd.f32 %v4962_v2, %v11095_v24 }
 0x7ee   : > { %v5735_v1 = vmax.f32 %v5479_v38, 0.0  ;;  %v5052_v56 = vadd.f32 %v5051_v19, %v4963_v45 }
 0x7f0   : > { %v5122_v55 = vmax.f32 %v5052_v56, 0.0  ;;  %5574 = vmatmul.bf16.gmra.mxu2 %v11001_v47  ;;  %5668 = vmatmul.bf16.gmra.mxu3 %v11202_v34  ;;  %v11297_v11 = vpack.c.bf16 %v5735_v1, %v5733_v28  ;;  %v7483_v47 = vld [vmem:[%s11572_s18 + $0x8] sm:$0xff] }
 0x7f1   : > { %v5392_v37 = vpop.f32.mrf.mxu0  ;;  %v5481_v58 = vpop.f32.mrf.mxu1  ;;  %v7491_v34 = vld [vmem:[%s11572_s18 + $0x48] sm:$0xff]  ;;  %5963 = vmatpush.bf16.msra.mxu0 %v7483_v47 }
 0x7f2   : > { %v5393_v59 = vadd.f32 %v5392_v37, %v11263_v23  ;;  %v11300_v31 = vpack.c.bf16 %v5122_v55, %v5120_v44  ;;  %6052 = vmatpush.bf16.msra.mxu1 %v7491_v34 }
 0x7f3   : > { %v4965_v21 = vpop.f32.mrf.mxu2  ;;  %v5059_v13 = vpop.f32.mrf.mxu3 }
 0x7f4   : > { %v5482_v36 = vadd.f32 %v5481_v58, %v5393_v59  ;;  %5431 = vmatmul.bf16.gmra.mxu0 %v11175_v41  ;;  %5520 = vmatmul.bf16.gmra.mxu1 %v11300_v31  ;;  %v4966_v27 = vadd.f32 %v4965_v21, %v11095_v24 }
 0x7f6   : > { %v5055_v22 = vadd.f32 %v5054_v51, %v4966_v27  ;;  %v5737_v14 = vmax.f32 %v5482_v36, 0.0 }
 0x7f8   : > { %v5124_v46 = vmax.f32 %v5055_v22, 0.0 }
 0x7f9   : > { %v5394_v8 = vpop.f32.mrf.mxu0  ;;  %v5483_v20 = vpop.f32.mrf.mxu1 }
 0x7fa   : > { %v5395_v0 = vadd.f32 %v5394_v8, %v11263_v23 }
 0x7fb   : > { %v4967_v19 = vpop.f32.mrf.mxu2  ;;  %v5061_v48 = vpop.f32.mrf.mxu3 }
 0x7fc   : > { %v5484_v53 = vadd.f32 %v5483_v20, %v5395_v0  ;;  %v4968_v7 = vadd.f32 %v4967_v19, %v11095_v24 }
 0x7fe   : > { %v5739_v26 = vmax.f32 %v5484_v53, 0.0  ;;  %v5057_v60 = vadd.f32 %v5056_v12, %v4968_v7 }
 0x800   : > { %v5126_v15 = vmax.f32 %v5057_v60, 0.0  ;;  %5579 = vmatmul.bf16.gmra.mxu2 %v11034_v25  ;;  %5673 = vmatmul.bf16.gmra.mxu3 %v11220_v17  ;;  %v11315_v5 = vpack.c.bf16 %v5739_v26, %v5737_v14 }
 0x801   : > { %v5397_v63 = vpop.f32.mrf.mxu0  ;;  %v5486_v52 = vpop.f32.mrf.mxu1 }
 0x802   : > { %v5398_v18 = vadd.f32 %v5397_v63, %v11263_v23  ;;  %v11318_v4 = vpack.c.bf16 %v5126_v15, %v5124_v46 }
 0x803   : > { %v4970_v51 = vpop.f32.mrf.mxu2  ;;  %v5064_v40 = vpop.f32.mrf.mxu3 }
 0x804   : > { %v5487_v54 = vadd.f32 %v5486_v52, %v5398_v18  ;;  %5436 = vmatmul.bf16.gmra.mxu0 %v11199_v10  ;;  %5525 = vmatmul.bf16.gmra.mxu1 %v11318_v4  ;;  %v4971_v43 = vadd.f32 %v4970_v51, %v11095_v24 }
 0x806   : > { %v5060_v38 = vadd.f32 %v5059_v13, %v4971_v43  ;;  %v5741_v1 = vmax.f32 %v5487_v54, 0.0 }
 0x808   : > { %v5128_v55 = vmax.f32 %v5060_v38, 0.0 }
 0x809   : > { %v5399_v25 = vpop.f32.mrf.mxu0  ;;  %v5488_v2 = vpop.f32.mrf.mxu1 }
 0x80a   : > { %v5400_v17 = vadd.f32 %v5399_v25, %v11263_v23 }
 0x80b   : > { %v4972_v12 = vpop.f32.mrf.mxu2  ;;  %v5066_v16 = vpop.f32.mrf.mxu3 }
 0x80c   : > { %v5489_v45 = vadd.f32 %v5488_v2, %v5400_v17  ;;  %v4973_v28 = vadd.f32 %v4972_v12, %v11095_v24 }
 0x80e   : > { %v5743_v56 = vmax.f32 %v5489_v45, 0.0  ;;  %v5062_v44 = vadd.f32 %v5061_v48, %v4973_v28 }
 0x810   : > { %v5130_v37 = vmax.f32 %v5062_v44, 0.0  ;;  %5584 = vmatmul.bf16.gmra.mxu2 %v11067_v62  ;;  %5678 = vmatmul.bf16.gmra.mxu3 %v11232_v49  ;;  %v11327_v58 = vpack.c.bf16 %v5743_v56, %v5741_v1  ;;  %v7482_v62 = vld [vmem:[%s11572_s18] sm:$0xff] }
 0x811   : > { %v5402_v59 = vpop.f32.mrf.mxu0  ;;  %v5491_v21 = vpop.f32.mrf.mxu1  ;;  %v7490_v49 = vld [vmem:[%s11572_s18 + $0x40] sm:$0xff]  ;;  %5964 = vmatpush.bf16.msra.mxu0 %v7482_v62 }
 0x812   : > { %v5403_v36 = vadd.f32 %v5402_v59, %v11263_v23  ;;  %v11330_v27 = vpack.c.bf16 %v5130_v37, %v5128_v55  ;;  %6053 = vmatpush.bf16.msra.mxu1 %v7490_v49 }
 0x813   : > { %v4975_v13 = vpop.f32.mrf.mxu2  ;;  %v5069_v47 = vpop.f32.mrf.mxu3 }
 0x814   : > { %v5492_v34 = vadd.f32 %v5491_v21, %v5403_v36  ;;  %5441 = vmatmul.bf16.gmra.mxu0 %v11217_v61  ;;  %5530 = vmatmul.bf16.gmra.mxu1 %v11330_v27  ;;  %v4976_v8 = vadd.f32 %v4975_v13, %v11095_v24 }
 0x816   : > { %v5065_v53 = vadd.f32 %v5064_v40, %v4976_v8  ;;  %v5745_v26 = vmax.f32 %v5492_v34, 0.0 }
 0x818   : > { %v5132_v15 = vmax.f32 %v5065_v53, 0.0 }
 0x819   : > { %v5404_v20 = vpop.f32.mrf.mxu0  ;;  %v5493_v0 = vpop.f32.mrf.mxu1 }
 0x81a   : > { %v5405_v19 = vadd.f32 %v5404_v20, %v11263_v23 }
 0x81b   : > { %v4977_v48 = vpop.f32.mrf.mxu2  ;;  %v5071_v22 = vpop.f32.mrf.mxu3 }
 0x81c   : > { %v5494_v7 = vadd.f32 %v5493_v0, %v5405_v19  ;;  %v4978_v14 = vadd.f32 %v4977_v48, %v11095_v24 }
 0x81e   : > { %v5747_v60 = vmax.f32 %v5494_v7, 0.0  ;;  %v5067_v46 = vadd.f32 %v5066_v16, %v4978_v14 }
 0x820   : > { %v5134_v63 = vmax.f32 %v5067_v46, 0.0  ;;  %5589 = vmatmul.bf16.gmra.mxu2 %v11089_v35  ;;  %5683 = vmatmul.bf16.gmra.mxu3 %v11250_v3  ;;  %v11345_v52 = vpack.c.bf16 %v5747_v60, %v5745_v26 }
 0x821   : > { %v5407_v18 = vpop.f32.mrf.mxu0  ;;  %v5496_v51 = vpop.f32.mrf.mxu1 }
 0x822   : > { %v5408_v54 = vadd.f32 %v5407_v18, %v11263_v23  ;;  %v11348_v43 = vpack.c.bf16 %v5134_v63, %v5132_v15 }
 0x823   : > { %v4980_v40 = vpop.f32.mrf.mxu2  ;;  %v5074_v25 = vpop.f32.mrf.mxu3 }
 0x824   : > { %v5497_v2 = vadd.f32 %v5496_v51, %v5408_v54  ;;  %5446 = vmatmul.bf16.gmra.mxu0 %v11229_v33  ;;  %5535 = vmatmul.bf16.gmra.mxu1 %v11348_v43  ;;  %v4981_v17 = vadd.f32 %v4980_v40, %v11095_v24 }
 0x826   : > { %v5070_v45 = vadd.f32 %v5069_v47, %v4981_v17  ;;  %v5749_v56 = vmax.f32 %v5497_v2, 0.0  ;;  %v11375_v17 = vperm.slane %v11259_v57, 1 }
 0x828   : > { %v5136_v37 = vmax.f32 %v5070_v45, 0.0 }
 0x829   : > { %v5409_v35 = vpop.f32.mrf.mxu0  ;;  %v5498_v12 = vpop.f32.mrf.mxu1 }
 0x82a   : > { %v5410_v3 = vadd.f32 %v5409_v35, %v11263_v23 }
 0x82b   : > { %v4982_v16 = vpop.f32.mrf.mxu2  ;;  %v5076_v38 = vpop.f32.mrf.mxu3 }
 0x82c   : > { %v5499_v28 = vadd.f32 %v5498_v12, %v5410_v3  ;;  %v4983_v1 = vadd.f32 %v4982_v16, %v11095_v24 }
 0x82e   : > { %v5751_v44 = vmax.f32 %v5499_v28, 0.0  ;;  %v5072_v55 = vadd.f32 %v5071_v22, %v4983_v1 }
 0x830   : > { %v5138_v59 = vmax.f32 %v5072_v55, 0.0  ;;  %5594 = vmatmul.bf16.gmra.mxu2 %v11115_v30  ;;  %5688 = vmatmul.bf16.gmra.mxu3 %v11270_v42  ;;  %v11357_v21 = vpack.c.bf16 %v5751_v44, %v5749_v56 }
 0x831   : > { %v5412_v36 = vpop.f32.mrf.mxu0  ;;  %v5501_v13 = vpop.f32.mrf.mxu1 }
 0x832   : > { %v5413_v34 = vadd.f32 %v5412_v36, %v11263_v23  ;;  %v11360_v8 = vpack.c.bf16 %v5138_v59, %v5136_v37 }
 0x833   : > { %v4985_v47 = vpop.f32.mrf.mxu2  ;;  %v5649_v62 = vpop.f32.mrf.mxu3 }
 0x834   : > { %v5502_v49 = vadd.f32 %v5501_v13, %v5413_v34  ;;  %5451 = vmatmul.bf16.gmra.mxu0 %v11247_v39  ;;  %5540 = vmatmul.bf16.gmra.mxu1 %v11360_v8  ;;  %v4986_v20 = vadd.f32 %v4985_v47, %v11095_v24 }
 0x836   : > { %v5075_v22 = vadd.f32 %v5074_v25, %v4986_v20  ;;  %v5753_v14 = vmax.f32 %v5502_v49, 0.0 }
 0x838   : > { %v5140_v46 = vmax.f32 %v5075_v22, 0.0 }
 0x839   : > { %v5414_v30 = vpop.f32.mrf.mxu0  ;;  %v5503_v0 = vpop.f32.mrf.mxu1 }
 0x83a   : > { %v5415_v42 = vadd.f32 %v5414_v30, %v11263_v23 }
 0x83b   : > { %v4987_v19 = vpop.f32.mrf.mxu2  ;;  %v5651_v48 = vpop.f32.mrf.mxu3 }
 0x83c   : > { %v5504_v53 = vadd.f32 %v5503_v0, %v5415_v42  ;;  %v4988_v7 = vadd.f32 %v4987_v19, %v11095_v24 }
 0x83e   : > { %v5755_v26 = vmax.f32 %v5504_v53, 0.0  ;;  %v5077_v60 = vadd.f32 %v5076_v38, %v4988_v7 }
 0x840   : > { %v5142_v15 = vmax.f32 %v5077_v60, 0.0  ;;  %5599 = vmatmul.bf16.gmra.mxu2 %v11133_v6  ;;  %5693 = vmatmul.bf16.gmra.mxu3 %v11288_v32  ;;  %v11369_v63 = vpack.c.bf16 %v5755_v26, %v5753_v14 }
 0x841   : > { %v5417_v18 = vpop.f32.mrf.mxu0  ;;  %v5506_v51 = vpop.f32.mrf.mxu1 }
 0x842   : > { %v5418_v54 = vadd.f32 %v5417_v18, %v11263_v23  ;;  %v11372_v40 = vpack.c.bf16 %v5142_v15, %v5140_v46 }
 0x843   : > { %v5560_v25 = vpop.f32.mrf.mxu2  ;;  %v5654_v2 = vpop.f32.mrf.mxu3 }
 0x844   : > { %v5507_v24 = vadd.f32 %v5506_v51, %v5418_v54  ;;  %5456 = vmatmul.bf16.gmra.mxu0 %v11267_v50  ;;  %5545 = vmatmul.bf16.gmra.mxu1 %v11372_v40  ;;  %v5561_v6 = vadd.f32 %v5560_v25, %v11375_v17 }
 0x846   : > { %v5650_v38 = vadd.f32 %v5649_v62, %v5561_v6  ;;  %v5757_v1 = vmax.f32 %v5507_v24, 0.0 }
 0x848   : > { %v5730_v44 = vmax.f32 %v5650_v38, 0.0 }
 0x849   : > { %v5419_v32 = vpop.f32.mrf.mxu0  ;;  %v5508_v35 = vpop.f32.mrf.mxu1 }
 0x84a   : > { %v5420_v12 = vadd.f32 %v5419_v32, %v11263_v23 }
 0x84b   : > { %v5562_v3 = vpop.f32.mrf.mxu2  ;;  %v5656_v16 = vpop.f32.mrf.mxu3 }
 0x84c   : > { %v5509_v45 = vadd.f32 %v5508_v35, %v5420_v12  ;;  %v5563_v28 = vadd.f32 %v5562_v3, %v11375_v17 }
 0x84e   : > { %v5759_v56 = vmax.f32 %v5509_v45, 0.0  ;;  %v5652_v57 = vadd.f32 %v5651_v48, %v5563_v28 }
 0x850   : > { %v5732_v55 = vmax.f32 %v5652_v57, 0.0  ;;  %5604 = vmatmul.bf16.gmra.mxu2 %v11157_v29  ;;  %5698 = vmatmul.bf16.gmra.mxu3 %v11300_v31  ;;  %v11384_v37 = vpack.c.bf16 %v5759_v56, %v5757_v1 }
 0x851   : > { %v5422_v59 = vpop.f32.mrf.mxu0  ;;  %v5511_v36 = vpop.f32.mrf.mxu1 }
 0x852   : > { %v5794_v13 = vpack.c.bf16 %v5732_v55, %v5730_v44  ;;  %v5423_v34 = vadd.f32 %v5422_v59, %v11263_v23 }
 0x853   : > { %v5565_v47 = vpop.f32.mrf.mxu2  ;;  %v5659_v62 = vpop.f32.mrf.mxu3 }
 0x854   : > { %v5512_v49 = vadd.f32 %v5511_v36, %v5423_v34  ;;  %5965 = vmatmul.bf16.vlgmr.msra.gmra.mxu0 %v11283_v9  ;;  %6054 = vmatmul.bf16.vlgmr.msra.gmra.mxu1 %v5794_v13  ;;  %v5566_v20 = vadd.f32 %v5565_v47, %v11375_v17 }
 0x856   : > { %v5655_v19 = vadd.f32 %v5654_v2, %v5566_v20  ;;  %v5761_v53 = vmax.f32 %v5512_v49, 0.0 }
 0x858   : > { %v5734_v26 = vmax.f32 %v5655_v19, 0.0 }
 0x859   : > { %v5424_v30 = vpop.f32.mrf.mxu0  ;;  %v5513_v0 = vpop.f32.mrf.mxu1 }
 0x85a   : > { %v5425_v29 = vadd.f32 %v5424_v30, %v11263_v23 }
 0x85b   : > { %v5567_v31 = vpop.f32.mrf.mxu2  ;;  %v5661_v42 = vpop.f32.mrf.mxu3 }
 0x85c   : > { %v5514_v48 = vadd.f32 %v5513_v0, %v5425_v29  ;;  %v5568_v22 = vadd.f32 %v5567_v31, %v11375_v17 }
 0x85e   : > { %v5763_v7 = vmax.f32 %v5514_v48, 0.0  ;;  %v5657_v14 = vadd.f32 %v5656_v16, %v5568_v22 }
 0x860   : > { %v5736_v60 = vmax.f32 %v5657_v14, 0.0  ;;  %5609 = vmatmul.bf16.gmra.mxu2 %v11175_v41  ;;  %5703 = vmatmul.bf16.gmra.mxu3 %v11318_v4  ;;  %v11393_v9 = vpack.c.bf16 %v5763_v7, %v5761_v53 }
 0x861   : > { %v5427_v46 = vpop.f32.mrf.mxu0  ;;  %v5516_v15 = vpop.f32.mrf.mxu1 }
 0x862   : > { %v5428_v18 = vadd.f32 %v5427_v46, %v11263_v23  ;;  %v5796_v51 = vpack.c.bf16 %v5736_v60, %v5734_v26 }
 0x863   : > { %v5570_v54 = vpop.f32.mrf.mxu2  ;;  %v5664_v25 = vpop.f32.mrf.mxu3 }
 0x864   : > { %v5517_v2 = vadd.f32 %v5516_v15, %v5428_v18  ;;  %5970 = vmatmul.bf16.gmra.mxu0 %v11297_v11  ;;  %6059 = vmatmul.bf16.gmra.mxu1 %v5796_v51  ;;  %v5571_v24 = vadd.f32 %v5570_v54, %v11375_v17 }
 0x866   : > { %v5660_v12 = vadd.f32 %v5659_v62, %v5571_v24  ;;  %v5765_v38 = vmax.f32 %v5517_v2, 0.0 }
 0x868   : > { %v5738_v1 = vmax.f32 %v5660_v12, 0.0 }
 0x869   : > { %v5429_v6 = vpop.f32.mrf.mxu0  ;;  %v5518_v32 = vpop.f32.mrf.mxu1 }
 0x86a   : > { %v5430_v41 = vadd.f32 %v5429_v6, %v11263_v23 }
 0x86b   : > { %v5572_v4 = vpop.f32.mrf.mxu2  ;;  %v5666_v35 = vpop.f32.mrf.mxu3 }
 0x86c   : > { %v5519_v3 = vadd.f32 %v5518_v32, %v5430_v41  ;;  %v5573_v16 = vadd.f32 %v5572_v4, %v11375_v17 }
 0x86e   : > { %v5767_v45 = vmax.f32 %v5519_v3, 0.0  ;;  %v5662_v28 = vadd.f32 %v5661_v42, %v5573_v16 }
 0x870   : > { %v5740_v56 = vmax.f32 %v5662_v28, 0.0  ;;  %5614 = vmatmul.bf16.gmra.mxu2 %v11199_v10  ;;  %5708 = vmatmul.bf16.gmra.mxu3 %v11330_v27  ;;  %v11402_v11 = vpack.c.bf16 %v5767_v45, %v5765_v38 }
 0x871   : > { %v5432_v57 = vpop.f32.mrf.mxu0  ;;  %v5521_v44 = vpop.f32.mrf.mxu1 }
 0x872   : > { %v5433_v55 = vadd.f32 %v5432_v57, %v11263_v23  ;;  %v5798_v59 = vpack.c.bf16 %v5740_v56, %v5738_v1 }
 0x873   : > { %v5575_v36 = vpop.f32.mrf.mxu2  ;;  %v5669_v13 = vpop.f32.mrf.mxu3 }
 0x874   : > { %v5522_v34 = vadd.f32 %v5521_v44, %v5433_v55  ;;  %5975 = vmatmul.bf16.gmra.mxu0 %v11315_v5  ;;  %6064 = vmatmul.bf16.gmra.mxu1 %v5798_v59  ;;  %v5576_v47 = vadd.f32 %v5575_v36, %v11375_v17 }
 0x876   : > { %v5665_v30 = vadd.f32 %v5664_v25, %v5576_v47  ;;  %v5769_v31 = vmax.f32 %v5522_v34, 0.0 }
 0x878   : > { %v5742_v48 = vmax.f32 %v5665_v30, 0.0 }
 0x879   : > { %v5434_v62 = vpop.f32.mrf.mxu0  ;;  %v5523_v49 = vpop.f32.mrf.mxu1 }
 0x87a   : > { %v5435_v10 = vadd.f32 %v5434_v62, %v11263_v23 }
 0x87b   : > { %v5577_v27 = vpop.f32.mrf.mxu2  ;;  %v5671_v20 = vpop.f32.mrf.mxu3 }
 0x87c   : > { %v5524_v0 = vadd.f32 %v5523_v49, %v5435_v10  ;;  %v5578_v29 = vadd.f32 %v5577_v27, %v11375_v17 }
 0x87e   : > { %v5771_v42 = vmax.f32 %v5524_v0, 0.0  ;;  %v5667_v19 = vadd.f32 %v5666_v35, %v5578_v29 }
 0x880   : > { %v5744_v22 = vmax.f32 %v5667_v19, 0.0  ;;  %5619 = vmatmul.bf16.gmra.mxu2 %v11217_v61  ;;  %5713 = vmatmul.bf16.gmra.mxu3 %v11348_v43  ;;  %v11411_v5 = vpack.c.bf16 %v5771_v42, %v5769_v31 }
 0x881   : > { %v5437_v53 = vpop.f32.mrf.mxu0  ;;  %v5526_v7 = vpop.f32.mrf.mxu1 }
 0x882   : > { %v5438_v14 = vadd.f32 %v5437_v53, %v11263_v23  ;;  %v5800_v26 = vpack.c.bf16 %v5744_v22, %v5742_v48 }
 0x883   : > { %v5580_v60 = vpop.f32.mrf.mxu2  ;;  %v5674_v46 = vpop.f32.mrf.mxu3 }
 0x884   : > { %v5527_v15 = vadd.f32 %v5526_v7, %v5438_v14  ;;  %5980 = vmatmul.bf16.gmra.mxu0 %v11327_v58  ;;  %6069 = vmatmul.bf16.gmra.mxu1 %v5800_v26  ;;  %v5581_v18 = vadd.f32 %v5580_v60, %v11375_v17 }
 0x886   : > { %v5670_v2 = vadd.f32 %v5669_v13, %v5581_v18  ;;  %v5773_v32 = vmax.f32 %v5527_v15, 0.0 }
 0x888   : > { %v5746_v35 = vmax.f32 %v5670_v2, 0.0 }
 0x889   : > { %v5439_v51 = vpop.f32.mrf.mxu0  ;;  %v5528_v54 = vpop.f32.mrf.mxu1 }
 0x88a   : > { %v5440_v61 = vadd.f32 %v5439_v51, %v11263_v23 }
 0x88b   : > { %v5582_v43 = vpop.f32.mrf.mxu2  ;;  %v5676_v25 = vpop.f32.mrf.mxu3 }
 0x88c   : > { %v5529_v24 = vadd.f32 %v5528_v54, %v5440_v61  ;;  %v5583_v6 = vadd.f32 %v5582_v43, %v11375_v17 }
 0x88e   : > { %v5775_v41 = vmax.f32 %v5529_v24, 0.0  ;;  %v5672_v4 = vadd.f32 %v5671_v20, %v5583_v6 }
 0x890   : > { %v5748_v12 = vmax.f32 %v5672_v4, 0.0  ;;  %5624 = vmatmul.bf16.gmra.mxu2 %v11229_v33  ;;  %5718 = vmatmul.bf16.gmra.mxu3 %v11360_v8  ;;  %v11420_v58 = vpack.c.bf16 %v5775_v41, %v5773_v32 }
 0x891   : > { %v5442_v3 = vpop.f32.mrf.mxu0  ;;  %v5531_v16 = vpop.f32.mrf.mxu1 }
 0x892   : > { %v5443_v38 = vadd.f32 %v5442_v3, %v11263_v23  ;;  %v5802_v45 = vpack.c.bf16 %v5748_v12, %v5746_v35 }
 0x893   : > { %v5585_v28 = vpop.f32.mrf.mxu2  ;;  %v5679_v1 = vpop.f32.mrf.mxu3 }
 0x894   : > { %v5532_v56 = vadd.f32 %v5531_v16, %v5443_v38  ;;  %5985 = vmatmul.bf16.gmra.mxu0 %v11345_v52  ;;  %6074 = vmatmul.bf16.gmra.mxu1 %v5802_v45  ;;  %v5586_v57 = vadd.f32 %v5585_v28, %v11375_v17 }
 0x896   : > { %v5675_v36 = vadd.f32 %v5674_v46, %v5586_v57  ;;  %v5777_v47 = vmax.f32 %v5532_v56, 0.0 }
 0x898   : > { %v5750_v10 = vmax.f32 %v5675_v36, 0.0 }
 0x899   : > { %v5444_v44 = vpop.f32.mrf.mxu0  ;;  %v5533_v55 = vpop.f32.mrf.mxu1 }
 0x89a   : > { %v5445_v33 = vadd.f32 %v5444_v44, %v11263_v23 }
 0x89b   : > { %v5587_v8 = vpop.f32.mrf.mxu2  ;;  %v5681_v59 = vpop.f32.mrf.mxu3 }
 0x89c   : > { %v5534_v13 = vadd.f32 %v5533_v55, %v5445_v33  ;;  %v5588_v34 = vadd.f32 %v5587_v8, %v11375_v17 }
 0x89e   : > { %v5779_v62 = vmax.f32 %v5534_v13, 0.0  ;;  %v5677_v49 = vadd.f32 %v5676_v25, %v5588_v34 }
 0x8a0   : > { %v5752_v27 = vmax.f32 %v5677_v49, 0.0  ;;  %5629 = vmatmul.bf16.gmra.mxu2 %v11247_v39  ;;  %5723 = vmatmul.bf16.gmra.mxu3 %v11372_v40  ;;  %v11429_v52 = vpack.c.bf16 %v5779_v62, %v5777_v47 }
 0x8a1   : > { %v5447_v20 = vpop.f32.mrf.mxu0  ;;  %v5536_v30 = vpop.f32.mrf.mxu1 }
 0x8a2   : > { %v5448_v0 = vadd.f32 %v5447_v20, %v11263_v23  ;;  %v5804_v29 = vpack.c.bf16 %v5752_v27, %v5750_v10 }
 0x8a3   : > { %v5590_v31 = vpop.f32.mrf.mxu2  ;;  %v5684_v42 = vpop.f32.mrf.mxu3 }
 0x8a4   : > { %v5537_v19 = vadd.f32 %v5536_v30, %v5448_v0  ;;  %5990 = vmatmul.bf16.gmra.mxu0 %v11357_v21  ;;  %6079 = vmatmul.bf16.gmra.mxu1 %v5804_v29  ;;  %v5591_v48 = vadd.f32 %v5590_v31, %v11375_v17 }
 0x8a6   : > { %v5680_v14 = vadd.f32 %v5679_v1, %v5591_v48  ;;  %v5781_v46 = vmax.f32 %v5537_v19, 0.0 }
 0x8a8   : > { %v5754_v51 = vmax.f32 %v5680_v14, 0.0 }
 0x8a9   : > { %v5449_v22 = vpop.f32.mrf.mxu0  ;;  %v5538_v53 = vpop.f32.mrf.mxu1 }
 0x8aa   : > { %v5450_v39 = vadd.f32 %v5449_v22, %v11263_v23 }
 0x8ab   : > { %v5592_v40 = vpop.f32.mrf.mxu2  ;;  %v5686_v7 = vpop.f32.mrf.mxu3 }
 0x8ac   : > { %v5539_v26 = vadd.f32 %v5538_v53, %v5450_v39  ;;  %v5593_v60 = vadd.f32 %v5592_v40, %v11375_v17 }
 0x8ae   : > { %v5783_v15 = vmax.f32 %v5539_v26, 0.0  ;;  %v5682_v18 = vadd.f32 %v5681_v59, %v5593_v60 }
 0x8b0   : > { %v5756_v54 = vmax.f32 %v5682_v18, 0.0  ;;  %5634 = vmatmul.bf16.gmra.mxu2 %v11267_v50  ;;  %v11437_v21 = vpack.c.bf16 %v5783_v15, %v5781_v46 }
 0x8b1   : > { %v5452_v61 = vpop.f32.mrf.mxu0  ;;  %v5541_v43 = vpop.f32.mrf.mxu1 }
 0x8b2   : > { %v5453_v25 = vadd.f32 %v5452_v61, %v11263_v23  ;;  %v5806_v2 = vpack.c.bf16 %v5756_v54, %v5754_v51 }
 0x8b3   : > { %v5595_v24 = vpop.f32.mrf.mxu2  ;;  %v5689_v6 = vpop.f32.mrf.mxu3 }
 0x8b4   : > { %v5542_v32 = vadd.f32 %v5541_v43, %v5453_v25  ;;  %5995 = vmatmul.bf16.gmra.mxu0 %v11369_v63  ;;  %6084 = vmatmul.bf16.gmra.mxu1 %v5806_v2  ;;  %v5596_v41 = vadd.f32 %v5595_v24, %v11375_v17 }
 0x8b6   : > { %v5685_v16 = vadd.f32 %v5684_v42, %v5596_v41  ;;  %v5785_v28 = vmax.f32 %v5542_v32, 0.0 }
 0x8b8   : > { %v5758_v57 = vmax.f32 %v5685_v16, 0.0 }
 0x8b9   : > { %v5454_v4 = vpop.f32.mrf.mxu0  ;;  %v5543_v35 = vpop.f32.mrf.mxu1 }
 0x8ba   : > { %v5455_v12 = vadd.f32 %v5454_v4, %v11263_v23 }
 0x8bb   : > { %v5597_v50 = vpop.f32.mrf.mxu2  ;;  %v5691_v3 = vpop.f32.mrf.mxu3 }
 0x8bc   : > { %v5544_v38 = vadd.f32 %v5543_v35, %v5455_v12  ;;  %v5598_v45 = vadd.f32 %v5597_v50, %v11375_v17 }
 0x8be   : > { %v5787_v1 = vmax.f32 %v5544_v38, 0.0  ;;  %v5687_v56 = vadd.f32 %v5686_v7, %v5598_v45 }
 0x8c0   : > { %v5760_v44 = vmax.f32 %v5687_v56, 0.0  ;;  %v11444_v55 = vpack.c.bf16 %v5787_v1, %v5785_v28 }
 0x8c1   : > { %v5457_v63 = vpop.f32.mrf.mxu0  ;;  %v5546_v33 = vpop.f32.mrf.mxu1 }
 0x8c2   : > { %v5458_v8 = vadd.f32 %v5457_v63, %v11263_v23  ;;  %v5808_v59 = vpack.c.bf16 %v5760_v44, %v5758_v57 }
 0x8c3   : > { %v5600_v36 = vpop.f32.mrf.mxu2  ;;  %v5694_v13 = vpop.f32.mrf.mxu3 }
 0x8c4   : > { %v5547_v34 = vadd.f32 %v5546_v33, %v5458_v8  ;;  %6000 = vmatmul.bf16.gmra.mxu0 %v11384_v37  ;;  %6089 = vmatmul.bf16.gmra.mxu1 %v5808_v59  ;;  %v5601_v47 = vadd.f32 %v5600_v36, %v11375_v17  ;;  %v11454_v37 = vld [vmem:[%s11573_s19] ss:$0 sm:$0xff] }
 0x8c6   : > { %v5690_v30 = vadd.f32 %v5689_v6, %v5601_v47  ;;  %v5789_v31 = vmax.f32 %v5547_v34, 0.0 }
 0x8c8   : > { %v5762_v48 = vmax.f32 %v5690_v30, 0.0 }
 0x8c9   : > { %v5459_v62 = vpop.f32.mrf.mxu0  ;;  %v5548_v49 = vpop.f32.mrf.mxu1 }
 0x8ca   : > { %v5460_v10 = vadd.f32 %v5459_v62, %v11263_v23 }
 0x8cb   : > { %v5602_v27 = vpop.f32.mrf.mxu2  ;;  %v5696_v20 = vpop.f32.mrf.mxu3 }
 0x8cc   : > { %v5549_v0 = vadd.f32 %v5548_v49, %v5460_v10  ;;  %v5603_v29 = vadd.f32 %v5602_v27, %v11375_v17 }
 0x8ce   : > { %v5791_v42 = vmax.f32 %v5549_v0, 0.0  ;;  %v5692_v19 = vadd.f32 %v5691_v3, %v5603_v29 }
 0x8d0   : > { %v5764_v22 = vmax.f32 %v5692_v19, 0.0  ;;  %v11456_v53 = vpack.c.bf16 %v5791_v42, %v5789_v31 }
 0x8d1   : > { %v5966_v23 = vpop.f32.mrf.mxu0  ;;  %v6055_v39 = vpop.f32.mrf.mxu1 }
 0x8d2   : > { %v5967_v40 = vadd.f32 %v11454_v37, %v5966_v23  ;;  %v5810_v7 = vpack.c.bf16 %v5764_v22, %v5762_v48 }
 0x8d3   : > { %v5605_v14 = vpop.f32.mrf.mxu2  ;;  %v5699_v26 = vpop.f32.mrf.mxu3 }
 0x8d4   : > { %v6056_v60 = vadd.f32 %v6055_v39, %v5967_v40  ;;  %6005 = vmatmul.bf16.gmra.mxu0 %v11393_v9  ;;  %6094 = vmatmul.bf16.gmra.mxu1 %v5810_v7  ;;  %v5606_v46 = vadd.f32 %v5605_v14, %v11375_v17 }
 0x8d6   : > { %6135 = vst [vmem:[%s11464_s23] sm:$0xff] %v6056_v60  ;;  %v5695_v43 = vadd.f32 %v5694_v13, %v5606_v46 }
 0x8d8   : > { %v5766_v6 = vmax.f32 %v5695_v43, 0.0 }
 0x8d9   : > { %v5968_v15 = vpop.f32.mrf.mxu0  ;;  %v6057_v18 = vpop.f32.mrf.mxu1 }
 0x8da   : > { %v5969_v51 = vadd.f32 %v11454_v37, %v5968_v15 }
 0x8db   : > { %v5607_v54 = vpop.f32.mrf.mxu2  ;;  %v5701_v61 = vpop.f32.mrf.mxu3 }
 0x8dc   : > { %v6058_v25 = vadd.f32 %v6057_v18, %v5969_v51  ;;  %v5608_v2 = vadd.f32 %v5607_v54, %v11375_v17 }
 0x8de   : > { %6136 = vst [vmem:[%s11464_s23 + $0x8] sm:$0xff] %v6058_v25  ;;  %v5697_v24 = vadd.f32 %v5696_v20, %v5608_v2 }
 0x8e0   : > { %v5768_v32 = vmax.f32 %v5697_v24, 0.0 }
 0x8e1   : > { %v5971_v9 = vpop.f32.mrf.mxu0  ;;  %v6060_v41 = vpop.f32.mrf.mxu1 }
 0x8e2   : > { %v5972_v4 = vadd.f32 %v11454_v37, %v5971_v9  ;;  %v5812_v35 = vpack.c.bf16 %v5768_v32, %v5766_v6 }
 0x8e3   : > { %v5610_v12 = vpop.f32.mrf.mxu2  ;;  %v5704_v50 = vpop.f32.mrf.mxu3 }
 0x8e4   : > { %v6061_v3 = vadd.f32 %v6060_v41, %v5972_v4  ;;  %6010 = vmatmul.bf16.gmra.mxu0 %v11402_v11  ;;  %6099 = vmatmul.bf16.gmra.mxu1 %v5812_v35  ;;  %v5611_v16 = vadd.f32 %v5610_v12, %v11375_v17 }
 0x8e6   : > { %6137 = vst [vmem:[%s11464_s23 + $0x10] sm:$0xff] %v6061_v3  ;;  %v5700_v56 = vadd.f32 %v5699_v26, %v5611_v16 }
 0x8e8   : > { %v5770_v8 = vmax.f32 %v5700_v56, 0.0 }
 0x8e9   : > { %v5973_v38 = vpop.f32.mrf.mxu0  ;;  %v6062_v45 = vpop.f32.mrf.mxu1 }
 0x8ea   : > { %v5974_v28 = vadd.f32 %v11454_v37, %v5973_v38 }
 0x8eb   : > { %v5612_v1 = vpop.f32.mrf.mxu2  ;;  %v5706_v63 = vpop.f32.mrf.mxu3 }
 0x8ec   : > { %v6063_v57 = vadd.f32 %v6062_v45, %v5974_v28  ;;  %v5613_v44 = vadd.f32 %v5612_v1, %v11375_v17 }
 0x8ee   : > { %6138 = vst [vmem:[%s11464_s23 + $0x18] sm:$0xff] %v6063_v57  ;;  %v5702_v33 = vadd.f32 %v5701_v61, %v5613_v44 }
 0x8f0   : > { %v5772_v59 = vmax.f32 %v5702_v33, 0.0 }
 0x8f1   : > { %v5976_v11 = vpop.f32.mrf.mxu0  ;;  %v6065_v36 = vpop.f32.mrf.mxu1 }
 0x8f2   : > { %v5977_v13 = vadd.f32 %v11454_v37, %v5976_v11  ;;  %v5814_v34 = vpack.c.bf16 %v5772_v59, %v5770_v8 }
 0x8f3   : > { %v5615_v47 = vpop.f32.mrf.mxu2  ;;  %v5709_v49 = vpop.f32.mrf.mxu3 }
 0x8f4   : > { %v6066_v62 = vadd.f32 %v6065_v36, %v5977_v13  ;;  %6015 = vmatmul.bf16.gmra.mxu0 %v11411_v5  ;;  %6104 = vmatmul.bf16.gmra.mxu1 %v5814_v34  ;;  %v5616_v10 = vadd.f32 %v5615_v47, %v11375_v17 }
 0x8f6   : > { %6139 = vst [vmem:[%s11464_s23 + $0x20] sm:$0xff] %v6066_v62  ;;  %v5705_v29 = vadd.f32 %v5704_v50, %v5616_v10 }
 0x8f8   : > { %v5774_v48 = vmax.f32 %v5705_v29, 0.0 }
 0x8f9   : > { %v5978_v27 = vpop.f32.mrf.mxu0  ;;  %v6067_v20 = vpop.f32.mrf.mxu1 }
 0x8fa   : > { %v5979_v30 = vadd.f32 %v11454_v37, %v5978_v27 }
 0x8fb   : > { %v5617_v0 = vpop.f32.mrf.mxu2  ;;  %v5711_v5 = vpop.f32.mrf.mxu3 }
 0x8fc   : > { %v6068_v31 = vadd.f32 %v6067_v20, %v5979_v30  ;;  %v5618_v42 = vadd.f32 %v5617_v0, %v11375_v17 }
 0x8fe   : > { %6140 = vst [vmem:[%s11464_s23 + $0x28] sm:$0xff] %v6068_v31  ;;  %v5707_v19 = vadd.f32 %v5706_v63, %v5618_v42 }
 0x900   : > { %v5776_v22 = vmax.f32 %v5707_v19, 0.0 }
 0x901   : > { %v5981_v23 = vpop.f32.mrf.mxu0  ;;  %v6070_v39 = vpop.f32.mrf.mxu1 }
 0x902   : > { %v5982_v40 = vadd.f32 %v11454_v37, %v5981_v23  ;;  %v5816_v7 = vpack.c.bf16 %v5776_v22, %v5774_v48 }
 0x903   : > { %v5620_v14 = vpop.f32.mrf.mxu2  ;;  %v5714_v18 = vpop.f32.mrf.mxu3 }
 0x904   : > { %v6071_v26 = vadd.f32 %v6070_v39, %v5982_v40  ;;  %6020 = vmatmul.bf16.gmra.mxu0 %v11420_v58  ;;  %6109 = vmatmul.bf16.gmra.mxu1 %v5816_v7  ;;  %v5621_v60 = vadd.f32 %v5620_v14, %v11375_v17 }
 0x906   : > { %6141 = vst [vmem:[%s11464_s23 + $0x30] sm:$0xff] %v6071_v26  ;;  %v5710_v61 = vadd.f32 %v5709_v49, %v5621_v60 }
 0x908   : > { %v5778_v24 = vmax.f32 %v5710_v61, 0.0 }
 0x909   : > { %v5983_v46 = vpop.f32.mrf.mxu0  ;;  %v6072_v15 = vpop.f32.mrf.mxu1 }
 0x90a   : > { %v5984_v51 = vadd.f32 %v11454_v37, %v5983_v46 }
 0x90b   : > { %v5622_v54 = vpop.f32.mrf.mxu2  ;;  %v5716_v35 = vpop.f32.mrf.mxu3 }
 0x90c   : > { %v6073_v43 = vadd.f32 %v6072_v15, %v5984_v51  ;;  %v5623_v25 = vadd.f32 %v5622_v54, %v11375_v17 }
 0x90e   : > { %6142 = vst [vmem:[%s11464_s23 + $0x38] sm:$0xff] %v6073_v43  ;;  %v5712_v2 = vadd.f32 %v5711_v5, %v5623_v25 }
 0x910   : > { %v5780_v6 = vmax.f32 %v5712_v2, 0.0 }
 0x911   : > { %v5986_v58 = vpop.f32.mrf.mxu0  ;;  %v6075_v32 = vpop.f32.mrf.mxu1 }
 0x912   : > { %v5987_v9 = vadd.f32 %v11454_v37, %v5986_v58  ;;  %v5818_v41 = vpack.c.bf16 %v5780_v6, %v5778_v24 }
 0x913   : > { %v5625_v4 = vpop.f32.mrf.mxu2  ;;  %v5719_v57 = vpop.f32.mrf.mxu3 }
 0x914   : > { %v6076_v12 = vadd.f32 %v6075_v32, %v5987_v9  ;;  %6025 = vmatmul.bf16.gmra.mxu0 %v11429_v52  ;;  %6114 = vmatmul.bf16.gmra.mxu1 %v5818_v41  ;;  %v5626_v50 = vadd.f32 %v5625_v4, %v11375_v17 }
 0x916   : > { %6143 = vst [vmem:[%s11464_s23 + $0x40] sm:$0xff] %v6076_v12  ;;  %v5715_v28 = vadd.f32 %v5714_v18, %v5626_v50 }
 0x918   : > { %v5782_v63 = vmax.f32 %v5715_v28, 0.0 }
 0x919   : > { %v5988_v3 = vpop.f32.mrf.mxu0  ;;  %v6077_v16 = vpop.f32.mrf.mxu1 }
 0x91a   : > { %v5989_v38 = vadd.f32 %v11454_v37, %v5988_v3 }
 0x91b   : > { %v5627_v45 = vpop.f32.mrf.mxu2  ;;  %v5721_v34 = vpop.f32.mrf.mxu3 }
 0x91c   : > { %v6078_v1 = vadd.f32 %v6077_v16, %v5989_v38  ;;  %v5628_v56 = vadd.f32 %v5627_v45, %v11375_v17 }
 0x91e   : > { %6144 = vst [vmem:[%s11464_s23 + $0x48] sm:$0xff] %v6078_v1  ;;  %v5717_v44 = vadd.f32 %v5716_v35, %v5628_v56 }
 0x920   : > { %v5784_v33 = vmax.f32 %v5717_v44, 0.0 }
 0x921   : > { %v5991_v52 = vpop.f32.mrf.mxu0  ;;  %v6080_v8 = vpop.f32.mrf.mxu1 }
 0x922   : > { %v5992_v59 = vadd.f32 %v11454_v37, %v5991_v52  ;;  %v5820_v11 = vpack.c.bf16 %v5784_v33, %v5782_v63 }
 0x923   : > { %v5630_v36 = vpop.f32.mrf.mxu2  ;;  %v5724_v5 = vpop.f32.mrf.mxu3 }
 0x924   : > { %v6081_v13 = vadd.f32 %v6080_v8, %v5992_v59  ;;  %6030 = vmatmul.bf16.gmra.mxu0 %v11437_v21  ;;  %6119 = vmatmul.bf16.gmra.mxu1 %v5820_v11  ;;  %v5631_v47 = vadd.f32 %v5630_v36, %v11375_v17 }
 0x926   : > { %6145 = vst [vmem:[%s11464_s23 + $0x50] sm:$0xff] %v6081_v13  ;;  %v5720_v20 = vadd.f32 %v5719_v57, %v5631_v47 }
 0x928   : > { %v5786_v31 = vmax.f32 %v5720_v20, 0.0 }
 0x929   : > { %v5993_v62 = vpop.f32.mrf.mxu0  ;;  %v6082_v49 = vpop.f32.mrf.mxu1 }
 0x92a   : > { %v5994_v10 = vadd.f32 %v11454_v37, %v5993_v62 }
 0x92b   : > { %v5632_v27 = vpop.f32.mrf.mxu2  ;;  %v5726_v51 = vpop.f32.mrf.mxu3 }
 0x92c   : > { %v6083_v30 = vadd.f32 %v6082_v49, %v5994_v10  ;;  %v5633_v0 = vadd.f32 %v5632_v27, %v11375_v17 }
 0x92e   : > { %6146 = vst [vmem:[%s11464_s23 + $0x58] sm:$0xff] %v6083_v30  ;;  %v5722_v29 = vadd.f32 %v5721_v34, %v5633_v0 }
 0x930   : > { %v5788_v42 = vmax.f32 %v5722_v29, 0.0 }
 0x931   : > { %v5996_v21 = vpop.f32.mrf.mxu0  ;;  %v6085_v19 = vpop.f32.mrf.mxu1 }
 0x932   : > { %v5997_v48 = vadd.f32 %v11454_v37, %v5996_v21  ;;  %v5822_v22 = vpack.c.bf16 %v5788_v42, %v5786_v31 }
 0x933   : > { %v5635_v23 = vpop.f32.mrf.mxu2 }
 0x934   : > { %v6086_v39 = vadd.f32 %v6085_v19, %v5997_v48  ;;  %6035 = vmatmul.bf16.gmra.mxu0 %v11444_v55  ;;  %6124 = vmatmul.bf16.gmra.mxu1 %v5822_v22  ;;  %v5636_v40 = vadd.f32 %v5635_v23, %v11375_v17 }
 0x936   : > { %6147 = vst [vmem:[%s11464_s23 + $0x60] sm:$0xff] %v6086_v39  ;;  %v5725_v46 = vadd.f32 %v5724_v5, %v5636_v40 }
 0x938   : > { %v5790_v61 = vmax.f32 %v5725_v46, 0.0 }
 0x939   : > { %v5998_v7 = vpop.f32.mrf.mxu0  ;;  %v6087_v14 = vpop.f32.mrf.mxu1 }
 0x93a   : > { %v5999_v26 = vadd.f32 %v11454_v37, %v5998_v7 }
 0x93b   : > { %v5637_v60 = vpop.f32.mrf.mxu2 }
 0x93c   : > { %v6088_v15 = vadd.f32 %v6087_v14, %v5999_v26  ;;  %v5638_v18 = vadd.f32 %v5637_v60, %v11375_v17 }
 0x93e   : > { %6148 = vst [vmem:[%s11464_s23 + $0x68] sm:$0xff] %v6088_v15  ;;  %v5727_v54 = vadd.f32 %v5726_v51, %v5638_v18 }
 0x940   : > { %v5792_v55 = vmax.f32 %v5727_v54, 0.0 }
 0x941   : > { %v6001_v43 = vpop.f32.mrf.mxu0  ;;  %v6090_v25 = vpop.f32.mrf.mxu1 }
 0x942   : > { %v6002_v2 = vadd.f32 %v11454_v37, %v6001_v43  ;;  %v5824_v24 = vpack.c.bf16 %v5792_v55, %v5790_v61 }
 0x944   : > { %v6091_v6 = vadd.f32 %v6090_v25, %v6002_v2  ;;  %6040 = vmatmul.bf16.gmra.mxu0 %v11456_v53  ;;  %6129 = vmatmul.bf16.gmra.mxu1 %v5824_v24 }
 0x946   : > { %6149 = vst [vmem:[%s11464_s23 + $0x70] sm:$0xff] %v6091_v6 }
 0x949   : > { %v6003_v58 = vpop.f32.mrf.mxu0  ;;  %v6092_v17 = vpop.f32.mrf.mxu1 }
 0x94a   : > { %v6004_v32 = vadd.f32 %v11454_v37, %v6003_v58 }
 0x94c   : > { %v6093_v9 = vadd.f32 %v6092_v17, %v6004_v32 }
 0x94e   : > { %6150 = vst [vmem:[%s11464_s23 + $0x78] sm:$0xff] %v6093_v9 }
 0x951   : > { %v6006_v41 = vpop.f32.mrf.mxu0  ;;  %v6095_v4 = vpop.f32.mrf.mxu1 }
 0x952   : > { %v6007_v35 = vadd.f32 %v11454_v37, %v6006_v41 }
 0x954   : > { %v6096_v12 = vadd.f32 %v6095_v4, %v6007_v35 }
 0x956   : > { %6151 = vst [vmem:[%s11464_s23 + $0x80] sm:$0xff] %v6096_v12 }
 0x959   : > { %v6008_v50 = vpop.f32.mrf.mxu0  ;;  %v6097_v3 = vpop.f32.mrf.mxu1 }
 0x95a   : > { %v6009_v53 = vadd.f32 %v11454_v37, %v6008_v50 }
 0x95c   : > { %v6098_v16 = vadd.f32 %v6097_v3, %v6009_v53 }
 0x95e   : > { %6152 = vst [vmem:[%s11464_s23 + $0x88] sm:$0xff] %v6098_v16 }
 0x961   : > { %v6011_v38 = vpop.f32.mrf.mxu0  ;;  %v6100_v45 = vpop.f32.mrf.mxu1 }
 0x962   : > { %v6012_v28 = vadd.f32 %v11454_v37, %v6011_v38 }
 0x964   : > { %v6101_v1 = vadd.f32 %v6100_v45, %v6012_v28 }
 0x966   : > { %6153 = vst [vmem:[%s11464_s23 + $0x90] sm:$0xff] %v6101_v1 }
 0x969   : > { %v6013_v56 = vpop.f32.mrf.mxu0  ;;  %v6102_v57 = vpop.f32.mrf.mxu1 }
 0x96a   : > { %v6014_v44 = vadd.f32 %v11454_v37, %v6013_v56 }
 0x96c   : > { %v6103_v63 = vadd.f32 %v6102_v57, %v6014_v44 }
 0x96e   : > { %6154 = vst [vmem:[%s11464_s23 + $0x98] sm:$0xff] %v6103_v63 }
 0x971   : > { %v6016_v33 = vpop.f32.mrf.mxu0  ;;  %v6105_v52 = vpop.f32.mrf.mxu1 }
 0x972   : > { %v6017_v8 = vadd.f32 %v11454_v37, %v6016_v33 }
 0x974   : > { %v6106_v59 = vadd.f32 %v6105_v52, %v6017_v8 }
 0x976   : > { %6155 = vst [vmem:[%s11464_s23 + $0xa0] sm:$0xff] %v6106_v59 }
 0x979   : > { %v6018_v11 = vpop.f32.mrf.mxu0  ;;  %v6107_v36 = vpop.f32.mrf.mxu1 }
 0x97a   : > { %v6019_v13 = vadd.f32 %v11454_v37, %v6018_v11 }
 0x97c   : > { %v6108_v34 = vadd.f32 %v6107_v36, %v6019_v13 }
 0x97e   : > { %6156 = vst [vmem:[%s11464_s23 + $0xa8] sm:$0xff] %v6108_v34 }
 0x981   : > { %v6021_v47 = vpop.f32.mrf.mxu0  ;;  %v6110_v62 = vpop.f32.mrf.mxu1 }
 0x982   : > { %v6022_v49 = vadd.f32 %v11454_v37, %v6021_v47 }
 0x984   : > { %v6111_v10 = vadd.f32 %v6110_v62, %v6022_v49 }
 0x986   : > { %6157 = vst [vmem:[%s11464_s23 + $0xb0] sm:$0xff] %v6111_v10 }
 0x989   : > { %v6023_v27 = vpop.f32.mrf.mxu0  ;;  %v6112_v20 = vpop.f32.mrf.mxu1 }
 0x98a   : > { %v6024_v30 = vadd.f32 %v11454_v37, %v6023_v27 }
 0x98c   : > { %v6113_v0 = vadd.f32 %v6112_v20, %v6024_v30 }
 0x98e   : > { %6158 = vst [vmem:[%s11464_s23 + $0xb8] sm:$0xff] %v6113_v0 }
 0x991   : > { %v6026_v29 = vpop.f32.mrf.mxu0  ;;  %v6115_v31 = vpop.f32.mrf.mxu1 }
 0x992   : > { %v6027_v42 = vadd.f32 %v11454_v37, %v6026_v29 }
 0x994   : > { %v6116_v21 = vadd.f32 %v6115_v31, %v6027_v42 }
 0x996   : > { %6159 = vst [vmem:[%s11464_s23 + $0xc0] sm:$0xff] %v6116_v21 }
 0x999   : > { %v6028_v19 = vpop.f32.mrf.mxu0  ;;  %v6117_v48 = vpop.f32.mrf.mxu1 }
 0x99a   : > { %v6029_v22 = vadd.f32 %v11454_v37, %v6028_v19 }
 0x99c   : > { %v6118_v5 = vadd.f32 %v6117_v48, %v6029_v22 }
 0x99e   : > { %6160 = vst [vmem:[%s11464_s23 + $0xc8] sm:$0xff] %v6118_v5 }
 0x9a1   : > { %v6031_v23 = vpop.f32.mrf.mxu0  ;;  %v6120_v39 = vpop.f32.mrf.mxu1 }
 0x9a2   : > { %v6032_v40 = vadd.f32 %v11454_v37, %v6031_v23 }
 0x9a4   : > { %v6121_v7 = vadd.f32 %v6120_v39, %v6032_v40 }
 0x9a6   : > { %6161 = vst [vmem:[%s11464_s23 + $0xd0] sm:$0xff] %v6121_v7 }
 0x9a9   : > { %v6033_v14 = vpop.f32.mrf.mxu0  ;;  %v6122_v26 = vpop.f32.mrf.mxu1 }
 0x9aa   : > { %v6034_v60 = vadd.f32 %v11454_v37, %v6033_v14 }
 0x9ac   : > { %v6123_v46 = vadd.f32 %v6122_v26, %v6034_v60 }
 0x9ae   : > { %6162 = vst [vmem:[%s11464_s23 + $0xd8] sm:$0xff] %v6123_v46 }
 0x9b1   : > { %v6036_v15 = vpop.f32.mrf.mxu0  ;;  %v6125_v18 = vpop.f32.mrf.mxu1 }
 0x9b2   : > { %v6037_v51 = vadd.f32 %v11454_v37, %v6036_v15 }
 0x9b4   : > { %v6126_v54 = vadd.f32 %v6125_v18, %v6037_v51 }
 0x9b6   : > { %6163 = vst [vmem:[%s11464_s23 + $0xe0] sm:$0xff] %v6126_v54 }
 0x9b9   : > { %v6038_v61 = vpop.f32.mrf.mxu0  ;;  %v6127_v55 = vpop.f32.mrf.mxu1 }
 0x9ba   : > { %v6039_v43 = vadd.f32 %v11454_v37, %v6038_v61 }
 0x9bc   : > { %v6128_v25 = vadd.f32 %v6127_v55, %v6039_v43 }
 0x9be   : > { %6164 = vst [vmem:[%s11464_s23 + $0xe8] sm:$0xff] %v6128_v25 }
 0x9c1   : > { %v6041_v2 = vpop.f32.mrf.mxu0  ;;  %v6130_v24 = vpop.f32.mrf.mxu1 }
 0x9c2   : > { %v6042_v6 = vadd.f32 %v11454_v37, %v6041_v2 }
 0x9c4   : > { %v6131_v58 = vadd.f32 %v6130_v24, %v6042_v6 }
 0x9c6   : > { %6165 = vst [vmem:[%s11464_s23 + $0xf0] sm:$0xff] %v6131_v58 }
 0x9c9   : > { %v6043_v17 = vpop.f32.mrf.mxu0  ;;  %v6132_v9 = vpop.f32.mrf.mxu1 }
 0x9ca   : > { %v6044_v32 = vadd.f32 %v11454_v37, %v6043_v17 }
 0x9cc   : > { %v6133_v41 = vadd.f32 %v6132_v9, %v6044_v32 }
 0x9ce   : > { %6166 = vst [vmem:[%s11464_s23 + $0xf8] sm:$0xff] %v6133_v41 }
 0x9cf PF: > { %s30_s1 = sadd.s32 1, %s7524_s1  }
 0x9d0   : > { %p27_p4 = scmp.ge.s32.totalorder %s30_s1, 6  }
 0x9d2   :  { %29 = sbr.rel (!%p27_p4) target bundleno = 6 (0x6), region = 130 }

</bundles_post_ra>
